<compile_context>
chip_gen: v6e
topology: v6e:2x2x1
jax: 0.10.0
libtpu: 0.0.40
codegen_flags: <defaults>
</compile_context>

<pallas_src>
import math

import jax
import jax.numpy as jnp
import numpy as np
from jax import lax
from jax.experimental import pallas as pl
from jax.experimental.pallas import tpu as pltpu

_INV_SQRT2 = 1.0 / math.sqrt(2.0)


def _gelu_exact(x):
    # PyTorch nn.GELU() default is the exact erf formulation.
    return 0.5 * x * (1.0 + lax.erf(x * jnp.float32(_INV_SQRT2)))


def cs_attention_kernel(x_ref, w1bd_ref, wa_ref, wb_ref, ex_ref, taps_ref,
                        expand_ref, o_ref):
    B, H, WCin = x_ref.shape
    hidden, Cout = wa_ref.shape
    W = expand_ref.shape[0]
    WCout = W * Cout
    gw = W + 6                  # per-map padded group width in the packed conv layout
    Lc = 2 * gw                 # conv accumulator width: [avg group | max group]
    Lp = ex_ref.shape[1]        # packed conv-input width (Lc + 6 tail zeros)
    f32 = jnp.float32

    # ---- fc1 (1x1 conv): one lane-dense MXU matmul, stays in (w,c)-flat layout ----
    x2 = x_ref[...].reshape(B * H, WCin)                              # free reshape
    y2 = jnp.dot(x2, w1bd_ref[...], preferred_element_type=f32)      # (B*H, W*Cout)
    y3 = y2.reshape(B, H, WCout)

    # ---- ChannelAttention pooling (flat layout, VPU/XLU only) ----
    sum_h = jnp.sum(y3, axis=1)                                       # (B, W*Cout)
    max_h = jnp.max(y3, axis=1)

    def lane_fold(v, op):
        # Reduce the W lane-groups of size Cout down to (B, Cout) by halving.
        width = v.shape[-1]
        while width > Cout:
            half = width // 2
            v = op(v[:, :half], v[:, half:width])
            width = half
        return v

    avg_v = lane_fold(sum_h, jnp.add) * jnp.float32(1.0 / (H * W))    # (B, Cout)
    max_v = lane_fold(max_h, jnp.maximum)                             # (B, Cout)

    # ---- ChannelAttention MLP on the VPU (hidden units = lane reductions) ----
    pooled = jnp.concatenate([avg_v, max_v], axis=0)                  # (2B, Cout)
    wa_v = wa_ref[...]                                                # (hidden, Cout)
    wb_v = wb_ref[...]                                                # (hidden, W*Cout) pre-tiled
    mlp = jnp.zeros((2 * B, WCout), f32)
    for j in range(hidden):
        hj = jnp.sum(pooled * wa_v[j:j + 1, :], axis=-1, keepdims=True)   # (2B, 1)
        mlp = mlp + _gelu_exact(hj) * wb_v[j:j + 1, :]                    # broadcast-FMA
    ca_w = jax.nn.sigmoid(mlp[:B] + mlp[B:])          # (B, W*Cout), already channel-tiled
    ca3 = y3 * ca_w[:, None, :]                       # (B, H, W*Cout)

    # ---- Spatial maps (channel mean via matmul, channel max via lane-rotate fold) ----
    ca2 = ca3.reshape(B * H, WCout)
    m = ca2
    s = Cout // 2
    while s >= 1:
        # lane rotate-left by s (explicit concat -> unambiguous direction)
        m = jnp.maximum(m, jnp.concatenate([m[:, s:], m[:, :s]], axis=-1))
        s //= 2
    # m[:, w*Cout] now holds max over the Cout channels of group w (junk elsewhere).
    cat = jnp.concatenate([ca2, m], axis=-1)                          # (B*H, 2*W*Cout)
    # One matmul builds the zero-padded, lane-packed conv input rows:
    #   cols [3, 3+W)        = channel-mean map
    #   cols [gw+3, gw+3+W)  = channel-max  map
    rows = jnp.dot(cat, ex_ref[...], preferred_element_type=f32)      # (B*H, Lp)
    p3 = rows.reshape(B, H, Lp)
    zrow = jnp.zeros((B, 3, Lp), f32)
    P = jnp.concatenate([zrow, p3, zrow], axis=1)                     # (B, H+6, Lp)

    # ---- 7x7 "same" conv: VPU shift-and-accumulate, kx shifts hoisted ----
    taps_v = taps_ref[...]                                            # (49, Lc) loaded once
    n_acc = 4
    accs = [jnp.zeros((B, H, Lc), f32) for _ in range(n_acc)]
    t = 0
    for kx in range(7):
        pk = P[:, :, kx:kx + Lc]          # hoisted lane shift (7 total, reused 7x each)
        for ky in range(7):
            idx = ky * 7 + kx
            tv = taps_v[idx:idx + 1, :][:, None, :]                   # (1, 1, Lc)
            accs[t % n_acc] = accs[t % n_acc] + tv * pk[:, ky:ky + H, :]
            t += 1
    acc = (accs[0] + accs[1]) + (accs[2] + accs[3])                   # (B, H, Lc)
    logit = acc[:, :, 0:W] + acc[:, :, gw:gw + W]                     # avg + max contributions
    sa = jax.nn.sigmoid(logit)                                        # (B, H, W)

    # ---- final multiply in the flat store layout (sa expanded over channels) ----
    sa_rep = jnp.dot(sa.reshape(B * H, W), expand_ref[...],
                     preferred_element_type=f32)                      # (B*H, W*Cout)
    o_ref[...] = (y2 * sa_rep).reshape(B, H, WCout).astype(o_ref.dtype)


def _pick_block_n(n, max_block=8, min_steps=4):
    # >= min_steps grid steps when possible (v7x megacore + double buffering),
    # otherwise at least 2 steps; raise max_block on v5e/v6e if desired.
    cands = [d for d in range(1, min(n, max_block) + 1) if n % d == 0]
    good = [d for d in cands if n // d >= min_steps]
    if good:
        return max(good)
    multi = [d for d in cands if n // d >= 2]
    return max(multi) if multi else max(cands)


def _vmem_bytes_estimate(block_n, H, W, Cin, Cout):
    f = 4
    x_blk = block_n * H * W * Cin * f
    o_blk = block_n * H * W * Cout * f
    wgt = ((W * Cin) * (W * Cout) + (2 * W * Cout) * (2 * (W + 6) + 6)
           + W * (W * Cout) + 49 * 2 * (W + 6) + 4 * W * Cout) * f
    inter = 10 * block_n * H * W * Cout * f   # y, ca, maxemb, cat, P, accs, sa_rep, ...
    return 2 * (x_blk + o_blk + wgt) + inter


def cs_attention(x, w1, wa, wb, kconv_flat, *, block_n=None):
    """x: (N, H, W, Cin) float32. Returns (N, H, W, Cout) float32."""
    N, H, W, Cin = x.shape
    Cout = w1.shape[1]
    hidden = wa.shape[1]
    assert wb.shape == (hidden, Cout)
    assert kconv_flat.shape == (2 * 7 * 7,)
    assert (W & (W - 1)) == 0 and (Cout & (Cout - 1)) == 0, \
        "W and Cout must be powers of two (lane-fold reductions)"

    if block_n is None:
        block_n = _pick_block_n(N)
    assert N % block_n == 0, "block_n must divide the batch size"

    vmem_budget = 32 * 1024 * 1024
    est = _vmem_bytes_estimate(block_n, H, W, Cin, Cout)
    assert est < vmem_budget - 4 * 1024 * 1024, \
        f"block_n={block_n} needs ~{est} B of VMEM; lower block_n"

    WCin, WCout = W * Cin, W * Cout
    gw = W + 6
    Lp = 2 * gw + 6

    # Lane-dense I/O: fold W into the lane dim (free row-major relabel in HBM).
    x_flat = x.reshape(N, H, WCin)

    # fc1 as a block-diagonal weight so the matmul stays in the flat layout.
    w1bd = jnp.kron(jnp.eye(W, dtype=w1.dtype), w1)                   # (W*Cin, W*Cout)
    wa_t = wa.T                                                       # (hidden, Cout)
    wb_t = jnp.tile(wb, (1, W))                                       # (hidden, W*Cout)

    # Map-extraction matrix: mean over channels (1/Cout weights) into the avg
    # group, selection of the folded group-max lanes into the max group.
    ex_np = np.zeros((2 * WCout, Lp), np.float32)
    for w in range(W):
        ex_np[w * Cout:(w + 1) * Cout, 3 + w] = 1.0 / Cout
        ex_np[WCout + w * Cout, gw + 3 + w] = 1.0
    ex = jnp.asarray(ex_np)

    # sa channel-expansion matrix (0/1).
    expand = jnp.asarray(np.kron(np.eye(W, dtype=np.float32),
                                 np.ones((1, Cout), np.float32)))     # (W, W*Cout)

    # Packed tap table: row ky*7+kx = [avg tap]*gw ++ [max tap]*gw.
    k2 = kconv_flat.reshape(2, 49)
    taps = jnp.concatenate(
        [jnp.repeat(k2[0][:, None], gw, axis=1),
         jnp.repeat(k2[1][:, None], gw, axis=1)], axis=1)             # (49, 2*gw)

    out_flat = pl.pallas_call(
        cs_attention_kernel,
        out_shape=jax.ShapeDtypeStruct((N, H, WCout), jnp.float32),
        grid=(N // block_n,),
        in_specs=[
            pl.BlockSpec((block_n, H, WCin), lambda n: (n, 0, 0)),
            pl.BlockSpec((WCin, WCout), lambda n: (0, 0)),
            pl.BlockSpec((hidden, Cout), lambda n: (0, 0)),
            pl.BlockSpec((hidden, WCout), lambda n: (0, 0)),
            pl.BlockSpec((2 * WCout, Lp), lambda n: (0, 0)),
            pl.BlockSpec((49, 2 * gw), lambda n: (0, 0)),
            pl.BlockSpec((W, WCout), lambda n: (0, 0)),
        ],
        out_specs=pl.BlockSpec((block_n, H, WCout), lambda n: (n, 0, 0)),
        compiler_params=pltpu.CompilerParams(
            dimension_semantics=("parallel",),
            vmem_limit_bytes=vmem_budget,
        ),
    )(x_flat, w1bd, wa_t, wb_t, ex, taps, expand)

    return out_flat.reshape(N, H, W, Cout)


def cs_attention_reference(x, w1, wa, wb, kconv_flat):
    """Pure-JAX reference matching the PyTorch forward, channels-last layout."""
    y = jnp.einsum("nhwc,cd->nhwd", x, w1, precision=lax.Precision.HIGHEST)
    avg = jnp.mean(y, axis=(1, 2))
    mx = jnp.max(y, axis=(1, 2))

    def mlp(v):
        return jax.nn.gelu(v @ wa, approximate=False) @ wb

    ca_w = jax.nn.sigmoid(mlp(avg) + mlp(mx))                  # (N, Cout)
    ca = y * ca_w[:, None, None, :]
    avg_m = jnp.mean(ca, axis=-1)
    max_m = jnp.max(ca, axis=-1)
    stacked = jnp.stack([avg_m, max_m], axis=-1)               # (N, H, W, 2)
    w = jnp.transpose(kconv_flat.reshape(2, 7, 7), (1, 2, 0))[:, :, :, None]  # HWIO
    logit = lax.conv_general_dilated(
        stacked, w, (1, 1), "SAME",
        dimension_numbers=("NHWC", "HWIO", "NHWC"),
        precision=lax.Precision.HIGHEST,
    )[..., 0]
    sa_w = jax.nn.sigmoid(logit)
    return y * sa_w[..., None]


if __name__ == "__main__":
    # Small shapes consistent with the module: CSAttention(in_channel=16, out_channel=32);
    # the ChannelAttention bottleneck is out_channel // 16 = 2 (ratio 16, bias=False everywhere).
    # N=16 so the default block_n=4 gives a 4-step "parallel" grid (v7x megacore + pipelining).
    N, H, W = 16, 16, 16
    Cin, Cout = 16, 32
    hidden = Cout // 16

    key = jax.random.PRNGKey(0)
    k_x, k_w1, k_wa, k_wb, k_conv = jax.random.split(key, 5)

    x = jax.random.normal(k_x, (N, H, W, Cin), jnp.float32)
    w1 = jax.random.normal(k_w1, (Cin, Cout), jnp.float32) / jnp.sqrt(Cin)
    wa = jax.random.normal(k_wa, (Cout, hidden), jnp.float32) / jnp.sqrt(Cout)
    wb = jax.random.normal(k_wb, (hidden, Cout), jnp.float32) / jnp.sqrt(hidden)
    # Spatial conv weights, torch layout (out=1, in=2, 7, 7) flattened: index
    # = c * 49 + ky * 7 + kx, where c=0 -> avg channel, c=1 -> max channel.
    kconv_flat = jax.random.normal(k_conv, (2 * 7 * 7,), jnp.float32) / jnp.sqrt(98.0)

    out = cs_attention(x, w1, wa, wb, kconv_flat)
    out = jax.block_until_ready(out)

    ref = jax.block_until_ready(cs_attention_reference(x, w1, wa, wb, kconv_flat))
    assert out.shape == (N, H, W, Cout)
    assert jnp.allclose(out, ref, atol=3e-3, rtol=3e-3), (
        float(jnp.max(jnp.abs(out - ref)))
    )

    print("KERNEL_OK")
</pallas_src>

<mosaic_0001>
module attributes {stable_mosaic.version = 11 : i64} {
  func.func @cs_attention_kernel(%arg0: i32, %arg1: memref<4x16x256xf32, #tpu.memory_space<vmem>>, %arg2: memref<256x512xf32, #tpu.memory_space<vmem>>, %arg3: memref<2x32xf32, #tpu.memory_space<vmem>>, %arg4: memref<2x512xf32, #tpu.memory_space<vmem>>, %arg5: memref<1024x50xf32, #tpu.memory_space<vmem>>, %arg6: memref<49x44xf32, #tpu.memory_space<vmem>>, %arg7: memref<16x512xf32, #tpu.memory_space<vmem>>, %arg8: memref<4x16x512xf32, #tpu.memory_space<vmem>>) attributes {dimension_semantics = [#tpu.dimension_semantics<parallel>], iteration_bounds = array<i64: 4>, scalar_prefetch = 0 : i64, scratch_operands = 0 : i64, tpu.core_type = #tpu.core_type<tc>, window_params = [{transform_indices = @transform_0, window_bounds = array<i64: 4, 16, 256>}, {pipeline_mode = #tpu.pipeline_mode<synchronous>, transform_indices = @transform_1, window_bounds = array<i64: 256, 512>}, {pipeline_mode = #tpu.pipeline_mode<synchronous>, transform_indices = @transform_2, window_bounds = array<i64: 2, 32>}, {pipeline_mode = #tpu.pipeline_mode<synchronous>, transform_indices = @transform_3, window_bounds = array<i64: 2, 512>}, {pipeline_mode = #tpu.pipeline_mode<synchronous>, transform_indices = @transform_4, window_bounds = array<i64: 1024, 50>}, {pipeline_mode = #tpu.pipeline_mode<synchronous>, transform_indices = @transform_5, window_bounds = array<i64: 49, 44>}, {pipeline_mode = #tpu.pipeline_mode<synchronous>, transform_indices = @transform_6, window_bounds = array<i64: 16, 512>}, {transform_indices = @transform_7, window_bounds = array<i64: 4, 16, 512>}]} {
    %c0 = arith.constant 0 : index
    %c0_0 = arith.constant 0 : index
    %c0_1 = arith.constant 0 : index
    %0 = vector.load %arg1[%c0, %c0_0, %c0_1] : memref<4x16x256xf32, #tpu.memory_space<vmem>>, vector<4x16x256xf32>
    %1 = vector.shape_cast %0 : vector<4x16x256xf32> to vector<64x256xf32>
    %c0_2 = arith.constant 0 : index
    %c0_3 = arith.constant 0 : index
    %2 = vector.load %arg2[%c0_2, %c0_3] : memref<256x512xf32, #tpu.memory_space<vmem>>, vector<256x512xf32>
    %cst = arith.constant dense<0.000000e+00> : vector<64x512xf32>
    %3 = tpu.matmul %1, %2, %cst {dimension_numbers = #tpu.dot_dimension_numbers<[1], [0], [0], [1], [0, 0, 1, 1], [], []>} : vector<64x256xf32>, vector<256x512xf32>, vector<64x512xf32> -> vector<64x512xf32>
    %4 = vector.shape_cast %3 : vector<64x512xf32> to vector<4x16x512xf32>
    %cst_4 = arith.constant dense<0.000000e+00> : vector<4x512xf32>
    %5 = vector.multi_reduction <add>, %4, %cst_4 [1] : vector<4x16x512xf32> to vector<4x512xf32>
    %cst_5 = arith.constant dense<0xFF800000> : vector<4x512xf32>
    %6 = vector.multi_reduction <maximumf>, %4, %cst_5 [1] : vector<4x16x512xf32> to vector<4x512xf32>
    %7 = vector.extract_strided_slice %5 {offsets = [0, 0], sizes = [4, 256], strides = [1, 1]} : vector<4x512xf32> to vector<4x256xf32>
    %8 = vector.extract_strided_slice %5 {offsets = [0, 256], sizes = [4, 256], strides = [1, 1]} : vector<4x512xf32> to vector<4x256xf32>
    %9 = arith.addf %7, %8 : vector<4x256xf32>
    %10 = vector.extract_strided_slice %9 {offsets = [0, 0], sizes = [4, 128], strides = [1, 1]} : vector<4x256xf32> to vector<4x128xf32>
    %11 = vector.extract_strided_slice %9 {offsets = [0, 128], sizes = [4, 128], strides = [1, 1]} : vector<4x256xf32> to vector<4x128xf32>
    %12 = arith.addf %10, %11 : vector<4x128xf32>
    %13 = vector.extract_strided_slice %12 {offsets = [0, 0], sizes = [4, 64], strides = [1, 1]} : vector<4x128xf32> to vector<4x64xf32>
    %14 = vector.extract_strided_slice %12 {offsets = [0, 64], sizes = [4, 64], strides = [1, 1]} : vector<4x128xf32> to vector<4x64xf32>
    %15 = arith.addf %13, %14 : vector<4x64xf32>
    %16 = vector.extract_strided_slice %15 {offsets = [0, 0], sizes = [4, 32], strides = [1, 1]} : vector<4x64xf32> to vector<4x32xf32>
    %17 = vector.extract_strided_slice %15 {offsets = [0, 32], sizes = [4, 32], strides = [1, 1]} : vector<4x64xf32> to vector<4x32xf32>
    %18 = arith.addf %16, %17 : vector<4x32xf32>
    %cst_6 = arith.constant 3.906250e-03 : f32
    %19 = vector.broadcast %cst_6 : f32 to vector<4x32xf32>
    %20 = arith.mulf %18, %19 : vector<4x32xf32>
    %21 = vector.extract_strided_slice %6 {offsets = [0, 0], sizes = [4, 256], strides = [1, 1]} : vector<4x512xf32> to vector<4x256xf32>
    %22 = vector.extract_strided_slice %6 {offsets = [0, 256], sizes = [4, 256], strides = [1, 1]} : vector<4x512xf32> to vector<4x256xf32>
    %23 = arith.maximumf %21, %22 : vector<4x256xf32>
    %24 = vector.extract_strided_slice %23 {offsets = [0, 0], sizes = [4, 128], strides = [1, 1]} : vector<4x256xf32> to vector<4x128xf32>
    %25 = vector.extract_strided_slice %23 {offsets = [0, 128], sizes = [4, 128], strides = [1, 1]} : vector<4x256xf32> to vector<4x128xf32>
    %26 = arith.maximumf %24, %25 : vector<4x128xf32>
    %27 = vector.extract_strided_slice %26 {offsets = [0, 0], sizes = [4, 64], strides = [1, 1]} : vector<4x128xf32> to vector<4x64xf32>
    %28 = vector.extract_strided_slice %26 {offsets = [0, 64], sizes = [4, 64], strides = [1, 1]} : vector<4x128xf32> to vector<4x64xf32>
    %29 = arith.maximumf %27, %28 : vector<4x64xf32>
    %30 = vector.extract_strided_slice %29 {offsets = [0, 0], sizes = [4, 32], strides = [1, 1]} : vector<4x64xf32> to vector<4x32xf32>
    %31 = vector.extract_strided_slice %29 {offsets = [0, 32], sizes = [4, 32], strides = [1, 1]} : vector<4x64xf32> to vector<4x32xf32>
    %32 = arith.maximumf %30, %31 : vector<4x32xf32>
    %33 = tpu.concatenate %20, %32 in 0 : vector<4x32xf32>, vector<4x32xf32> -> vector<8x32xf32>
    %c0_7 = arith.constant 0 : index
    %c0_8 = arith.constant 0 : index
    %34 = vector.load %arg3[%c0_7, %c0_8] : memref<2x32xf32, #tpu.memory_space<vmem>>, vector<2x32xf32>
    %c0_9 = arith.constant 0 : index
    %c0_10 = arith.constant 0 : index
    %35 = vector.load %arg4[%c0_9, %c0_10] : memref<2x512xf32, #tpu.memory_space<vmem>>, vector<2x512xf32>
    %cst_11 = arith.constant 0.000000e+00 : f32
    %36 = vector.broadcast %cst_11 : f32 to vector<8x512xf32>
    %37 = vector.extract_strided_slice %34 {offsets = [0, 0], sizes = [1, 32], strides = [1, 1]} : vector<2x32xf32> to vector<1x32xf32>
    %38 = vector.broadcast %37 : vector<1x32xf32> to vector<8x32xf32>
    %39 = arith.mulf %33, %38 : vector<8x32xf32>
    %cst_12 = arith.constant dense<0.000000e+00> : vector<8xf32>
    %40 = vector.multi_reduction <add>, %39, %cst_12 [1] : vector<8x32xf32> to vector<8xf32>
    %41 = vector.shape_cast %40 : vector<8xf32> to vector<8x1xf32>
    %cst_13 = arith.constant 5.000000e-01 : f32
    %42 = vector.broadcast %cst_13 : f32 to vector<8x1xf32>
    %43 = arith.mulf %42, %41 : vector<8x1xf32>
    %cst_14 = arith.constant 0.707106769 : f32
    %44 = vector.broadcast %cst_14 : f32 to vector<8x1xf32>
    %45 = arith.mulf %41, %44 : vector<8x1xf32>
    %46 = math.erf %45 : vector<8x1xf32>
    %cst_15 = arith.constant 1.000000e+00 : f32
    %47 = vector.broadcast %cst_15 : f32 to vector<8x1xf32>
    %48 = arith.addf %47, %46 : vector<8x1xf32>
    %49 = arith.mulf %43, %48 : vector<8x1xf32>
    %50 = vector.extract_strided_slice %35 {offsets = [0, 0], sizes = [1, 512], strides = [1, 1]} : vector<2x512xf32> to vector<1x512xf32>
    %51 = vector.broadcast %49 : vector<8x1xf32> to vector<8x512xf32>
    %52 = vector.broadcast %50 : vector<1x512xf32> to vector<8x512xf32>
    %53 = arith.mulf %51, %52 : vector<8x512xf32>
    %54 = arith.addf %36, %53 : vector<8x512xf32>
    %55 = vector.extract_strided_slice %34 {offsets = [1, 0], sizes = [1, 32], strides = [1, 1]} : vector<2x32xf32> to vector<1x32xf32>
    %56 = vector.broadcast %55 : vector<1x32xf32> to vector<8x32xf32>
    %57 = arith.mulf %33, %56 : vector<8x32xf32>
    %cst_16 = arith.constant dense<0.000000e+00> : vector<8xf32>
    %58 = vector.multi_reduction <add>, %57, %cst_16 [1] : vector<8x32xf32> to vector<8xf32>
    %59 = vector.shape_cast %58 : vector<8xf32> to vector<8x1xf32>
    %cst_17 = arith.constant 5.000000e-01 : f32
    %60 = vector.broadcast %cst_17 : f32 to vector<8x1xf32>
    %61 = arith.mulf %60, %59 : vector<8x1xf32>
    %cst_18 = arith.constant 0.707106769 : f32
    %62 = vector.broadcast %cst_18 : f32 to vector<8x1xf32>
    %63 = arith.mulf %59, %62 : vector<8x1xf32>
    %64 = math.erf %63 : vector<8x1xf32>
    %cst_19 = arith.constant 1.000000e+00 : f32
    %65 = vector.broadcast %cst_19 : f32 to vector<8x1xf32>
    %66 = arith.addf %65, %64 : vector<8x1xf32>
    %67 = arith.mulf %61, %66 : vector<8x1xf32>
    %68 = vector.extract_strided_slice %35 {offsets = [1, 0], sizes = [1, 512], strides = [1, 1]} : vector<2x512xf32> to vector<1x512xf32>
    %69 = vector.broadcast %67 : vector<8x1xf32> to vector<8x512xf32>
    %70 = vector.broadcast %68 : vector<1x512xf32> to vector<8x512xf32>
    %71 = arith.mulf %69, %70 : vector<8x512xf32>
    %72 = arith.addf %54, %71 : vector<8x512xf32>
    %73 = vector.extract_strided_slice %72 {offsets = [0, 0], sizes = [4, 512], strides = [1, 1]} : vector<8x512xf32> to vector<4x512xf32>
    %74 = vector.extract_strided_slice %72 {offsets = [4, 0], sizes = [4, 512], strides = [1, 1]} : vector<8x512xf32> to vector<4x512xf32>
    %75 = arith.addf %73, %74 : vector<4x512xf32>
    %76 = arith.negf %75 : vector<4x512xf32>
    %77 = math.exp %76 : vector<4x512xf32>
    %cst_20 = arith.constant 1.000000e+00 : f32
    %78 = vector.broadcast %cst_20 : f32 to vector<4x512xf32>
    %79 = arith.addf %78, %77 : vector<4x512xf32>
    %80 = arith.divf %78, %79 : vector<4x512xf32>
    %81 = vector.shape_cast %80 : vector<4x512xf32> to vector<4x1x512xf32>
    %82 = vector.broadcast %81 : vector<4x1x512xf32> to vector<4x16x512xf32>
    %83 = arith.mulf %4, %82 : vector<4x16x512xf32>
    %84 = vector.shape_cast %83 : vector<4x16x512xf32> to vector<64x512xf32>
    %85 = vector.extract_strided_slice %84 {offsets = [0, 16], sizes = [64, 496], strides = [1, 1]} : vector<64x512xf32> to vector<64x496xf32>
    %86 = vector.extract_strided_slice %84 {offsets = [0, 0], sizes = [64, 16], strides = [1, 1]} : vector<64x512xf32> to vector<64x16xf32>
    %87 = tpu.concatenate %85, %86 in 1 : vector<64x496xf32>, vector<64x16xf32> -> vector<64x512xf32>
    %88 = arith.maximumf %84, %87 : vector<64x512xf32>
    %89 = vector.extract_strided_slice %88 {offsets = [0, 8], sizes = [64, 504], strides = [1, 1]} : vector<64x512xf32> to vector<64x504xf32>
    %90 = vector.extract_strided_slice %88 {offsets = [0, 0], sizes = [64, 8], strides = [1, 1]} : vector<64x512xf32> to vector<64x8xf32>
    %91 = tpu.concatenate %89, %90 in 1 : vector<64x504xf32>, vector<64x8xf32> -> vector<64x512xf32>
    %92 = arith.maximumf %88, %91 : vector<64x512xf32>
    %93 = vector.extract_strided_slice %92 {offsets = [0, 4], sizes = [64, 508], strides = [1, 1]} : vector<64x512xf32> to vector<64x508xf32>
    %94 = vector.extract_strided_slice %92 {offsets = [0, 0], sizes = [64, 4], strides = [1, 1]} : vector<64x512xf32> to vector<64x4xf32>
    %95 = tpu.concatenate %93, %94 in 1 : vector<64x508xf32>, vector<64x4xf32> -> vector<64x512xf32>
    %96 = arith.maximumf %92, %95 : vector<64x512xf32>
    %97 = vector.extract_strided_slice %96 {offsets = [0, 2], sizes = [64, 510], strides = [1, 1]} : vector<64x512xf32> to vector<64x510xf32>
    %98 = vector.extract_strided_slice %96 {offsets = [0, 0], sizes = [64, 2], strides = [1, 1]} : vector<64x512xf32> to vector<64x2xf32>
    %99 = tpu.concatenate %97, %98 in 1 : vector<64x510xf32>, vector<64x2xf32> -> vector<64x512xf32>
    %100 = arith.maximumf %96, %99 : vector<64x512xf32>
    %101 = vector.extract_strided_slice %100 {offsets = [0, 1], sizes = [64, 511], strides = [1, 1]} : vector<64x512xf32> to vector<64x511xf32>
    %102 = vector.extract_strided_slice %100 {offsets = [0, 0], sizes = [64, 1], strides = [1, 1]} : vector<64x512xf32> to vector<64x1xf32>
    %103 = tpu.concatenate %101, %102 in 1 : vector<64x511xf32>, vector<64x1xf32> -> vector<64x512xf32>
    %104 = arith.maximumf %100, %103 : vector<64x512xf32>
    %105 = tpu.concatenate %84, %104 in 1 : vector<64x512xf32>, vector<64x512xf32> -> vector<64x1024xf32>
    %c0_21 = arith.constant 0 : index
    %c0_22 = arith.constant 0 : index
    %106 = vector.load %arg5[%c0_21, %c0_22] : memref<1024x50xf32, #tpu.memory_space<vmem>>, vector<1024x50xf32>
    %cst_23 = arith.constant dense<0.000000e+00> : vector<64x50xf32>
    %107 = tpu.matmul %105, %106, %cst_23 {dimension_numbers = #tpu.dot_dimension_numbers<[1], [0], [0], [1], [0, 0, 1, 1], [], []>} : vector<64x1024xf32>, vector<1024x50xf32>, vector<64x50xf32> -> vector<64x50xf32>
    %108 = vector.shape_cast %107 : vector<64x50xf32> to vector<4x16x50xf32>
    %cst_24 = arith.constant 0.000000e+00 : f32
    %109 = vector.broadcast %cst_24 : f32 to vector<4x3x50xf32>
    %110 = tpu.concatenate %109, %108, %109 in 1 : vector<4x3x50xf32>, vector<4x16x50xf32>, vector<4x3x50xf32> -> vector<4x22x50xf32>
    %c0_25 = arith.constant 0 : index
    %c0_26 = arith.constant 0 : index
    %111 = vector.load %arg6[%c0_25, %c0_26] : memref<49x44xf32, #tpu.memory_space<vmem>>, vector<49x44xf32>
    %cst_27 = arith.constant 0.000000e+00 : f32
    %112 = vector.broadcast %cst_27 : f32 to vector<4x16x44xf32>
    %cst_28 = arith.constant 0.000000e+00 : f32
    %113 = vector.broadcast %cst_28 : f32 to vector<4x16x44xf32>
    %cst_29 = arith.constant 0.000000e+00 : f32
    %114 = vector.broadcast %cst_29 : f32 to vector<4x16x44xf32>
    %cst_30 = arith.constant 0.000000e+00 : f32
    %115 = vector.broadcast %cst_30 : f32 to vector<4x16x44xf32>
    %116 = vector.extract_strided_slice %110 {offsets = [0, 0, 0], sizes = [4, 22, 44], strides = [1, 1, 1]} : vector<4x22x50xf32> to vector<4x22x44xf32>
    %117 = vector.extract_strided_slice %111 {offsets = [0, 0], sizes = [1, 44], strides = [1, 1]} : vector<49x44xf32> to vector<1x44xf32>
    %118 = vector.shape_cast %117 : vector<1x44xf32> to vector<1x1x44xf32>
    %119 = vector.extract_strided_slice %116 {offsets = [0, 0, 0], sizes = [4, 16, 44], strides = [1, 1, 1]} : vector<4x22x44xf32> to vector<4x16x44xf32>
    %120 = vector.broadcast %118 : vector<1x1x44xf32> to vector<4x16x44xf32>
    %121 = arith.mulf %120, %119 : vector<4x16x44xf32>
    %122 = arith.addf %112, %121 : vector<4x16x44xf32>
    %123 = vector.extract_strided_slice %111 {offsets = [7, 0], sizes = [1, 44], strides = [1, 1]} : vector<49x44xf32> to vector<1x44xf32>
    %124 = vector.shape_cast %123 : vector<1x44xf32> to vector<1x1x44xf32>
    %125 = vector.extract_strided_slice %116 {offsets = [0, 1, 0], sizes = [4, 16, 44], strides = [1, 1, 1]} : vector<4x22x44xf32> to vector<4x16x44xf32>
    %126 = vector.broadcast %124 : vector<1x1x44xf32> to vector<4x16x44xf32>
    %127 = arith.mulf %126, %125 : vector<4x16x44xf32>
    %128 = arith.addf %113, %127 : vector<4x16x44xf32>
    %129 = vector.extract_strided_slice %111 {offsets = [14, 0], sizes = [1, 44], strides = [1, 1]} : vector<49x44xf32> to vector<1x44xf32>
    %130 = vector.shape_cast %129 : vector<1x44xf32> to vector<1x1x44xf32>
    %131 = vector.extract_strided_slice %116 {offsets = [0, 2, 0], sizes = [4, 16, 44], strides = [1, 1, 1]} : vector<4x22x44xf32> to vector<4x16x44xf32>
    %132 = vector.broadcast %130 : vector<1x1x44xf32> to vector<4x16x44xf32>
    %133 = arith.mulf %132, %131 : vector<4x16x44xf32>
    %134 = arith.addf %114, %133 : vector<4x16x44xf32>
    %135 = vector.extract_strided_slice %111 {offsets = [21, 0], sizes = [1, 44], strides = [1, 1]} : vector<49x44xf32> to vector<1x44xf32>
    %136 = vector.shape_cast %135 : vector<1x44xf32> to vector<1x1x44xf32>
    %137 = vector.extract_strided_slice %116 {offsets = [0, 3, 0], sizes = [4, 16, 44], strides = [1, 1, 1]} : vector<4x22x44xf32> to vector<4x16x44xf32>
    %138 = vector.broadcast %136 : vector<1x1x44xf32> to vector<4x16x44xf32>
    %139 = arith.mulf %138, %137 : vector<4x16x44xf32>
    %140 = arith.addf %115, %139 : vector<4x16x44xf32>
    %141 = vector.extract_strided_slice %111 {offsets = [28, 0], sizes = [1, 44], strides = [1, 1]} : vector<49x44xf32> to vector<1x44xf32>
    %142 = vector.shape_cast %141 : vector<1x44xf32> to vector<1x1x44xf32>
    %143 = vector.extract_strided_slice %116 {offsets = [0, 4, 0], sizes = [4, 16, 44], strides = [1, 1, 1]} : vector<4x22x44xf32> to vector<4x16x44xf32>
    %144 = vector.broadcast %142 : vector<1x1x44xf32> to vector<4x16x44xf32>
    %145 = arith.mulf %144, %143 : vector<4x16x44xf32>
    %146 = arith.addf %122, %145 : vector<4x16x44xf32>
    %147 = vector.extract_strided_slice %111 {offsets = [35, 0], sizes = [1, 44], strides = [1, 1]} : vector<49x44xf32> to vector<1x44xf32>
    %148 = vector.shape_cast %147 : vector<1x44xf32> to vector<1x1x44xf32>
    %149 = vector.extract_strided_slice %116 {offsets = [0, 5, 0], sizes = [4, 16, 44], strides = [1, 1, 1]} : vector<4x22x44xf32> to vector<4x16x44xf32>
    %150 = vector.broadcast %148 : vector<1x1x44xf32> to vector<4x16x44xf32>
    %151 = arith.mulf %150, %149 : vector<4x16x44xf32>
    %152 = arith.addf %128, %151 : vector<4x16x44xf32>
    %153 = vector.extract_strided_slice %111 {offsets = [42, 0], sizes = [1, 44], strides = [1, 1]} : vector<49x44xf32> to vector<1x44xf32>
    %154 = vector.shape_cast %153 : vector<1x44xf32> to vector<1x1x44xf32>
    %155 = vector.extract_strided_slice %116 {offsets = [0, 6, 0], sizes = [4, 16, 44], strides = [1, 1, 1]} : vector<4x22x44xf32> to vector<4x16x44xf32>
    %156 = vector.broadcast %154 : vector<1x1x44xf32> to vector<4x16x44xf32>
    %157 = arith.mulf %156, %155 : vector<4x16x44xf32>
    %158 = arith.addf %134, %157 : vector<4x16x44xf32>
    %159 = vector.extract_strided_slice %110 {offsets = [0, 0, 1], sizes = [4, 22, 44], strides = [1, 1, 1]} : vector<4x22x50xf32> to vector<4x22x44xf32>
    %160 = vector.extract_strided_slice %111 {offsets = [1, 0], sizes = [1, 44], strides = [1, 1]} : vector<49x44xf32> to vector<1x44xf32>
    %161 = vector.shape_cast %160 : vector<1x44xf32> to vector<1x1x44xf32>
    %162 = vector.extract_strided_slice %159 {offsets = [0, 0, 0], sizes = [4, 16, 44], strides = [1, 1, 1]} : vector<4x22x44xf32> to vector<4x16x44xf32>
    %163 = vector.broadcast %161 : vector<1x1x44xf32> to vector<4x16x44xf32>
    %164 = arith.mulf %163, %162 : vector<4x16x44xf32>
    %165 = arith.addf %140, %164 : vector<4x16x44xf32>
    %166 = vector.extract_strided_slice %111 {offsets = [8, 0], sizes = [1, 44], strides = [1, 1]} : vector<49x44xf32> to vector<1x44xf32>
    %167 = vector.shape_cast %166 : vector<1x44xf32> to vector<1x1x44xf32>
    %168 = vector.extract_strided_slice %159 {offsets = [0, 1, 0], sizes = [4, 16, 44], strides = [1, 1, 1]} : vector<4x22x44xf32> to vector<4x16x44xf32>
    %169 = vector.broadcast %167 : vector<1x1x44xf32> to vector<4x16x44xf32>
    %170 = arith.mulf %169, %168 : vector<4x16x44xf32>
    %171 = arith.addf %146, %170 : vector<4x16x44xf32>
    %172 = vector.extract_strided_slice %111 {offsets = [15, 0], sizes = [1, 44], strides = [1, 1]} : vector<49x44xf32> to vector<1x44xf32>
    %173 = vector.shape_cast %172 : vector<1x44xf32> to vector<1x1x44xf32>
    %174 = vector.extract_strided_slice %159 {offsets = [0, 2, 0], sizes = [4, 16, 44], strides = [1, 1, 1]} : vector<4x22x44xf32> to vector<4x16x44xf32>
    %175 = vector.broadcast %173 : vector<1x1x44xf32> to vector<4x16x44xf32>
    %176 = arith.mulf %175, %174 : vector<4x16x44xf32>
    %177 = arith.addf %152, %176 : vector<4x16x44xf32>
    %178 = vector.extract_strided_slice %111 {offsets = [22, 0], sizes = [1, 44], strides = [1, 1]} : vector<49x44xf32> to vector<1x44xf32>
    %179 = vector.shape_cast %178 : vector<1x44xf32> to vector<1x1x44xf32>
    %180 = vector.extract_strided_slice %159 {offsets = [0, 3, 0], sizes = [4, 16, 44], strides = [1, 1, 1]} : vector<4x22x44xf32> to vector<4x16x44xf32>
    %181 = vector.broadcast %179 : vector<1x1x44xf32> to vector<4x16x44xf32>
    %182 = arith.mulf %181, %180 : vector<4x16x44xf32>
    %183 = arith.addf %158, %182 : vector<4x16x44xf32>
    %184 = vector.extract_strided_slice %111 {offsets = [29, 0], sizes = [1, 44], strides = [1, 1]} : vector<49x44xf32> to vector<1x44xf32>
    %185 = vector.shape_cast %184 : vector<1x44xf32> to vector<1x1x44xf32>
    %186 = vector.extract_strided_slice %159 {offsets = [0, 4, 0], sizes = [4, 16, 44], strides = [1, 1, 1]} : vector<4x22x44xf32> to vector<4x16x44xf32>
    %187 = vector.broadcast %185 : vector<1x1x44xf32> to vector<4x16x44xf32>
    %188 = arith.mulf %187, %186 : vector<4x16x44xf32>
    %189 = arith.addf %165, %188 : vector<4x16x44xf32>
    %190 = vector.extract_strided_slice %111 {offsets = [36, 0], sizes = [1, 44], strides = [1, 1]} : vector<49x44xf32> to vector<1x44xf32>
    %191 = vector.shape_cast %190 : vector<1x44xf32> to vector<1x1x44xf32>
    %192 = vector.extract_strided_slice %159 {offsets = [0, 5, 0], sizes = [4, 16, 44], strides = [1, 1, 1]} : vector<4x22x44xf32> to vector<4x16x44xf32>
    %193 = vector.broadcast %191 : vector<1x1x44xf32> to vector<4x16x44xf32>
    %194 = arith.mulf %193, %192 : vector<4x16x44xf32>
    %195 = arith.addf %171, %194 : vector<4x16x44xf32>
    %196 = vector.extract_strided_slice %111 {offsets = [43, 0], sizes = [1, 44], strides = [1, 1]} : vector<49x44xf32> to vector<1x44xf32>
    %197 = vector.shape_cast %196 : vector<1x44xf32> to vector<1x1x44xf32>
    %198 = vector.extract_strided_slice %159 {offsets = [0, 6, 0], sizes = [4, 16, 44], strides = [1, 1, 1]} : vector<4x22x44xf32> to vector<4x16x44xf32>
    %199 = vector.broadcast %197 : vector<1x1x44xf32> to vector<4x16x44xf32>
    %200 = arith.mulf %199, %198 : vector<4x16x44xf32>
    %201 = arith.addf %177, %200 : vector<4x16x44xf32>
    %202 = vector.extract_strided_slice %110 {offsets = [0, 0, 2], sizes = [4, 22, 44], strides = [1, 1, 1]} : vector<4x22x50xf32> to vector<4x22x44xf32>
    %203 = vector.extract_strided_slice %111 {offsets = [2, 0], sizes = [1, 44], strides = [1, 1]} : vector<49x44xf32> to vector<1x44xf32>
    %204 = vector.shape_cast %203 : vector<1x44xf32> to vector<1x1x44xf32>
    %205 = vector.extract_strided_slice %202 {offsets = [0, 0, 0], sizes = [4, 16, 44], strides = [1, 1, 1]} : vector<4x22x44xf32> to vector<4x16x44xf32>
    %206 = vector.broadcast %204 : vector<1x1x44xf32> to vector<4x16x44xf32>
    %207 = arith.mulf %206, %205 : vector<4x16x44xf32>
    %208 = arith.addf %183, %207 : vector<4x16x44xf32>
    %209 = vector.extract_strided_slice %111 {offsets = [9, 0], sizes = [1, 44], strides = [1, 1]} : vector<49x44xf32> to vector<1x44xf32>
    %210 = vector.shape_cast %209 : vector<1x44xf32> to vector<1x1x44xf32>
    %211 = vector.extract_strided_slice %202 {offsets = [0, 1, 0], sizes = [4, 16, 44], strides = [1, 1, 1]} : vector<4x22x44xf32> to vector<4x16x44xf32>
    %212 = vector.broadcast %210 : vector<1x1x44xf32> to vector<4x16x44xf32>
    %213 = arith.mulf %212, %211 : vector<4x16x44xf32>
    %214 = arith.addf %189, %213 : vector<4x16x44xf32>
    %215 = vector.extract_strided_slice %111 {offsets = [16, 0], sizes = [1, 44], strides = [1, 1]} : vector<49x44xf32> to vector<1x44xf32>
    %216 = vector.shape_cast %215 : vector<1x44xf32> to vector<1x1x44xf32>
    %217 = vector.extract_strided_slice %202 {offsets = [0, 2, 0], sizes = [4, 16, 44], strides = [1, 1, 1]} : vector<4x22x44xf32> to vector<4x16x44xf32>
    %218 = vector.broadcast %216 : vector<1x1x44xf32> to vector<4x16x44xf32>
    %219 = arith.mulf %218, %217 : vector<4x16x44xf32>
    %220 = arith.addf %195, %219 : vector<4x16x44xf32>
    %221 = vector.extract_strided_slice %111 {offsets = [23, 0], sizes = [1, 44], strides = [1, 1]} : vector<49x44xf32> to vector<1x44xf32>
    %222 = vector.shape_cast %221 : vector<1x44xf32> to vector<1x1x44xf32>
    %223 = vector.extract_strided_slice %202 {offsets = [0, 3, 0], sizes = [4, 16, 44], strides = [1, 1, 1]} : vector<4x22x44xf32> to vector<4x16x44xf32>
    %224 = vector.broadcast %222 : vector<1x1x44xf32> to vector<4x16x44xf32>
    %225 = arith.mulf %224, %223 : vector<4x16x44xf32>
    %226 = arith.addf %201, %225 : vector<4x16x44xf32>
    %227 = vector.extract_strided_slice %111 {offsets = [30, 0], sizes = [1, 44], strides = [1, 1]} : vector<49x44xf32> to vector<1x44xf32>
    %228 = vector.shape_cast %227 : vector<1x44xf32> to vector<1x1x44xf32>
    %229 = vector.extract_strided_slice %202 {offsets = [0, 4, 0], sizes = [4, 16, 44], strides = [1, 1, 1]} : vector<4x22x44xf32> to vector<4x16x44xf32>
    %230 = vector.broadcast %228 : vector<1x1x44xf32> to vector<4x16x44xf32>
    %231 = arith.mulf %230, %229 : vector<4x16x44xf32>
    %232 = arith.addf %208, %231 : vector<4x16x44xf32>
    %233 = vector.extract_strided_slice %111 {offsets = [37, 0], sizes = [1, 44], strides = [1, 1]} : vector<49x44xf32> to vector<1x44xf32>
    %234 = vector.shape_cast %233 : vector<1x44xf32> to vector<1x1x44xf32>
    %235 = vector.extract_strided_slice %202 {offsets = [0, 5, 0], sizes = [4, 16, 44], strides = [1, 1, 1]} : vector<4x22x44xf32> to vector<4x16x44xf32>
    %236 = vector.broadcast %234 : vector<1x1x44xf32> to vector<4x16x44xf32>
    %237 = arith.mulf %236, %235 : vector<4x16x44xf32>
    %238 = arith.addf %214, %237 : vector<4x16x44xf32>
    %239 = vector.extract_strided_slice %111 {offsets = [44, 0], sizes = [1, 44], strides = [1, 1]} : vector<49x44xf32> to vector<1x44xf32>
    %240 = vector.shape_cast %239 : vector<1x44xf32> to vector<1x1x44xf32>
    %241 = vector.extract_strided_slice %202 {offsets = [0, 6, 0], sizes = [4, 16, 44], strides = [1, 1, 1]} : vector<4x22x44xf32> to vector<4x16x44xf32>
    %242 = vector.broadcast %240 : vector<1x1x44xf32> to vector<4x16x44xf32>
    %243 = arith.mulf %242, %241 : vector<4x16x44xf32>
    %244 = arith.addf %220, %243 : vector<4x16x44xf32>
    %245 = vector.extract_strided_slice %110 {offsets = [0, 0, 3], sizes = [4, 22, 44], strides = [1, 1, 1]} : vector<4x22x50xf32> to vector<4x22x44xf32>
    %246 = vector.extract_strided_slice %111 {offsets = [3, 0], sizes = [1, 44], strides = [1, 1]} : vector<49x44xf32> to vector<1x44xf32>
    %247 = vector.shape_cast %246 : vector<1x44xf32> to vector<1x1x44xf32>
    %248 = vector.extract_strided_slice %245 {offsets = [0, 0, 0], sizes = [4, 16, 44], strides = [1, 1, 1]} : vector<4x22x44xf32> to vector<4x16x44xf32>
    %249 = vector.broadcast %247 : vector<1x1x44xf32> to vector<4x16x44xf32>
    %250 = arith.mulf %249, %248 : vector<4x16x44xf32>
    %251 = arith.addf %226, %250 : vector<4x16x44xf32>
    %252 = vector.extract_strided_slice %111 {offsets = [10, 0], sizes = [1, 44], strides = [1, 1]} : vector<49x44xf32> to vector<1x44xf32>
    %253 = vector.shape_cast %252 : vector<1x44xf32> to vector<1x1x44xf32>
    %254 = vector.extract_strided_slice %245 {offsets = [0, 1, 0], sizes = [4, 16, 44], strides = [1, 1, 1]} : vector<4x22x44xf32> to vector<4x16x44xf32>
    %255 = vector.broadcast %253 : vector<1x1x44xf32> to vector<4x16x44xf32>
    %256 = arith.mulf %255, %254 : vector<4x16x44xf32>
    %257 = arith.addf %232, %256 : vector<4x16x44xf32>
    %258 = vector.extract_strided_slice %111 {offsets = [17, 0], sizes = [1, 44], strides = [1, 1]} : vector<49x44xf32> to vector<1x44xf32>
    %259 = vector.shape_cast %258 : vector<1x44xf32> to vector<1x1x44xf32>
    %260 = vector.extract_strided_slice %245 {offsets = [0, 2, 0], sizes = [4, 16, 44], strides = [1, 1, 1]} : vector<4x22x44xf32> to vector<4x16x44xf32>
    %261 = vector.broadcast %259 : vector<1x1x44xf32> to vector<4x16x44xf32>
    %262 = arith.mulf %261, %260 : vector<4x16x44xf32>
    %263 = arith.addf %238, %262 : vector<4x16x44xf32>
    %264 = vector.extract_strided_slice %111 {offsets = [24, 0], sizes = [1, 44], strides = [1, 1]} : vector<49x44xf32> to vector<1x44xf32>
    %265 = vector.shape_cast %264 : vector<1x44xf32> to vector<1x1x44xf32>
    %266 = vector.extract_strided_slice %245 {offsets = [0, 3, 0], sizes = [4, 16, 44], strides = [1, 1, 1]} : vector<4x22x44xf32> to vector<4x16x44xf32>
    %267 = vector.broadcast %265 : vector<1x1x44xf32> to vector<4x16x44xf32>
    %268 = arith.mulf %267, %266 : vector<4x16x44xf32>
    %269 = arith.addf %244, %268 : vector<4x16x44xf32>
    %270 = vector.extract_strided_slice %111 {offsets = [31, 0], sizes = [1, 44], strides = [1, 1]} : vector<49x44xf32> to vector<1x44xf32>
    %271 = vector.shape_cast %270 : vector<1x44xf32> to vector<1x1x44xf32>
    %272 = vector.extract_strided_slice %245 {offsets = [0, 4, 0], sizes = [4, 16, 44], strides = [1, 1, 1]} : vector<4x22x44xf32> to vector<4x16x44xf32>
    %273 = vector.broadcast %271 : vector<1x1x44xf32> to vector<4x16x44xf32>
    %274 = arith.mulf %273, %272 : vector<4x16x44xf32>
    %275 = arith.addf %251, %274 : vector<4x16x44xf32>
    %276 = vector.extract_strided_slice %111 {offsets = [38, 0], sizes = [1, 44], strides = [1, 1]} : vector<49x44xf32> to vector<1x44xf32>
    %277 = vector.shape_cast %276 : vector<1x44xf32> to vector<1x1x44xf32>
    %278 = vector.extract_strided_slice %245 {offsets = [0, 5, 0], sizes = [4, 16, 44], strides = [1, 1, 1]} : vector<4x22x44xf32> to vector<4x16x44xf32>
    %279 = vector.broadcast %277 : vector<1x1x44xf32> to vector<4x16x44xf32>
    %280 = arith.mulf %279, %278 : vector<4x16x44xf32>
    %281 = arith.addf %257, %280 : vector<4x16x44xf32>
    %282 = vector.extract_strided_slice %111 {offsets = [45, 0], sizes = [1, 44], strides = [1, 1]} : vector<49x44xf32> to vector<1x44xf32>
    %283 = vector.shape_cast %282 : vector<1x44xf32> to vector<1x1x44xf32>
    %284 = vector.extract_strided_slice %245 {offsets = [0, 6, 0], sizes = [4, 16, 44], strides = [1, 1, 1]} : vector<4x22x44xf32> to vector<4x16x44xf32>
    %285 = vector.broadcast %283 : vector<1x1x44xf32> to vector<4x16x44xf32>
    %286 = arith.mulf %285, %284 : vector<4x16x44xf32>
    %287 = arith.addf %263, %286 : vector<4x16x44xf32>
    %288 = vector.extract_strided_slice %110 {offsets = [0, 0, 4], sizes = [4, 22, 44], strides = [1, 1, 1]} : vector<4x22x50xf32> to vector<4x22x44xf32>
    %289 = vector.extract_strided_slice %111 {offsets = [4, 0], sizes = [1, 44], strides = [1, 1]} : vector<49x44xf32> to vector<1x44xf32>
    %290 = vector.shape_cast %289 : vector<1x44xf32> to vector<1x1x44xf32>
    %291 = vector.extract_strided_slice %288 {offsets = [0, 0, 0], sizes = [4, 16, 44], strides = [1, 1, 1]} : vector<4x22x44xf32> to vector<4x16x44xf32>
    %292 = vector.broadcast %290 : vector<1x1x44xf32> to vector<4x16x44xf32>
    %293 = arith.mulf %292, %291 : vector<4x16x44xf32>
    %294 = arith.addf %269, %293 : vector<4x16x44xf32>
    %295 = vector.extract_strided_slice %111 {offsets = [11, 0], sizes = [1, 44], strides = [1, 1]} : vector<49x44xf32> to vector<1x44xf32>
    %296 = vector.shape_cast %295 : vector<1x44xf32> to vector<1x1x44xf32>
    %297 = vector.extract_strided_slice %288 {offsets = [0, 1, 0], sizes = [4, 16, 44], strides = [1, 1, 1]} : vector<4x22x44xf32> to vector<4x16x44xf32>
    %298 = vector.broadcast %296 : vector<1x1x44xf32> to vector<4x16x44xf32>
    %299 = arith.mulf %298, %297 : vector<4x16x44xf32>
    %300 = arith.addf %275, %299 : vector<4x16x44xf32>
    %301 = vector.extract_strided_slice %111 {offsets = [18, 0], sizes = [1, 44], strides = [1, 1]} : vector<49x44xf32> to vector<1x44xf32>
    %302 = vector.shape_cast %301 : vector<1x44xf32> to vector<1x1x44xf32>
    %303 = vector.extract_strided_slice %288 {offsets = [0, 2, 0], sizes = [4, 16, 44], strides = [1, 1, 1]} : vector<4x22x44xf32> to vector<4x16x44xf32>
    %304 = vector.broadcast %302 : vector<1x1x44xf32> to vector<4x16x44xf32>
    %305 = arith.mulf %304, %303 : vector<4x16x44xf32>
    %306 = arith.addf %281, %305 : vector<4x16x44xf32>
    %307 = vector.extract_strided_slice %111 {offsets = [25, 0], sizes = [1, 44], strides = [1, 1]} : vector<49x44xf32> to vector<1x44xf32>
    %308 = vector.shape_cast %307 : vector<1x44xf32> to vector<1x1x44xf32>
    %309 = vector.extract_strided_slice %288 {offsets = [0, 3, 0], sizes = [4, 16, 44], strides = [1, 1, 1]} : vector<4x22x44xf32> to vector<4x16x44xf32>
    %310 = vector.broadcast %308 : vector<1x1x44xf32> to vector<4x16x44xf32>
    %311 = arith.mulf %310, %309 : vector<4x16x44xf32>
    %312 = arith.addf %287, %311 : vector<4x16x44xf32>
    %313 = vector.extract_strided_slice %111 {offsets = [32, 0], sizes = [1, 44], strides = [1, 1]} : vector<49x44xf32> to vector<1x44xf32>
    %314 = vector.shape_cast %313 : vector<1x44xf32> to vector<1x1x44xf32>
    %315 = vector.extract_strided_slice %288 {offsets = [0, 4, 0], sizes = [4, 16, 44], strides = [1, 1, 1]} : vector<4x22x44xf32> to vector<4x16x44xf32>
    %316 = vector.broadcast %314 : vector<1x1x44xf32> to vector<4x16x44xf32>
    %317 = arith.mulf %316, %315 : vector<4x16x44xf32>
    %318 = arith.addf %294, %317 : vector<4x16x44xf32>
    %319 = vector.extract_strided_slice %111 {offsets = [39, 0], sizes = [1, 44], strides = [1, 1]} : vector<49x44xf32> to vector<1x44xf32>
    %320 = vector.shape_cast %319 : vector<1x44xf32> to vector<1x1x44xf32>
    %321 = vector.extract_strided_slice %288 {offsets = [0, 5, 0], sizes = [4, 16, 44], strides = [1, 1, 1]} : vector<4x22x44xf32> to vector<4x16x44xf32>
    %322 = vector.broadcast %320 : vector<1x1x44xf32> to vector<4x16x44xf32>
    %323 = arith.mulf %322, %321 : vector<4x16x44xf32>
    %324 = arith.addf %300, %323 : vector<4x16x44xf32>
    %325 = vector.extract_strided_slice %111 {offsets = [46, 0], sizes = [1, 44], strides = [1, 1]} : vector<49x44xf32> to vector<1x44xf32>
    %326 = vector.shape_cast %325 : vector<1x44xf32> to vector<1x1x44xf32>
    %327 = vector.extract_strided_slice %288 {offsets = [0, 6, 0], sizes = [4, 16, 44], strides = [1, 1, 1]} : vector<4x22x44xf32> to vector<4x16x44xf32>
    %328 = vector.broadcast %326 : vector<1x1x44xf32> to vector<4x16x44xf32>
    %329 = arith.mulf %328, %327 : vector<4x16x44xf32>
    %330 = arith.addf %306, %329 : vector<4x16x44xf32>
    %331 = vector.extract_strided_slice %110 {offsets = [0, 0, 5], sizes = [4, 22, 44], strides = [1, 1, 1]} : vector<4x22x50xf32> to vector<4x22x44xf32>
    %332 = vector.extract_strided_slice %111 {offsets = [5, 0], sizes = [1, 44], strides = [1, 1]} : vector<49x44xf32> to vector<1x44xf32>
    %333 = vector.shape_cast %332 : vector<1x44xf32> to vector<1x1x44xf32>
    %334 = vector.extract_strided_slice %331 {offsets = [0, 0, 0], sizes = [4, 16, 44], strides = [1, 1, 1]} : vector<4x22x44xf32> to vector<4x16x44xf32>
    %335 = vector.broadcast %333 : vector<1x1x44xf32> to vector<4x16x44xf32>
    %336 = arith.mulf %335, %334 : vector<4x16x44xf32>
    %337 = arith.addf %312, %336 : vector<4x16x44xf32>
    %338 = vector.extract_strided_slice %111 {offsets = [12, 0], sizes = [1, 44], strides = [1, 1]} : vector<49x44xf32> to vector<1x44xf32>
    %339 = vector.shape_cast %338 : vector<1x44xf32> to vector<1x1x44xf32>
    %340 = vector.extract_strided_slice %331 {offsets = [0, 1, 0], sizes = [4, 16, 44], strides = [1, 1, 1]} : vector<4x22x44xf32> to vector<4x16x44xf32>
    %341 = vector.broadcast %339 : vector<1x1x44xf32> to vector<4x16x44xf32>
    %342 = arith.mulf %341, %340 : vector<4x16x44xf32>
    %343 = arith.addf %318, %342 : vector<4x16x44xf32>
    %344 = vector.extract_strided_slice %111 {offsets = [19, 0], sizes = [1, 44], strides = [1, 1]} : vector<49x44xf32> to vector<1x44xf32>
    %345 = vector.shape_cast %344 : vector<1x44xf32> to vector<1x1x44xf32>
    %346 = vector.extract_strided_slice %331 {offsets = [0, 2, 0], sizes = [4, 16, 44], strides = [1, 1, 1]} : vector<4x22x44xf32> to vector<4x16x44xf32>
    %347 = vector.broadcast %345 : vector<1x1x44xf32> to vector<4x16x44xf32>
    %348 = arith.mulf %347, %346 : vector<4x16x44xf32>
    %349 = arith.addf %324, %348 : vector<4x16x44xf32>
    %350 = vector.extract_strided_slice %111 {offsets = [26, 0], sizes = [1, 44], strides = [1, 1]} : vector<49x44xf32> to vector<1x44xf32>
    %351 = vector.shape_cast %350 : vector<1x44xf32> to vector<1x1x44xf32>
    %352 = vector.extract_strided_slice %331 {offsets = [0, 3, 0], sizes = [4, 16, 44], strides = [1, 1, 1]} : vector<4x22x44xf32> to vector<4x16x44xf32>
    %353 = vector.broadcast %351 : vector<1x1x44xf32> to vector<4x16x44xf32>
    %354 = arith.mulf %353, %352 : vector<4x16x44xf32>
    %355 = arith.addf %330, %354 : vector<4x16x44xf32>
    %356 = vector.extract_strided_slice %111 {offsets = [33, 0], sizes = [1, 44], strides = [1, 1]} : vector<49x44xf32> to vector<1x44xf32>
    %357 = vector.shape_cast %356 : vector<1x44xf32> to vector<1x1x44xf32>
    %358 = vector.extract_strided_slice %331 {offsets = [0, 4, 0], sizes = [4, 16, 44], strides = [1, 1, 1]} : vector<4x22x44xf32> to vector<4x16x44xf32>
    %359 = vector.broadcast %357 : vector<1x1x44xf32> to vector<4x16x44xf32>
    %360 = arith.mulf %359, %358 : vector<4x16x44xf32>
    %361 = arith.addf %337, %360 : vector<4x16x44xf32>
    %362 = vector.extract_strided_slice %111 {offsets = [40, 0], sizes = [1, 44], strides = [1, 1]} : vector<49x44xf32> to vector<1x44xf32>
    %363 = vector.shape_cast %362 : vector<1x44xf32> to vector<1x1x44xf32>
    %364 = vector.extract_strided_slice %331 {offsets = [0, 5, 0], sizes = [4, 16, 44], strides = [1, 1, 1]} : vector<4x22x44xf32> to vector<4x16x44xf32>
    %365 = vector.broadcast %363 : vector<1x1x44xf32> to vector<4x16x44xf32>
    %366 = arith.mulf %365, %364 : vector<4x16x44xf32>
    %367 = arith.addf %343, %366 : vector<4x16x44xf32>
    %368 = vector.extract_strided_slice %111 {offsets = [47, 0], sizes = [1, 44], strides = [1, 1]} : vector<49x44xf32> to vector<1x44xf32>
    %369 = vector.shape_cast %368 : vector<1x44xf32> to vector<1x1x44xf32>
    %370 = vector.extract_strided_slice %331 {offsets = [0, 6, 0], sizes = [4, 16, 44], strides = [1, 1, 1]} : vector<4x22x44xf32> to vector<4x16x44xf32>
    %371 = vector.broadcast %369 : vector<1x1x44xf32> to vector<4x16x44xf32>
    %372 = arith.mulf %371, %370 : vector<4x16x44xf32>
    %373 = arith.addf %349, %372 : vector<4x16x44xf32>
    %374 = vector.extract_strided_slice %110 {offsets = [0, 0, 6], sizes = [4, 22, 44], strides = [1, 1, 1]} : vector<4x22x50xf32> to vector<4x22x44xf32>
    %375 = vector.extract_strided_slice %111 {offsets = [6, 0], sizes = [1, 44], strides = [1, 1]} : vector<49x44xf32> to vector<1x44xf32>
    %376 = vector.shape_cast %375 : vector<1x44xf32> to vector<1x1x44xf32>
    %377 = vector.extract_strided_slice %374 {offsets = [0, 0, 0], sizes = [4, 16, 44], strides = [1, 1, 1]} : vector<4x22x44xf32> to vector<4x16x44xf32>
    %378 = vector.broadcast %376 : vector<1x1x44xf32> to vector<4x16x44xf32>
    %379 = arith.mulf %378, %377 : vector<4x16x44xf32>
    %380 = arith.addf %355, %379 : vector<4x16x44xf32>
    %381 = vector.extract_strided_slice %111 {offsets = [13, 0], sizes = [1, 44], strides = [1, 1]} : vector<49x44xf32> to vector<1x44xf32>
    %382 = vector.shape_cast %381 : vector<1x44xf32> to vector<1x1x44xf32>
    %383 = vector.extract_strided_slice %374 {offsets = [0, 1, 0], sizes = [4, 16, 44], strides = [1, 1, 1]} : vector<4x22x44xf32> to vector<4x16x44xf32>
    %384 = vector.broadcast %382 : vector<1x1x44xf32> to vector<4x16x44xf32>
    %385 = arith.mulf %384, %383 : vector<4x16x44xf32>
    %386 = arith.addf %361, %385 : vector<4x16x44xf32>
    %387 = vector.extract_strided_slice %111 {offsets = [20, 0], sizes = [1, 44], strides = [1, 1]} : vector<49x44xf32> to vector<1x44xf32>
    %388 = vector.shape_cast %387 : vector<1x44xf32> to vector<1x1x44xf32>
    %389 = vector.extract_strided_slice %374 {offsets = [0, 2, 0], sizes = [4, 16, 44], strides = [1, 1, 1]} : vector<4x22x44xf32> to vector<4x16x44xf32>
    %390 = vector.broadcast %388 : vector<1x1x44xf32> to vector<4x16x44xf32>
    %391 = arith.mulf %390, %389 : vector<4x16x44xf32>
    %392 = arith.addf %367, %391 : vector<4x16x44xf32>
    %393 = vector.extract_strided_slice %111 {offsets = [27, 0], sizes = [1, 44], strides = [1, 1]} : vector<49x44xf32> to vector<1x44xf32>
    %394 = vector.shape_cast %393 : vector<1x44xf32> to vector<1x1x44xf32>
    %395 = vector.extract_strided_slice %374 {offsets = [0, 3, 0], sizes = [4, 16, 44], strides = [1, 1, 1]} : vector<4x22x44xf32> to vector<4x16x44xf32>
    %396 = vector.broadcast %394 : vector<1x1x44xf32> to vector<4x16x44xf32>
    %397 = arith.mulf %396, %395 : vector<4x16x44xf32>
    %398 = arith.addf %373, %397 : vector<4x16x44xf32>
    %399 = vector.extract_strided_slice %111 {offsets = [34, 0], sizes = [1, 44], strides = [1, 1]} : vector<49x44xf32> to vector<1x44xf32>
    %400 = vector.shape_cast %399 : vector<1x44xf32> to vector<1x1x44xf32>
    %401 = vector.extract_strided_slice %374 {offsets = [0, 4, 0], sizes = [4, 16, 44], strides = [1, 1, 1]} : vector<4x22x44xf32> to vector<4x16x44xf32>
    %402 = vector.broadcast %400 : vector<1x1x44xf32> to vector<4x16x44xf32>
    %403 = arith.mulf %402, %401 : vector<4x16x44xf32>
    %404 = arith.addf %380, %403 : vector<4x16x44xf32>
    %405 = vector.extract_strided_slice %111 {offsets = [41, 0], sizes = [1, 44], strides = [1, 1]} : vector<49x44xf32> to vector<1x44xf32>
    %406 = vector.shape_cast %405 : vector<1x44xf32> to vector<1x1x44xf32>
    %407 = vector.extract_strided_slice %374 {offsets = [0, 5, 0], sizes = [4, 16, 44], strides = [1, 1, 1]} : vector<4x22x44xf32> to vector<4x16x44xf32>
    %408 = vector.broadcast %406 : vector<1x1x44xf32> to vector<4x16x44xf32>
    %409 = arith.mulf %408, %407 : vector<4x16x44xf32>
    %410 = arith.addf %386, %409 : vector<4x16x44xf32>
    %411 = vector.extract_strided_slice %111 {offsets = [48, 0], sizes = [1, 44], strides = [1, 1]} : vector<49x44xf32> to vector<1x44xf32>
    %412 = vector.shape_cast %411 : vector<1x44xf32> to vector<1x1x44xf32>
    %413 = vector.extract_strided_slice %374 {offsets = [0, 6, 0], sizes = [4, 16, 44], strides = [1, 1, 1]} : vector<4x22x44xf32> to vector<4x16x44xf32>
    %414 = vector.broadcast %412 : vector<1x1x44xf32> to vector<4x16x44xf32>
    %415 = arith.mulf %414, %413 : vector<4x16x44xf32>
    %416 = arith.addf %392, %415 : vector<4x16x44xf32>
    %417 = arith.addf %416, %398 : vector<4x16x44xf32>
    %418 = arith.addf %404, %410 : vector<4x16x44xf32>
    %419 = arith.addf %417, %418 : vector<4x16x44xf32>
    %420 = vector.extract_strided_slice %419 {offsets = [0, 0, 0], sizes = [4, 16, 16], strides = [1, 1, 1]} : vector<4x16x44xf32> to vector<4x16x16xf32>
    %421 = vector.extract_strided_slice %419 {offsets = [0, 0, 22], sizes = [4, 16, 16], strides = [1, 1, 1]} : vector<4x16x44xf32> to vector<4x16x16xf32>
    %422 = arith.addf %420, %421 : vector<4x16x16xf32>
    %423 = arith.negf %422 : vector<4x16x16xf32>
    %424 = math.exp %423 : vector<4x16x16xf32>
    %cst_31 = arith.constant 1.000000e+00 : f32
    %425 = vector.broadcast %cst_31 : f32 to vector<4x16x16xf32>
    %426 = arith.addf %425, %424 : vector<4x16x16xf32>
    %427 = arith.divf %425, %426 : vector<4x16x16xf32>
    %428 = vector.shape_cast %427 : vector<4x16x16xf32> to vector<64x16xf32>
    %c0_32 = arith.constant 0 : index
    %c0_33 = arith.constant 0 : index
    %429 = vector.load %arg7[%c0_32, %c0_33] : memref<16x512xf32, #tpu.memory_space<vmem>>, vector<16x512xf32>
    %cst_34 = arith.constant dense<0.000000e+00> : vector<64x512xf32>
    %430 = tpu.matmul %428, %429, %cst_34 {dimension_numbers = #tpu.dot_dimension_numbers<[1], [0], [0], [1], [0, 0, 1, 1], [], []>} : vector<64x16xf32>, vector<16x512xf32>, vector<64x512xf32> -> vector<64x512xf32>
    %431 = arith.mulf %3, %430 : vector<64x512xf32>
    %432 = vector.shape_cast %431 : vector<64x512xf32> to vector<4x16x512xf32>
    %c0_35 = arith.constant 0 : index
    %c0_36 = arith.constant 0 : index
    %c0_37 = arith.constant 0 : index
    %433 = vector.load %arg8[%c0_35, %c0_36, %c0_37] : memref<4x16x512xf32, #tpu.memory_space<vmem>>, vector<4x16x512xf32>
    tpu.vector_store %arg8[%c0_35, %c0_36, %c0_37], %432 {strides = array<i32>} : memref<4x16x512xf32, #tpu.memory_space<vmem>>, vector<4x16x512xf32>,
    return
  }
  func.func @transform_0(%arg0: i32) -> (i32, i32, i32) {
    %c0_i32 = arith.constant 0 : i32
    %c0_i32_0 = arith.constant 0 : i32
    %c0_i32_1 = arith.constant 0 : i32
    return %arg0, %c0_i32, %c0_i32_0 : i32, i32, i32
  }
  func.func @transform_1(%arg0: i32) -> (i32, i32) {
    %c0_i32 = arith.constant 0 : i32
    %c0_i32_0 = arith.constant 0 : i32
    %c0_i32_1 = arith.constant 0 : i32
    return %c0_i32, %c0_i32_0 : i32, i32
  }
  func.func @transform_2(%arg0: i32) -> (i32, i32) {
    %c0_i32 = arith.constant 0 : i32
    %c0_i32_0 = arith.constant 0 : i32
    %c0_i32_1 = arith.constant 0 : i32
    return %c0_i32, %c0_i32_0 : i32, i32
  }
  func.func @transform_3(%arg0: i32) -> (i32, i32) {
    %c0_i32 = arith.constant 0 : i32
    %c0_i32_0 = arith.constant 0 : i32
    %c0_i32_1 = arith.constant 0 : i32
    return %c0_i32, %c0_i32_0 : i32, i32
  }
  func.func @transform_4(%arg0: i32) -> (i32, i32) {
    %c0_i32 = arith.constant 0 : i32
    %c0_i32_0 = arith.constant 0 : i32
    %c0_i32_1 = arith.constant 0 : i32
    return %c0_i32, %c0_i32_0 : i32, i32
  }
  func.func @transform_5(%arg0: i32) -> (i32, i32) {
    %c0_i32 = arith.constant 0 : i32
    %c0_i32_0 = arith.constant 0 : i32
    %c0_i32_1 = arith.constant 0 : i32
    return %c0_i32, %c0_i32_0 : i32, i32
  }
  func.func @transform_6(%arg0: i32) -> (i32, i32) {
    %c0_i32 = arith.constant 0 : i32
    %c0_i32_0 = arith.constant 0 : i32
    %c0_i32_1 = arith.constant 0 : i32
    return %c0_i32, %c0_i32_0 : i32, i32
  }
  func.func @transform_7(%arg0: i32) -> (i32, i32, i32) {
    %c0_i32 = arith.constant 0 : i32
    %c0_i32_0 = arith.constant 0 : i32
    %c0_i32_1 = arith.constant 0 : i32
    return %arg0, %c0_i32, %c0_i32_0 : i32, i32, i32
  }
}

</mosaic_0001>

<bundles_post_ra>
// kernel: tpu_custom_call.1
= control target key start
LH: loop header
LB: loop body
LE: loop exit
PB: predicated region body
PF: predicated region fallthrough
CT: control target
= control target key end

     0   :  { %12 = vsyncpa [#allocation3], 0  ;;  %s13574_s0 = inlined_call_operand.vmem [shape: f32[16,16,256], index: 0, kind: input, shape index: {}]   ;;  %s13575_s1 = inlined_call_operand.vmem [shape: f32[256,512], index: 1, kind: input, shape index: {}]   ;;  %s13576_s2 = inlined_call_operand.vmem [shape: f32[2,32], index: 2, kind: input, shape index: {}]   ;;  %s13577_s3 = inlined_call_operand.vmem [shape: f32[2,512], index: 3, kind: input, shape index: {}]   ;;  %s13578_s4 = inlined_call_operand.vmem [shape: f32[1024,50], index: 4, kind: input, shape index: {}]   ;;  %s13579_s5 = inlined_call_operand.vmem [shape: f32[49,44], index: 5, kind: input, shape index: {}]   ;;  %s13580_s6 = inlined_call_operand.hbm [shape: f32[16,512], index: 6, kind: input, shape index: {}]   ;;  %s13581_s7 = inlined_call_operand.hbm [shape: f32[16,16,512], index: 7, kind: output, shape index: {}]  }
   0x1   :  { %13 = vsyncpa [#allocation4], 0 }
   0x2   :  { %15 = vsyncpa [#allocation4 + $0x1], 0  ;;  %s7945_s24 = smov 0   ;;  %s7947_s25 = smov 0  }
   0x3   :  { %s7949_s26 = smov 0   ;;  %s7951_s27 = smov 0  }
   0x4 LB: > { %s7966_s28 = sadd.s32 4294967295, %s7884_s27   ;;  %s7001_s29 = sadd.s32 4294967294, %s7884_s27   ;;  %s7884_s27 = sphi %s7951_s27, %s14740_s27   ;;  %s7880_s26 = sphi %s7949_s26, %s14739_s26   ;;  %s7876_s25 = sphi %s7947_s25, %s14738_s25   ;;  %s7872_s24 = sphi %s7945_s24, %s14737_s24  }
   0x5   : > { %s7970_s30 = sadd.s32 1, %s7884_s27   ;;  %s180_s8 = sadd.s32 1, %s7880_s26 }
   0x6   : > { %s177_s9 = ssub.s32 %s7884_s27, %s7970_s30  ;;  %p190_p0 = scmp.ne.s32.totalorder %s7880_s26, %s7876_s25 }
   0x7   : > { %p178_p1 = scmp.eq.s32.totalorder %s177_s9, 0  ;;  %p191_p2 = scmp.eq.s32.totalorder %s7966_s28, 3 }
   0x8   : > { %p196_p3 = scmp.ne.s32.totalorder %s7876_s25, %s7872_s24  ;;  %p197_p4 = scmp.eq.s32.totalorder %s7001_s29, 3 }
   0x9   : > { %s7981_s10 = scalar_select %p178_p1, %s7880_s26, %s180_s8  }
   0xa   : > { %p7983_p5 = por %p191_p2, %p190_p0  ;;  %p7987_p6 = por %p197_p4, %p196_p3 }
   0xb   : > { %p7002_p7 = scmp.ge.s32.totalorder %s7884_s27, 1  ;;  %p204_p8 = scmp.lt.s32.totalorder %s7884_s27, 5 }
   0xc   : > { %s13874_s12 = scalar_select %p7987_p6, 1, 0 }
   0xd   : > { %p7287_p9 = scmp.eq.s32.totalorder %s7966_s28, 0  ;;  %p7994_p10 = pnand %p7002_p7, %p204_p8 }
   0xe   : > { %s7886_s14 = smov [#allocation2]  }
   0xf   : > { %s231_s15 = sshll.u32 %s7886_s14, 4  ;;  %p7279_p11 = pneg %p7994_p10  ;;  %s232_s15 = int_to_ptr.vmem [resolvable:$true] %s231_s15 }
  0x10   : > { %s7805_s16 = scalar_lea.vmem %s232_s15, 1024  ;;  %p7813_p3 = scmp.lt.s32.totalorder %s232_s15, %s232_s15 }
  0x11   : > { %p7280_p12 = pnand %p7287_p9, %p7279_p11  ;;  %p7806_p0 = scmp.ne.s32.totalorder %s232_s15, %s7805_s16 }
  0x12   : > { %p7814_p4 = scmp.lt.s32.totalorder %s7805_s16, %s7805_s16 }
  0x13   : > { %p7796_p13 = pneg %p7280_p12 }
  0x14   : > { %p7815_p6 = por %p7814_p4, %p7813_p3 }
  0x15   : > { %p7808_p1 = pnand %p7806_p0, %p7796_p13 }
  0x17   : > { %p7809_p2 = pneg %p7808_p1 }
  0x19   : > { %p7816_p7 = pnand %p7815_p6, %p7809_p2 }
  0x1b   : > { %7819 = shalt.err (!%p7816_p7)
}
  0x1c   : > { %s7887_s17 = smov 512   ;;  %s7888_s18 = smov 32  }
  0x1d   : > { %7282 = dma.hbm_to_vmem [thread:$0]  (!%p7280_p12), %s13580_s6, 1024, %s232_s15, [#allocation3], %s7887_s17, %s7887_s17, %s7888_s18  }
  0x1e   : > { %257 = sbr.rel (%p7994_p10) target bundleno = 2799 (0xaef), region = 48 }
  0x23   : > { %7863 = dma.done.wait (%p7287_p9), [#allocation3], 1024  }
  0x24   : > { %7865 = vsyncadd (%p7287_p9), [#allocation3], 4294966272  ;;  %v375_v0 = vld [vmem:[%s13575_s1 + $0x1e8] sm:$0xff]  ;;  %v377_v1 = vld [vmem:[%s13575_s1 + $0x1f8] sm:$0xff]  ;;  %s7008_s13 = sshll.u32 %s7966_s28, 2  ;;  %s7889_s22 = smov 64  }
  0x25   : > { %v374_v2 = vld [vmem:[%s13575_s1 + $0x1e0] sm:$0xff]  ;;  %442 = vmatprep.subr.mxu0 %v375_v0  ;;  %555 = vmatprep.subr.mxu1 %v377_v1  ;;  %v376_v3 = vld [vmem:[%s13575_s1 + $0x1f0] sm:$0xff]  ;;  %v371_v4 = vld [vmem:[%s13575_s1 + $0x1c8] sm:$0xff]  ;;  %p8314_p6 = scmp.lt.s32.totalorder %s7008_s13, 15  ;;  %vm1005_vm0 = vcmask 1041409   ;;  %vm1020_vm1 = vcmask 1045509  }
  0x26   : > { %v373_v5 = vld [vmem:[%s13575_s1 + $0x1d8] sm:$0xff]  ;;  %443 = vmatpush1.msra.mxu0 %v374_v2  ;;  %556 = vmatpush1.msra.mxu1 %v376_v3  ;;  %v370_v6 = vld [vmem:[%s13575_s1 + $0x1c0] sm:$0xff]  ;;  %v372_v7 = vld [vmem:[%s13575_s1 + $0x1d0] sm:$0xff]  ;;  %vm1008_vm2 = vcmask 1042434   ;;  %vm1023_vm3 = vcmask 1046534   ;;  %vm1011_vm4 = vcmask 1043459  }
  0x27   : > { %v367_v8 = vld [vmem:[%s13575_s1 + $0x1a8] sm:$0xff]  ;;  %444 = vmatprep.subr.mxu0 %v371_v4  ;;  %557 = vmatprep.subr.mxu1 %v373_v5  ;;  %v369_v9 = vld [vmem:[%s13575_s1 + $0x1b8] sm:$0xff]  ;;  %v366_v10 = vld [vmem:[%s13575_s1 + $0x1a0] sm:$0xff]  ;;  %s14742_s13 = smov (!%p8314_p6, %s7008_s13), 15  ;;  %vm1026_vm5 = vcmask 1047559   ;;  %vm1029_vm6 = vcmask 1043456  }
  0x28   : > { %v368_v11 = vld [vmem:[%s13575_s1 + $0x1b0] sm:$0xff]  ;;  %445 = vmatpush1.msra.mxu0 %v370_v6  ;;  %558 = vmatpush1.msra.mxu1 %v372_v7  ;;  %v363_v12 = vld [vmem:[%s13575_s1 + $0x188] sm:$0xff]  ;;  %v365_v13 = vld [vmem:[%s13575_s1 + $0x198] sm:$0xff]  ;;  %s7046_s21 = sshll.u32 %s14742_s13, 5  ;;  %vm1038_vm7 = vcmask 261120   ;;  %vm1435_vm8 = vcmask 916480  }
  0x29   : > { %446 = vmatprep.subr.mxu0 %v367_v8  ;;  %559 = vmatprep.subr.mxu1 %v369_v9  ;;  %v362_v14 = vld [vmem:[%s13575_s1 + $0x180] sm:$0xff]  ;;  %v364_v15 = vld [vmem:[%s13575_s1 + $0x190] sm:$0xff]  ;;  %v359_v16 = vld [vmem:[%s13575_s1 + $0x168] sm:$0xff]  ;;  %s8394_s23 = scalar_lea.vmem %s13574_s0, %s7046_s21  ;;  %s7892_s21 = smov 112   ;;  %vm1636_vm9 = vcmask 982016   ;;  %vm1837_vm10 = vcmask 1014784  }
  0x2a   : > { %447 = vmatpush1.msra.mxu0 %v366_v10  ;;  %560 = vmatpush1.msra.mxu1 %v368_v11  ;;  %v361_v17 = vld [vmem:[%s13575_s1 + $0x178] sm:$0xff]  ;;  %v358_v18 = vld [vmem:[%s13575_s1 + $0x160] sm:$0xff]  ;;  %v360_v19 = vld [vmem:[%s13575_s1 + $0x170] sm:$0xff]  ;;  %s7893_s13 = smov 120   ;;  %s7894_s17 = smov 124   ;;  %vm2038_vm11 = vcmask 1031168  }
  0x2b   : > { %448 = vmatprep.subr.mxu0 %v363_v12  ;;  %561 = vmatprep.subr.mxu1 %v365_v13  ;;  %v355_v20 = vld [vmem:[%s13575_s1 + $0x148] sm:$0xff]  ;;  %v357_v21 = vld [vmem:[%s13575_s1 + $0x158] sm:$0xff]  ;;  %v354_v22 = vld [vmem:[%s13575_s1 + $0x140] sm:$0xff]  ;;  %s7895_s18 = smov 126   ;;  %s7896_s15 = smov 127   ;;  %vm2239_vm12 = vcmask 1039360  }
  0x2c   : > { %449 = vmatpush1.msra.mxu0 %v362_v14  ;;  %562 = vmatpush1.msra.mxu1 %v364_v15  ;;  %v356_v23 = vld [vmem:[%s13575_s1 + $0x150] sm:$0xff]  ;;  %v351_v24 = vld [vmem:[%s13575_s1 + $0x128] sm:$0xff]  ;;  %v353_v25 = vld [vmem:[%s13575_s1 + $0x138] sm:$0xff]  ;;  %vm2900_vm13 = vcmask 1042432   ;;  %s7897_s16 = smov 123   ;;  %vm3344_vm14 = vcmask 1046528  }
  0x2d   : > { %450 = vmatprep.subr.mxu0 %v359_v16  ;;  %563 = vmatprep.subr.mxu1 %v361_v17  ;;  %v350_v26 = vld [vmem:[%s13575_s1 + $0x120] sm:$0xff]  ;;  %v352_v27 = vld [vmem:[%s13575_s1 + $0x130] sm:$0xff]  ;;  %v347_v28 = vld [vmem:[%s13575_s1 + $0x108] sm:$0xff]  ;;  %vm3409_vm15 = vcmask 1045504  }
  0x2e   : > { %451 = vmatpush1.msra.mxu0 %v358_v18  ;;  %564 = vmatpush1.msra.mxu1 %v360_v19  ;;  %v349_v29 = vld [vmem:[%s13575_s1 + $0x118] sm:$0xff]  ;;  %v346_v30 = vld [vmem:[%s13575_s1 + $0x100] sm:$0xff]  ;;  %v348_v31 = vld [vmem:[%s13575_s1 + $0x110] sm:$0xff] }
  0x2f   : > { %452 = vmatprep.subr.mxu0 %v355_v20  ;;  %565 = vmatprep.subr.mxu1 %v357_v21  ;;  %v343_v32 = vld [vmem:[%s13575_s1 + $0xe8] sm:$0xff]  ;;  %v345_v33 = vld [vmem:[%s13575_s1 + $0xf8] sm:$0xff]  ;;  %v342_v34 = vld [vmem:[%s13575_s1 + $0xe0] sm:$0xff] }
  0x30   : > { %453 = vmatpush1.msra.mxu0 %v354_v22  ;;  %566 = vmatpush1.msra.mxu1 %v356_v23  ;;  %v344_v35 = vld [vmem:[%s13575_s1 + $0xf0] sm:$0xff]  ;;  %v339_v36 = vld [vmem:[%s13575_s1 + $0xc8] sm:$0xff]  ;;  %v341_v37 = vld [vmem:[%s13575_s1 + $0xd8] sm:$0xff] }
  0x31   : > { %454 = vmatprep.subr.mxu0 %v351_v24  ;;  %567 = vmatprep.subr.mxu1 %v353_v25  ;;  %v338_v38 = vld [vmem:[%s13575_s1 + $0xc0] sm:$0xff]  ;;  %v340_v39 = vld [vmem:[%s13575_s1 + $0xd0] sm:$0xff]  ;;  %v335_v40 = vld [vmem:[%s13575_s1 + $0xa8] sm:$0xff] }
  0x32   : > { %455 = vmatpush1.msra.mxu0 %v350_v26  ;;  %568 = vmatpush1.msra.mxu1 %v352_v27  ;;  %v337_v41 = vld [vmem:[%s13575_s1 + $0xb8] sm:$0xff]  ;;  %v334_v42 = vld [vmem:[%s13575_s1 + $0xa0] sm:$0xff]  ;;  %v336_v43 = vld [vmem:[%s13575_s1 + $0xb0] sm:$0xff] }
  0x33   : > { %456 = vmatprep.subr.mxu0 %v347_v28  ;;  %569 = vmatprep.subr.mxu1 %v349_v29  ;;  %v331_v44 = vld [vmem:[%s13575_s1 + $0x88] sm:$0xff]  ;;  %v333_v45 = vld [vmem:[%s13575_s1 + $0x98] sm:$0xff]  ;;  %v330_v46 = vld [vmem:[%s13575_s1 + $0x80] sm:$0xff] }
  0x34   : > { %457 = vmatpush1.msra.mxu0 %v346_v30  ;;  %570 = vmatpush1.msra.mxu1 %v348_v31  ;;  %v332_v47 = vld [vmem:[%s13575_s1 + $0x90] sm:$0xff]  ;;  %v327_v48 = vld [vmem:[%s13575_s1 + $0x68] sm:$0xff]  ;;  %v329_v49 = vld [vmem:[%s13575_s1 + $0x78] sm:$0xff] }
  0x35   : > { %458 = vmatprep.subr.mxu0 %v343_v32  ;;  %571 = vmatprep.subr.mxu1 %v345_v33  ;;  %v326_v50 = vld [vmem:[%s13575_s1 + $0x60] sm:$0xff]  ;;  %v328_v51 = vld [vmem:[%s13575_s1 + $0x70] sm:$0xff]  ;;  %v323_v52 = vld [vmem:[%s13575_s1 + $0x48] sm:$0xff] }
  0x36   : > { %459 = vmatpush1.msra.mxu0 %v342_v34  ;;  %572 = vmatpush1.msra.mxu1 %v344_v35  ;;  %v325_v53 = vld [vmem:[%s13575_s1 + $0x58] sm:$0xff]  ;;  %v322_v54 = vld [vmem:[%s13575_s1 + $0x40] sm:$0xff]  ;;  %v324_v55 = vld [vmem:[%s13575_s1 + $0x50] sm:$0xff] }
  0x37   : > { %460 = vmatprep.subr.mxu0 %v339_v36  ;;  %573 = vmatprep.subr.mxu1 %v341_v37  ;;  %v319_v56 = vld [vmem:[%s13575_s1 + $0x28] sm:$0xff]  ;;  %v321_v57 = vld [vmem:[%s13575_s1 + $0x38] sm:$0xff]  ;;  %v318_v58 = vld [vmem:[%s13575_s1 + $0x20] sm:$0xff] }
  0x38   : > { %461 = vmatpush1.msra.mxu0 %v338_v38  ;;  %574 = vmatpush1.msra.mxu1 %v340_v39  ;;  %v320_v59 = vld [vmem:[%s13575_s1 + $0x30] sm:$0xff]  ;;  %v315_v60 = vld [vmem:[%s13575_s1 + $0x8] sm:$0xff]  ;;  %v317_v61 = vld [vmem:[%s13575_s1 + $0x18] sm:$0xff] }
  0x39   : > { %462 = vmatprep.subr.mxu0 %v335_v40  ;;  %575 = vmatprep.subr.mxu1 %v337_v41  ;;  %v314_v62 = vld [vmem:[%s13575_s1] sm:$0xff]  ;;  %v316_v63 = vld [vmem:[%s13575_s1 + $0x10] sm:$0xff]  ;;  %v439_v0 = vld [vmem:[%s13575_s1 + $0x3e8] sm:$0xff] }
  0x3a   : > { %463 = vmatpush1.msra.mxu0 %v334_v42  ;;  %576 = vmatpush1.msra.mxu1 %v336_v43  ;;  %v441_v1 = vld [vmem:[%s13575_s1 + $0x3f8] sm:$0xff]  ;;  %v438_v2 = vld [vmem:[%s13575_s1 + $0x3e0] sm:$0xff]  ;;  %v440_v3 = vld [vmem:[%s13575_s1 + $0x3f0] sm:$0xff] }
  0x3b   : > { %464 = vmatprep.subr.mxu0 %v331_v44  ;;  %577 = vmatprep.subr.mxu1 %v333_v45  ;;  %v435_v4 = vld [vmem:[%s13575_s1 + $0x3c8] sm:$0xff]  ;;  %v437_v5 = vld [vmem:[%s13575_s1 + $0x3d8] sm:$0xff]  ;;  %v434_v6 = vld [vmem:[%s13575_s1 + $0x3c0] sm:$0xff] }
  0x3c   : > { %465 = vmatpush1.msra.mxu0 %v330_v46  ;;  %578 = vmatpush1.msra.mxu1 %v332_v47  ;;  %v436_v7 = vld [vmem:[%s13575_s1 + $0x3d0] sm:$0xff]  ;;  %v431_v8 = vld [vmem:[%s13575_s1 + $0x3a8] sm:$0xff]  ;;  %v433_v9 = vld [vmem:[%s13575_s1 + $0x3b8] sm:$0xff] }
  0x3d   : > { %466 = vmatprep.subr.mxu0 %v327_v48  ;;  %579 = vmatprep.subr.mxu1 %v329_v49  ;;  %v430_v10 = vld [vmem:[%s13575_s1 + $0x3a0] sm:$0xff]  ;;  %v432_v11 = vld [vmem:[%s13575_s1 + $0x3b0] sm:$0xff]  ;;  %v427_v12 = vld [vmem:[%s13575_s1 + $0x388] sm:$0xff] }
  0x3e   : > { %467 = vmatpush1.msra.mxu0 %v326_v50  ;;  %580 = vmatpush1.msra.mxu1 %v328_v51  ;;  %v429_v13 = vld [vmem:[%s13575_s1 + $0x398] sm:$0xff]  ;;  %v426_v14 = vld [vmem:[%s13575_s1 + $0x380] sm:$0xff]  ;;  %v428_v15 = vld [vmem:[%s13575_s1 + $0x390] sm:$0xff] }
  0x3f   : > { %468 = vmatprep.subr.mxu0 %v323_v52  ;;  %581 = vmatprep.subr.mxu1 %v325_v53  ;;  %v423_v16 = vld [vmem:[%s13575_s1 + $0x368] sm:$0xff]  ;;  %v425_v17 = vld [vmem:[%s13575_s1 + $0x378] sm:$0xff]  ;;  %v422_v18 = vld [vmem:[%s13575_s1 + $0x360] sm:$0xff] }
  0x40   : > { %469 = vmatpush1.msra.mxu0 %v322_v54  ;;  %582 = vmatpush1.msra.mxu1 %v324_v55  ;;  %v424_v19 = vld [vmem:[%s13575_s1 + $0x370] sm:$0xff]  ;;  %v419_v20 = vld [vmem:[%s13575_s1 + $0x348] sm:$0xff]  ;;  %v421_v21 = vld [vmem:[%s13575_s1 + $0x358] sm:$0xff] }
  0x41   : > { %470 = vmatprep.subr.mxu0 %v319_v56  ;;  %583 = vmatprep.subr.mxu1 %v321_v57  ;;  %v418_v22 = vld [vmem:[%s13575_s1 + $0x340] sm:$0xff]  ;;  %v420_v23 = vld [vmem:[%s13575_s1 + $0x350] sm:$0xff]  ;;  %v415_v24 = vld [vmem:[%s13575_s1 + $0x328] sm:$0xff] }
  0x42   : > { %471 = vmatpush1.msra.mxu0 %v318_v58  ;;  %584 = vmatpush1.msra.mxu1 %v320_v59  ;;  %v417_v25 = vld [vmem:[%s13575_s1 + $0x338] sm:$0xff]  ;;  %v414_v26 = vld [vmem:[%s13575_s1 + $0x320] sm:$0xff]  ;;  %v416_v27 = vld [vmem:[%s13575_s1 + $0x330] sm:$0xff] }
  0x43   : > { %472 = vmatprep.subr.mxu0 %v315_v60  ;;  %585 = vmatprep.subr.mxu1 %v317_v61  ;;  %v411_v28 = vld [vmem:[%s13575_s1 + $0x308] sm:$0xff]  ;;  %v413_v29 = vld [vmem:[%s13575_s1 + $0x318] sm:$0xff]  ;;  %v410_v30 = vld [vmem:[%s13575_s1 + $0x300] sm:$0xff] }
  0x44   : > { %473 = vmatpush1.msra.mxu0 %v314_v62  ;;  %586 = vmatpush1.msra.mxu1 %v316_v63  ;;  %v412_v31 = vld [vmem:[%s13575_s1 + $0x310] sm:$0xff]  ;;  %v407_v32 = vld [vmem:[%s13575_s1 + $0x2e8] sm:$0xff]  ;;  %v409_v33 = vld [vmem:[%s13575_s1 + $0x2f8] sm:$0xff] }
  0x45   : > { %474 = vmatprep.subr.mxu0 %v439_v0  ;;  %587 = vmatprep.subr.mxu1 %v441_v1  ;;  %v406_v34 = vld [vmem:[%s13575_s1 + $0x2e0] sm:$0xff]  ;;  %v408_v35 = vld [vmem:[%s13575_s1 + $0x2f0] sm:$0xff]  ;;  %v403_v36 = vld [vmem:[%s13575_s1 + $0x2c8] sm:$0xff] }
  0x46   : > { %475 = vmatpush2.msra.mxu0 %v438_v2  ;;  %588 = vmatpush2.msra.mxu1 %v440_v3  ;;  %v405_v37 = vld [vmem:[%s13575_s1 + $0x2d8] sm:$0xff]  ;;  %v402_v38 = vld [vmem:[%s13575_s1 + $0x2c0] sm:$0xff]  ;;  %v404_v39 = vld [vmem:[%s13575_s1 + $0x2d0] sm:$0xff] }
  0x47   : > { %476 = vmatprep.subr.mxu0 %v435_v4  ;;  %589 = vmatprep.subr.mxu1 %v437_v5  ;;  %v399_v40 = vld [vmem:[%s13575_s1 + $0x2a8] sm:$0xff]  ;;  %v401_v41 = vld [vmem:[%s13575_s1 + $0x2b8] sm:$0xff]  ;;  %v398_v42 = vld [vmem:[%s13575_s1 + $0x2a0] sm:$0xff] }
  0x48   : > { %477 = vmatpush2.msra.mxu0 %v434_v6  ;;  %590 = vmatpush2.msra.mxu1 %v436_v7  ;;  %v400_v43 = vld [vmem:[%s13575_s1 + $0x2b0] sm:$0xff]  ;;  %v395_v44 = vld [vmem:[%s13575_s1 + $0x288] sm:$0xff]  ;;  %v397_v45 = vld [vmem:[%s13575_s1 + $0x298] sm:$0xff] }
  0x49   : > { %478 = vmatprep.subr.mxu0 %v431_v8  ;;  %591 = vmatprep.subr.mxu1 %v433_v9  ;;  %v394_v46 = vld [vmem:[%s13575_s1 + $0x280] sm:$0xff]  ;;  %v396_v47 = vld [vmem:[%s13575_s1 + $0x290] sm:$0xff]  ;;  %v391_v48 = vld [vmem:[%s13575_s1 + $0x268] sm:$0xff] }
  0x4a   : > { %479 = vmatpush2.msra.mxu0 %v430_v10  ;;  %592 = vmatpush2.msra.mxu1 %v432_v11  ;;  %v393_v49 = vld [vmem:[%s13575_s1 + $0x278] sm:$0xff]  ;;  %v390_v50 = vld [vmem:[%s13575_s1 + $0x260] sm:$0xff]  ;;  %v392_v51 = vld [vmem:[%s13575_s1 + $0x270] sm:$0xff] }
  0x4b   : > { %480 = vmatprep.subr.mxu0 %v427_v12  ;;  %593 = vmatprep.subr.mxu1 %v429_v13  ;;  %v387_v52 = vld [vmem:[%s13575_s1 + $0x248] sm:$0xff]  ;;  %v389_v53 = vld [vmem:[%s13575_s1 + $0x258] sm:$0xff]  ;;  %v386_v54 = vld [vmem:[%s13575_s1 + $0x240] sm:$0xff] }
  0x4c   : > { %481 = vmatpush2.msra.mxu0 %v426_v14  ;;  %594 = vmatpush2.msra.mxu1 %v428_v15  ;;  %v388_v55 = vld [vmem:[%s13575_s1 + $0x250] sm:$0xff]  ;;  %v383_v56 = vld [vmem:[%s13575_s1 + $0x228] sm:$0xff]  ;;  %v385_v57 = vld [vmem:[%s13575_s1 + $0x238] sm:$0xff] }
  0x4d   : > { %482 = vmatprep.subr.mxu0 %v423_v16  ;;  %595 = vmatprep.subr.mxu1 %v425_v17  ;;  %v382_v58 = vld [vmem:[%s13575_s1 + $0x220] sm:$0xff]  ;;  %v384_v59 = vld [vmem:[%s13575_s1 + $0x230] sm:$0xff]  ;;  %v379_v60 = vld [vmem:[%s13575_s1 + $0x208] sm:$0xff] }
  0x4e   : > { %483 = vmatpush2.msra.mxu0 %v422_v18  ;;  %596 = vmatpush2.msra.mxu1 %v424_v19  ;;  %v381_v61 = vld [vmem:[%s13575_s1 + $0x218] sm:$0xff]  ;;  %v378_v62 = vld [vmem:[%s13575_s1 + $0x200] sm:$0xff]  ;;  %v299_v63 = vld [vmem:[%s8394_s23 + $0x8] sm:$0xff] }
  0x4f   : > { %484 = vmatprep.subr.mxu0 %v419_v20  ;;  %597 = vmatprep.subr.mxu1 %v421_v21  ;;  %v380_v0 = vld [vmem:[%s13575_s1 + $0x210] sm:$0xff]  ;;  %v298_v1 = vld [vmem:[%s8394_s23] sm:$0xff]  ;;  %v301_v2 = vld [vmem:[%s8394_s23 + $0x18] sm:$0xff] }
  0x50   : > { %485 = vmatpush2.msra.mxu0 %v418_v22  ;;  %598 = vmatpush2.msra.mxu1 %v420_v23  ;;  %v300_v3 = vld [vmem:[%s8394_s23 + $0x10] sm:$0xff]  ;;  %v303_v4 = vld [vmem:[%s8394_s23 + $0x28] sm:$0xff]  ;;  %v302_v5 = vld [vmem:[%s8394_s23 + $0x20] sm:$0xff] }
  0x51   : > { %486 = vmatprep.subr.mxu0 %v415_v24  ;;  %599 = vmatprep.subr.mxu1 %v417_v25  ;;  %v305_v6 = vld [vmem:[%s8394_s23 + $0x38] sm:$0xff]  ;;  %v304_v7 = vld [vmem:[%s8394_s23 + $0x30] sm:$0xff]  ;;  %v307_v8 = vld [vmem:[%s8394_s23 + $0x48] sm:$0xff] }
  0x52   : > { %487 = vmatpush2.msra.mxu0 %v414_v26  ;;  %600 = vmatpush2.msra.mxu1 %v416_v27  ;;  %v306_v9 = vld [vmem:[%s8394_s23 + $0x40] sm:$0xff]  ;;  %v309_v10 = vld [vmem:[%s8394_s23 + $0x58] sm:$0xff]  ;;  %v308_v11 = vld [vmem:[%s8394_s23 + $0x50] sm:$0xff] }
  0x53   : > { %488 = vmatprep.subr.mxu0 %v411_v28  ;;  %601 = vmatprep.subr.mxu1 %v413_v29  ;;  %v311_v12 = vld [vmem:[%s8394_s23 + $0x68] sm:$0xff]  ;;  %v310_v13 = vld [vmem:[%s8394_s23 + $0x60] sm:$0xff]  ;;  %v313_v14 = vld [vmem:[%s8394_s23 + $0x78] sm:$0xff] }
  0x54   : > { %489 = vmatpush2.msra.mxu0 %v410_v30  ;;  %602 = vmatpush2.msra.mxu1 %v412_v31  ;;  %v312_v15 = vld [vmem:[%s8394_s23 + $0x70] sm:$0xff]  ;;  %s7890_s23 = smov 96  }
  0x55   : > { %490 = vmatprep.subr.mxu0 %v407_v32  ;;  %603 = vmatprep.subr.mxu1 %v409_v33 }
  0x56   : > { %491 = vmatpush2.msra.mxu0 %v406_v34  ;;  %604 = vmatpush2.msra.mxu1 %v408_v35 }
  0x57   : > { %492 = vmatprep.subr.mxu0 %v403_v36  ;;  %605 = vmatprep.subr.mxu1 %v405_v37 }
  0x58   : > { %493 = vmatpush2.msra.mxu0 %v402_v38  ;;  %606 = vmatpush2.msra.mxu1 %v404_v39 }
  0x59   : > { %494 = vmatprep.subr.mxu0 %v399_v40  ;;  %607 = vmatprep.subr.mxu1 %v401_v41 }
  0x5a   : > { %495 = vmatpush2.msra.mxu0 %v398_v42  ;;  %608 = vmatpush2.msra.mxu1 %v400_v43 }
  0x5b   : > { %496 = vmatprep.subr.mxu0 %v395_v44  ;;  %609 = vmatprep.subr.mxu1 %v397_v45 }
  0x5c   : > { %497 = vmatpush2.msra.mxu0 %v394_v46  ;;  %610 = vmatpush2.msra.mxu1 %v396_v47 }
  0x5d   : > { %498 = vmatprep.subr.mxu0 %v391_v48  ;;  %611 = vmatprep.subr.mxu1 %v393_v49 }
  0x5e   : > { %499 = vmatpush2.msra.mxu0 %v390_v50  ;;  %612 = vmatpush2.msra.mxu1 %v392_v51 }
  0x5f   : > { %500 = vmatprep.subr.mxu0 %v387_v52  ;;  %613 = vmatprep.subr.mxu1 %v389_v53 }
  0x60   : > { %501 = vmatpush2.msra.mxu0 %v386_v54  ;;  %614 = vmatpush2.msra.mxu1 %v388_v55 }
  0x61   : > { %502 = vmatprep.subr.mxu0 %v383_v56  ;;  %615 = vmatprep.subr.mxu1 %v385_v57 }
  0x62   : > { %503 = vmatpush2.msra.mxu0 %v382_v58  ;;  %616 = vmatpush2.msra.mxu1 %v384_v59 }
  0x63   : > { %504 = vmatprep.subr.mxu0 %v379_v60  ;;  %617 = vmatprep.subr.mxu1 %v381_v61 }
  0x64   : > { %505 = vmatpush2.msra.mxu0 %v378_v62  ;;  %506 = vmatprep.mubr.f32.mxu0 %v299_v63 }
  0x65   : > { %618 = vmatpush2.msra.mxu1 %v380_v0  ;;  %619 = vmatprep.mubr.f32.mxu1 %v299_v63 }
  0x66   : > { %507 = vmatmul.mubr.f32.vlgmr.msra.gmra.mxu0 %v298_v1  ;;  %620 = vmatmul.mubr.f32.vlgmr.msra.gmra.mxu1 %v298_v1 }
  0x67   : > { %512 = vmatprep.mubr.f32.mxu0 %v301_v2  ;;  %625 = vmatprep.mubr.f32.mxu1 %v301_v2 }
  0x6a   : > { %513 = vmatmul.mubr.f32.gmra.mxu0 %v300_v3  ;;  %626 = vmatmul.mubr.f32.gmra.mxu1 %v300_v3 }
  0x6b   : > { %518 = vmatprep.mubr.f32.mxu0 %v303_v4  ;;  %631 = vmatprep.mubr.f32.mxu1 %v303_v4 }
  0x6e   : > { %519 = vmatmul.mubr.f32.gmra.mxu0 %v302_v5  ;;  %632 = vmatmul.mubr.f32.gmra.mxu1 %v302_v5 }
  0x6f   : > { %524 = vmatprep.mubr.f32.mxu0 %v305_v6  ;;  %637 = vmatprep.mubr.f32.mxu1 %v305_v6 }
  0x72   : > { %525 = vmatmul.mubr.f32.gmra.mxu0 %v304_v7  ;;  %638 = vmatmul.mubr.f32.gmra.mxu1 %v304_v7 }
  0x73   : > { %530 = vmatprep.mubr.f32.mxu0 %v307_v8  ;;  %643 = vmatprep.mubr.f32.mxu1 %v307_v8 }
  0x76   : > { %531 = vmatmul.mubr.f32.gmra.mxu0 %v306_v9  ;;  %644 = vmatmul.mubr.f32.gmra.mxu1 %v306_v9 }
  0x77   : > { %536 = vmatprep.mubr.f32.mxu0 %v309_v10  ;;  %649 = vmatprep.mubr.f32.mxu1 %v309_v10 }
  0x7a   : > { %537 = vmatmul.mubr.f32.gmra.mxu0 %v308_v11  ;;  %650 = vmatmul.mubr.f32.gmra.mxu1 %v308_v11 }
  0x7b   : > { %542 = vmatprep.mubr.f32.mxu0 %v311_v12  ;;  %655 = vmatprep.mubr.f32.mxu1 %v311_v12 }
  0x7e   : > { %543 = vmatmul.mubr.f32.gmra.mxu0 %v310_v13  ;;  %656 = vmatmul.mubr.f32.gmra.mxu1 %v310_v13 }
  0x7f   : > { %548 = vmatprep.mubr.f32.mxu0 %v313_v14  ;;  %661 = vmatprep.mubr.f32.mxu1 %v313_v14 }
  0x82   : > { %549 = vmatmul.mubr.f32.gmra.mxu0 %v312_v15  ;;  %662 = vmatmul.mubr.f32.gmra.mxu1 %v312_v15 }
 0x126   : > { %v8430_v16 = vpop.f32.mrf.mxu0  ;;  %v8432_v17 = vpop.f32.mrf.mxu1 }
 0x127   : > { %13877 = vst [vmem:[#allocation8_spill] sm:$0xff] %v8430_v16  ;;  %13878 = vst [vmem:[#allocation9_spill] sm:$0xff] %v8432_v17 }
 0x128   : > { %v8434_v18 = vpop.f32.mrf.mxu0  ;;  %v8436_v19 = vpop.f32.mrf.mxu1 }
 0x129   : > { %13879 = vst [vmem:[#allocation10_spill] sm:$0xff] %v8434_v18  ;;  %13880 = vst [vmem:[#allocation11_spill] sm:$0xff] %v8436_v19 }
 0x12a   : > { %v8438_v20 = vpop.f32.mrf.mxu0  ;;  %v8440_v21 = vpop.f32.mrf.mxu1 }
 0x12b   : > { %13881 = vst [vmem:[#allocation12_spill] sm:$0xff] %v8438_v20  ;;  %13882 = vst [vmem:[#allocation13_spill] sm:$0xff] %v8440_v21  ;;  %v668_v22 = vadd.f32 %v8438_v20, %v8430_v16  ;;  %v780_v23 = vmax.f32 %v8430_v16, %v8438_v20  ;;  %v682_v24 = vadd.f32 %v8440_v21, %v8432_v17 }
 0x12c   : > { %v794_v25 = vmax.f32 %v8432_v17, %v8440_v21  ;;  %v8450_v26 = vpop.f32.mrf.mxu0  ;;  %v8452_v27 = vpop.f32.mrf.mxu1 }
 0x12d   : > { %13883 = vst [vmem:[#allocation14_spill] sm:$0xff] %v8450_v26  ;;  %13884 = vst [vmem:[#allocation15_spill] sm:$0xff] %v8452_v27  ;;  %v669_v28 = vrot.slane %v668_v22, 4  ;;  %v781_v29 = vrot.slane %v780_v23, 4  ;;  %v683_v30 = vrot.slane %v682_v24, 4  ;;  %v675_v32 = vadd.f32 %v8450_v26, %v8434_v18 }
 0x12e   : > { %v795_v31 = vrot.slane %v794_v25, 4  ;;  %v787_v33 = vmax.f32 %v8434_v18, %v8450_v26  ;;  %v689_v34 = vadd.f32 %v8452_v27, %v8436_v19  ;;  %v801_v35 = vmax.f32 %v8436_v19, %v8452_v27  ;;  %v8462_v36 = vpop.f32.mrf.mxu0  ;;  %v8464_v37 = vpop.f32.mrf.mxu1 }
 0x12f   : > { %13885 = vst [vmem:[#allocation16_spill] sm:$0xff] %v8462_v36  ;;  %13886 = vst [vmem:[#allocation17_spill] sm:$0xff] %v8464_v37  ;;  %v8466_v38 = vadd.f32 %v669_v28, %v668_v22  ;;  %v782_v39 = vmax.f32 %v780_v23, %v781_v29  ;;  %v8468_v40 = vadd.f32 %v683_v30, %v682_v24  ;;  %v676_v42 = vrot.slane %v675_v32, 4 }
 0x130   : > { %v796_v41 = vmax.f32 %v794_v25, %v795_v31  ;;  %v788_v43 = vrot.slane %v787_v33, 4  ;;  %v690_v44 = vrot.slane %v689_v34, 4  ;;  %v802_v45 = vrot.slane %v801_v35, 4  ;;  %v8470_v46 = vpop.f32.mrf.mxu0  ;;  %v8472_v47 = vpop.f32.mrf.mxu1 }
 0x131   : > { %13887 = vst [vmem:[#allocation18_spill] sm:$0xff] %v8470_v46  ;;  %13888 = vst [vmem:[#allocation19_spill] sm:$0xff] %v8472_v47  ;;  %v783_v48 = vrot.slane %v782_v39, 2  ;;  %v8476_v52 = vadd.f32 %v676_v42, %v675_v32 }
 0x132   : > { %v797_v49 = vrot.slane %v796_v41, 2  ;;  %v8478_v53 = vmax.f32 %v787_v33, %v788_v43  ;;  %v8480_v54 = vadd.f32 %v690_v44, %v689_v34  ;;  %v8482_v55 = vmax.f32 %v801_v35, %v802_v45  ;;  %v8484_v56 = vpop.f32.mrf.mxu0  ;;  %v8486_v57 = vpop.f32.mrf.mxu1 }
 0x133   : > { %13889 = vst [vmem:[#allocation20_spill] sm:$0xff] %v8484_v56  ;;  %13890 = vst [vmem:[#allocation21_spill] sm:$0xff] %v8486_v57  ;;  %v696_v58 = vadd.f32 %v8484_v56, %v8462_v36  ;;  %v808_v59 = vmax.f32 %v8462_v36, %v8484_v56  ;;  %v710_v60 = vadd.f32 %v8486_v57, %v8464_v37 }
 0x134   : > { %v822_v61 = vmax.f32 %v8464_v37, %v8486_v57  ;;  %v8496_v62 = vpop.f32.mrf.mxu0  ;;  %v8498_v63 = vpop.f32.mrf.mxu1  ;;  %v8500_v0 = vmax.f32 %v782_v39, %v783_v48  ;;  %v8503_v2 = vmax.f32 %v796_v41, %v797_v49 }
 0x135   : > { %13891 = vst [vmem:[#allocation22_spill] sm:$0xff] %v8496_v62  ;;  %13892 = vst [vmem:[#allocation23_spill] sm:$0xff] %v8498_v63  ;;  %v697_v4 = vrot.slane %v696_v58, 4  ;;  %v809_v5 = vrot.slane %v808_v59, 4  ;;  %v711_v6 = vrot.slane %v710_v60, 4  ;;  %v703_v8 = vadd.f32 %v8496_v62, %v8470_v46 }
 0x136   : > { %v823_v7 = vrot.slane %v822_v61, 4  ;;  %v815_v9 = vmax.f32 %v8470_v46, %v8496_v62  ;;  %v717_v10 = vadd.f32 %v8498_v63, %v8472_v47  ;;  %v829_v11 = vmax.f32 %v8472_v47, %v8498_v63  ;;  %v8514_v12 = vpop.f32.mrf.mxu0  ;;  %v8516_v13 = vpop.f32.mrf.mxu1 }
 0x137   : > { %13893 = vst [vmem:[#allocation24_spill] sm:$0xff] %v8514_v12  ;;  %13894 = vst [vmem:[#allocation25_spill] sm:$0xff] %v8516_v13  ;;  %v698_v14 = vadd.f32 %v697_v4, %v696_v58  ;;  %v810_v15 = vmax.f32 %v808_v59, %v809_v5  ;;  %v712_v22 = vadd.f32 %v711_v6, %v710_v60  ;;  %v704_v24 = vrot.slane %v703_v8, 4 }
 0x138   : > { %v824_v23 = vmax.f32 %v822_v61, %v823_v7  ;;  %v816_v25 = vrot.slane %v815_v9, 4  ;;  %v718_v28 = vrot.slane %v717_v10, 4  ;;  %v830_v29 = vrot.slane %v829_v11, 4  ;;  %v8518_v30 = vpop.f32.mrf.mxu0  ;;  %v8520_v31 = vpop.f32.mrf.mxu1 }
 0x139   : > { %13895 = vst [vmem:[#allocation26_spill] sm:$0xff] %v8518_v30  ;;  %13896 = vst [vmem:[#allocation27_spill] sm:$0xff] %v8520_v31  ;;  %v699_v32 = vrot.slane %v698_v14, 2  ;;  %v811_v33 = vrot.slane %v810_v15, 2  ;;  %v713_v34 = vrot.slane %v712_v22, 2  ;;  %v705_v39 = vadd.f32 %v704_v24, %v703_v8 }
 0x13a   : > { %v825_v35 = vrot.slane %v824_v23, 2  ;;  %v817_v41 = vmax.f32 %v815_v9, %v816_v25  ;;  %v719_v42 = vadd.f32 %v718_v28, %v717_v10  ;;  %v831_v43 = vmax.f32 %v829_v11, %v830_v29  ;;  %v8522_v44 = vpop.f32.mrf.mxu0  ;;  %v8524_v45 = vpop.f32.mrf.mxu1 }
 0x13b   : > { %13897 = vst [vmem:[#allocation28_spill] sm:$0xff] %v8522_v44  ;;  %13898 = vst [vmem:[#allocation29_spill] sm:$0xff] %v8524_v45  ;;  %v8526_v48 = vadd.f32 %v699_v32, %v698_v14  ;;  %v8528_v49 = vmax.f32 %v810_v15, %v811_v33  ;;  %v8530_v58 = vadd.f32 %v713_v34, %v712_v22  ;;  %v706_v60 = vrot.slane %v705_v39, 2 }
 0x13c   : > { %v8532_v59 = vmax.f32 %v824_v23, %v825_v35  ;;  %v818_v61 = vrot.slane %v817_v41, 2  ;;  %v720_v4 = vrot.slane %v719_v42, 2  ;;  %v832_v5 = vrot.slane %v831_v43, 2  ;;  %v8534_v6 = vpop.f32.mrf.mxu0  ;;  %v8544_v11 = vpop.f32.mrf.mxu1 }
 0x13d   : > { %13899 = vst [vmem:[#allocation30_spill] sm:$0xff] %v8534_v6  ;;  %v724_v7 = vadd.f32 %v8522_v44, %v8514_v12  ;;  %v836_v8 = vmax.f32 %v8514_v12, %v8522_v44  ;;  %v738_v9 = vadd.f32 %v8524_v45, %v8516_v13  ;;  %v850_v10 = vmax.f32 %v8516_v13, %v8524_v45 }
 0x13e   : > { %13900 = vst [vmem:[#allocation31_spill] sm:$0xff] %v8544_v11  ;;  %v8546_v14 = vadd.f32 %v706_v60, %v705_v39  ;;  %v8548_v15 = vmax.f32 %v817_v41, %v818_v61  ;;  %v8550_v22 = vadd.f32 %v720_v4, %v719_v42  ;;  %v8552_v23 = vmax.f32 %v831_v43, %v832_v5  ;;  %v8562_v39 = vpop.f32.mrf.mxu0  ;;  %v8564_v50 = vpop.f32.mrf.mxu1 }
 0x13f   : > { %v725_v24 = vrot.slane %v724_v7, 4  ;;  %v837_v25 = vrot.slane %v836_v8, 4  ;;  %v739_v28 = vrot.slane %v738_v9, 4  ;;  %v851_v29 = vrot.slane %v850_v10, 4  ;;  %13901 = vst [vmem:[#allocation32_spill] sm:$0xff] %v8562_v39  ;;  %13902 = vst [vmem:[#allocation33_spill] sm:$0xff] %v8564_v50 }
 0x140   : > { %v731_v32 = vadd.f32 %v8534_v6, %v8518_v30  ;;  %v843_v33 = vmax.f32 %v8518_v30, %v8534_v6  ;;  %v745_v34 = vadd.f32 %v8544_v11, %v8520_v31  ;;  %v857_v35 = vmax.f32 %v8520_v31, %v8544_v11  ;;  %v8566_v31 = vpop.f32.mrf.mxu0  ;;  %v8576_v30 = vpop.f32.mrf.mxu1 }
 0x141   : > { %v726_v41 = vadd.f32 %v725_v24, %v724_v7  ;;  %v838_v42 = vmax.f32 %v836_v8, %v837_v25  ;;  %v740_v43 = vadd.f32 %v739_v28, %v738_v9  ;;  %v852_v60 = vmax.f32 %v850_v10, %v851_v29  ;;  %13903 = vst [vmem:[#allocation34_spill] sm:$0xff] %v8566_v31 }
 0x142   : > { %v732_v61 = vrot.slane %v731_v32, 4  ;;  %v844_v4 = vrot.slane %v843_v33, 4  ;;  %v746_v5 = vrot.slane %v745_v34, 4  ;;  %v858_v51 = vrot.slane %v857_v35, 4  ;;  %13904 = vst [vmem:[#allocation35_spill] sm:$0xff] %v8576_v30 }
 0x143   : > { %v727_v3 = vrot.slane %v726_v41, 2  ;;  %v839_v1 = vrot.slane %v838_v42, 2  ;;  %v741_v44 = vrot.slane %v740_v43, 2  ;;  %v853_v45 = vrot.slane %v852_v60, 2 }
 0x144   : > { %v733_v6 = vadd.f32 %v732_v61, %v731_v32  ;;  %v845_v12 = vmax.f32 %v843_v33, %v844_v4  ;;  %v747_v13 = vadd.f32 %v746_v5, %v745_v34  ;;  %v859_v11 = vmax.f32 %v857_v35, %v858_v51  ;;  %v8606_v5 = vpop.f32.mrf.mxu1 }
 0x145   : > { %v8568_v7 = vadd.f32 %v727_v3, %v726_v41  ;;  %v8570_v8 = vmax.f32 %v838_v42, %v839_v1  ;;  %v8572_v9 = vadd.f32 %v741_v44, %v740_v43  ;;  %v8574_v10 = vmax.f32 %v852_v60, %v853_v45  ;;  %v8594_v42 = vpop.f32.mrf.mxu0  ;;  %13910 = vst [vmem:[#allocation37_spill] sm:$0xff] %v8606_v5 }
 0x146   : > { %v734_v24 = vrot.slane %v733_v6, 2  ;;  %v846_v25 = vrot.slane %v845_v12, 2  ;;  %v748_v28 = vrot.slane %v747_v13, 2  ;;  %v860_v29 = vrot.slane %v859_v11, 2  ;;  %13907 = vst [vmem:[#allocation36_spill] sm:$0xff] %v8594_v42 }
 0x147   : > { %v785_v32 = vrot.slane %v8500_v0, 1  ;;  %v13905_v51 = vrot.slane %v8478_v53, 2  ;;  %v799_v3 = vrot.slane %v8503_v2, 1  ;;  %v13906_v1 = vrot.slane %v8482_v55, 2 }
 0x148   : > { %v8586_v45 = vadd.f32 %v734_v24, %v733_v6  ;;  %v8588_v34 = vmax.f32 %v845_v12, %v846_v25  ;;  %v8590_v35 = vadd.f32 %v748_v28, %v747_v13  ;;  %v8592_v41 = vmax.f32 %v859_v11, %v860_v29 }
 0x149   : > { %v791_v33 = vmax.f32 %v8478_v53, %v13905_v51  ;;  %v805_v44 = vmax.f32 %v8482_v55, %v13906_v1  ;;  %v786_v43 = vmax.f32 %v8500_v0, %v785_v32  ;;  %v800_v53 = vmax.f32 %v8503_v2, %v799_v3 }
 0x14a   : > { %v13908_v4 = vrot.slane %v8466_v38, 2  ;;  %v678_v6 = vrot.slane %v8476_v52, 2  ;;  %v13909_v12 = vrot.slane %v8468_v40, 2  ;;  %v692_v11 = vrot.slane %v8480_v54, 2 }
 0x14b   : > { %v792_v60 = vrot.slane %v791_v33, 1  ;;  %v806_v61 = vrot.slane %v805_v44, 1  ;;  %v948_v25 = vmax.f32 %v786_v43, %v800_v53  ;;  %v752_v2 = vadd.f32 %v8594_v42, %v8562_v39  ;;  %v8616_v53 = vpop.f32.mrf.mxu0 }
 0x14c   : > { %v672_v55 = vadd.f32 %v13908_v4, %v8466_v38  ;;  %v686_v13 = vadd.f32 %v13909_v12, %v8468_v40  ;;  %v679_v29 = vadd.f32 %v678_v6, %v8476_v52  ;;  %v693_v32 = vadd.f32 %v692_v11, %v8480_v54  ;;  %13911 = vst [vmem:[#allocation38_spill] sm:$0xff] %v8616_v53  ;;  %v8620_v54 = vpop.f32.mrf.mxu1 }
 0x14d   : > { %v793_v24 = vmax.f32 %v791_v33, %v792_v60  ;;  %v807_v0 = vmax.f32 %v805_v44, %v806_v61  ;;  %v753_v3 = vrot.slane %v752_v2, 4  ;;  %v864_v40 = vmax.f32 %v8562_v39, %v8594_v42  ;;  %13912 = vst [vmem:[#allocation39_spill] sm:$0xff] %v8620_v54 }
 0x14e   : > { %v673_v28 = vrot.slane %v672_v55, 1  ;;  %v687_v38 = vrot.slane %v686_v13, 1  ;;  %v766_v1 = vadd.f32 %v8606_v5, %v8564_v50  ;;  %v680_v44 = vrot.slane %v679_v29, 1 }
 0x14f   : > { %v949_v51 = vmax.f32 %v793_v24, %v807_v0  ;;  %v694_v60 = vrot.slane %v693_v32, 1  ;;  %v754_v52 = vadd.f32 %v753_v3, %v752_v2  ;;  %v865_v4 = vrot.slane %v864_v40, 4 }
 0x150   : > { %v674_v33 = vadd.f32 %v673_v28, %v672_v55  ;;  %v688_v43 = vadd.f32 %v687_v38, %v686_v13  ;;  %v767_v6 = vrot.slane %v766_v1, 4  ;;  %v681_v12 = vadd.f32 %v680_v44, %v679_v29 }
 0x151   : > { %v8618_v61 = vmax.f32 %v948_v25, %v949_v51  ;;  %v695_v11 = vadd.f32 %v694_v60, %v693_v32  ;;  %v878_v0 = vmax.f32 %v8564_v50, %v8606_v5  ;;  %v755_v55 = vrot.slane %v754_v52, 2 }
 0x152   : > { %v892_v24 = vadd.f32 %v688_v43, %v674_v33  ;;  %v866_v13 = vmax.f32 %v864_v40, %v865_v4  ;;  %v768_v28 = vadd.f32 %v767_v6, %v766_v1  ;;  %v759_v25 = vadd.f32 %v8616_v53, %v8566_v31 }
 0x153   : > { %964 = vrot.lane.b32.xlu0 %v8618_v61, %s7889_s22  ;;  %v893_v2 = vadd.f32 %v695_v11, %v681_v12  ;;  %v879_v38 = vrot.slane %v878_v0, 4  ;;  %v871_v29 = vmax.f32 %v8566_v31, %v8616_v53  ;;  %v773_v32 = vadd.f32 %v8620_v54, %v8576_v30 }
 0x154   : > { %v8632_v51 = vadd.f32 %v755_v55, %v754_v52  ;;  %v867_v3 = vrot.slane %v866_v13, 2  ;;  %v769_v33 = vrot.slane %v768_v28, 2  ;;  %v760_v44 = vrot.slane %v759_v25, 4 }
 0x155   : > { %v8634_v43 = vadd.f32 %v893_v2, %v892_v24  ;;  %v880_v40 = vmax.f32 %v878_v0, %v879_v38  ;;  %v872_v1 = vrot.slane %v871_v29, 4  ;;  %v774_v60 = vrot.slane %v773_v32, 4 }
 0x156   : > { %v8636_v4 = vmax.f32 %v866_v13, %v867_v3  ;;  %v8638_v6 = vadd.f32 %v769_v33, %v768_v28  ;;  %v761_v12 = vadd.f32 %v760_v44, %v759_v25  ;;  %v885_v11 = vmax.f32 %v8576_v30, %v8620_v54 }
 0x157   : > { %908 = vrot.lane.b32.xlu1 %v8634_v43, %s7889_s22  ;;  %v881_v52 = vrot.slane %v880_v40, 2  ;;  %v873_v55 = vmax.f32 %v871_v29, %v872_v1  ;;  %v775_v42 = vadd.f32 %v774_v60, %v773_v32  ;;  %v813_v24 = vrot.slane %v8528_v49, 1 }
 0x158   : > { %v762_v2 = vrot.slane %v761_v12, 2  ;;  %v886_v0 = vrot.slane %v885_v11, 4  ;;  %v820_v38 = vrot.slane %v8548_v15, 1  ;;  %v827_v13 = vrot.slane %v8532_v59, 1 }
 0x159   : > { %v8647_v28 = vmax.f32 %v880_v40, %v881_v52  ;;  %v874_v25 = vrot.slane %v873_v55, 2  ;;  %v776_v3 = vrot.slane %v775_v42, 2  ;;  %v814_v33 = vmax.f32 %v8528_v49, %v813_v24 }
 0x15a   : > { %v763_v44 = vadd.f32 %v762_v2, %v761_v12  ;;  %v887_v53 = vmax.f32 %v885_v11, %v886_v0  ;;  %v821_v5 = vmax.f32 %v8548_v15, %v820_v38  ;;  %v828_v29 = vmax.f32 %v8532_v59, %v827_v13 }
 0x15b   : > { %v875_v32 = vmax.f32 %v873_v55, %v874_v25  ;;  %v777_v1 = vadd.f32 %v776_v3, %v775_v42  ;;  %v834_v60 = vrot.slane %v8552_v23, 1  ;;  %v701_v54 = vrot.slane %v8526_v48, 1 }
 0x15c   : > { %v888_v39 = vrot.slane %v887_v53, 2  ;;  %v950_v31 = vmax.f32 %v814_v33, %v828_v29  ;;  %v708_v40 = vrot.slane %v8546_v14, 1  ;;  %v715_v52 = vrot.slane %v8530_v58, 1 }
 0x15d   : > { %v835_v49 = vmax.f32 %v8552_v23, %v834_v60  ;;  %v702_v12 = vadd.f32 %v701_v54, %v8526_v48  ;;  %v722_v15 = vrot.slane %v8550_v22, 1  ;;  %v729_v59 = vrot.slane %v8568_v7, 1 }
 0x15e   : > { %v889_v11 = vmax.f32 %v887_v53, %v888_v39  ;;  %v709_v42 = vadd.f32 %v708_v40, %v8546_v14  ;;  %v716_v55 = vadd.f32 %v715_v52, %v8530_v58  ;;  %v736_v24 = vrot.slane %v8586_v45, 1 }
 0x15f   : > { %v951_v2 = vmax.f32 %v821_v5, %v835_v49  ;;  %v723_v0 = vadd.f32 %v722_v15, %v8550_v22  ;;  %v730_v38 = vadd.f32 %v729_v59, %v8568_v7  ;;  %v743_v23 = vrot.slane %v8572_v9, 1 }
 0x160   : > { %v894_v13 = vadd.f32 %v716_v55, %v702_v12  ;;  %v737_v48 = vadd.f32 %v736_v24, %v8586_v45  ;;  %v750_v54 = vrot.slane %v8590_v35, 1  ;;  %v841_v39 = vrot.slane %v8570_v8, 1 }
 0x161   : > { %v957_v53 = vmax.f32 %v950_v31, %v951_v2  ;;  %v895_v14 = vadd.f32 %v723_v0, %v709_v42  ;;  %v744_v58 = vadd.f32 %v743_v23, %v8572_v9  ;;  %v848_v25 = vrot.slane %v8588_v34, 1 }
 0x162   : > { %v751_v5 = vadd.f32 %v750_v54, %v8590_v35  ;;  %v842_v22 = vmax.f32 %v8570_v8, %v841_v39  ;;  %v855_v7 = vrot.slane %v8574_v10, 1  ;;  %v862_v3 = vrot.slane %v8592_v41, 1 }
 0x163   : > { %966 = vrot.lane.b32.xlu1 %v957_v53, %s7889_s22  ;;  %v901_v45 = vadd.f32 %v895_v14, %v894_v13  ;;  %v896_v33 = vadd.f32 %v744_v58, %v730_v38  ;;  %v849_v29 = vmax.f32 %v8588_v34, %v848_v25  ;;  %v757_v31 = vrot.slane %v8632_v51, 1 }
 0x164   : > { %v897_v60 = vadd.f32 %v751_v5, %v737_v48  ;;  %v856_v9 = vmax.f32 %v8574_v10, %v855_v7  ;;  %v863_v40 = vmax.f32 %v8592_v41, %v862_v3  ;;  %v764_v35 = vrot.slane %v763_v44, 1 }
 0x165   : > { %910 = vrot.lane.b32.xlu0 %v901_v45, %s7889_s22  ;;  %v758_v8 = vadd.f32 %v757_v31, %v8632_v51  ;;  %v771_v52 = vrot.slane %v8638_v6, 1  ;;  %v778_v49 = vrot.slane %v777_v1, 1  ;;  %v869_v12 = vrot.slane %v8636_v4, 1 }
 0x166   : > { %v902_v15 = vadd.f32 %v897_v60, %v896_v33  ;;  %v765_v59 = vadd.f32 %v764_v35, %v763_v44  ;;  %v953_v34 = vmax.f32 %v849_v29, %v863_v40  ;;  %v876_v24 = vrot.slane %v875_v32, 1 }
 0x167   : > { %v772_v42 = vadd.f32 %v771_v52, %v8638_v6  ;;  %v779_v55 = vadd.f32 %v778_v49, %v777_v1  ;;  %v952_v10 = vmax.f32 %v842_v22, %v856_v9  ;;  %v883_v41 = vrot.slane %v8647_v28, 1 }
 0x168   : > { %v890_v2 = vrot.slane %v889_v11, 1  ;;  %v870_v38 = vmax.f32 %v8636_v4, %v869_v12  ;;  %v877_v23 = vmax.f32 %v875_v32, %v876_v24  ;;  %v1033_v35 = vlaneseq }
 0x169   : > { %912 = vrot.lane.b32.xlu0 %v902_v15, %s7889_s22  ;;  %v898_v0 = vadd.f32 %v772_v42, %v758_v8  ;;  %v899_v51 = vadd.f32 %v779_v55, %v765_v59  ;;  %v884_v13 = vmax.f32 %v8647_v28, %v883_v41  ;;  %v958_v44 = vmax.f32 %v952_v10, %v953_v34 }
 0x16a   : > { %v891_v48 = vmax.f32 %v889_v11, %v890_v2  ;;  %v8694_v49 = vshrl.u32 %v1033_v35, 7  ;;  %v2406_v35 = vld [vmem:[%s13578_s4 + $0x1f0] sm:$0xff] }
 0x16b   : > { %v903_v54 = vadd.f32 %v899_v51, %v898_v0  ;;  %v954_v6 = vmax.f32 %v870_v38, %v884_v13 }
 0x16c   : > { %v955_v39 = vmax.f32 %v877_v23, %v891_v48  ;;  %v8697_v2 = vsub.s32 1, %v8694_v49  ;;  %v1031_v23 = vld [vmem:[%s13576_s2] sm:$0x3]  ;;  %v8703_v13 = vsub.s32 0, %v8694_v49 }
 0x16d   : > { %968 = vrot.lane.b32.xlu0 %v958_v44, %s7889_s22  ;;  %914 = vrot.lane.b32.xlu1 %v903_v54, %s7889_s22 }
 0x16e   : > { %v959_v1 = vmax.f32 %v954_v6, %v955_v39  ;;  %13913 = vst [vmem:[#allocation40_spill] sm:$0xff] %v8697_v2  ;;  %13914 = vst [vmem:[#allocation41_spill] sm:$0xff] %v8703_v13 }
 0x171   : > { %970 = vrot.lane.b32.xlu1 %v959_v1, %s7889_s22  ;;  %s7898_s22 = smov 122  }
 0x1c5   : > { %v965_v25 = vpop.permute.xlu0 %964 }
 0x1c6   : > { %v976_v4 = vmax.f32 %v8618_v61, %v965_v25 }
 0x1c9   : > { %v909_v14 = vpop.permute.xlu1 %908 }
 0x1ca   : > { %v920_v58 = vadd.f32 %v909_v14, %v8634_v43 }
 0x1cc   : > { %928 = vrot.lane.b32.xlu0 %v920_v58, %s7890_s23 }
 0x1d0   : > { %984 = vrot.lane.b32.xlu0 %v976_v4, %s7890_s23 }
 0x1d5   : > { %v967_v28 = vpop.permute.xlu1 %966 }
 0x1d6   : > { %v977_v32 = vmax.f32 %v957_v53, %v967_v28 }
 0x1d7   : > { %v911_v11 = vpop.permute.xlu0 %910 }
 0x1d8   : > { %v921_v5 = vadd.f32 %v911_v11, %v901_v45  ;;  %986 = vrot.lane.b32.xlu1 %v977_v32, %s7890_s23 }
 0x1da   : > { %930 = vrot.lane.b32.xlu0 %v921_v5, %s7890_s23 }
 0x1db   : > { %v913_v22 = vpop.permute.xlu0 %912 }
 0x1dc   : > { %v922_v7 = vadd.f32 %v913_v22, %v902_v15 }
 0x1de   : > { %932 = vrot.lane.b32.xlu1 %v922_v7, %s7890_s23 }
 0x1df   : > { %v969_v3 = vpop.permute.xlu0 %968  ;;  %v915_v33 = vpop.permute.xlu1 %914 }
 0x1e0   : > { %v978_v29 = vmax.f32 %v958_v44, %v969_v3  ;;  %v923_v31 = vadd.f32 %v915_v33, %v903_v54 }
 0x1e2   : > { %988 = vrot.lane.b32.xlu0 %v978_v29, %s7890_s23  ;;  %934 = vrot.lane.b32.xlu1 %v923_v31, %s7890_s23 }
 0x1e3   : > { %v971_v43 = vpop.permute.xlu1 %970 }
 0x1e4   : > { %v979_v60 = vmax.f32 %v959_v1, %v971_v43 }
 0x1e6   : > { %990 = vrot.lane.b32.xlu1 %v979_v60, %s7890_s23  ;;  %s7899_s23 = smov 125  }
 0x23e   : > { %v929_v61 = vpop.permute.xlu0 %928 }
 0x23f   : > { %v940_v55 = vadd.f32 %v929_v61, %v920_v58  ;;  %v1095_v58 = vrot.slane %v1031_v23, %v8697_v2  ;;  %v2407_v61 = vld [vmem:[%s13578_s4 + $0x1f8] sm:$0xff] }
 0x240   : > { %7105 = vmatprep.subr.mxu1 %v2407_v61  ;;  %v2364_v61 = vld [vmem:[%s13578_s4 + $0xa0] sm:$0xff] }
 0x241   : > { %v944_v39 = vmul.f32 0.00390625, %v940_v55  ;;  %v2356_v55 = vld [vmem:[%s13578_s4 + $0x60] sm:$0xff] }
 0x242   : > { %v985_v9 = vpop.permute.xlu0 %984 }
 0x243   : > { %v996_v24 = vmax.f32 %v976_v4, %v985_v9  ;;  %v2359_v9 = vld [vmem:[%s13578_s4 + $0x78] sm:$0xff] }
 0x245   : > { %v1018_v6 = vrot.slane %v996_v24, 4  ;;  %v2388_v24 = vld [vmem:[%s13578_s4 + $0x160] sm:$0xff] }
 0x24a   : > { %v987_v53 = vpop.permute.xlu1 %986 }
 0x24b   : > { %v997_v15 = vmax.f32 %v977_v32, %v987_v53  ;;  %v1036_v32 = vrot.slane %v1031_v23, %v8703_v13  ;;  %v2374_v53 = vld [vmem:[%s13578_s4 + $0xf0] sm:$0xff] }
 0x24c   : > { %v931_v40 = vpop.permute.xlu0 %930  ;;  %v2402_v23 = vld [vmem:[%s13578_s4 + $0x1d0] sm:$0xff] }
 0x24d   : > { %v941_v45 = vadd.f32 %v931_v40, %v921_v5  ;;  %v1019_v51 = vrot.slane %v997_v15, 3  ;;  %v2391_v40 = vld [vmem:[%s13578_s4 + $0x178] sm:$0xff]  ;;  %v2357_v15 = vld [vmem:[%s13578_s4 + $0x68] sm:$0xff] }
 0x24e   : > { %7106 = vmatpush3.msra.mxu1 %v2391_v40  ;;  %v2348_v40 = vld [vmem:[%s13578_s4 + $0x20] sm:$0xff] }
 0x24f   : > { %v945_v12 = vmul.f32 0.00390625, %v941_v45  ;;  %v1021_v4 = vsel %vm1020_vm1, %v1019_v51, %v1018_v6  ;;  %v2358_v45 = vld [vmem:[%s13578_s4 + $0x70] sm:$0xff]  ;;  %7107 = vmatprep.subr.mxu1 %v2406_v35  ;;  %v2387_v51 = vld [vmem:[%s13578_s4 + $0x158] sm:$0xff]  ;;  %v2353_v6 = vld [vmem:[%s13578_s4 + $0x48] sm:$0xff]  ;;  %vm3572_vm1 = vcmask 1041408  }
 0x250   : > { %v933_v8 = vpop.permute.xlu1 %932  ;;  %v2363_v35 = vld [vmem:[%s13578_s4 + $0x98] sm:$0xff] }
 0x251   : > { %v942_v52 = vadd.f32 %v933_v8, %v922_v7  ;;  %v1004_v0 = vrot.slane %v945_v12, 7  ;;  %v2390_v8 = vld [vmem:[%s13578_s4 + $0x170] sm:$0xff]  ;;  %v2405_v12 = vld [vmem:[%s13578_s4 + $0x1e8] sm:$0xff] }
 0x252   : > { %7108 = vmatpush3.msra.mxu1 %v2390_v8  ;;  %v2347_v8 = vld [vmem:[%s13578_s4 + $0x18] sm:$0xff] }
 0x253   : > { %v946_v59 = vmul.f32 0.00390625, %v942_v52  ;;  %v1006_v25 = vsel %vm1005_vm0, %v1004_v0, %v944_v39  ;;  %v2373_v52 = vld [vmem:[%s13578_s4 + $0xe8] sm:$0xff]  ;;  %7109 = vmatprep.subr.mxu1 %v2405_v12  ;;  %v2355_v0 = vld [vmem:[%s13578_s4 + $0x58] sm:$0xff]  ;;  %v2362_v12 = vld [vmem:[%s13578_s4 + $0x90] sm:$0xff]  ;;  %vm3511_vm0 = vcmask 1044480  }
 0x254   : > { %v989_v34 = vpop.permute.xlu0 %988  ;;  %v935_v42 = vpop.permute.xlu1 %934  ;;  %v2401_v39 = vld [vmem:[%s13578_s4 + $0x1c8] sm:$0xff] }
 0x255   : > { %v998_v10 = vmax.f32 %v978_v29, %v989_v34  ;;  %v943_v41 = vadd.f32 %v935_v42, %v923_v31  ;;  %v1007_v48 = vrot.slane %v946_v59, 6  ;;  %v2389_v59 = vld [vmem:[%s13578_s4 + $0x168] sm:$0xff]  ;;  %v2372_v34 = vld [vmem:[%s13578_s4 + $0xe0] sm:$0xff] }
 0x256   : > { %v2404_v42 = vld [vmem:[%s13578_s4 + $0x1e0] sm:$0xff]  ;;  %7110 = vmatpush3.msra.mxu1 %v2389_v59  ;;  %v2346_v59 = vld [vmem:[%s13578_s4 + $0x10] sm:$0xff] }
 0x257   : > { %v947_v38 = vmul.f32 0.00390625, %v943_v41  ;;  %v1022_v44 = vrot.slane %v998_v10, 2  ;;  %v1009_v11 = vsel %vm1008_vm2, %v1007_v48, %v1006_v25  ;;  %v2371_v10 = vld [vmem:[%s13578_s4 + $0xd8] sm:$0xff]  ;;  %7111 = vmatprep.subr.mxu1 %v2404_v42  ;;  %v2354_v48 = vld [vmem:[%s13578_s4 + $0x50] sm:$0xff]  ;;  %v2352_v25 = vld [vmem:[%s13578_s4 + $0x40] sm:$0xff]  ;;  %vm3470_vm2 = vcmask 1040384  }
 0x258   : > { %v991_v54 = vpop.permute.xlu1 %990  ;;  %v2403_v41 = vld [vmem:[%s13578_s4 + $0x1d8] sm:$0xff]  ;;  %7112 = vmatpush3.msra.mxu1 %v2388_v24  ;;  %v2361_v42 = vld [vmem:[%s13578_s4 + $0x88] sm:$0xff] }
 0x259   : > { %v1010_v1 = vrot.slane %v947_v38, 5  ;;  %v999_v14 = vmax.f32 %v979_v60, %v991_v54  ;;  %v1024_v5 = vsel %vm1023_vm3, %v1022_v44, %v1021_v4  ;;  %v2375_v60 = vld [vmem:[%s13578_s4 + $0xf8] sm:$0xff]  ;;  %v2370_v38 = vld [vmem:[%s13578_s4 + $0xd0] sm:$0xff]  ;;  %7113 = vmatprep.subr.mxu1 %v2403_v41  ;;  %v2369_v54 = vld [vmem:[%s13578_s4 + $0xc8] sm:$0xff]  ;;  %vm6597_vm3 = vcmask 130048  }
 0x25a   : > { %7049 = vmatprep.subr.mxu0 %v2375_v60  ;;  %v2386_v44 = vld [vmem:[%s13578_s4 + $0x150] sm:$0xff]  ;;  %7114 = vmatpush3.msra.mxu1 %v2387_v51  ;;  %v2384_v4 = vld [vmem:[%s13578_s4 + $0x140] sm:$0xff]  ;;  %v2381_v60 = vld [vmem:[%s13578_s4 + $0x128] sm:$0xff] }
 0x25b   : > { %v1025_v28 = vrot.slane %v999_v14, 1  ;;  %v1012_v22 = vsel %vm1011_vm4, %v1010_v1, %v1009_v11  ;;  %7050 = vmatpush3.msra.mxu0 %v2359_v9  ;;  %7115 = vmatprep.subr.mxu1 %v2402_v23  ;;  %v2385_v1 = vld [vmem:[%s13578_s4 + $0x148] sm:$0xff]  ;;  %v2368_v14 = vld [vmem:[%s13578_s4 + $0xc0] sm:$0xff]  ;;  %v2351_v11 = vld [vmem:[%s13578_s4 + $0x38] sm:$0xff] }
 0x25c   : > { %7051 = vmatprep.subr.mxu0 %v2374_v53  ;;  %7116 = vmatpush3.msra.mxu1 %v2386_v44  ;;  %v2396_v9 = vld [vmem:[%s13578_s4 + $0x1a0] sm:$0xff]  ;;  %v2345_v24 = vld [vmem:[%s13578_s4 + $0x8] sm:$0xff] }
 0x25d   : > { %v1027_v7 = vsel %vm1026_vm5, %v1025_v28, %v1024_v5  ;;  %7052 = vmatpush3.msra.mxu0 %v2358_v45  ;;  %7117 = vmatprep.subr.mxu1 %v2401_v39  ;;  %v2367_v28 = vld [vmem:[%s13578_s4 + $0xb8] sm:$0xff]  ;;  %v2380_v53 = vld [vmem:[%s13578_s4 + $0x120] sm:$0xff]  ;;  %v8905_v39 = vsub.s32 3, %v8694_v49 }
 0x25e   : > { %v1030_v3 = vsel %vm1029_vm6, %v1012_v22, %v1027_v7  ;;  %7053 = vmatprep.subr.mxu0 %v2373_v52  ;;  %7118 = vmatpush3.msra.mxu1 %v2385_v1  ;;  %v2383_v5 = vld [vmem:[%s13578_s4 + $0x138] sm:$0xff]  ;;  %v2366_v22 = vld [vmem:[%s13578_s4 + $0xb0] sm:$0xff]  ;;  %v2360_v41 = vld [vmem:[%s13578_s4 + $0x80] sm:$0xff]  ;;  %v8911_v1 = vsub.s32 7, %v8694_v49 }
 0x25f   : > { %v1096_v33 = vmul.f32 %v1095_v58, %v1030_v3  ;;  %v1037_v29 = vmul.f32 %v1036_v32, %v1030_v3  ;;  %7054 = vmatpush3.msra.mxu0 %v2357_v15  ;;  %v2400_v58 = vld [vmem:[%s13578_s4 + $0x1c0] sm:$0xff]  ;;  %v2399_v32 = vld [vmem:[%s13578_s4 + $0x1b8] sm:$0xff]  ;;  %v2398_v7 = vld [vmem:[%s13578_s4 + $0x1b0] sm:$0xff]  ;;  %13915 = vst [vmem:[#allocation42_spill] sm:$0xff] %v8905_v39 }
 0x260   : > { %7055 = vmatprep.subr.mxu0 %v2372_v34  ;;  %7119 = vmatprep.subr.mxu1 %v2400_v58  ;;  %v2350_v3 = vld [vmem:[%s13578_s4 + $0x30] sm:$0xff]  ;;  %v2395_v45 = vld [vmem:[%s13578_s4 + $0x198] sm:$0xff]  ;;  %v2344_v51 = vld [vmem:[%s13578_s4] sm:$0xff]  ;;  %13917 = vst [vmem:[#allocation44_spill] sm:$0xff] %v8911_v1  ;;  %v8917_v58 = vsub.s32 2, %v8694_v49 }
 0x261   : > { %v1097_v31 = vsel %vm1038_vm7, %v1096_v33, 0.0  ;;  %v1039_v43 = vsel %vm1038_vm7, %v1037_v29, 0.0  ;;  %7056 = vmatpush3.msra.mxu0 %v2356_v55  ;;  %7120 = vmatpush3.msra.mxu1 %v2384_v4  ;;  %v2382_v33 = vld [vmem:[%s13578_s4 + $0x130] sm:$0xff]  ;;  %v2365_v29 = vld [vmem:[%s13578_s4 + $0xa8] sm:$0xff]  ;;  %v2379_v52 = vld [vmem:[%s13578_s4 + $0x118] sm:$0xff]  ;;  %v8923_v4 = vsub.s32 6, %v8694_v49 }
 0x262   : > { %1098 = vadd.xlane.f32.xlu1 %v1097_v31  ;;  %1040 = vadd.xlane.f32.xlu0 %v1039_v43  ;;  %v2397_v31 = vld [vmem:[%s13578_s4 + $0x1a8] sm:$0xff]  ;;  %v2394_v15 = vld [vmem:[%s13578_s4 + $0x190] sm:$0xff]  ;;  %13918 = vst [vmem:[#allocation45_spill] sm:$0xff] %v8917_v58 }
 0x263   : > { %7057 = vmatprep.subr.mxu0 %v2371_v10  ;;  %7121 = vmatprep.subr.mxu1 %v2399_v32  ;;  %v2349_v43 = vld [vmem:[%s13578_s4 + $0x28] sm:$0xff]  ;;  %v2378_v34 = vld [vmem:[%s13578_s4 + $0x110] sm:$0xff]  ;;  %13920 = vst [vmem:[#allocation47_spill] sm:$0xff] %v8923_v4 }
 0x264   : > { %7058 = vmatpush3.msra.mxu0 %v2355_v0  ;;  %7122 = vmatpush3.msra.mxu1 %v2383_v5  ;;  %v2393_v55 = vld [vmem:[%s13578_s4 + $0x188] sm:$0xff]  ;;  %v2392_v0 = vld [vmem:[%s13578_s4 + $0x180] sm:$0xff] }
 0x265   : > { %7059 = vmatprep.subr.mxu0 %v2370_v38  ;;  %7123 = vmatprep.subr.mxu1 %v2398_v7  ;;  %v2377_v10 = vld [vmem:[%s13578_s4 + $0x108] sm:$0xff]  ;;  %v2376_v38 = vld [vmem:[%s13578_s4 + $0x100] sm:$0xff] }
 0x266   : > { %7060 = vmatpush3.msra.mxu0 %v2354_v48  ;;  %7124 = vmatpush3.msra.mxu1 %v2382_v33 }
 0x267   : > { %7061 = vmatprep.subr.mxu0 %v2369_v54  ;;  %7125 = vmatprep.subr.mxu1 %v2397_v31 }
 0x268   : > { %7062 = vmatpush3.msra.mxu0 %v2353_v6  ;;  %7126 = vmatpush3.msra.mxu1 %v2381_v60  ;;  %v8908_v6 = vsub.s32 5, %v8694_v49 }
 0x269   : > { %7063 = vmatprep.subr.mxu0 %v2368_v14  ;;  %7127 = vmatprep.subr.mxu1 %v2396_v9  ;;  %v1032_v14 = vld [vmem:[%s13577_s3] sm:$0xff] }
 0x26a   : > { %7064 = vmatpush3.msra.mxu0 %v2352_v25  ;;  %7128 = vmatpush3.msra.mxu1 %v2380_v53  ;;  %13916 = vst [vmem:[#allocation43_spill] sm:$0xff] %v8908_v6  ;;  %v8920_v25 = vsub.s32 4, %v8694_v49  ;;  %v1112_v32 = vrot.slane %v1032_v14, %v8905_v39  ;;  %v1120_v5 = vrot.slane %v1032_v14, %v8911_v1 }
 0x26b   : > { %7065 = vmatprep.subr.mxu0 %v2367_v28  ;;  %7129 = vmatprep.subr.mxu1 %v2395_v45  ;;  %v1108_v28 = vrot.slane %v1032_v14, %v8697_v2  ;;  %v1055_v7 = vrot.slane %v1032_v14, %v8917_v58  ;;  %v1063_v33 = vrot.slane %v1032_v14, %v8923_v4 }
 0x26c   : > { %7066 = vmatpush3.msra.mxu0 %v2351_v11  ;;  %7130 = vmatpush3.msra.mxu1 %v2379_v52  ;;  %13919 = vst [vmem:[#allocation46_spill] sm:$0xff] %v8920_v25  ;;  %v1116_v11 = vrot.slane %v1032_v14, %v8908_v6 }
 0x26d   : > { %7067 = vmatprep.subr.mxu0 %v2366_v22  ;;  %7131 = vmatprep.subr.mxu1 %v2394_v15  ;;  %v1051_v22 = vrot.slane %v1032_v14, %v8703_v13  ;;  %v1128_v31 = vrot.slane %v1108_v28, %v8697_v2  ;;  %v1075_v45 = vrot.slane %v1055_v7, %v8703_v13 }
 0x26e   : > { %7068 = vmatpush3.msra.mxu0 %v2350_v3  ;;  %7132 = vmatpush3.msra.mxu1 %v2378_v34  ;;  %v1059_v3 = vrot.slane %v1032_v14, %v8920_v25  ;;  %v1136_v60 = vrot.slane %v1116_v11, %v8697_v2  ;;  %v1083_v52 = vrot.slane %v1063_v33, %v8703_v13 }
 0x26f   : > { %7069 = vmatprep.subr.mxu0 %v2365_v29  ;;  %7133 = vmatprep.subr.mxu1 %v2393_v55 }
 0x270   : > { %7070 = vmatpush3.msra.mxu0 %v2349_v43  ;;  %7134 = vmatpush3.msra.mxu1 %v2377_v10  ;;  %v1132_v43 = vrot.slane %v1112_v32, %v8697_v2 }
 0x271   : > { %7071 = vmatprep.subr.mxu0 %v2364_v61  ;;  %7135 = vmatprep.subr.mxu1 %v2392_v0  ;;  %v1140_v61 = vrot.slane %v1120_v5, %v8697_v2 }
 0x272   : > { %7072 = vmatpush3.msra.mxu0 %v2348_v40  ;;  %7136 = vmatpush3.msra.mxu1 %v2376_v38 }
 0x273   : > { %7073 = vmatprep.subr.mxu0 %v2363_v35  ;;  %v1071_v35 = vrot.slane %v1051_v22, %v8703_v13 }
 0x274   : > { %7074 = vmatpush3.msra.mxu0 %v2347_v8  ;;  %v1079_v8 = vrot.slane %v1059_v3, %v8703_v13 }
 0x275   : > { %7075 = vmatprep.subr.mxu0 %v2362_v12 }
 0x276   : > { %7076 = vmatpush3.msra.mxu0 %v2346_v59 }
 0x277   : > { %7077 = vmatprep.subr.mxu0 %v2361_v42 }
 0x278   : > { %7078 = vmatpush3.msra.mxu0 %v2345_v24 }
 0x279   : > { %7079 = vmatprep.subr.mxu0 %v2360_v41 }
 0x27a   : > { %7080 = vmatpush3.msra.mxu0 %v2344_v51 }
 0x2eb   : > { %v1099_v23 = vpop.xlane.xlu1 %1098  ;;  %v1041_v48 = vpop.xlane.xlu0 %1040 }
 0x2ec   : > { %v1101_v44 = vmul.f32 0.70710677, %v1099_v23  ;;  %v1043_v54 = vmul.f32 0.70710677, %v1041_v48  ;;  %v1100_v40 = vmul.f32 0.5, %v1099_v23  ;;  %v1042_v12 = vmul.f32 0.5, %v1041_v48 }
 0x2ee   : > { %7740 = verf.f32 %v1101_v44 }
 0x2ef   : > { %7742 = verf.f32 %v1043_v54 }
 0x2fb   : > { %v7741_v29 = vpop.eup %7740 }
 0x2fc   : > { %v7743_v9 = vpop.eup %7742  ;;  %v1103_v53 = vadd.f32 1.0, %v7741_v29 }
 0x2fd   : > { %v1045_v15 = vadd.f32 1.0, %v7743_v9 }
 0x2fe   : > { %v1104_v59 = vmul.f32 %v1103_v53, %v1100_v40 }
 0x2ff   : > { %v1046_v34 = vmul.f32 %v1045_v15, %v1042_v12 }
 0x300   : > { %v1141_v42 = vmul.f32 %v1128_v31, %v1104_v59  ;;  %v1142_v55 = vmul.f32 %v1132_v43, %v1104_v59  ;;  %v1143_v24 = vmul.f32 %v1136_v60, %v1104_v59  ;;  %v1144_v10 = vmul.f32 %v1140_v61, %v1104_v59 }
 0x301   : > { %v1084_v41 = vmul.f32 %v1071_v35, %v1046_v34  ;;  %v1085_v0 = vmul.f32 %v1075_v45, %v1046_v34  ;;  %v1086_v51 = vmul.f32 %v1079_v8, %v1046_v34  ;;  %v1087_v38 = vmul.f32 %v1083_v52, %v1046_v34 }
 0x302   : > { %v7891_v52 = vmov 1966171168  }
 0x303   : > { %v1145_v23 = vadd.f32 %v1141_v42, %v1084_v41  ;;  %v1146_v44 = vadd.f32 %v1142_v55, %v1085_v0  ;;  %v1147_v54 = vadd.f32 %v1143_v24, %v1086_v51  ;;  %v1148_v14 = vadd.f32 %v1144_v10, %v1087_v38 }
 0x304   : > { %v1196_v12 = vunpack.c.l.s4 %v7891_v52 }
 0x305   : > { %v1153_v28 = vrot.slane %v1145_v23, 4  ;;  %v1154_v32 = vrot.slane %v1146_v44, 4  ;;  %v1155_v11 = vrot.slane %v1147_v54, 4  ;;  %v1156_v5 = vrot.slane %v1148_v14, 4 }
 0x306   : > { %v1197_v15 = vunpack.c.0.s8 %v1196_v12 }
 0x307   : > { %v1161_v48 = vadd.f32 %v1153_v28, %v1145_v23  ;;  %v1162_v22 = vadd.f32 %v1154_v32, %v1146_v44  ;;  %v1163_v7 = vadd.f32 %v1155_v11, %v1147_v54  ;;  %v1164_v3 = vadd.f32 %v1156_v5, %v1148_v14 }
 0x308   : > { %v1200_v34 = vsub.s32 %v1197_v15, %v8694_v49 }
 0x309   : > { %v7011_v33 = vmul.f32 -1.442695, %v1161_v48  ;;  %v7012_v29 = vmul.f32 -1.442695, %v1162_v22  ;;  %v7013_v31 = vmul.f32 -1.442695, %v1163_v7 }
 0x30a   : > { %v7014_v43 = vmul.f32 -1.442695, %v1164_v3 }
 0x30b   : > { %7744 = vpow2.f32 %v7011_v33 }
 0x30c   : > { %7746 = vpow2.f32 %v7012_v29 }
 0x30d   : > { %7748 = vpow2.f32 %v7013_v31 }
 0x30e   : > { %7750 = vpow2.f32 %v7014_v43 }
 0x318   : > { %v7745_v60 = vpop.eup %7744 }
 0x319   : > { %v7747_v61 = vpop.eup %7746  ;;  %v1177_v9 = vadd.f32 1.0, %v7745_v60 }
 0x31a   : > { %v7749_v40 = vpop.eup %7748  ;;  %v1178_v53 = vadd.f32 1.0, %v7747_v61 }
 0x31b   : > { %v7751_v35 = vpop.eup %7750  ;;  %v1179_v45 = vadd.f32 1.0, %v7749_v40  ;;  %7752 = vrcp.f32 %v1177_v9 }
 0x31c   : > { %v1180_v8 = vadd.f32 1.0, %v7751_v35  ;;  %7754 = vrcp.f32 %v1178_v53 }
 0x31d   : > { %7756 = vrcp.f32 %v1179_v45 }
 0x31e   : > { %7758 = vrcp.f32 %v1180_v8 }
 0x328   : > { %v7753_v59 = vpop.eup %7752 }
 0x329   : > { %v7755_v42 = vpop.eup %7754 }
 0x32a   : > { %v7757_v55 = vpop.eup %7756  ;;  %v1193_v24 = vcombine.low %v7753_v59, %v7755_v42 }
 0x32b   : > { %v7759_v10 = vpop.eup %7758 }
 0x32c   : > { %v1194_v41 = vcombine.low %v7757_v55, %v7759_v10  ;;  %v1201_v0 = vrot.slane %v1193_v24, %v1200_v34 }
 0x32e   : > { %v1208_v51 = vrot.slane %v1194_v41, %v1200_v34 }
 0x330   : > { %v1209_v38 = vcombine.low %v1201_v0, %v1208_v51  ;;  %v1210_v23 = vcombine.high %v1201_v0, %v1208_v51 }
 0x332   : > { %v1217_v44 = vrot.slane %v1209_v38, %v1200_v34  ;;  %v1224_v54 = vrot.slane %v1210_v23, %v1200_v34 }
 0x334   : > { %v1234_v14 = vrot.slane %v1217_v44, %v8697_v2  ;;  %v1242_v28 = vrot.slane %v1217_v44, %v8905_v39  ;;  %v1230_v32 = vrot.slane %v1217_v44, %v8703_v13  ;;  %v1238_v11 = vrot.slane %v1217_v44, %v8917_v58 }
 0x335   : > { %v1258_v3 = vrot.slane %v1224_v54, %v8905_v39  ;;  %v1250_v33 = vrot.slane %v1224_v54, %v8697_v2  ;;  %v1254_v29 = vrot.slane %v1224_v54, %v8917_v58  ;;  %v1246_v40 = vrot.slane %v1224_v54, %v8703_v13 }
 0x336   : > { %v8947_v49 = vmul.f32 %v1234_v14, %v8434_v18  ;;  %v8950_v5 = vmul.f32 %v1242_v28, %v8436_v19  ;;  %v8953_v48 = vmul.f32 %v1230_v32, %v8430_v16  ;;  %v8956_v22 = vmul.f32 %v1238_v11, %v8432_v17 }
 0x337   : > { %v8959_v7 = vmul.f32 %v1242_v28, %v8452_v27  ;;  %v8971_v60 = vmul.f32 %v1238_v11, %v8440_v21  ;;  %v8976_v61 = vmul.f32 %v1234_v14, %v8450_v26  ;;  %v8979_v9 = vmul.f32 %v1230_v32, %v8438_v20  ;;  %v13921_v14 = vld [vmem:[#allocation26_spill] sm:$0xff]  ;;  %v13922_v32 = vld [vmem:[#allocation27_spill] sm:$0xff] }
 0x338   : > { %2536 = vmatprep.mubr.f32.mxu0 %v8947_v49  ;;  %2641 = vmatprep.mubr.f32.mxu1 %v8950_v5  ;;  %v7345_v31 = vpack.i.bf16 %v8950_v5, %v8956_v22  ;;  %v7340_v43 = vpack.i.bf16 %v8947_v49, %v8953_v48  ;;  %v8989_v35 = vmul.f32 %v1258_v3, %v8472_v47 }
 0x339   : > { %2537 = vmatmul.mubr.f32.vlgmr.msra.gmra.mxu0 %v8953_v48  ;;  %2642 = vmatmul.mubr.f32.vlgmr.msra.gmra.mxu1 %v8956_v22  ;;  %v7355_v53 = vpack.i.bf16 %v8959_v7, %v8971_v60  ;;  %v8992_v45 = vmul.f32 %v1254_v29, %v8464_v37  ;;  %v1225_v8 = vcombine.high %v1217_v44, %v1217_v44 }
 0x33a   : > { %7346 = vrot.lane.b32.xlu1 %v7345_v31, %s7892_s21  ;;  %2646 = vmatprep.mubr.f32.mxu1 %v8959_v7  ;;  %v7350_v52 = vpack.i.bf16 %v8976_v61, %v8979_v9  ;;  %v8999_v12 = vmul.f32 %v1250_v33, %v8470_v46  ;;  %v9002_v15 = vmul.f32 %v1246_v40, %v8462_v36 }
 0x33b   : > { %7341 = vrot.lane.b32.xlu0 %v7340_v43, %s7892_s21  ;;  %2541 = vmatprep.mubr.f32.mxu0 %v8976_v61  ;;  %v9009_v59 = vmul.f32 %v1258_v3, %v8498_v63  ;;  %v9012_v34 = vmul.f32 %v1250_v33, %v8496_v62  ;;  %v9015_v42 = vmul.f32 %v1254_v29, %v8486_v57  ;;  %v13923_v3 = vld [vmem:[#allocation25_spill] sm:$0xff]  ;;  %v13925_v43 = vld [vmem:[#allocation31_spill] sm:$0xff]  ;;  %v13934_v63 = vld [vmem:[#allocation36_spill] sm:$0xff] }
 0x33c   : > { %v7365_v55 = vpack.i.bf16 %v8989_v35, %v8992_v45  ;;  %v1266_v24 = vrot.slane %v1225_v8, %v8697_v2  ;;  %v1274_v10 = vrot.slane %v1225_v8, %v8905_v39  ;;  %v1270_v41 = vrot.slane %v1225_v8, %v8917_v58 }
 0x33d   : > { %2542 = vmatmul.mubr.f32.gmra.mxu0 %v8979_v9  ;;  %2647 = vmatmul.mubr.f32.gmra.mxu1 %v8971_v60  ;;  %v7360_v0 = vpack.i.bf16 %v8999_v12, %v9002_v15  ;;  %v9027_v51 = vmul.f32 %v1246_v40, %v8484_v56  ;;  %v1262_v38 = vrot.slane %v1225_v8, %v8703_v13 }
 0x33e   : > { %7356 = vrot.lane.b32.xlu1 %v7355_v53, %s7892_s21  ;;  %2651 = vmatprep.mubr.f32.mxu1 %v8989_v35  ;;  %v1226_v23 = vcombine.high %v1224_v54, %v1224_v54  ;;  %v7375_v44 = vpack.i.bf16 %v9009_v59, %v9015_v42  ;;  %v9037_v28 = vmul.f32 %v1266_v24, %v13921_v14  ;;  %v13924_v54 = vld [vmem:[#allocation24_spill] sm:$0xff] }
 0x33f   : > { %7351 = vrot.lane.b32.xlu0 %v7350_v52, %s7892_s21  ;;  %2546 = vmatprep.mubr.f32.mxu0 %v8999_v12  ;;  %v9040_v11 = vmul.f32 %v1274_v10, %v13922_v32  ;;  %v9043_v33 = vmul.f32 %v1270_v41, %v13923_v3  ;;  %v7370_v29 = vpack.i.bf16 %v9012_v34, %v9027_v51 }
 0x340   : > { %v9050_v31 = vmul.f32 %v1262_v38, %v13924_v54  ;;  %v9057_v40 = vmul.f32 %v1274_v10, %v13925_v43  ;;  %v1290_v53 = vrot.slane %v1226_v23, %v8905_v39  ;;  %v1282_v8 = vrot.slane %v1226_v23, %v8697_v2  ;;  %v13928_v43 = vld [vmem:[#allocation28_spill] sm:$0xff]  ;;  %v13932_v54 = vld [vmem:[#allocation37_spill] sm:$0xff] }
 0x341   : > { %2547 = vmatmul.mubr.f32.gmra.mxu0 %v9002_v15  ;;  %2652 = vmatmul.mubr.f32.gmra.mxu1 %v8992_v45  ;;  %v7385_v52 = vpack.i.bf16 %v9040_v11, %v9043_v33  ;;  %v9075_v14 = vmul.f32 %v1262_v38, %v13928_v43  ;;  %v1278_v3 = vrot.slane %v1226_v23, %v8703_v13 }
 0x342   : > { %7366 = vrot.lane.b32.xlu1 %v7365_v55, %s7892_s21  ;;  %2656 = vmatprep.mubr.f32.mxu1 %v9009_v59  ;;  %v13926_v55 = vld [vmem:[#allocation30_spill] sm:$0xff]  ;;  %v7380_v10 = vpack.i.bf16 %v9037_v28, %v9050_v31 }
 0x343   : > { %7361 = vrot.lane.b32.xlu0 %v7360_v0, %s7892_s21  ;;  %2551 = vmatprep.mubr.f32.mxu0 %v9012_v34  ;;  %v9064_v0 = vmul.f32 %v1266_v24, %v13926_v55  ;;  %v9120_v62 = vmul.f32 %v1278_v3, %v13934_v63 }
 0x345   : > { %2552 = vmatmul.mubr.f32.gmra.mxu0 %v9027_v51  ;;  %2657 = vmatmul.mubr.f32.gmra.mxu1 %v9015_v42  ;;  %v7390_v38 = vpack.i.bf16 %v9064_v0, %v9075_v14 }
 0x346   : > { %7376 = vrot.lane.b32.xlu1 %v7375_v44, %s7892_s21  ;;  %2556 = vmatprep.mubr.f32.mxu0 %v9037_v28  ;;  %v13927_v44 = vld [vmem:[#allocation29_spill] sm:$0xff] }
 0x347   : > { %7371 = vrot.lane.b32.xlu0 %v7370_v29, %s7892_s21  ;;  %2661 = vmatprep.mubr.f32.mxu1 %v9040_v11  ;;  %v9067_v32 = vmul.f32 %v1270_v41, %v13927_v44  ;;  %v1286_v29 = vrot.slane %v1226_v23, %v8917_v58  ;;  %v9085_v41 = vmul.f32 %v1290_v53, %v8576_v30  ;;  %v13929_v23 = vld [vmem:[#allocation34_spill] sm:$0xff] }
 0x349   : > { %2557 = vmatmul.mubr.f32.gmra.mxu0 %v9050_v31  ;;  %2662 = vmatmul.mubr.f32.gmra.mxu1 %v9043_v33  ;;  %v7395_v24 = vpack.i.bf16 %v9057_v40, %v9067_v32  ;;  %v9088_v55 = vmul.f32 %v1286_v29, %v8564_v50  ;;  %v13931_v50 = vld [vmem:[#allocation39_spill] sm:$0xff] }
 0x34a   : > { %7386 = vrot.lane.b32.xlu1 %v7385_v52, %s7892_s21  ;;  %2666 = vmatprep.mubr.f32.mxu1 %v9057_v40  ;;  %v9095_v52 = vmul.f32 %v1282_v8, %v13929_v23  ;;  %v9107_v43 = vmul.f32 %v1290_v53, %v13931_v50  ;;  %v9110_v23 = vmul.f32 %v1286_v29, %v13932_v54 }
 0x34b   : > { %7381 = vrot.lane.b32.xlu0 %v7380_v10, %s7892_s21  ;;  %2561 = vmatprep.mubr.f32.mxu0 %v9064_v0  ;;  %v13930_v10 = vld [vmem:[#allocation32_spill] sm:$0xff]  ;;  %v7405_v30 = vpack.i.bf16 %v9085_v41, %v9088_v55 }
 0x34c   : > { %v9098_v44 = vmul.f32 %v1278_v3, %v13930_v10  ;;  %v13933_v10 = vld [vmem:[#allocation38_spill] sm:$0xff]  ;;  %v7415_v53 = vpack.i.bf16 %v9107_v43, %v9110_v23 }
 0x34d   : > { %2562 = vmatmul.mubr.f32.gmra.mxu0 %v9075_v14  ;;  %2667 = vmatmul.mubr.f32.gmra.mxu1 %v9067_v32 }
 0x34e   : > { %7396 = vrot.lane.b32.xlu1 %v7395_v24, %s7892_s21  ;;  %2671 = vmatprep.mubr.f32.mxu1 %v9085_v41  ;;  %v7400_v24 = vpack.i.bf16 %v9095_v52, %v9098_v44 }
 0x34f   : > { %7391 = vrot.lane.b32.xlu0 %v7390_v38, %s7892_s21  ;;  %2566 = vmatprep.mubr.f32.mxu0 %v9095_v52  ;;  %v9117_v38 = vmul.f32 %v1282_v8, %v13933_v10 }
 0x351   : > { %2567 = vmatmul.mubr.f32.gmra.mxu0 %v9098_v44  ;;  %2672 = vmatmul.mubr.f32.gmra.mxu1 %v9088_v55  ;;  %v7410_v8 = vpack.i.bf16 %v9117_v38, %v9120_v62 }
 0x352   : > { %7406 = vrot.lane.b32.xlu1 %v7405_v30, %s7892_s21  ;;  %2676 = vmatprep.mubr.f32.mxu1 %v9107_v43 }
 0x353   : > { %7401 = vrot.lane.b32.xlu0 %v7400_v24, %s7892_s21  ;;  %2571 = vmatprep.mubr.f32.mxu0 %v9117_v38 }
 0x355   : > { %2572 = vmatmul.mubr.f32.gmra.mxu0 %v9120_v62  ;;  %2677 = vmatmul.mubr.f32.gmra.mxu1 %v9110_v23 }
 0x356   : > { %7416 = vrot.lane.b32.xlu1 %v7415_v53, %s7892_s21 }
 0x357   : > { %7411 = vrot.lane.b32.xlu0 %v7410_v8, %s7892_s21  ;;  %s7048_s21 = sshll.u32 %s7966_s28, 12 }
 0x358   : > { %s13522_s9 = scalar_lea.hbm %s13581_s7, %s7048_s21 }
 0x3ac   : > { %v7347_v30 = vpop.permute.xlu1 %7346 }
 0x3ad   : > { %v7349_v3 = vunpack.i.h.bf16 %v7347_v30  ;;  %v7348_v29 = vunpack.i.l.bf16 %v7347_v30  ;;  %v7342_v24 = vpop.permute.xlu0 %7341 }
 0x3ae   : > { %v7344_v50 = vunpack.i.h.bf16 %v7342_v24  ;;  %v7343_v10 = vunpack.i.l.bf16 %v7342_v24 }
 0x3af   : > { %v1438_v54 = vsel %vm1435_vm8, %v7348_v29, %v7349_v3 }
 0x3b0   : > { %v7357_v63 = vpop.permute.xlu1 %7356  ;;  %v1500_v57 = vsel %vm1435_vm8, %v7349_v3, %v7343_v10  ;;  %v9137_v56 = vmax.f32 %v8956_v22, %v1438_v54  ;;  %v1436_v47 = vsel %vm1435_vm8, %v7343_v10, %v7344_v50  ;;  %v1437_v53 = vsel %vm1435_vm8, %v7344_v50, %v7348_v29 }
 0x3b1   : > { %v7359_v8 = vunpack.i.h.bf16 %v7357_v63  ;;  %v7358_v46 = vunpack.i.l.bf16 %v7357_v63  ;;  %v7352_v37 = vpop.permute.xlu0 %7351  ;;  %v9142_v30 = vmax.f32 %v8950_v5, %v1500_v57  ;;  %v9145_v24 = vmax.f32 %v8953_v48, %v1436_v47 }
 0x3b2   : > { %v7354_v36 = vunpack.i.h.bf16 %v7352_v37  ;;  %v7353_v27 = vunpack.i.l.bf16 %v7352_v37  ;;  %v9148_v3 = vmax.f32 %v8947_v49, %v1437_v53 }
 0x3b3   : > { %v7425_v22 = vpack.i.bf16 %v9142_v30, %v9137_v56  ;;  %v1441_v54 = vsel %vm1435_vm8, %v7358_v46, %v7359_v8 }
 0x3b4   : > { %v7367_v50 = vpop.permute.xlu1 %7366  ;;  %v7420_v63 = vpack.i.bf16 %v9148_v3, %v9145_v24  ;;  %v1501_v57 = vsel %vm1435_vm8, %v7359_v8, %v7353_v27  ;;  %v9157_v5 = vmax.f32 %v8971_v60, %v1441_v54  ;;  %v1439_v47 = vsel %vm1435_vm8, %v7353_v27, %v7354_v36 }
 0x3b5   : > { %v7369_v37 = vunpack.i.h.bf16 %v7367_v50  ;;  %v7368_v48 = vunpack.i.l.bf16 %v7367_v50  ;;  %v7362_v49 = vpop.permute.xlu0 %7361  ;;  %7426 = vrot.lane.b32.xlu1 %v7425_v22, %s7893_s13  ;;  %v9162_v10 = vmax.f32 %v8959_v7, %v1501_v57  ;;  %v1440_v29 = vsel %vm1435_vm8, %v7354_v36, %v7358_v46 }
 0x3b6   : > { %v7364_v53 = vunpack.i.h.bf16 %v7362_v49  ;;  %v7363_v26 = vunpack.i.l.bf16 %v7362_v49  ;;  %7421 = vrot.lane.b32.xlu0 %v7420_v63, %s7893_s13  ;;  %v9167_v60 = vmax.f32 %v8979_v9, %v1439_v47  ;;  %v9170_v27 = vmax.f32 %v8976_v61, %v1440_v29 }
 0x3b7   : > { %v7435_v8 = vpack.i.bf16 %v9162_v10, %v9157_v5  ;;  %v1444_v22 = vsel %vm1435_vm8, %v7368_v48, %v7369_v37 }
 0x3b8   : > { %v7377_v54 = vpop.permute.xlu1 %7376  ;;  %v7430_v7 = vpack.i.bf16 %v9170_v27, %v9167_v60  ;;  %v1502_v36 = vsel %vm1435_vm8, %v7369_v37, %v7363_v26  ;;  %v9179_v46 = vmax.f32 %v8992_v45, %v1444_v22  ;;  %v1442_v9 = vsel %vm1435_vm8, %v7363_v26, %v7364_v53 }
 0x3b9   : > { %v7379_v50 = vunpack.i.h.bf16 %v7377_v54  ;;  %v7378_v63 = vunpack.i.l.bf16 %v7377_v54  ;;  %v7372_v61 = vpop.permute.xlu0 %7371  ;;  %7436 = vrot.lane.b32.xlu1 %v7435_v8, %s7893_s13  ;;  %v9184_v57 = vmax.f32 %v8989_v35, %v1502_v36  ;;  %v1443_v47 = vsel %vm1435_vm8, %v7364_v53, %v7368_v48 }
 0x3ba   : > { %v7374_v49 = vunpack.i.h.bf16 %v7372_v61  ;;  %v7373_v29 = vunpack.i.l.bf16 %v7372_v61  ;;  %7431 = vrot.lane.b32.xlu0 %v7430_v7, %s7893_s13  ;;  %v9189_v37 = vmax.f32 %v9002_v15, %v1442_v9  ;;  %v9192_v45 = vmax.f32 %v8999_v12, %v1443_v47 }
 0x3bb   : > { %v7445_v26 = vpack.i.bf16 %v9184_v57, %v9179_v46  ;;  %v1447_v8 = vsel %vm1435_vm8, %v7378_v63, %v7379_v50 }
 0x3bc   : > { %v7387_v22 = vpop.permute.xlu1 %7386  ;;  %v7440_v35 = vpack.i.bf16 %v9192_v45, %v9189_v37  ;;  %v1503_v48 = vsel %vm1435_vm8, %v7379_v50, %v7373_v29  ;;  %v9201_v53 = vmax.f32 %v9015_v42, %v1447_v8  ;;  %v1445_v15 = vsel %vm1435_vm8, %v7373_v29, %v7374_v49 }
 0x3bd   : > { %7446 = vrot.lane.b32.xlu1 %v7445_v26, %s7893_s13  ;;  %v7389_v12 = vunpack.i.h.bf16 %v7387_v22  ;;  %v7388_v54 = vunpack.i.l.bf16 %v7387_v22  ;;  %v7382_v7 = vpop.permute.xlu0 %7381  ;;  %v9206_v36 = vmax.f32 %v9009_v59, %v1503_v48  ;;  %v1446_v9 = vsel %vm1435_vm8, %v7374_v49, %v7378_v63 }
 0x3be   : > { %7441 = vrot.lane.b32.xlu0 %v7440_v35, %s7893_s13  ;;  %v7384_v61 = vunpack.i.h.bf16 %v7382_v7  ;;  %v7383_v47 = vunpack.i.l.bf16 %v7382_v7  ;;  %v9211_v50 = vmax.f32 %v9027_v51, %v1445_v15  ;;  %v9214_v42 = vmax.f32 %v9012_v34, %v1446_v9 }
 0x3bf   : > { %v7455_v29 = vpack.i.bf16 %v9206_v36, %v9201_v53  ;;  %v1450_v26 = vsel %vm1435_vm8, %v7388_v54, %v7389_v12 }
 0x3c0   : > { %v7397_v8 = vpop.permute.xlu1 %7396  ;;  %v7450_v59 = vpack.i.bf16 %v9214_v42, %v9211_v50  ;;  %v1504_v63 = vsel %vm1435_vm8, %v7389_v12, %v7383_v47  ;;  %v9223_v49 = vmax.f32 %v9043_v33, %v1450_v26  ;;  %v1448_v51 = vsel %vm1435_vm8, %v7383_v47, %v7384_v61 }
 0x3c1   : > { %7456 = vrot.lane.b32.xlu1 %v7455_v29, %s7893_s13  ;;  %v7399_v34 = vunpack.i.h.bf16 %v7397_v8  ;;  %v7398_v22 = vunpack.i.l.bf16 %v7397_v8  ;;  %v7392_v35 = vpop.permute.xlu0 %7391  ;;  %v9228_v48 = vmax.f32 %v9040_v11, %v1504_v63  ;;  %v1449_v15 = vsel %vm1435_vm8, %v7384_v61, %v7388_v54 }
 0x3c2   : > { %7451 = vrot.lane.b32.xlu0 %v7450_v59, %s7893_s13  ;;  %v7394_v7 = vunpack.i.h.bf16 %v7392_v35  ;;  %v7393_v9 = vunpack.i.l.bf16 %v7392_v35  ;;  %v9233_v12 = vmax.f32 %v9050_v31, %v1448_v51  ;;  %v9236_v33 = vmax.f32 %v9037_v28, %v1449_v15 }
 0x3c3   : > { %v7465_v47 = vpack.i.bf16 %v9228_v48, %v9223_v49  ;;  %v1453_v29 = vsel %vm1435_vm8, %v7398_v22, %v7399_v34 }
 0x3c4   : > { %v7407_v26 = vpop.permute.xlu1 %7406  ;;  %v7460_v11 = vpack.i.bf16 %v9236_v33, %v9233_v12  ;;  %v1505_v54 = vsel %vm1435_vm8, %v7399_v34, %v7393_v9  ;;  %v9245_v61 = vmax.f32 %v9067_v32, %v1453_v29  ;;  %v1451_v31 = vsel %vm1435_vm8, %v7393_v9, %v7394_v7 }
 0x3c5   : > { %v7409_v8 = vunpack.i.h.bf16 %v7407_v26  ;;  %v7408_v59 = vunpack.i.l.bf16 %v7407_v26  ;;  %v7402_v28 = vpop.permute.xlu0 %7401  ;;  %7466 = vrot.lane.b32.xlu1 %v7465_v47, %s7893_s13  ;;  %v9250_v63 = vmax.f32 %v9057_v40, %v1505_v54  ;;  %v1452_v51 = vsel %vm1435_vm8, %v7394_v7, %v7398_v22 }
 0x3c6   : > { %v7404_v35 = vunpack.i.h.bf16 %v7402_v28  ;;  %v7403_v15 = vunpack.i.l.bf16 %v7402_v28  ;;  %7461 = vrot.lane.b32.xlu0 %v7460_v11, %s7893_s13  ;;  %v9255_v34 = vmax.f32 %v9075_v14, %v1451_v31  ;;  %v9258_v32 = vmax.f32 %v9064_v0, %v1452_v51 }
 0x3c7   : > { %v7475_v9 = vpack.i.bf16 %v9250_v63, %v9245_v61  ;;  %v1456_v47 = vsel %vm1435_vm8, %v7408_v59, %v7409_v8 }
 0x3c8   : > { %v7417_v29 = vpop.permute.xlu1 %7416  ;;  %v7470_v40 = vpack.i.bf16 %v9258_v32, %v9255_v34  ;;  %v1506_v22 = vsel %vm1435_vm8, %v7409_v8, %v7403_v15  ;;  %v9267_v7 = vmax.f32 %v9088_v55, %v1456_v47  ;;  %v1454_v14 = vsel %vm1435_vm8, %v7403_v15, %v7404_v35 }
 0x3c9   : > { %v7419_v26 = vunpack.i.h.bf16 %v7417_v29  ;;  %v7418_v11 = vunpack.i.l.bf16 %v7417_v29  ;;  %v7412_v0 = vpop.permute.xlu0 %7411  ;;  %7476 = vrot.lane.b32.xlu1 %v7475_v9, %s7893_s13  ;;  %v9272_v54 = vmax.f32 %v9085_v41, %v1506_v22  ;;  %v1455_v31 = vsel %vm1435_vm8, %v7404_v35, %v7408_v59 }
 0x3ca   : > { %v7414_v28 = vunpack.i.h.bf16 %v7412_v0  ;;  %v7413_v51 = vunpack.i.l.bf16 %v7412_v0  ;;  %7471 = vrot.lane.b32.xlu0 %v7470_v40, %s7893_s13  ;;  %v9277_v8 = vmax.f32 %v9098_v44, %v1454_v14  ;;  %v9280_v55 = vmax.f32 %v9095_v52, %v1455_v31 }
 0x3cb   : > { %v7485_v15 = vpack.i.bf16 %v9272_v54, %v9267_v7  ;;  %v1459_v9 = vsel %vm1435_vm8, %v7418_v11, %v7419_v26 }
 0x3cc   : > { %v7480_v41 = vpack.i.bf16 %v9280_v55, %v9277_v8  ;;  %v1507_v59 = vsel %vm1435_vm8, %v7419_v26, %v7413_v51  ;;  %v9289_v35 = vmax.f32 %v9110_v23, %v1459_v9  ;;  %v1457_v47 = vsel %vm1435_vm8, %v7413_v51, %v7414_v28 }
 0x3cd   : > { %7486 = vrot.lane.b32.xlu1 %v7485_v15, %s7893_s13  ;;  %v9294_v44 = vmax.f32 %v9107_v43, %v1507_v59  ;;  %v1458_v52 = vsel %vm1435_vm8, %v7414_v28, %v7418_v11  ;;  %v9298_v29 = vmax.f32 %v9120_v62, %v1457_v47 }
 0x3ce   : > { %7481 = vrot.lane.b32.xlu0 %v7480_v41, %s7893_s13  ;;  %v9302_v40 = vmax.f32 %v9117_v38, %v1458_v52 }
 0x3cf   : > { %v7495_v23 = vpack.i.bf16 %v9294_v44, %v9289_v35 }
 0x3d0   : > { %v7490_v22 = vpack.i.bf16 %v9302_v40, %v9298_v29 }
 0x3d1   : > { %7496 = vrot.lane.b32.xlu1 %v7495_v23, %s7893_s13 }
 0x3d2   : > { %7491 = vrot.lane.b32.xlu0 %v7490_v22, %s7893_s13 }
 0x3f9   : > { %v9310_v43 = vpop.f32.mrf.mxu0  ;;  %v9312_v14 = vpop.f32.mrf.mxu1 }
 0x3fb   : > { %v9314_v62 = vpop.f32.mrf.mxu0  ;;  %v9316_v26 = vpop.f32.mrf.mxu1 }
 0x3fd   : > { %v9318_v38 = vpop.f32.mrf.mxu0  ;;  %v9320_v11 = vpop.f32.mrf.mxu1 }
 0x3ff   : > { %v9322_v0 = vpop.f32.mrf.mxu0  ;;  %v9324_v31 = vpop.f32.mrf.mxu1 }
 0x401   : > { %v7087_v28 = vpop.f32.mrf.mxu0  ;;  %v7143_v51 = vpop.f32.mrf.mxu1 }
 0x403   : > { %v7088_v15 = vpop.f32.mrf.mxu0  ;;  %v7144_v9 = vpop.f32.mrf.mxu1 }
 0x404   : > { %v7089_v41 = vadd.f32 %v7088_v15, %v7087_v28  ;;  %v7145_v59 = vadd.f32 %v7144_v9, %v7143_v51 }
 0x405   : > { %v7090_v47 = vpop.f32.mrf.mxu0  ;;  %v7146_v52 = vpop.f32.mrf.mxu1 }
 0x406   : > { %v9326_v23 = vadd.f32 %v7145_v59, %v7089_v41 }
 0x407   : > { %v7091_v22 = vpop.f32.mrf.mxu0  ;;  %v7147_v21 = vpop.f32.mrf.mxu1 }
 0x408   : > { %v7092_v20 = vadd.f32 %v7091_v22, %v7090_v47  ;;  %v7148_v19 = vadd.f32 %v7147_v21, %v7146_v52 }
 0x409   : > { %v7093_v18 = vpop.f32.mrf.mxu0  ;;  %v7149_v17 = vpop.f32.mrf.mxu1 }
 0x40a   : > { %v9328_v16 = vadd.f32 %v7148_v19, %v7092_v20 }
 0x40b   : > { %v7094_v2 = vpop.f32.mrf.mxu0  ;;  %v7150_v6 = vpop.f32.mrf.mxu1 }
 0x40c   : > { %v7095_v58 = vadd.f32 %v7094_v2, %v7093_v18  ;;  %v7151_v4 = vadd.f32 %v7150_v6, %v7149_v17 }
 0x40d   : > { %v7096_v39 = vpop.f32.mrf.mxu0  ;;  %v7152_v1 = vpop.f32.mrf.mxu1 }
 0x40e   : > { %v9330_v28 = vadd.f32 %v7151_v4, %v7095_v58 }
 0x40f   : > { %v7097_v51 = vpop.f32.mrf.mxu0  ;;  %v7153_v15 = vpop.f32.mrf.mxu1 }
 0x410   : > { %v7098_v9 = vadd.f32 %v7097_v51, %v7096_v39  ;;  %v7154_v41 = vadd.f32 %v7153_v15, %v7152_v1 }
 0x411   : > { %v7099_v59 = vpop.f32.mrf.mxu0  ;;  %v7155_v13 = vpop.f32.mrf.mxu1 }
 0x412   : > { %v9332_v47 = vadd.f32 %v7154_v41, %v7098_v9 }
 0x413   : > { %v7100_v21 = vpop.f32.mrf.mxu0  ;;  %v7156_v52 = vpop.f32.mrf.mxu1 }
 0x414   : > { %v7101_v19 = vadd.f32 %v7100_v21, %v7099_v59  ;;  %v7157_v20 = vadd.f32 %v7156_v52, %v7155_v13 }
 0x415   : > { %v7102_v22 = vpop.f32.mrf.mxu0  ;;  %v7158_v25 = vpop.f32.mrf.mxu1 }
 0x416   : > { %v9334_v18 = vadd.f32 %v7157_v20, %v7101_v19 }
 0x417   : > { %v7103_v17 = vpop.f32.mrf.mxu0  ;;  %v7159_v2 = vpop.f32.mrf.mxu1 }
 0x418   : > { %v7104_v6 = vadd.f32 %v7103_v17, %v7102_v22  ;;  %v7160_v58 = vadd.f32 %v7159_v2, %v7158_v25 }
 0x41a   : > { %v9336_v4 = vadd.f32 %v7160_v58, %v7104_v6 }
 0x41c   : > { %13935 = vst [vmem:[#allocation48_spill] sm:$0xff] %v9336_v4 }
 0x427   : > { %v7427_v39 = vpop.permute.xlu1 %7426 }
 0x428   : > { %v7429_v1 = vunpack.i.h.bf16 %v7427_v39  ;;  %v7428_v51 = vunpack.i.l.bf16 %v7427_v39  ;;  %v7422_v15 = vpop.permute.xlu0 %7421 }
 0x429   : > { %v7424_v9 = vunpack.i.h.bf16 %v7422_v15  ;;  %v7423_v41 = vunpack.i.l.bf16 %v7422_v15 }
 0x42a   : > { %v1639_v59 = vsel %vm1636_vm9, %v7428_v51, %v7429_v1 }
 0x42b   : > { %v7437_v13 = vpop.permute.xlu1 %7436  ;;  %v1701_v21 = vsel %vm1636_vm9, %v7429_v1, %v7423_v41  ;;  %v9341_v52 = vmax.f32 %v9137_v56, %v1639_v59  ;;  %v1637_v19 = vsel %vm1636_vm9, %v7423_v41, %v7424_v9  ;;  %v1638_v25 = vsel %vm1636_vm9, %v7424_v9, %v7428_v51 }
 0x42c   : > { %v7439_v20 = vunpack.i.h.bf16 %v7437_v13  ;;  %v7438_v22 = vunpack.i.l.bf16 %v7437_v13  ;;  %v7432_v17 = vpop.permute.xlu0 %7431  ;;  %v9346_v2 = vmax.f32 %v9142_v30, %v1701_v21  ;;  %v9349_v6 = vmax.f32 %v9145_v24, %v1637_v19 }
 0x42d   : > { %v7434_v58 = vunpack.i.h.bf16 %v7432_v17  ;;  %v7433_v39 = vunpack.i.l.bf16 %v7432_v17  ;;  %v9352_v1 = vmax.f32 %v9148_v3, %v1638_v25 }
 0x42e   : > { %v7505_v56 = vpack.i.bf16 %v9346_v2, %v9341_v52  ;;  %v1642_v15 = vsel %vm1636_vm9, %v7438_v22, %v7439_v20 }
 0x42f   : > { %v7447_v51 = vpop.permute.xlu1 %7446  ;;  %v7500_v9 = vpack.i.bf16 %v9352_v1, %v9349_v6  ;;  %v1702_v30 = vsel %vm1636_vm9, %v7439_v20, %v7433_v39  ;;  %v9361_v41 = vmax.f32 %v9157_v5, %v1642_v15  ;;  %v1640_v24 = vsel %vm1636_vm9, %v7433_v39, %v7434_v58 }
 0x430   : > { %v7449_v59 = vunpack.i.h.bf16 %v7447_v51  ;;  %v7448_v13 = vunpack.i.l.bf16 %v7447_v51  ;;  %v7442_v3 = vpop.permute.xlu0 %7441  ;;  %7506 = vrot.lane.b32.xlu1 %v7505_v56, %s7894_s17  ;;  %v9366_v21 = vmax.f32 %v9162_v10, %v1702_v30  ;;  %v1641_v19 = vsel %vm1636_vm9, %v7434_v58, %v7438_v22 }
 0x431   : > { %v7444_v25 = vunpack.i.h.bf16 %v7442_v3  ;;  %v7443_v17 = vunpack.i.l.bf16 %v7442_v3  ;;  %7501 = vrot.lane.b32.xlu0 %v7500_v9, %s7894_s17  ;;  %v9371_v5 = vmax.f32 %v9167_v60, %v1640_v24  ;;  %v9374_v20 = vmax.f32 %v9170_v27, %v1641_v19 }
 0x432   : > { %v7515_v39 = vpack.i.bf16 %v9366_v21, %v9361_v41  ;;  %v1645_v56 = vsel %vm1636_vm9, %v7448_v13, %v7449_v59 }
 0x433   : > { %v7457_v15 = vpop.permute.xlu1 %7456  ;;  %v7510_v10 = vpack.i.bf16 %v9374_v20, %v9371_v5  ;;  %v1703_v22 = vsel %vm1636_vm9, %v7449_v59, %v7443_v17  ;;  %v9383_v58 = vmax.f32 %v9179_v46, %v1645_v56  ;;  %v1643_v60 = vsel %vm1636_vm9, %v7443_v17, %v7444_v25 }
 0x434   : > { %v7459_v51 = vunpack.i.h.bf16 %v7457_v15  ;;  %v7458_v9 = vunpack.i.l.bf16 %v7457_v15  ;;  %v7452_v27 = vpop.permute.xlu0 %7451  ;;  %7516 = vrot.lane.b32.xlu1 %v7515_v39, %s7894_s17  ;;  %v9388_v30 = vmax.f32 %v9184_v57, %v1703_v22  ;;  %v1644_v24 = vsel %vm1636_vm9, %v7444_v25, %v7448_v13 }
 0x435   : > { %v7454_v3 = vunpack.i.h.bf16 %v7452_v27  ;;  %v7453_v19 = vunpack.i.l.bf16 %v7452_v27  ;;  %7511 = vrot.lane.b32.xlu0 %v7510_v10, %s7894_s17  ;;  %v9393_v59 = vmax.f32 %v9189_v37, %v1643_v60  ;;  %v9396_v46 = vmax.f32 %v9192_v45, %v1644_v24 }
 0x436   : > { %v7525_v17 = vpack.i.bf16 %v9388_v30, %v9383_v58  ;;  %v1648_v39 = vsel %vm1636_vm9, %v7458_v9, %v7459_v51 }
 0x437   : > { %v7467_v56 = vpop.permute.xlu1 %7466  ;;  %v7520_v57 = vpack.i.bf16 %v9396_v46, %v9393_v59  ;;  %v1704_v13 = vsel %vm1636_vm9, %v7459_v51, %v7453_v19  ;;  %v9405_v25 = vmax.f32 %v9201_v53, %v1648_v39  ;;  %v1646_v37 = vsel %vm1636_vm9, %v7453_v19, %v7454_v3 }
 0x438   : > { %7526 = vrot.lane.b32.xlu1 %v7525_v17, %s7894_s17  ;;  %v7469_v45 = vunpack.i.h.bf16 %v7467_v56  ;;  %v7468_v15 = vunpack.i.l.bf16 %v7467_v56  ;;  %v7462_v10 = vpop.permute.xlu0 %7461  ;;  %v9410_v22 = vmax.f32 %v9206_v36, %v1704_v13  ;;  %v1647_v60 = vsel %vm1636_vm9, %v7454_v3, %v7458_v9 }
 0x439   : > { %7521 = vrot.lane.b32.xlu0 %v7520_v57, %s7894_s17  ;;  %v7464_v27 = vunpack.i.h.bf16 %v7462_v10  ;;  %v7463_v24 = vunpack.i.l.bf16 %v7462_v10  ;;  %v9415_v51 = vmax.f32 %v9211_v50, %v1646_v37  ;;  %v9418_v53 = vmax.f32 %v9214_v42, %v1647_v60 }
 0x43a   : > { %v7535_v19 = vpack.i.bf16 %v9410_v22, %v9405_v25  ;;  %v1651_v17 = vsel %vm1636_vm9, %v7468_v15, %v7469_v45 }
 0x43b   : > { %v7477_v39 = vpop.permute.xlu1 %7476  ;;  %v7530_v36 = vpack.i.bf16 %v9418_v53, %v9415_v51  ;;  %v1705_v9 = vsel %vm1636_vm9, %v7469_v45, %v7463_v24  ;;  %v9427_v3 = vmax.f32 %v9223_v49, %v1651_v17  ;;  %v1649_v50 = vsel %vm1636_vm9, %v7463_v24, %v7464_v27 }
 0x43c   : > { %7536 = vrot.lane.b32.xlu1 %v7535_v19, %s7894_s17  ;;  %v7479_v42 = vunpack.i.h.bf16 %v7477_v39  ;;  %v7478_v56 = vunpack.i.l.bf16 %v7477_v39  ;;  %v7472_v57 = vpop.permute.xlu0 %7471  ;;  %v9432_v13 = vmax.f32 %v9228_v48, %v1705_v9  ;;  %v1650_v37 = vsel %vm1636_vm9, %v7464_v27, %v7468_v15 }
 0x43d   : > { %7531 = vrot.lane.b32.xlu0 %v7530_v36, %s7894_s17  ;;  %v7474_v10 = vunpack.i.h.bf16 %v7472_v57  ;;  %v7473_v60 = vunpack.i.l.bf16 %v7472_v57  ;;  %v9437_v45 = vmax.f32 %v9233_v12, %v1649_v50  ;;  %v9440_v49 = vmax.f32 %v9236_v33, %v1650_v37 }
 0x43e   : > { %v7545_v24 = vpack.i.bf16 %v9432_v13, %v9427_v3  ;;  %v1654_v19 = vsel %vm1636_vm9, %v7478_v56, %v7479_v42 }
 0x43f   : > { %v7487_v17 = vpop.permute.xlu1 %7486  ;;  %v7540_v48 = vpack.i.bf16 %v9440_v49, %v9437_v45  ;;  %v1706_v15 = vsel %vm1636_vm9, %v7479_v42, %v7473_v60  ;;  %v9449_v27 = vmax.f32 %v9245_v61, %v1654_v19  ;;  %v1652_v12 = vsel %vm1636_vm9, %v7473_v60, %v7474_v10 }
 0x440   : > { %v7489_v39 = vunpack.i.h.bf16 %v7487_v17  ;;  %v7488_v36 = vunpack.i.l.bf16 %v7487_v17  ;;  %v7482_v33 = vpop.permute.xlu0 %7481  ;;  %7546 = vrot.lane.b32.xlu1 %v7545_v24, %s7894_s17  ;;  %v9454_v9 = vmax.f32 %v9250_v63, %v1706_v15  ;;  %v1653_v50 = vsel %vm1636_vm9, %v7474_v10, %v7478_v56 }
 0x441   : > { %v7484_v57 = vunpack.i.h.bf16 %v7482_v33  ;;  %v7483_v37 = vunpack.i.l.bf16 %v7482_v33  ;;  %7541 = vrot.lane.b32.xlu0 %v7540_v48, %s7894_s17  ;;  %v9459_v42 = vmax.f32 %v9255_v34, %v1652_v12  ;;  %v9462_v61 = vmax.f32 %v9258_v32, %v1653_v50 }
 0x442   : > { %v7555_v60 = vpack.i.bf16 %v9454_v9, %v9449_v27  ;;  %v1657_v24 = vsel %vm1636_vm9, %v7488_v36, %v7489_v39 }
 0x443   : > { %v7497_v19 = vpop.permute.xlu1 %7496  ;;  %v7550_v63 = vpack.i.bf16 %v9462_v61, %v9459_v42  ;;  %v1707_v56 = vsel %vm1636_vm9, %v7489_v39, %v7483_v37  ;;  %v9471_v10 = vmax.f32 %v9267_v7, %v1657_v24  ;;  %v1655_v34 = vsel %vm1636_vm9, %v7483_v37, %v7484_v57 }
 0x444   : > { %v7499_v17 = vunpack.i.h.bf16 %v7497_v19  ;;  %v7498_v48 = vunpack.i.l.bf16 %v7497_v19  ;;  %v7492_v32 = vpop.permute.xlu0 %7491  ;;  %7556 = vrot.lane.b32.xlu1 %v7555_v60, %s7894_s17  ;;  %v9476_v15 = vmax.f32 %v9272_v54, %v1707_v56  ;;  %v1656_v12 = vsel %vm1636_vm9, %v7484_v57, %v7488_v36 }
 0x445   : > { %v7494_v33 = vunpack.i.h.bf16 %v7492_v32  ;;  %v7493_v50 = vunpack.i.l.bf16 %v7492_v32  ;;  %7551 = vrot.lane.b32.xlu0 %v7550_v63, %s7894_s17  ;;  %v9481_v39 = vmax.f32 %v9277_v8, %v1655_v34  ;;  %v9484_v7 = vmax.f32 %v9280_v55, %v1656_v12 }
 0x446   : > { %v7565_v37 = vpack.i.bf16 %v9476_v15, %v9471_v10  ;;  %v1660_v60 = vsel %vm1636_vm9, %v7498_v48, %v7499_v17 }
 0x447   : > { %v7560_v54 = vpack.i.bf16 %v9484_v7, %v9481_v39  ;;  %v1708_v36 = vsel %vm1636_vm9, %v7499_v17, %v7493_v50  ;;  %v9493_v57 = vmax.f32 %v9289_v35, %v1660_v60  ;;  %v1658_v24 = vsel %vm1636_vm9, %v7493_v50, %v7494_v33 }
 0x448   : > { %7566 = vrot.lane.b32.xlu1 %v7565_v37, %s7894_s17  ;;  %v9498_v8 = vmax.f32 %v9294_v44, %v1708_v36  ;;  %v1659_v55 = vsel %vm1636_vm9, %v7494_v33, %v7498_v48  ;;  %v9502_v19 = vmax.f32 %v9298_v29, %v1658_v24 }
 0x449   : > { %7561 = vrot.lane.b32.xlu0 %v7560_v54, %s7894_s17  ;;  %v9506_v63 = vmax.f32 %v9302_v40, %v1659_v55 }
 0x44a   : > { %v7575_v35 = vpack.i.bf16 %v9498_v8, %v9493_v57 }
 0x44b   : > { %v7570_v56 = vpack.i.bf16 %v9506_v63, %v9502_v19 }
 0x44c   : > { %7576 = vrot.lane.b32.xlu1 %v7575_v35, %s7894_s17 }
 0x44d   : > { %7571 = vrot.lane.b32.xlu0 %v7570_v56, %s7894_s17 }
 0x4a2   : > { %v7507_v44 = vpop.permute.xlu1 %7506 }
 0x4a3   : > { %v7509_v34 = vunpack.i.h.bf16 %v7507_v44  ;;  %v7508_v29 = vunpack.i.l.bf16 %v7507_v44  ;;  %v7502_v17 = vpop.permute.xlu0 %7501 }
 0x4a4   : > { %v7504_v48 = vunpack.i.h.bf16 %v7502_v17  ;;  %v7503_v32 = vunpack.i.l.bf16 %v7502_v17 }
 0x4a5   : > { %v1840_v40 = vsel %vm1837_vm10, %v7508_v29, %v7509_v34 }
 0x4a6   : > { %v7517_v12 = vpop.permute.xlu1 %7516  ;;  %v1902_v33 = vsel %vm1837_vm10, %v7509_v34, %v7503_v32  ;;  %v9517_v50 = vmax.f32 %v9341_v52, %v1840_v40  ;;  %v1838_v37 = vsel %vm1837_vm10, %v7503_v32, %v7504_v48  ;;  %v1839_v60 = vsel %vm1837_vm10, %v7504_v48, %v7508_v29 }
 0x4a7   : > { %v7519_v54 = vunpack.i.h.bf16 %v7517_v12  ;;  %v7518_v36 = vunpack.i.l.bf16 %v7517_v12  ;;  %v7512_v24 = vpop.permute.xlu0 %7511  ;;  %v9522_v55 = vmax.f32 %v9346_v2, %v1902_v33  ;;  %v9525_v35 = vmax.f32 %v9349_v6, %v1838_v37 }
 0x4a8   : > { %v7514_v56 = vunpack.i.h.bf16 %v7512_v24  ;;  %v7513_v44 = vunpack.i.l.bf16 %v7512_v24  ;;  %v9528_v34 = vmax.f32 %v9352_v1, %v1839_v60 }
 0x4a9   : > { %v7585_v52 = vpack.i.bf16 %v9522_v55, %v9517_v50  ;;  %v1843_v17 = vsel %vm1837_vm10, %v7518_v36, %v7519_v54 }
 0x4aa   : > { %v7527_v29 = vpop.permute.xlu1 %7526  ;;  %v7580_v48 = vpack.i.bf16 %v9528_v34, %v9525_v35  ;;  %v1903_v2 = vsel %vm1837_vm10, %v7519_v54, %v7513_v44  ;;  %v9537_v32 = vmax.f32 %v9361_v41, %v1843_v17  ;;  %v1841_v6 = vsel %vm1837_vm10, %v7513_v44, %v7514_v56 }
 0x4ab   : > { %v7529_v40 = vunpack.i.h.bf16 %v7527_v29  ;;  %v7528_v12 = vunpack.i.l.bf16 %v7527_v29  ;;  %v7522_v1 = vpop.permute.xlu0 %7521  ;;  %7586 = vrot.lane.b32.xlu1 %v7585_v52, %s7895_s18  ;;  %v9542_v33 = vmax.f32 %v9366_v21, %v1903_v2  ;;  %v1842_v37 = vsel %vm1837_vm10, %v7514_v56, %v7518_v36 }
 0x4ac   : > { %v7524_v60 = vunpack.i.h.bf16 %v7522_v1  ;;  %v7523_v24 = vunpack.i.l.bf16 %v7522_v1  ;;  %7581 = vrot.lane.b32.xlu0 %v7580_v48, %s7895_s18  ;;  %v9547_v41 = vmax.f32 %v9371_v5, %v1841_v6  ;;  %v9550_v54 = vmax.f32 %v9374_v20, %v1842_v37 }
 0x4ad   : > { %v7595_v44 = vpack.i.bf16 %v9542_v33, %v9537_v32  ;;  %v1846_v52 = vsel %vm1837_vm10, %v7528_v12, %v7529_v40 }
 0x4ae   : > { %v7537_v17 = vpop.permute.xlu1 %7536  ;;  %v7590_v21 = vpack.i.bf16 %v9550_v54, %v9547_v41  ;;  %v1904_v36 = vsel %vm1837_vm10, %v7529_v40, %v7523_v24  ;;  %v9559_v56 = vmax.f32 %v9383_v58, %v1846_v52  ;;  %v1844_v5 = vsel %vm1837_vm10, %v7523_v24, %v7524_v60 }
 0x4af   : > { %v7539_v29 = vunpack.i.h.bf16 %v7537_v17  ;;  %v7538_v48 = vunpack.i.l.bf16 %v7537_v17  ;;  %v7532_v20 = vpop.permute.xlu0 %7531  ;;  %7596 = vrot.lane.b32.xlu1 %v7595_v44, %s7895_s18  ;;  %v9564_v2 = vmax.f32 %v9388_v30, %v1904_v36  ;;  %v1845_v6 = vsel %vm1837_vm10, %v7524_v60, %v7528_v12 }
 0x4b0   : > { %v7534_v1 = vunpack.i.h.bf16 %v7532_v20  ;;  %v7533_v37 = vunpack.i.l.bf16 %v7532_v20  ;;  %7591 = vrot.lane.b32.xlu0 %v7590_v21, %s7895_s18  ;;  %v9569_v40 = vmax.f32 %v9393_v59, %v1844_v5  ;;  %v9572_v58 = vmax.f32 %v9396_v46, %v1845_v6 }
 0x4b1   : > { %v7605_v24 = vpack.i.bf16 %v9564_v2, %v9559_v56  ;;  %v1849_v44 = vsel %vm1837_vm10, %v7538_v48, %v7539_v29 }
 0x4b2   : > { %v7547_v52 = vpop.permute.xlu1 %7546  ;;  %v7600_v30 = vpack.i.bf16 %v9572_v58, %v9569_v40  ;;  %v1905_v12 = vsel %vm1837_vm10, %v7539_v29, %v7533_v37  ;;  %v9581_v60 = vmax.f32 %v9405_v25, %v1849_v44  ;;  %v1847_v59 = vsel %vm1837_vm10, %v7533_v37, %v7534_v1 }
 0x4b3   : > { %7606 = vrot.lane.b32.xlu1 %v7605_v24, %s7895_s18  ;;  %v7549_v46 = vunpack.i.h.bf16 %v7547_v52  ;;  %v7548_v17 = vunpack.i.l.bf16 %v7547_v52  ;;  %v7542_v21 = vpop.permute.xlu0 %7541  ;;  %v9586_v36 = vmax.f32 %v9410_v22, %v1905_v12  ;;  %v1848_v5 = vsel %vm1837_vm10, %v7534_v1, %v7538_v48 }
 0x4b4   : > { %7601 = vrot.lane.b32.xlu0 %v7600_v30, %s7895_s18  ;;  %v7544_v20 = vunpack.i.h.bf16 %v7542_v21  ;;  %v7543_v6 = vunpack.i.l.bf16 %v7542_v21  ;;  %v9591_v29 = vmax.f32 %v9415_v51, %v1847_v59  ;;  %v9594_v25 = vmax.f32 %v9418_v53, %v1848_v5 }
 0x4b5   : > { %v7615_v37 = vpack.i.bf16 %v9586_v36, %v9581_v60  ;;  %v1852_v24 = vsel %vm1837_vm10, %v7548_v17, %v7549_v46 }
 0x4b6   : > { %v7557_v44 = vpop.permute.xlu1 %7556  ;;  %v7610_v22 = vpack.i.bf16 %v9594_v25, %v9591_v29  ;;  %v1906_v48 = vsel %vm1837_vm10, %v7549_v46, %v7543_v6  ;;  %v9603_v1 = vmax.f32 %v9427_v3, %v1852_v24  ;;  %v1850_v51 = vsel %vm1837_vm10, %v7543_v6, %v7544_v20 }
 0x4b7   : > { %7616 = vrot.lane.b32.xlu1 %v7615_v37, %s7895_s18  ;;  %v7559_v53 = vunpack.i.h.bf16 %v7557_v44  ;;  %v7558_v52 = vunpack.i.l.bf16 %v7557_v44  ;;  %v7552_v30 = vpop.permute.xlu0 %7551  ;;  %v9608_v12 = vmax.f32 %v9432_v13, %v1906_v48  ;;  %v1851_v59 = vsel %vm1837_vm10, %v7544_v20, %v7548_v17 }
 0x4b8   : > { %7611 = vrot.lane.b32.xlu0 %v7610_v22, %s7895_s18  ;;  %v7554_v21 = vunpack.i.h.bf16 %v7552_v30  ;;  %v7553_v5 = vunpack.i.l.bf16 %v7552_v30  ;;  %v9613_v46 = vmax.f32 %v9437_v45, %v1850_v51  ;;  %v9616_v3 = vmax.f32 %v9440_v49, %v1851_v59 }
 0x4b9   : > { %v7625_v6 = vpack.i.bf16 %v9608_v12, %v9603_v1  ;;  %v1855_v37 = vsel %vm1837_vm10, %v7558_v52, %v7559_v53 }
 0x4ba   : > { %v7567_v24 = vpop.permute.xlu1 %7566  ;;  %v7620_v13 = vpack.i.bf16 %v9616_v3, %v9613_v46  ;;  %v1907_v17 = vsel %vm1837_vm10, %v7559_v53, %v7553_v5  ;;  %v9625_v20 = vmax.f32 %v9449_v27, %v1855_v37  ;;  %v1853_v45 = vsel %vm1837_vm10, %v7553_v5, %v7554_v21 }
 0x4bb   : > { %v7569_v44 = vunpack.i.h.bf16 %v7567_v24  ;;  %v7568_v22 = vunpack.i.l.bf16 %v7567_v24  ;;  %v7562_v49 = vpop.permute.xlu0 %7561  ;;  %7626 = vrot.lane.b32.xlu1 %v7625_v6, %s7895_s18  ;;  %v9630_v48 = vmax.f32 %v9454_v9, %v1907_v17  ;;  %v1854_v51 = vsel %vm1837_vm10, %v7554_v21, %v7558_v52 }
 0x4bc   : > { %v7564_v30 = vunpack.i.h.bf16 %v7562_v49  ;;  %v7563_v59 = vunpack.i.l.bf16 %v7562_v49  ;;  %7621 = vrot.lane.b32.xlu0 %v7620_v13, %s7895_s18  ;;  %v9635_v53 = vmax.f32 %v9459_v42, %v1853_v45  ;;  %v9638_v27 = vmax.f32 %v9462_v61, %v1854_v51 }
 0x4bd   : > { %v7635_v5 = vpack.i.bf16 %v9630_v48, %v9625_v20  ;;  %v1858_v6 = vsel %vm1837_vm10, %v7568_v22, %v7569_v44 }
 0x4be   : > { %v7577_v37 = vpop.permute.xlu1 %7576  ;;  %v7630_v9 = vpack.i.bf16 %v9638_v27, %v9635_v53  ;;  %v1908_v52 = vsel %vm1837_vm10, %v7569_v44, %v7563_v59  ;;  %v9647_v21 = vmax.f32 %v9471_v10, %v1858_v6  ;;  %v1856_v42 = vsel %vm1837_vm10, %v7563_v59, %v7564_v30 }
 0x4bf   : > { %v7579_v24 = vunpack.i.h.bf16 %v7577_v37  ;;  %v7578_v13 = vunpack.i.l.bf16 %v7577_v37  ;;  %v7572_v61 = vpop.permute.xlu0 %7571  ;;  %7636 = vrot.lane.b32.xlu1 %v7635_v5, %s7895_s18  ;;  %v9652_v17 = vmax.f32 %v9476_v15, %v1908_v52  ;;  %v1857_v45 = vsel %vm1837_vm10, %v7564_v30, %v7568_v22  ;;  %v2471_v52 = vld [vmem:[%s13578_s4 + $0x3f8] sm:$0xff] }
 0x4c0   : > { %v7574_v49 = vunpack.i.h.bf16 %v7572_v61  ;;  %v7573_v51 = vunpack.i.l.bf16 %v7572_v61  ;;  %7631 = vrot.lane.b32.xlu0 %v7630_v9, %s7895_s18  ;;  %v9657_v44 = vmax.f32 %v9481_v39, %v1856_v42  ;;  %v9660_v10 = vmax.f32 %v9484_v7, %v1857_v45  ;;  %v2439_v9 = vld [vmem:[%s13578_s4 + $0x2f8] sm:$0xff]  ;;  %7217 = vmatprep.subr.mxu1 %v2471_v52  ;;  %v2437_v45 = vld [vmem:[%s13578_s4 + $0x2e8] sm:$0xff] }
 0x4c1   : > { %v7645_v59 = vpack.i.bf16 %v9652_v17, %v9647_v21  ;;  %v1861_v5 = vsel %vm1837_vm10, %v7578_v13, %v7579_v24  ;;  %7161 = vmatprep.subr.mxu0 %v2439_v9  ;;  %v2455_v42 = vld [vmem:[%s13578_s4 + $0x378] sm:$0xff]  ;;  %v2452_v9 = vld [vmem:[%s13578_s4 + $0x360] sm:$0xff] }
 0x4c2   : > { %v7640_v15 = vpack.i.bf16 %v9660_v10, %v9657_v44  ;;  %v1909_v22 = vsel %vm1837_vm10, %v7579_v24, %v7573_v51  ;;  %v9669_v30 = vmax.f32 %v9493_v57, %v1861_v5  ;;  %v1859_v6 = vsel %vm1837_vm10, %v7573_v51, %v7574_v49  ;;  %v2423_v57 = vld [vmem:[%s13578_s4 + $0x278] sm:$0xff]  ;;  %v2422_v24 = vld [vmem:[%s13578_s4 + $0x270] sm:$0xff]  ;;  %7218 = vmatpush3.msra.mxu1 %v2455_v42  ;;  %v2421_v51 = vld [vmem:[%s13578_s4 + $0x268] sm:$0xff] }
 0x4c3   : > { %7646 = vrot.lane.b32.xlu1 %v7645_v59, %s7895_s18  ;;  %v9674_v39 = vmax.f32 %v9498_v8, %v1909_v22  ;;  %v1860_v7 = vsel %vm1837_vm10, %v7574_v49, %v7578_v13  ;;  %v9678_v37 = vmax.f32 %v9502_v19, %v1859_v6  ;;  %v2438_v19 = vld [vmem:[%s13578_s4 + $0x2f0] sm:$0xff]  ;;  %7162 = vmatpush3.msra.mxu0 %v2423_v57  ;;  %v2469_v59 = vld [vmem:[%s13578_s4 + $0x3e8] sm:$0xff]  ;;  %v2436_v5 = vld [vmem:[%s13578_s4 + $0x2e0] sm:$0xff] }
 0x4c4   : > { %7641 = vrot.lane.b32.xlu0 %v7640_v15, %s7895_s18  ;;  %v9691_v8 = vmax.f32 %v9506_v63, %v1860_v7  ;;  %v2470_v63 = vld [vmem:[%s13578_s4 + $0x3f0] sm:$0xff]  ;;  %7163 = vmatprep.subr.mxu0 %v2438_v19  ;;  %v2453_v15 = vld [vmem:[%s13578_s4 + $0x368] sm:$0xff]  ;;  %v2420_v22 = vld [vmem:[%s13578_s4 + $0x260] sm:$0xff] }
 0x4c5   : > { %v7655_v13 = vpack.i.bf16 %v9674_v39, %v9669_v30  ;;  %v2454_v49 = vld [vmem:[%s13578_s4 + $0x370] sm:$0xff]  ;;  %7164 = vmatpush3.msra.mxu0 %v2422_v24  ;;  %7219 = vmatprep.subr.mxu1 %v2470_v63  ;;  %v2468_v6 = vld [vmem:[%s13578_s4 + $0x3e0] sm:$0xff]  ;;  %v2435_v7 = vld [vmem:[%s13578_s4 + $0x2d8] sm:$0xff] }
 0x4c6   : > { %v7650_v61 = vpack.i.bf16 %v9691_v8, %v9678_v37  ;;  %7165 = vmatprep.subr.mxu0 %v2437_v45  ;;  %7220 = vmatpush3.msra.mxu1 %v2454_v49  ;;  %v2419_v57 = vld [vmem:[%s13578_s4 + $0x258] sm:$0xff]  ;;  %v2434_v19 = vld [vmem:[%s13578_s4 + $0x2d0] sm:$0xff]  ;;  %v2433_v63 = vld [vmem:[%s13578_s4 + $0x2c8] sm:$0xff] }
 0x4c7   : > { %7656 = vrot.lane.b32.xlu1 %v7655_v13, %s7895_s18  ;;  %7166 = vmatpush3.msra.mxu0 %v2421_v51  ;;  %v2467_v52 = vld [vmem:[%s13578_s4 + $0x3d8] sm:$0xff]  ;;  %v2418_v24 = vld [vmem:[%s13578_s4 + $0x250] sm:$0xff]  ;;  %v2417_v45 = vld [vmem:[%s13578_s4 + $0x248] sm:$0xff] }
 0x4c8   : > { %7651 = vrot.lane.b32.xlu0 %v7650_v61, %s7895_s18  ;;  %7221 = vmatprep.subr.mxu1 %v2469_v59  ;;  %v2451_v42 = vld [vmem:[%s13578_s4 + $0x358] sm:$0xff]  ;;  %v2466_v13 = vld [vmem:[%s13578_s4 + $0x3d0] sm:$0xff]  ;;  %v2465_v49 = vld [vmem:[%s13578_s4 + $0x3c8] sm:$0xff] }
 0x4c9   : > { %7167 = vmatprep.subr.mxu0 %v2436_v5  ;;  %7222 = vmatpush3.msra.mxu1 %v2453_v15  ;;  %v2450_v61 = vld [vmem:[%s13578_s4 + $0x350] sm:$0xff]  ;;  %v2432_v51 = vld [vmem:[%s13578_s4 + $0x2c0] sm:$0xff]  ;;  %v2449_v59 = vld [vmem:[%s13578_s4 + $0x348] sm:$0xff] }
 0x4ca   : > { %7168 = vmatpush3.msra.mxu0 %v2420_v22  ;;  %7223 = vmatprep.subr.mxu1 %v2468_v6  ;;  %v2416_v5 = vld [vmem:[%s13578_s4 + $0x240] sm:$0xff]  ;;  %v2431_v22 = vld [vmem:[%s13578_s4 + $0x2b8] sm:$0xff] }
 0x4cb   : > { %7169 = vmatprep.subr.mxu0 %v2435_v7  ;;  %7224 = vmatpush3.msra.mxu1 %v2452_v9  ;;  %v2464_v15 = vld [vmem:[%s13578_s4 + $0x3c0] sm:$0xff]  ;;  %v2415_v7 = vld [vmem:[%s13578_s4 + $0x238] sm:$0xff] }
 0x4cc   : > { %7170 = vmatpush3.msra.mxu0 %v2419_v57  ;;  %7225 = vmatprep.subr.mxu1 %v2467_v52  ;;  %v2448_v6 = vld [vmem:[%s13578_s4 + $0x340] sm:$0xff]  ;;  %v2463_v9 = vld [vmem:[%s13578_s4 + $0x3b8] sm:$0xff]  ;;  %v2430_v57 = vld [vmem:[%s13578_s4 + $0x2b0] sm:$0xff] }
 0x4cd   : > { %7171 = vmatprep.subr.mxu0 %v2434_v19  ;;  %7226 = vmatpush3.msra.mxu1 %v2451_v42  ;;  %v2447_v52 = vld [vmem:[%s13578_s4 + $0x338] sm:$0xff]  ;;  %v2414_v19 = vld [vmem:[%s13578_s4 + $0x230] sm:$0xff] }
 0x4ce   : > { %7172 = vmatpush3.msra.mxu0 %v2418_v24  ;;  %7227 = vmatprep.subr.mxu1 %v2466_v13  ;;  %v2462_v42 = vld [vmem:[%s13578_s4 + $0x3b0] sm:$0xff]  ;;  %v2429_v24 = vld [vmem:[%s13578_s4 + $0x2a8] sm:$0xff] }
 0x4cf   : > { %7173 = vmatprep.subr.mxu0 %v2433_v63  ;;  %7228 = vmatpush3.msra.mxu1 %v2450_v61  ;;  %v2446_v13 = vld [vmem:[%s13578_s4 + $0x330] sm:$0xff]  ;;  %v2413_v63 = vld [vmem:[%s13578_s4 + $0x228] sm:$0xff] }
 0x4d0   : > { %7174 = vmatpush3.msra.mxu0 %v2417_v45  ;;  %7229 = vmatprep.subr.mxu1 %v2465_v49  ;;  %v2461_v61 = vld [vmem:[%s13578_s4 + $0x3a8] sm:$0xff]  ;;  %v2428_v45 = vld [vmem:[%s13578_s4 + $0x2a0] sm:$0xff] }
 0x4d1   : > { %7175 = vmatprep.subr.mxu0 %v2432_v51  ;;  %7230 = vmatpush3.msra.mxu1 %v2449_v59  ;;  %v2445_v49 = vld [vmem:[%s13578_s4 + $0x328] sm:$0xff]  ;;  %v2412_v51 = vld [vmem:[%s13578_s4 + $0x220] sm:$0xff] }
 0x4d2   : > { %7176 = vmatpush3.msra.mxu0 %v2416_v5  ;;  %7231 = vmatprep.subr.mxu1 %v2464_v15  ;;  %v2460_v59 = vld [vmem:[%s13578_s4 + $0x3a0] sm:$0xff]  ;;  %v2427_v5 = vld [vmem:[%s13578_s4 + $0x298] sm:$0xff] }
 0x4d3   : > { %7177 = vmatprep.subr.mxu0 %v2431_v22  ;;  %7232 = vmatpush3.msra.mxu1 %v2448_v6  ;;  %v2444_v15 = vld [vmem:[%s13578_s4 + $0x320] sm:$0xff]  ;;  %v2411_v22 = vld [vmem:[%s13578_s4 + $0x218] sm:$0xff] }
 0x4d4   : > { %7178 = vmatpush3.msra.mxu0 %v2415_v7  ;;  %7233 = vmatprep.subr.mxu1 %v2463_v9  ;;  %v2459_v6 = vld [vmem:[%s13578_s4 + $0x398] sm:$0xff]  ;;  %v2426_v7 = vld [vmem:[%s13578_s4 + $0x290] sm:$0xff] }
 0x4d5   : > { %7179 = vmatprep.subr.mxu0 %v2430_v57  ;;  %7234 = vmatpush3.msra.mxu1 %v2447_v52  ;;  %v2443_v9 = vld [vmem:[%s13578_s4 + $0x318] sm:$0xff]  ;;  %v2410_v52 = vld [vmem:[%s13578_s4 + $0x210] sm:$0xff] }
 0x4d6   : > { %7180 = vmatpush3.msra.mxu0 %v2414_v19  ;;  %7235 = vmatprep.subr.mxu1 %v2462_v42  ;;  %v2458_v19 = vld [vmem:[%s13578_s4 + $0x390] sm:$0xff]  ;;  %v2425_v42 = vld [vmem:[%s13578_s4 + $0x288] sm:$0xff] }
 0x4d7   : > { %7181 = vmatprep.subr.mxu0 %v2429_v24  ;;  %7236 = vmatpush3.msra.mxu1 %v2446_v13 }
 0x4d8   : > { %7182 = vmatpush3.msra.mxu0 %v2413_v63  ;;  %7237 = vmatprep.subr.mxu1 %v2461_v61  ;;  %v2442_v61 = vld [vmem:[%s13578_s4 + $0x310] sm:$0xff] }
 0x4d9   : > { %7183 = vmatprep.subr.mxu0 %v2428_v45  ;;  %7238 = vmatpush3.msra.mxu1 %v2445_v49  ;;  %v2409_v45 = vld [vmem:[%s13578_s4 + $0x208] sm:$0xff] }
 0x4da   : > { %7184 = vmatpush3.msra.mxu0 %v2412_v51  ;;  %7239 = vmatprep.subr.mxu1 %v2460_v59  ;;  %v2457_v49 = vld [vmem:[%s13578_s4 + $0x388] sm:$0xff] }
 0x4db   : > { %7185 = vmatprep.subr.mxu0 %v2427_v5  ;;  %7240 = vmatpush3.msra.mxu1 %v2444_v15  ;;  %v2424_v5 = vld [vmem:[%s13578_s4 + $0x280] sm:$0xff]  ;;  %v2441_v15 = vld [vmem:[%s13578_s4 + $0x308] sm:$0xff] }
 0x4dc   : > { %7186 = vmatpush3.msra.mxu0 %v2411_v22  ;;  %7241 = vmatprep.subr.mxu1 %v2459_v6  ;;  %v2408_v22 = vld [vmem:[%s13578_s4 + $0x200] sm:$0xff] }
 0x4dd   : > { %7187 = vmatprep.subr.mxu0 %v2426_v7  ;;  %7242 = vmatpush3.msra.mxu1 %v2443_v9  ;;  %v2456_v7 = vld [vmem:[%s13578_s4 + $0x380] sm:$0xff] }
 0x4de   : > { %7188 = vmatpush3.msra.mxu0 %v2410_v52  ;;  %7243 = vmatprep.subr.mxu1 %v2458_v19 }
 0x4df   : > { %7189 = vmatprep.subr.mxu0 %v2425_v42  ;;  %7244 = vmatpush3.msra.mxu1 %v2442_v61 }
 0x4e0   : > { %7190 = vmatpush3.msra.mxu0 %v2409_v45  ;;  %7245 = vmatprep.subr.mxu1 %v2457_v49 }
 0x4e1   : > { %7191 = vmatprep.subr.mxu0 %v2424_v5  ;;  %7246 = vmatpush3.msra.mxu1 %v2441_v15 }
 0x4e2   : > { %7192 = vmatpush3.msra.mxu0 %v2408_v22  ;;  %7247 = vmatprep.subr.mxu1 %v2456_v7 }
 0x51d   : > { %v7587_v57 = vpop.permute.xlu1 %7586 }
 0x51e   : > { %v7589_v24 = vunpack.i.h.bf16 %v7587_v57  ;;  %v7588_v13 = vunpack.i.l.bf16 %v7587_v57  ;;  %v7582_v63 = vpop.permute.xlu0 %7581 }
 0x51f   : > { %v7584_v51 = vunpack.i.h.bf16 %v7582_v63  ;;  %v7583_v59 = vunpack.i.l.bf16 %v7582_v63  ;;  %v2440_v63 = vld [vmem:[%s13578_s4 + $0x300] sm:$0xff] }
 0x520   : > { %v2041_v6 = vsel %vm2038_vm11, %v7588_v13, %v7589_v24  ;;  %7248 = vmatpush3.msra.mxu1 %v2440_v63 }
 0x521   : > { %v7597_v9 = vpop.permute.xlu1 %7596  ;;  %v2103_v57 = vsel %vm2038_vm11, %v7589_v24, %v7583_v59  ;;  %v9882_v52 = vmax.f32 %v9517_v50, %v2041_v6  ;;  %v2039_v19 = vsel %vm2038_vm11, %v7583_v59, %v7584_v51  ;;  %v2040_v42 = vsel %vm2038_vm11, %v7584_v51, %v7588_v13 }
 0x522   : > { %v7599_v61 = vunpack.i.h.bf16 %v7597_v9  ;;  %v7598_v45 = vunpack.i.l.bf16 %v7597_v9  ;;  %v7592_v49 = vpop.permute.xlu0 %7591  ;;  %v9890_v4 = vmax.f32 %v9522_v55, %v2103_v57  ;;  %v9893_v24 = vmax.f32 %v9525_v35, %v2039_v19 }
 0x523   : > { %v7594_v50 = vunpack.i.h.bf16 %v7592_v49  ;;  %v7593_v59 = vunpack.i.l.bf16 %v7592_v49  ;;  %v9896_v13 = vmax.f32 %v9528_v34, %v2040_v42 }
 0x524   : > { %v7665_v51 = vpack.i.bf16 %v9890_v4, %v9882_v52  ;;  %v2044_v5 = vsel %vm2038_vm11, %v7598_v45, %v7599_v61 }
 0x525   : > { %v7607_v6 = vpop.permute.xlu1 %7606  ;;  %v7660_v55 = vpack.i.bf16 %v9896_v13, %v9893_v24  ;;  %v2104_v35 = vsel %vm2038_vm11, %v7599_v61, %v7593_v59  ;;  %v9905_v15 = vmax.f32 %v9537_v32, %v2044_v5  ;;  %v2042_v22 = vsel %vm2038_vm11, %v7593_v59, %v7594_v50 }
 0x526   : > { %v7609_v34 = vunpack.i.h.bf16 %v7607_v6  ;;  %v7608_v9 = vunpack.i.l.bf16 %v7607_v6  ;;  %v7602_v7 = vpop.permute.xlu0 %7601  ;;  %7666 = vrot.lane.b32.xlu1 %v7665_v51, %s7896_s15  ;;  %v9910_v57 = vmax.f32 %v9542_v33, %v2104_v35  ;;  %v2043_v19 = vsel %vm2038_vm11, %v7594_v50, %v7598_v45 }
 0x527   : > { %v7604_v42 = vunpack.i.h.bf16 %v7602_v7  ;;  %v7603_v63 = vunpack.i.l.bf16 %v7602_v7  ;;  %7661 = vrot.lane.b32.xlu0 %v7660_v55, %s7896_s15  ;;  %v9915_v32 = vmax.f32 %v9547_v41, %v2042_v22  ;;  %v9918_v61 = vmax.f32 %v9550_v54, %v2043_v19 }
 0x528   : > { %v7675_v49 = vpack.i.bf16 %v9910_v57, %v9905_v15  ;;  %v2047_v59 = vsel %vm2038_vm11, %v7608_v9, %v7609_v34 }
 0x529   : > { %v7617_v51 = vpop.permute.xlu1 %7616  ;;  %v7670_v33 = vpack.i.bf16 %v9918_v61, %v9915_v32  ;;  %v2105_v45 = vsel %vm2038_vm11, %v7609_v34, %v7603_v63  ;;  %v9927_v50 = vmax.f32 %v9559_v56, %v2047_v59  ;;  %v2045_v41 = vsel %vm2038_vm11, %v7603_v63, %v7604_v42 }
 0x52a   : > { %v7619_v5 = vunpack.i.h.bf16 %v7617_v51  ;;  %v7618_v6 = vunpack.i.l.bf16 %v7617_v51  ;;  %v7612_v54 = vpop.permute.xlu0 %7611  ;;  %7676 = vrot.lane.b32.xlu1 %v7675_v49, %s7896_s15  ;;  %v9932_v55 = vmax.f32 %v9564_v2, %v2105_v45  ;;  %v2046_v35 = vsel %vm2038_vm11, %v7604_v42, %v7608_v9 }
 0x52b   : > { %v7614_v22 = vunpack.i.h.bf16 %v7612_v54  ;;  %v7613_v7 = vunpack.i.l.bf16 %v7612_v54  ;;  %7671 = vrot.lane.b32.xlu0 %v7670_v33, %s7896_s15  ;;  %v9937_v34 = vmax.f32 %v9569_v40, %v2045_v41  ;;  %v9940_v56 = vmax.f32 %v9572_v58, %v2046_v35 }
 0x52c   : > { %v7685_v19 = vpack.i.bf16 %v9932_v55, %v9927_v50  ;;  %v2050_v63 = vsel %vm2038_vm11, %v7618_v6, %v7619_v5 }
 0x52d   : > { %v7627_v49 = vpop.permute.xlu1 %7626  ;;  %v7680_v2 = vpack.i.bf16 %v9940_v56, %v9937_v34  ;;  %v2106_v9 = vsel %vm2038_vm11, %v7619_v5, %v7613_v7  ;;  %v9949_v42 = vmax.f32 %v9581_v60, %v2050_v63  ;;  %v2048_v40 = vsel %vm2038_vm11, %v7613_v7, %v7614_v22 }
 0x52e   : > { %7686 = vrot.lane.b32.xlu1 %v7685_v19, %s7896_s15  ;;  %v7629_v58 = vunpack.i.h.bf16 %v7627_v49  ;;  %v7628_v59 = vunpack.i.l.bf16 %v7627_v49  ;;  %v7622_v51 = vpop.permute.xlu0 %7621  ;;  %v9954_v33 = vmax.f32 %v9586_v36, %v2106_v9  ;;  %v2049_v45 = vsel %vm2038_vm11, %v7614_v22, %v7618_v6 }
 0x52f   : > { %7681 = vrot.lane.b32.xlu0 %v7680_v2, %s7896_s15  ;;  %v7624_v41 = vunpack.i.h.bf16 %v7622_v51  ;;  %v7623_v54 = vunpack.i.l.bf16 %v7622_v51  ;;  %v9959_v5 = vmax.f32 %v9591_v29, %v2048_v40  ;;  %v9962_v60 = vmax.f32 %v9594_v25, %v2049_v45 }
 0x530   : > { %v7695_v35 = vpack.i.bf16 %v9954_v33, %v9949_v42  ;;  %v2053_v7 = vsel %vm2038_vm11, %v7628_v59, %v7629_v58 }
 0x531   : > { %v7637_v19 = vpop.permute.xlu1 %7636  ;;  %v7690_v36 = vpack.i.bf16 %v9962_v60, %v9959_v5  ;;  %v2107_v6 = vsel %vm2038_vm11, %v7629_v58, %v7623_v54  ;;  %v9971_v22 = vmax.f32 %v9603_v1, %v2053_v7  ;;  %v2051_v29 = vsel %vm2038_vm11, %v7623_v54, %v7624_v41 }
 0x532   : > { %7696 = vrot.lane.b32.xlu1 %v7695_v35, %s7896_s15  ;;  %v7639_v25 = vunpack.i.h.bf16 %v7637_v19  ;;  %v7638_v63 = vunpack.i.l.bf16 %v7637_v19  ;;  %v7632_v49 = vpop.permute.xlu0 %7631  ;;  %v9976_v2 = vmax.f32 %v9608_v12, %v2107_v6  ;;  %v2052_v9 = vsel %vm2038_vm11, %v7624_v41, %v7628_v59 }
 0x533   : > { %7691 = vrot.lane.b32.xlu0 %v7690_v36, %s7896_s15  ;;  %v7634_v40 = vunpack.i.h.bf16 %v7632_v49  ;;  %v7633_v51 = vunpack.i.l.bf16 %v7632_v49  ;;  %v9981_v58 = vmax.f32 %v9613_v46, %v2051_v29  ;;  %v9984_v1 = vmax.f32 %v9616_v3, %v2052_v9 }
 0x534   : > { %v7705_v45 = vpack.i.bf16 %v9976_v2, %v9971_v22  ;;  %v2056_v54 = vsel %vm2038_vm11, %v7638_v63, %v7639_v25 }
 0x535   : > { %v7647_v35 = vpop.permute.xlu1 %7646  ;;  %v7700_v12 = vpack.i.bf16 %v9984_v1, %v9981_v58  ;;  %v2108_v59 = vsel %vm2038_vm11, %v7639_v25, %v7633_v51  ;;  %v9993_v41 = vmax.f32 %v9625_v20, %v2056_v54  ;;  %v2054_v46 = vsel %vm2038_vm11, %v7633_v51, %v7634_v40 }
 0x536   : > { %v7649_v7 = vunpack.i.h.bf16 %v7647_v35  ;;  %v7648_v19 = vunpack.i.l.bf16 %v7647_v35  ;;  %v7642_v3 = vpop.permute.xlu0 %7641  ;;  %7706 = vrot.lane.b32.xlu1 %v7705_v45, %s7896_s15  ;;  %v9998_v36 = vmax.f32 %v9630_v48, %v2108_v59  ;;  %v2055_v6 = vsel %vm2038_vm11, %v7634_v40, %v7638_v63 }
 0x537   : > { %v7644_v29 = vunpack.i.h.bf16 %v7642_v3  ;;  %v7643_v49 = vunpack.i.l.bf16 %v7642_v3  ;;  %7701 = vrot.lane.b32.xlu0 %v7700_v12, %s7896_s15  ;;  %v10003_v25 = vmax.f32 %v9635_v53, %v2054_v46  ;;  %v10006_v20 = vmax.f32 %v9638_v27, %v2055_v6 }
 0x538   : > { %v7715_v9 = vpack.i.bf16 %v9998_v36, %v9993_v41  ;;  %v2059_v51 = vsel %vm2038_vm11, %v7648_v19, %v7649_v7 }
 0x539   : > { %v7657_v45 = vpop.permute.xlu1 %7656  ;;  %v7710_v48 = vpack.i.bf16 %v10006_v20, %v10003_v25  ;;  %v2109_v63 = vsel %vm2038_vm11, %v7649_v7, %v7643_v49  ;;  %v10015_v40 = vmax.f32 %v9647_v21, %v2059_v51  ;;  %v2057_v53 = vsel %vm2038_vm11, %v7643_v49, %v7644_v29 }
 0x53a   : > { %v7659_v54 = vunpack.i.h.bf16 %v7657_v45  ;;  %v7658_v35 = vunpack.i.l.bf16 %v7657_v45  ;;  %v7652_v27 = vpop.permute.xlu0 %7651  ;;  %7716 = vrot.lane.b32.xlu1 %v7715_v9, %s7896_s15  ;;  %v10020_v12 = vmax.f32 %v9652_v17, %v2109_v63  ;;  %v2058_v59 = vsel %vm2038_vm11, %v7644_v29, %v7648_v19 }
 0x53b   : > { %v7654_v46 = vunpack.i.h.bf16 %v7652_v27  ;;  %v7653_v3 = vunpack.i.l.bf16 %v7652_v27  ;;  %7711 = vrot.lane.b32.xlu0 %v7710_v48, %s7896_s15  ;;  %v10025_v7 = vmax.f32 %v9657_v44, %v2057_v53  ;;  %v10028_v21 = vmax.f32 %v9660_v10, %v2058_v59 }
 0x53c   : > { %v7725_v6 = vpack.i.bf16 %v10020_v12, %v10015_v40  ;;  %v2062_v49 = vsel %vm2038_vm11, %v7658_v35, %v7659_v54 }
 0x53d   : > { %v7720_v17 = vpack.i.bf16 %v10028_v21, %v10025_v7  ;;  %v2110_v19 = vsel %vm2038_vm11, %v7659_v54, %v7653_v3  ;;  %v10037_v29 = vmax.f32 %v9669_v30, %v2062_v49  ;;  %v2060_v9 = vsel %vm2038_vm11, %v7653_v3, %v7654_v46 }
 0x53e   : > { %7726 = vrot.lane.b32.xlu1 %v7725_v6, %s7896_s15  ;;  %v10042_v44 = vmax.f32 %v9674_v39, %v2110_v19  ;;  %v2061_v10 = vsel %vm2038_vm11, %v7654_v46, %v7658_v35  ;;  %v10046_v51 = vmax.f32 %v9678_v37, %v2060_v9 }
 0x53f   : > { %7721 = vrot.lane.b32.xlu0 %v7720_v17, %s7896_s15  ;;  %v10050_v45 = vmax.f32 %v9691_v8, %v2061_v10 }
 0x540   : > { %v7735_v30 = vpack.i.bf16 %v10042_v44, %v10037_v29 }
 0x541   : > { %v7730_v48 = vpack.i.bf16 %v10050_v45, %v10046_v51 }
 0x542   : > { %7736 = vrot.lane.b32.xlu1 %v7735_v30, %s7896_s15 }
 0x543   : > { %7731 = vrot.lane.b32.xlu0 %v7730_v48, %s7896_s15 }
 0x598   : > { %v7667_v39 = vpop.permute.xlu1 %7666 }
 0x599   : > { %v7669_v63 = vunpack.i.h.bf16 %v7667_v39  ;;  %v7668_v37 = vunpack.i.l.bf16 %v7667_v39  ;;  %v7662_v53 = vpop.permute.xlu0 %7661 }
 0x59a   : > { %v7664_v54 = vunpack.i.h.bf16 %v7662_v53  ;;  %v7663_v35 = vunpack.i.l.bf16 %v7662_v53 }
 0x59b   : > { %v2242_v8 = vsel %vm2239_vm12, %v7668_v37, %v7669_v63 }
 0x59c   : > { %v2314_v27 = vmax.f32 %v9882_v52, %v2242_v8  ;;  %v2240_v59 = vsel %vm2239_vm12, %v7663_v35, %v7664_v54  ;;  %v7677_v46 = vpop.permute.xlu1 %7676  ;;  %v2241_v3 = vsel %vm2239_vm12, %v7664_v54, %v7668_v37  ;;  %v2304_v6 = vsel %vm2239_vm12, %v7669_v63, %v7663_v35 }
 0x59d   : > { %v2312_v49 = vmax.f32 %v9893_v24, %v2240_v59  ;;  %v7679_v17 = vunpack.i.h.bf16 %v7677_v46  ;;  %v7678_v19 = vunpack.i.l.bf16 %v7677_v46  ;;  %v7672_v9 = vpop.permute.xlu0 %7671  ;;  %v2313_v10 = vmax.f32 %v9896_v13, %v2241_v3 }
 0x59e   : > { %v7674_v30 = vunpack.i.h.bf16 %v7672_v9  ;;  %v7673_v48 = vunpack.i.l.bf16 %v7672_v9  ;;  %v2315_v39 = vmax.f32 %v9890_v4, %v2304_v6 }
 0x59f   : > { %2746 = vmatprep.mubr.f32.mxu0 %v2313_v10  ;;  %v2245_v52 = vsel %vm2239_vm12, %v7678_v19, %v7679_v17 }
 0x5a0   : > { %2851 = vmatprep.mubr.f32.mxu1 %v2315_v39  ;;  %2747 = vmatmul.mubr.f32.vlgmr.msra.gmra.mxu0 %v2312_v49  ;;  %v7687_v53 = vpop.permute.xlu1 %7686  ;;  %v2244_v37 = vsel %vm2239_vm12, %v7674_v30, %v7678_v19  ;;  %v2305_v63 = vsel %vm2239_vm12, %v7679_v17, %v7673_v48  ;;  %v2243_v24 = vsel %vm2239_vm12, %v7673_v48, %v7674_v30 }
 0x5a1   : > { %2852 = vmatmul.mubr.f32.vlgmr.msra.gmra.mxu1 %v2314_v27  ;;  %v7689_v54 = vunpack.i.h.bf16 %v7687_v53  ;;  %v7688_v35 = vunpack.i.l.bf16 %v7687_v53  ;;  %v7682_v13 = vpop.permute.xlu0 %7681  ;;  %v2317_v8 = vmax.f32 %v9918_v61, %v2244_v37  ;;  %v2319_v4 = vmax.f32 %v9910_v57, %v2305_v63 }
 0x5a2   : > { %v7684_v59 = vunpack.i.h.bf16 %v7682_v13  ;;  %v7683_v46 = vunpack.i.l.bf16 %v7682_v13  ;;  %v2316_v3 = vmax.f32 %v9915_v32, %v2243_v24  ;;  %v2318_v6 = vmax.f32 %v9905_v15, %v2245_v52 }
 0x5a3   : > { %2751 = vmatprep.mubr.f32.mxu0 %v2317_v8  ;;  %2856 = vmatprep.mubr.f32.mxu1 %v2319_v4  ;;  %v2248_v49 = vsel %vm2239_vm12, %v7688_v35, %v7689_v54 }
 0x5a4   : > { %2752 = vmatmul.mubr.f32.gmra.mxu0 %v2316_v3  ;;  %v7697_v17 = vpop.permute.xlu1 %7696  ;;  %v2247_v27 = vsel %vm2239_vm12, %v7684_v59, %v7688_v35  ;;  %v2306_v19 = vsel %vm2239_vm12, %v7689_v54, %v7683_v46  ;;  %v2246_v61 = vsel %vm2239_vm12, %v7683_v46, %v7684_v59  ;;  %v2322_v57 = vmax.f32 %v9927_v50, %v2248_v49 }
 0x5a5   : > { %2857 = vmatmul.mubr.f32.gmra.mxu1 %v2318_v6  ;;  %v7699_v9 = vunpack.i.h.bf16 %v7697_v17  ;;  %v7698_v10 = vunpack.i.l.bf16 %v7697_v17  ;;  %v7692_v32 = vpop.permute.xlu0 %7691  ;;  %v2321_v15 = vmax.f32 %v9940_v56, %v2247_v27  ;;  %v2323_v30 = vmax.f32 %v9932_v55, %v2306_v19 }
 0x5a6   : > { %v7694_v48 = vunpack.i.h.bf16 %v7692_v32  ;;  %v7693_v39 = vunpack.i.l.bf16 %v7692_v32  ;;  %v2320_v52 = vmax.f32 %v9937_v34, %v2246_v61 }
 0x5a7   : > { %2756 = vmatprep.mubr.f32.mxu0 %v2321_v15  ;;  %2861 = vmatprep.mubr.f32.mxu1 %v2323_v30  ;;  %v2251_v53 = vsel %vm2239_vm12, %v7698_v10, %v7699_v9 }
 0x5a8   : > { %2757 = vmatmul.mubr.f32.gmra.mxu0 %v2320_v52  ;;  %v7707_v37 = vpop.permute.xlu1 %7706  ;;  %v2250_v50 = vsel %vm2239_vm12, %v7694_v48, %v7698_v10  ;;  %v2307_v63 = vsel %vm2239_vm12, %v7699_v9, %v7693_v39  ;;  %v2249_v24 = vsel %vm2239_vm12, %v7693_v39, %v7694_v48  ;;  %v2326_v56 = vmax.f32 %v9949_v42, %v2251_v53 }
 0x5a9   : > { %2862 = vmatmul.mubr.f32.gmra.mxu1 %v2322_v57  ;;  %v7709_v55 = vunpack.i.h.bf16 %v7707_v37  ;;  %v7708_v54 = vunpack.i.l.bf16 %v7707_v37  ;;  %v7702_v35 = vpop.permute.xlu0 %7701  ;;  %v2325_v34 = vmax.f32 %v9962_v60, %v2250_v50  ;;  %v2327_v13 = vmax.f32 %v9954_v33, %v2307_v63 }
 0x5aa   : > { %v7704_v8 = vunpack.i.h.bf16 %v7702_v35  ;;  %v7703_v4 = vunpack.i.l.bf16 %v7702_v35  ;;  %v2324_v59 = vmax.f32 %v9959_v5, %v2249_v24 }
 0x5ab   : > { %2761 = vmatprep.mubr.f32.mxu0 %v2325_v34  ;;  %2866 = vmatprep.mubr.f32.mxu1 %v2327_v13  ;;  %v2254_v46 = vsel %vm2239_vm12, %v7708_v54, %v7709_v55 }
 0x5ac   : > { %2762 = vmatmul.mubr.f32.gmra.mxu0 %v2324_v59  ;;  %v7717_v3 = vpop.permute.xlu1 %7716  ;;  %v2253_v42 = vsel %vm2239_vm12, %v7704_v8, %v7708_v54  ;;  %v2308_v6 = vsel %vm2239_vm12, %v7709_v55, %v7703_v4  ;;  %v2252_v49 = vsel %vm2239_vm12, %v7703_v4, %v7704_v8  ;;  %v2330_v60 = vmax.f32 %v9971_v22, %v2254_v46 }
 0x5ad   : > { %2867 = vmatmul.mubr.f32.gmra.mxu1 %v2326_v56  ;;  %v7719_v33 = vunpack.i.h.bf16 %v7717_v3  ;;  %v7718_v17 = vunpack.i.l.bf16 %v7717_v3  ;;  %v7712_v27 = vpop.permute.xlu0 %7711  ;;  %v2329_v5 = vmax.f32 %v9984_v1, %v2253_v42  ;;  %v2331_v19 = vmax.f32 %v9976_v2, %v2308_v6 }
 0x5ae   : > { %v7714_v61 = vunpack.i.h.bf16 %v7712_v27  ;;  %v7713_v57 = vunpack.i.l.bf16 %v7712_v27  ;;  %v2328_v9 = vmax.f32 %v9981_v58, %v2252_v49  ;;  %v7083_v6 = vadd.f32 %v9314_v62, %v9310_v43 }
 0x5af   : > { %2766 = vmatprep.mubr.f32.mxu0 %v2329_v5  ;;  %2871 = vmatprep.mubr.f32.mxu1 %v2331_v19  ;;  %v2257_v10 = vsel %vm2239_vm12, %v7718_v17, %v7719_v33  ;;  %v7139_v49 = vadd.f32 %v9316_v26, %v9312_v14 }
 0x5b0   : > { %2767 = vmatmul.mubr.f32.gmra.mxu0 %v2328_v9  ;;  %v7727_v32 = vpop.permute.xlu1 %7726  ;;  %v2256_v22 = vsel %vm2239_vm12, %v7714_v61, %v7718_v17  ;;  %v2309_v15 = vsel %vm2239_vm12, %v7719_v33, %v7713_v57  ;;  %v2255_v30 = vsel %vm2239_vm12, %v7713_v57, %v7714_v61  ;;  %v2334_v1 = vmax.f32 %v9993_v41, %v2257_v10 }
 0x5b1   : > { %2872 = vmatmul.mubr.f32.gmra.mxu1 %v2330_v60  ;;  %v7729_v2 = vunpack.i.h.bf16 %v7727_v32  ;;  %v7728_v48 = vunpack.i.l.bf16 %v7727_v32  ;;  %v7722_v39 = vpop.permute.xlu0 %7721  ;;  %v2333_v58 = vmax.f32 %v10006_v20, %v2256_v22  ;;  %v2335_v52 = vmax.f32 %v9998_v36, %v2309_v15 }
 0x5b2   : > { %v7724_v53 = vunpack.i.h.bf16 %v7722_v39  ;;  %v7723_v37 = vunpack.i.l.bf16 %v7722_v39  ;;  %v2332_v50 = vmax.f32 %v10003_v25, %v2255_v30 }
 0x5b3   : > { %2771 = vmatprep.mubr.f32.mxu0 %v2333_v58  ;;  %2876 = vmatprep.mubr.f32.mxu1 %v2335_v52  ;;  %v2260_v63 = vsel %vm2239_vm12, %v7728_v48, %v7729_v2 }
 0x5b4   : > { %2772 = vmatmul.mubr.f32.gmra.mxu0 %v2332_v50  ;;  %v7737_v24 = vpop.permute.xlu1 %7736  ;;  %v2259_v41 = vsel %vm2239_vm12, %v7724_v53, %v7728_v48  ;;  %v2310_v56 = vsel %vm2239_vm12, %v7729_v2, %v7723_v37  ;;  %v2258_v55 = vsel %vm2239_vm12, %v7723_v37, %v7724_v53  ;;  %v2338_v20 = vmax.f32 %v10015_v40, %v2260_v63 }
 0x5b5   : > { %2877 = vmatmul.mubr.f32.gmra.mxu1 %v2334_v1  ;;  %v7739_v36 = vunpack.i.h.bf16 %v7737_v24  ;;  %v7738_v54 = vunpack.i.l.bf16 %v7737_v24  ;;  %v7732_v35 = vpop.permute.xlu0 %7731  ;;  %v2337_v25 = vmax.f32 %v10028_v21, %v2259_v41  ;;  %v2339_v34 = vmax.f32 %v10020_v12, %v2310_v56 }
 0x5b6   : > { %v7734_v13 = vunpack.i.h.bf16 %v7732_v35  ;;  %v7733_v8 = vunpack.i.l.bf16 %v7732_v35  ;;  %v2336_v4 = vmax.f32 %v10025_v7, %v2258_v55  ;;  %v10148_v55 = vld [vmem:[%s13579_s5 + $0x18] sm:$0xff] }
 0x5b7   : > { %2776 = vmatprep.mubr.f32.mxu0 %v2337_v25  ;;  %2881 = vmatprep.mubr.f32.mxu1 %v2339_v34  ;;  %v2263_v59 = vsel %vm2239_vm12, %v7738_v54, %v7739_v36  ;;  %v10155_v25 = vld [vmem:[%s13579_s5] sm:$0xff] }
 0x5b8   : > { %2777 = vmatmul.mubr.f32.gmra.mxu0 %v2336_v4  ;;  %v2262_v46 = vsel %vm2239_vm12, %v7734_v13, %v7738_v54  ;;  %v2311_v40 = vsel %vm2239_vm12, %v7739_v36, %v7733_v8  ;;  %v2261_v3 = vsel %vm2239_vm12, %v7733_v8, %v7734_v13  ;;  %v2342_v7 = vmax.f32 %v10037_v29, %v2263_v59  ;;  %v13936_v59 = vld [vmem:[#allocation46_spill] sm:$0xff] }
 0x5b9   : > { %2882 = vmatmul.mubr.f32.gmra.mxu1 %v2338_v20  ;;  %v2341_v21 = vmax.f32 %v10050_v45, %v2262_v46  ;;  %v2343_v12 = vmax.f32 %v10042_v44, %v2311_v40  ;;  %v2340_v42 = vmax.f32 %v10046_v51, %v2261_v3  ;;  %v2644_v45 = vadd.f32 %v7139_v49, %v7083_v6  ;;  %v10171_v40 = vld [vmem:[%s13579_s5 + $0x20] sm:$0xff] }
 0x5ba   : > { %v7086_v29 = vadd.f32 %v9322_v0, %v9318_v38  ;;  %v7142_v51 = vadd.f32 %v9324_v31, %v9320_v11  ;;  %v10166_v46 = vrot.slane %v10148_v55, %v13936_v59 }
 0x5bb   : > { %2781 = vmatprep.mubr.f32.mxu0 %v2341_v21  ;;  %2886 = vmatprep.mubr.f32.mxu1 %v2343_v12  ;;  %v13938_v12 = vld [vmem:[#allocation41_spill] sm:$0xff] }
 0x5bc   : > { %2782 = vmatmul.mubr.f32.gmra.mxu0 %v2340_v42  ;;  %v2649_v10 = vadd.f32 %v7142_v51, %v7086_v29  ;;  %13937 = vst [vmem:[#allocation46_spill] sm:$0xff] %v10166_v46  ;;  %v10175_v42 = vrot.slane %v10155_v25, %v13938_v12 }
 0x5bd   : > { %2887 = vmatmul.mubr.f32.gmra.mxu1 %v2342_v7 }
 0x5be   : > { %13939 = vst [vmem:[#allocation41_spill] sm:$0xff] %v10175_v42 }
 0x660   : > { %v7193_v60 = vpop.f32.mrf.mxu0 }
 0x661   : > { %v7249_v33 = vpop.f32.mrf.mxu1 }
 0x662   : > { %v7194_v17 = vpop.f32.mrf.mxu0 }
 0x663   : > { %v7195_v27 = vadd.f32 %v7194_v17, %v7193_v60  ;;  %v7250_v44 = vpop.f32.mrf.mxu1  ;;  %v10190_v60 = vld [vmem:[%s13579_s5 + $0x8] sm:$0xff] }
 0x664   : > { %v7196_v5 = vpop.f32.mrf.mxu0  ;;  %v7251_v61 = vadd.f32 %v7250_v44, %v7249_v33  ;;  %v13941_v33 = vld [vmem:[#allocation44_spill] sm:$0xff] }
 0x665   : > { %v2749_v19 = vadd.f32 %v7195_v27, %v2644_v45  ;;  %v7252_v57 = vpop.f32.mrf.mxu1  ;;  %v10194_v17 = vrot.slane %v10155_v25, %v13941_v33  ;;  %v10199_v45 = vld [vmem:[%s13579_s5 + $0x28] sm:$0xff] }
 0x666   : > { %v7197_v43 = vpop.f32.mrf.mxu0 }
 0x667   : > { %v2854_v62 = vadd.f32 %v7251_v61, %v2749_v19  ;;  %v7198_v9 = vadd.f32 %v7197_v43, %v7196_v5  ;;  %v7253_v14 = vpop.f32.mrf.mxu1  ;;  %13942 = vst [vmem:[#allocation44_spill] sm:$0xff] %v10194_v17  ;;  %v13944_v5 = vld [vmem:[#allocation42_spill] sm:$0xff] }
 0x668   : > { %v7199_v26 = vpop.f32.mrf.mxu0  ;;  %v7254_v31 = vadd.f32 %v7253_v14, %v7252_v57  ;;  %v10209_v29 = vrot.slane %v10171_v40, %v13944_v5 }
 0x669   : > { %v2901_v32 = vrot.slane %v2854_v62, 5  ;;  %v7255_v22 = vpop.f32.mrf.mxu1  ;;  %v2754_v38 = vadd.f32 %v7198_v9, %v2649_v10 }
 0x66a   : > { %v7200_v15 = vpop.f32.mrf.mxu0  ;;  %13945 = vst [vmem:[#allocation42_spill] sm:$0xff] %v10209_v29 }
 0x66b   : > { %v10131_v30 = vsel %vm2900_vm13, 0.0, %v2901_v32  ;;  %v7201_v0 = vadd.f32 %v7200_v15, %v7199_v26  ;;  %v7256_v1 = vpop.f32.mrf.mxu1  ;;  %v2859_v58 = vadd.f32 %v7254_v31, %v2754_v38  ;;  %v13946_v26 = vld [vmem:[#allocation47_spill] sm:$0xff] }
 0x66c   : > { %v7202_v11 = vpop.f32.mrf.mxu0  ;;  %5377 = vrot.lane.b32.xlu1 %v10131_v30, %s7897_s16  ;;  %3260 = vrot.lane.b32.xlu0 %v10131_v30, %s7896_s15  ;;  %v7257_v52 = vadd.f32 %v7256_v1, %v7255_v22  ;;  %v3048_v43 = vmul.f32 %v10166_v46, %v10131_v30  ;;  %v3345_v9 = vrot.slane %v10131_v30, 1  ;;  %v3410_v14 = vrot.slane %v10131_v30, 2 }
 0x66d   : > { %v2759_v2 = vadd.f32 %v7201_v0, %v9326_v23  ;;  %v7258_v48 = vpop.f32.mrf.mxu1  ;;  %v2902_v20 = vrot.slane %v2859_v58, 5  ;;  %v10221_v10 = vrot.slane %v10190_v60, %v13946_v26  ;;  %v2944_v1 = vmul.f32 %v10175_v42, %v10131_v30 }
 0x66e   : > { %v7203_v39 = vpop.f32.mrf.mxu0 }
 0x66f   : > { %v7204_v53 = vadd.f32 %v7203_v39, %v7202_v11  ;;  %v7259_v37 = vpop.f32.mrf.mxu1  ;;  %v10142_v63 = vadd.f32 %v7257_v52, %v2759_v2  ;;  %v10178_v7 = vsel %vm2900_vm13, %v2901_v32, %v2902_v20  ;;  %v10212_v51 = vsel %vm2900_vm13, %v2902_v20, 0.0  ;;  %13947 = vst [vmem:[#allocation47_spill] sm:$0xff] %v10221_v10  ;;  %v13948_v32 = vld [vmem:[#allocation45_spill] sm:$0xff] }
 0x670   : > { %v7205_v50 = vpop.f32.mrf.mxu0  ;;  %4889 = vrot.lane.b32.xlu1 %v10131_v30, %s7894_s17  ;;  %3877 = vrot.lane.b32.xlu0 %v10131_v30, %s7895_s18  ;;  %v7260_v41 = vadd.f32 %v7259_v37, %v7258_v48  ;;  %v10225_v22 = vrot.slane %v10199_v45, %v13948_v32  ;;  %v3346_v0 = vrot.slane %v10178_v7, 1  ;;  %v3411_v2 = vrot.slane %v10178_v7, 2 }
 0x671   : > { %v2764_v24 = vadd.f32 %v7204_v53, %v9328_v16  ;;  %v7261_v56 = vpop.f32.mrf.mxu1  ;;  %v13649_v16 = vrot.slane %v10142_v63, 5  ;;  %v3348_v48 = vrot.slane %v10212_v51, 1  ;;  %v3049_v39 = vmul.f32 %v10166_v46, %v10178_v7 }
 0x672   : > { %v7206_v23 = vpop.f32.mrf.mxu0  ;;  %13949 = vst [vmem:[#allocation45_spill] sm:$0xff] %v10225_v22  ;;  %v3072_v37 = vrot.slane %v3048_v43, 4  ;;  %v3050_v20 = vmul.f32 %v10166_v46, %v10212_v51  ;;  %v3513_v43 = vrot.slane %v10178_v7, 3 }
 0x673   : > { %v10150_v36 = vadd.f32 %v7260_v41, %v2764_v24  ;;  %v7207_v54 = vadd.f32 %v7206_v23, %v7205_v50  ;;  %v7262_v35 = vpop.f32.mrf.mxu1  ;;  %v3112_v50 = vmul.f32 %v10209_v29, %v10131_v30  ;;  %v3113_v23 = vmul.f32 %v10209_v29, %v10178_v7 }
 0x674   : > { %v7208_v34 = vpop.f32.mrf.mxu0  ;;  %5865 = vrot.lane.b32.xlu1 %v10131_v30, %s7898_s22  ;;  %4365 = vrot.lane.b32.xlu0 %v10131_v30, %s7899_s23  ;;  %v7263_v3 = vadd.f32 %v7262_v35, %v7261_v56  ;;  %v3073_v56 = vrot.slane %v3049_v39, 4 }
 0x675   : > { %v13648_v13 = vrot.slane %v10150_v36, 5  ;;  %v2769_v8 = vadd.f32 %v7207_v54, %v9330_v28  ;;  %v7264_v4 = vpop.f32.mrf.mxu1 }
 0x676   : > { %v7209_v21 = vpop.f32.mrf.mxu0 }
 0x677   : > { %v10185_v28 = vsel %vm2900_vm13, %v13649_v16, %v13648_v13  ;;  %v7210_v6 = vadd.f32 %v7209_v21, %v7208_v34  ;;  %v7265_v49 = vpop.f32.mrf.mxu1  ;;  %v10201_v27 = vadd.f32 %v7263_v3, %v2769_v8  ;;  %v10257_v34 = vsel %vm3344_vm14, %v3345_v9, %v3346_v0 }
 0x678   : > { %13940 = vst [vmem:[#allocation49_spill] sm:$0xff] %v10185_v28  ;;  %v7211_v44 = vpop.f32.mrf.mxu0  ;;  %5379 = vrot.lane.b32.xlu0 %v10178_v7, %s7897_s16  ;;  %3262 = vrot.lane.b32.xlu1 %v10178_v7, %s7896_s15  ;;  %v7266_v61 = vadd.f32 %v7265_v49, %v7264_v4  ;;  %v2964_v8 = vmul.f32 %v10194_v17, %v10131_v30  ;;  %v3136_v21 = vrot.slane %v3112_v50, 4  ;;  %v13952_v49 = vld [vmem:[#allocation48_spill] sm:$0xff] }
 0x679   : > { %13943 = vst [vmem:[#allocation50_spill] sm:$0xff] %v10201_v27  ;;  %v2774_v19 = vadd.f32 %v7210_v6, %v9332_v47  ;;  %v7267_v57 = vpop.f32.mrf.mxu1  ;;  %v13645_v11 = vrot.slane %v10201_v27, 5  ;;  %v3074_v3 = vsel %vm1029_vm6, %v3072_v37, %v3073_v56  ;;  %v3137_v6 = vrot.slane %v3113_v23, 4  ;;  %v13991_v27 = vld [vmem:[#allocation40_spill] sm:$0xff] }
 0x67a   : > { %v7212_v62 = vpop.f32.mrf.mxu0  ;;  %v2945_v9 = vmul.f32 %v10175_v42, %v10178_v7  ;;  %v3614_v23 = vrot.slane %v10178_v7, 4 }
 0x67b   : > { %v10227_v15 = vadd.f32 %v7266_v61, %v2774_v19  ;;  %v7213_v47 = vadd.f32 %v7212_v62, %v7211_v44  ;;  %v7268_v38 = vpop.f32.mrf.mxu1  ;;  %v10269_v61 = vadd.f32 %v3074_v3, %v2944_v1  ;;  %v3138_v62 = vsel %vm1029_vm6, %v3136_v21, %v3137_v6 }
 0x67c   : > { %v7214_v31 = vpop.f32.mrf.mxu0  ;;  %5867 = vrot.lane.b32.xlu0 %v10178_v7, %s7898_s22  ;;  %3879 = vrot.lane.b32.xlu1 %v10178_v7, %s7895_s18  ;;  %v7269_v24 = vadd.f32 %v7268_v38, %v7267_v57  ;;  %v3075_v57 = vrot.slane %v3050_v20, 4  ;;  %v10284_v1 = vadd.f32 %v3138_v62, %v2964_v8 }
 0x67d   : > { %13950 = vst [vmem:[#allocation51_spill] sm:$0xff] %v10227_v15  ;;  %v13644_v58 = vrot.slane %v10227_v15, 5  ;;  %v2779_v52 = vadd.f32 %v7213_v47, %v9334_v18  ;;  %v7270_v53 = vpop.f32.mrf.mxu1  ;;  %13953 = vst [vmem:[#allocation48_spill] sm:$0xff] %v10269_v61  ;;  %v3184_v47 = vmul.f32 %v10225_v22, %v10131_v30  ;;  %v3619_v61 = vrot.slane %v10185_v28, 4 }
 0x67e   : > { %v7215_v41 = vpop.f32.mrf.mxu0  ;;  %13954 = vst [vmem:[#allocation53_spill] sm:$0xff] %v10284_v1  ;;  %v3076_v39 = vsel %vm1029_vm6, %v3073_v56, %v3075_v57  ;;  %v10304_v56 = vmul.f32 %v10209_v29, %v10212_v51 }
 0x67f   : > { %v10254_v18 = vsel %vm2900_vm13, %v13645_v11, %v13644_v58  ;;  %v7216_v54 = vadd.f32 %v7215_v41, %v7214_v31  ;;  %v7271_v35 = vpop.f32.mrf.mxu1  ;;  %v10261_v4 = vadd.f32 %v7269_v24, %v2779_v52  ;;  %v10282_v31 = vsel %vm3409_vm15, %v3410_v14, %v3411_v2 }
 0x680   : > { %13951 = vst [vmem:[#allocation52_spill] sm:$0xff] %v10254_v18  ;;  %4367 = vrot.lane.b32.xlu1 %v10178_v7, %s7899_s23  ;;  %3365 = vrot.lane.b32.xlu0 %v10257_v34, %s7896_s15  ;;  %v7272_v19 = vadd.f32 %v7271_v35, %v7270_v53  ;;  %v3512_v52 = vrot.slane %v10131_v30, 3  ;;  %v3413_v53 = vrot.slane %v10212_v51, 2  ;;  %v10293_v37 = vadd.f32 %v3076_v39, %v2945_v9 }
 0x681   : > { %v2784_v44 = vadd.f32 %v7216_v54, %v13952_v49  ;;  %v3185_v14 = vmul.f32 %v10225_v22, %v10178_v7  ;;  %v2910_v50 = vrot.slane %v10261_v4, 5  ;;  %v10300_v41 = vsel %vm3344_vm14, %v3346_v0, %v3348_v48 }
 0x682   : > { %13955 = vst [vmem:[#allocation54_spill] sm:$0xff] %v10293_v37  ;;  %v3208_v20 = vrot.slane %v3184_v47, 4  ;;  %v10309_v35 = vmul.f32 %v10225_v22, %v10212_v51  ;;  %v10317_v0 = vsel %vm3511_vm0, %v3512_v52, %v3513_v43  ;;  %v2992_v48 = vmul.f32 %v10221_v10, %v10131_v30 }
 0x683   : > { %v10277_v38 = vadd.f32 %v7272_v19, %v2784_v44  ;;  %v3209_v54 = vrot.slane %v3185_v14, 4  ;;  %v13647_v3 = vrot.slane %v10304_v56, 4  ;;  %v2965_v49 = vmul.f32 %v10194_v17, %v10178_v7 }
 0x684   : > { %4891 = vrot.lane.b32.xlu1 %v10178_v7, %s7894_s17  ;;  %3430 = vrot.lane.b32.xlu0 %v10282_v31, %s7896_s15  ;;  %v13646_v44 = vrot.slane %v10309_v35, 4  ;;  %v3613_v19 = vrot.slane %v10131_v30, 4  ;;  %v2993_v9 = vmul.f32 %v10221_v10, %v10178_v7  ;;  %v10341_v47 = vsel %vm3409_vm15, %v3411_v2, %v3413_v53 }
 0x685   : > { %v2911_v24 = vrot.slane %v10277_v38, 5  ;;  %v3210_v21 = vsel %vm1029_vm6, %v3208_v20, %v3209_v54  ;;  %v3140_v62 = vsel %vm1029_vm6, %v3137_v6, %v13647_v3  ;;  %v3515_v14 = vrot.slane %v10212_v51, 3 }
 0x686   : > { %v10331_v57 = vadd.f32 %v3210_v21, %v2992_v48  ;;  %v10343_v38 = vadd.f32 %v3140_v62, %v2965_v49  ;;  %v3212_v39 = vsel %vm1029_vm6, %v3209_v54, %v13646_v44  ;;  %v10349_v52 = vsel %vm1029_vm6, %v3613_v19, %v3614_v23 }
 0x687   : > { %v10314_v8 = vsel %vm2900_vm13, %v2910_v50, %v2911_v24  ;;  %v3714_v6 = vrot.slane %v10178_v7, 5  ;;  %v10353_v20 = vadd.f32 %v3212_v39, %v2993_v9  ;;  %v3713_v2 = vrot.slane %v10131_v30, 5 }
 0x688   : > { %13956 = vst [vmem:[#allocation55_spill] sm:$0xff] %v10314_v8  ;;  %3367 = vrot.lane.b32.xlu1 %v10300_v41, %s7896_s15  ;;  %3532 = vrot.lane.b32.xlu0 %v10317_v0, %s7896_s15  ;;  %13957 = vst [vmem:[#allocation56_spill] sm:$0xff] %v10331_v57  ;;  %v10361_v53 = vsel %vm3511_vm0, %v3513_v43, %v3515_v14  ;;  %v3616_v48 = vrot.slane %v10212_v51, 4  ;;  %v3778_v21 = vrot.slane %v10178_v7, 6  ;;  %v3777_v49 = vrot.slane %v10131_v30, 6 }
 0x689   : > { %13958 = vst [vmem:[#allocation57_spill] sm:$0xff] %v10343_v38  ;;  %13959 = vst [vmem:[#allocation58_spill] sm:$0xff] %v10353_v20  ;;  %v10364_v54 = vsel %vm2900_vm13, %v3713_v2, %v3714_v6  ;;  %v3716_v62 = vrot.slane %v10212_v51, 5  ;;  %v3780_v39 = vrot.slane %v10212_v51, 6  ;;  %v10424_v14 = vsel %vm2900_vm13, %v2911_v24, 0.0 }
 0x68a   : > { %v10374_v19 = vsel %vm1029_vm6, %v3614_v23, %v3616_v48  ;;  %v10377_v43 = vsel %vm3572_vm1, %v3777_v49, %v3778_v21  ;;  %13960 = vst [vmem:[#allocation59_spill] sm:$0xff] %v10424_v14  ;;  %v2975_v2 = vmul.f32 %v10194_v17, %v10424_v14  ;;  %v3123_v48 = vmul.f32 %v10209_v29, %v10424_v14 }
 0x68b   : > { %v10385_v9 = vsel %vm2900_vm13, %v3714_v6, %v3716_v62  ;;  %v10393_v23 = vsel %vm3572_vm1, %v3778_v21, %v3780_v39  ;;  %v10433_v6 = vsel %vm2900_vm13, 0.0, %v2910_v50  ;;  %v3122_v4 = vmul.f32 %v10209_v29, %v10314_v8 }
 0x68c   : > { %3432 = vrot.lane.b32.xlu1 %v10341_v47, %s7896_s15  ;;  %3633 = vrot.lane.b32.xlu0 %v10349_v52, %s7896_s15  ;;  %13961 = vst [vmem:[#allocation60_spill] sm:$0xff] %v10433_v6  ;;  %v3154_v24 = vrot.slane %v3123_v48, 4  ;;  %v3121_v21 = vmul.f32 %v10209_v29, %v10433_v6  ;;  %v3003_v50 = vmul.f32 %v10221_v10, %v10424_v14  ;;  %v13982_v29 = vrot.slane %v10142_v63, 5  ;;  %v13986_v63 = vld [vmem:[#allocation43_spill] sm:$0xff] }
 0x68d   : > { %v3195_v49 = vmul.f32 %v10225_v22, %v10424_v14  ;;  %v3152_v48 = vrot.slane %v3122_v4, 4  ;;  %v2973_v11 = vmul.f32 %v10194_v17, %v10433_v6  ;;  %v2974_v44 = vmul.f32 %v10194_v17, %v10314_v8 }
 0x68e   : > { %v10451_v62 = vadd.f32 %v3154_v24, %v2975_v2  ;;  %v3151_v39 = vrot.slane %v3121_v21, 4  ;;  %v3193_v3 = vmul.f32 %v10225_v22, %v10433_v6  ;;  %v3194_v2 = vmul.f32 %v10225_v22, %v10314_v8 }
 0x68f   : > { %v3226_v58 = vrot.slane %v3195_v49, 4  ;;  %v3155_v16 = vsel %vm1029_vm6, %v3152_v48, %v3154_v24  ;;  %v3001_v42 = vmul.f32 %v10221_v10, %v10433_v6  ;;  %v3002_v24 = vmul.f32 %v10221_v10, %v10314_v8 }
 0x690   : > { %3534 = vrot.lane.b32.xlu1 %v10361_v53, %s7896_s15  ;;  %3733 = vrot.lane.b32.xlu0 %v10364_v54, %s7896_s15  ;;  %13962 = vst [vmem:[#allocation61_spill] sm:$0xff] %v10451_v62  ;;  %v3153_v13 = vsel %vm1029_vm6, %v3151_v39, %v3152_v48  ;;  %v10471_v4 = vadd.f32 %v3155_v16, %v2974_v44  ;;  %v3223_v49 = vrot.slane %v3193_v3, 4  ;;  %v3224_v14 = vrot.slane %v3194_v2, 4 }
 0x691   : > { %v10467_v62 = vadd.f32 %v3226_v58, %v3003_v50  ;;  %v10469_v21 = vadd.f32 %v3153_v13, %v2973_v11  ;;  %v10651_v18 = vrot.slane %v10155_v25, %v13986_v63 }
 0x692   : > { %13965 = vst [vmem:[#allocation64_spill] sm:$0xff] %v10471_v4  ;;  %v3225_v50 = vsel %vm1029_vm6, %v3223_v49, %v3224_v14  ;;  %v3227_v13 = vsel %vm1029_vm6, %v3224_v14, %v3226_v58 }
 0x693   : > { %13963 = vst [vmem:[#allocation62_spill] sm:$0xff] %v10467_v62  ;;  %13964 = vst [vmem:[#allocation63_spill] sm:$0xff] %v10469_v21  ;;  %v10483_v16 = vadd.f32 %v3225_v50, %v3001_v42  ;;  %v10485_v11 = vadd.f32 %v3227_v13, %v3002_v24 }
 0x694   : > { %3635 = vrot.lane.b32.xlu1 %v10374_v19, %s7896_s15  ;;  %3797 = vrot.lane.b32.xlu0 %v10377_v43, %s7896_s15  ;;  %13990 = vst [vmem:[#allocation86_spill] sm:$0xff] %v10651_v18 }
 0x695   : > { %13966 = vst [vmem:[#allocation65_spill] sm:$0xff] %v10483_v16  ;;  %13967 = vst [vmem:[#allocation66_spill] sm:$0xff] %v10485_v11 }
 0x698   : > { %3735 = vrot.lane.b32.xlu1 %v10385_v9, %s7896_s15  ;;  %3957 = vrot.lane.b32.xlu0 %v10257_v34, %s7895_s18 }
 0x69c   : > { %3799 = vrot.lane.b32.xlu1 %v10393_v23, %s7896_s15  ;;  %4037 = vrot.lane.b32.xlu0 %v10282_v31, %s7895_s18 }
 0x6a0   : > { %3959 = vrot.lane.b32.xlu1 %v10300_v41, %s7895_s18  ;;  %4081 = vrot.lane.b32.xlu0 %v10317_v0, %s7895_s18 }
 0x6a4   : > { %4039 = vrot.lane.b32.xlu1 %v10341_v47, %s7895_s18  ;;  %4161 = vrot.lane.b32.xlu0 %v10349_v52, %s7895_s18 }
 0x6a8   : > { %4083 = vrot.lane.b32.xlu1 %v10361_v53, %s7895_s18  ;;  %4241 = vrot.lane.b32.xlu0 %v10364_v54, %s7895_s18 }
 0x6ac   : > { %4163 = vrot.lane.b32.xlu1 %v10374_v19, %s7895_s18  ;;  %4321 = vrot.lane.b32.xlu0 %v10377_v43, %s7895_s18 }
 0x6b0   : > { %4243 = vrot.lane.b32.xlu1 %v10385_v9, %s7895_s18  ;;  %4445 = vrot.lane.b32.xlu0 %v10257_v34, %s7899_s23 }
 0x6b4   : > { %4323 = vrot.lane.b32.xlu1 %v10393_v23, %s7895_s18  ;;  %4525 = vrot.lane.b32.xlu0 %v10282_v31, %s7899_s23 }
 0x6b8   : > { %4447 = vrot.lane.b32.xlu1 %v10300_v41, %s7899_s23  ;;  %4605 = vrot.lane.b32.xlu0 %v10317_v0, %s7899_s23 }
 0x6bc   : > { %4527 = vrot.lane.b32.xlu1 %v10341_v47, %s7899_s23  ;;  %4811 = vrot.lane.b32.xlu0 %v10393_v23, %s7899_s23 }
 0x6c0   : > { %4607 = vrot.lane.b32.xlu1 %v10361_v53, %s7899_s23  ;;  %5095 = vrot.lane.b32.xlu0 %v10361_v53, %s7894_s17 }
 0x6c4   : > { %4809 = vrot.lane.b32.xlu1 %v10377_v43, %s7899_s23  ;;  %4651 = vrot.lane.b32.xlu0 %v10374_v19, %s7899_s23 }
 0x6c8   : > { %5093 = vrot.lane.b32.xlu1 %v10317_v0, %s7894_s17  ;;  %4731 = vrot.lane.b32.xlu0 %v10385_v9, %s7899_s23 }
 0x6cc   : > { %4649 = vrot.lane.b32.xlu1 %v10349_v52, %s7899_s23  ;;  %4935 = vrot.lane.b32.xlu0 %v10300_v41, %s7894_s17 }
 0x6d0   : > { %4729 = vrot.lane.b32.xlu1 %v10364_v54, %s7899_s23  ;;  %5015 = vrot.lane.b32.xlu0 %v10341_v47, %s7894_s17 }
 0x6d4   : > { %4933 = vrot.lane.b32.xlu1 %v10257_v34, %s7894_s17  ;;  %5663 = vrot.lane.b32.xlu0 %v10374_v19, %s7897_s16 }
 0x6d8   : > { %5013 = vrot.lane.b32.xlu1 %v10282_v31, %s7894_s17  ;;  %5219 = vrot.lane.b32.xlu0 %v10385_v9, %s7894_s17 }
 0x6dc   : > { %5661 = vrot.lane.b32.xlu1 %v10349_v52, %s7897_s16  ;;  %5299 = vrot.lane.b32.xlu0 %v10393_v23, %s7894_s17 }
 0x6de   : > { %v10511_v42 = vpop.permute.xlu1 %5377  ;;  %v10513_v58 = vpop.permute.xlu0 %3260 }
 0x6e0   : > { %5217 = vrot.lane.b32.xlu1 %v10364_v54, %s7894_s17  ;;  %5947 = vrot.lane.b32.xlu0 %v10300_v41, %s7898_s22 }
 0x6e2   : > { %v10519_v3 = vpop.permute.xlu1 %4889  ;;  %v10521_v44 = vpop.permute.xlu0 %3877 }
 0x6e4   : > { %5297 = vrot.lane.b32.xlu1 %v10377_v43, %s7894_s17  ;;  %5501 = vrot.lane.b32.xlu0 %v10282_v31, %s7897_s16 }
 0x6e6   : > { %v10527_v14 = vpop.permute.xlu1 %5865  ;;  %v10529_v39 = vpop.permute.xlu0 %4365 }
 0x6e8   : > { %5945 = vrot.lane.b32.xlu1 %v10257_v34, %s7898_s22  ;;  %5581 = vrot.lane.b32.xlu0 %v10317_v0, %s7897_s16 }
 0x6ea   : > { %v10535_v48 = vpop.permute.xlu0 %5379  ;;  %v10537_v2 = vpop.permute.xlu1 %3262 }
 0x6ec   : > { %5503 = vrot.lane.b32.xlu1 %v10341_v47, %s7897_s16  ;;  %6229 = vrot.lane.b32.xlu0 %v10364_v54, %s7898_s22 }
 0x6ee   : > { %v10543_v49 = vpop.permute.xlu0 %5867  ;;  %v10545_v24 = vpop.permute.xlu1 %3879 }
 0x6f0   : > { %5583 = vrot.lane.b32.xlu1 %v10361_v53, %s7897_s16  ;;  %5173 = vrot.lane.b32.xlu0 %v10349_v52, %s7894_s17 }
 0x6f2   : > { %v10551_v50 = vpop.permute.xlu1 %4367  ;;  %v10553_v13 = vpop.permute.xlu0 %3365 }
 0x6f3   : > { %13968 = vst [vmem:[#allocation67_spill] sm:$0xff] %v10553_v13 }
 0x6f4   : > { %6231 = vrot.lane.b32.xlu1 %v10385_v9, %s7898_s22  ;;  %5787 = vrot.lane.b32.xlu0 %v10393_v23, %s7897_s16 }
 0x6f6   : > { %v10559_v11 = vpop.permute.xlu1 %4891  ;;  %v10561_v16 = vpop.permute.xlu0 %3430 }
 0x6f7   : > { %13969 = vst [vmem:[#allocation68_spill] sm:$0xff] %v10559_v11  ;;  %v10655_v11 = vrot.slane %v10155_v25, %v13991_v27 }
 0x6f8   : > { %5785 = vrot.lane.b32.xlu1 %v10377_v43, %s7897_s16  ;;  %5457 = vrot.lane.b32.xlu0 %v10257_v34, %s7897_s16 }
 0x6f9   : > { %13992 = vst [vmem:[#allocation40_spill] sm:$0xff] %v10655_v11 }
 0x6fa   : > { %v10567_v62 = vpop.permute.xlu1 %3367  ;;  %v10569_v4 = vpop.permute.xlu0 %3532 }
 0x6fb   : > { %13970 = vst [vmem:[#allocation69_spill] sm:$0xff] %v10567_v62 }
 0x6fc   : > { %6069 = vrot.lane.b32.xlu1 %v10317_v0, %s7898_s22  ;;  %6071 = vrot.lane.b32.xlu0 %v10361_v53, %s7898_s22 }
 0x6fe   : > { %v10575_v21 = vpop.permute.xlu1 %3432  ;;  %v10577_v6 = vpop.permute.xlu0 %3633 }
 0x6ff   : > { %13971 = vst [vmem:[#allocation70_spill] sm:$0xff] %v10575_v21  ;;  %13972 = vst [vmem:[#allocation71_spill] sm:$0xff] %v10577_v6  ;;  %v10770_v6 = vrot.slane %v10190_v60, %v13991_v27 }
 0x700   : > { %6149 = vrot.lane.b32.xlu1 %v10349_v52, %s7898_s22  ;;  %6151 = vrot.lane.b32.xlu0 %v10374_v19, %s7898_s22 }
 0x701   : > { %14014 = vst [vmem:[#allocation105_spill] sm:$0xff] %v10770_v6 }
 0x702   : > { %v10583_v34 = vpop.permute.xlu1 %3534  ;;  %v10585_v8 = vpop.permute.xlu0 %3733 }
 0x703   : > { %13973 = vst [vmem:[#allocation72_spill] sm:$0xff] %v10585_v8 }
 0x704   : > { %5175 = vrot.lane.b32.xlu1 %v10374_v19, %s7894_s17  ;;  %5741 = vrot.lane.b32.xlu0 %v10364_v54, %s7897_s16 }
 0x706   : > { %v10591_v0 = vpop.permute.xlu1 %3635  ;;  %v10593_v53 = vpop.permute.xlu0 %3797 }
 0x707   : > { %13974 = vst [vmem:[#allocation73_spill] sm:$0xff] %v10591_v0  ;;  %13975 = vst [vmem:[#allocation74_spill] sm:$0xff] %v10593_v53  ;;  %v10730_v53 = vrot.slane %v10171_v40, %v13936_v59 }
 0x708   : > { %6025 = vrot.lane.b32.xlu1 %v10282_v31, %s7898_s22  ;;  %5459 = vrot.lane.b32.xlu0 %v10300_v41, %s7897_s16 }
 0x709   : > { %14008 = vst [vmem:[#allocation100_spill] sm:$0xff] %v10730_v53 }
 0x70a   : > { %v10599_v52 = vpop.permute.xlu1 %3735  ;;  %v10601_v22 = vpop.permute.xlu0 %3957 }
 0x70b   : > { %13976 = vst [vmem:[#allocation75_spill] sm:$0xff] %v10599_v52  ;;  %13977 = vst [vmem:[#allocation76_spill] sm:$0xff] %v10601_v22  ;;  %v13997_v52 = vrot.slane %v10150_v36, 5 }
 0x70c   : > { %5743 = vrot.lane.b32.xlu1 %v10385_v9, %s7897_s16  ;;  %6309 = vrot.lane.b32.xlu0 %v10377_v43, %s7898_s22  ;;  %v10622_v9 = vsel %vm2900_vm13, 0.0, %v13982_v29 }
 0x70d   : > { %13983 = vst [vmem:[#allocation81_spill] sm:$0xff] %v10622_v9  ;;  %v3415_v8 = vrot.slane %v10622_v9, 2 }
 0x70e   : > { %v10607_v54 = vpop.permute.xlu1 %3799  ;;  %v10609_v19 = vpop.permute.xlu0 %4037 }
 0x70f   : > { %13978 = vst [vmem:[#allocation77_spill] sm:$0xff] %v10607_v54  ;;  %13979 = vst [vmem:[#allocation78_spill] sm:$0xff] %v10609_v19  ;;  %v10675_v19 = vrot.slane %v10155_v25, %v13944_v5  ;;  %v2966_v54 = vmul.f32 %v10194_v17, %v10212_v51  ;;  %v14006_v17 = vrot.slane %v10304_v56, 4 }
 0x710   : > { %6027 = vrot.lane.b32.xlu1 %v10341_v47, %s7898_s22  ;;  %6311 = vrot.lane.b32.xlu0 %v10393_v23, %s7898_s22  ;;  %v10635_v23 = vld [vmem:[%s13579_s5 + $0x10] sm:$0xff] }
 0x711   : > { %v10643_v29 = vrot.slane %v10635_v23, %v13986_v63  ;;  %13996 = vst [vmem:[#allocation90_spill] sm:$0xff] %v10675_v19  ;;  %v10726_v22 = vadd.f32 %v14006_v17, %v2966_v54  ;;  %v3517_v54 = vrot.slane %v10622_v9, 3 }
 0x712   : > { %v10615_v31 = vpop.permute.xlu1 %3959  ;;  %v10617_v41 = vpop.permute.xlu0 %4081 }
 0x713   : > { %13980 = vst [vmem:[#allocation79_spill] sm:$0xff] %v10615_v31  ;;  %13981 = vst [vmem:[#allocation80_spill] sm:$0xff] %v10617_v41  ;;  %v10684_v38 = vmul.f32 %v10643_v29, %v10131_v30  ;;  %v10688_v41 = vmul.f32 %v10643_v29, %v10212_v51  ;;  %v10697_v36 = vmul.f32 %v10643_v29, %v10178_v7 }
 0x714   : > { %5381 = vrot.lane.b32.xlu1 %v10622_v9, %s7897_s16  ;;  %3264 = vrot.lane.b32.xlu0 %v10622_v9, %s7896_s15  ;;  %13987 = vst [vmem:[#allocation43_spill] sm:$0xff] %v10643_v29  ;;  %v10705_v30 = vrot.slane %v10190_v60, %v13941_v33  ;;  %v2994_v7 = vmul.f32 %v10221_v10, %v10212_v51  ;;  %v3350_v29 = vrot.slane %v10622_v9, 1  ;;  %14007 = vst [vmem:[#allocation99_spill] sm:$0xff] %v10726_v22 }
 0x715   : > { %14001 = vst [vmem:[#allocation94_spill] sm:$0xff] %v10697_v36  ;;  %v3416_v51 = vrot.slane %v10185_v28, 2  ;;  %v14009_v10 = vrot.slane %v10309_v35, 4  ;;  %v3518_v22 = vrot.slane %v10185_v28, 3  ;;  %v10753_v35 = vrot.slane %v10199_v45, %v13944_v5 }
 0x716   : > { %v10628_v43 = vpop.permute.xlu1 %4039  ;;  %v10630_v47 = vpop.permute.xlu0 %4161  ;;  %14003 = vst [vmem:[#allocation96_spill] sm:$0xff] %v10705_v30 }
 0x717   : > { %13984 = vst [vmem:[#allocation82_spill] sm:$0xff] %v10628_v43  ;;  %13985 = vst [vmem:[#allocation83_spill] sm:$0xff] %v10630_v47  ;;  %v10663_v43 = vrot.slane %v10155_v25, %v13936_v59  ;;  %v10671_v47 = vrot.slane %v10155_v25, %v13946_v26  ;;  %v10736_v57 = vadd.f32 %v14009_v10, %v2994_v7 }
 0x718   : > { %4893 = vrot.lane.b32.xlu1 %v10622_v9, %s7894_s17  ;;  %3881 = vrot.lane.b32.xlu0 %v10622_v9, %s7895_s18  ;;  %14013 = vst [vmem:[#allocation104_spill] sm:$0xff] %v10753_v35  ;;  %v10782_v36 = vsel %vm3511_vm0, %v3517_v54, %v3518_v22 }
 0x719   : > { %13993 = vst [vmem:[#allocation87_spill] sm:$0xff] %v10663_v43  ;;  %13995 = vst [vmem:[#allocation89_spill] sm:$0xff] %v10671_v47 }
 0x71a   : > { %v10645_v46 = vpop.permute.xlu1 %4083  ;;  %v10647_v15 = vpop.permute.xlu0 %4241  ;;  %14010 = vst [vmem:[#allocation101_spill] sm:$0xff] %v10736_v57  ;;  %v3618_v57 = vrot.slane %v10622_v9, 4 }
 0x71b   : > { %13988 = vst [vmem:[#allocation84_spill] sm:$0xff] %v10645_v46  ;;  %13989 = vst [vmem:[#allocation85_spill] sm:$0xff] %v10647_v15  ;;  %v10667_v15 = vrot.slane %v10155_v25, %v13948_v32  ;;  %v10680_v46 = vsel %vm2900_vm13, %v13997_v52, 0.0  ;;  %v3351_v25 = vrot.slane %v10185_v28, 1  ;;  %v10701_v52 = vrot.slane %v10190_v60, %v13938_v12 }
 0x71c   : > { %3266 = vrot.lane.b32.xlu1 %v10185_v28, %s7896_s15  ;;  %4369 = vrot.lane.b32.xlu0 %v10622_v9, %s7899_s23  ;;  %13998 = vst [vmem:[#allocation91_spill] sm:$0xff] %v10680_v46  ;;  %v3353_v17 = vrot.slane %v10680_v46, 1  ;;  %v3418_v53 = vrot.slane %v10680_v46, 2  ;;  %v3520_v10 = vrot.slane %v10680_v46, 3  ;;  %v3621_v7 = vrot.slane %v10680_v46, 4 }
 0x71d   : > { %13994 = vst [vmem:[#allocation88_spill] sm:$0xff] %v10667_v15  ;;  %14002 = vst [vmem:[#allocation95_spill] sm:$0xff] %v10701_v52  ;;  %v10743_v56 = vsel %vm3344_vm14, %v3350_v29, %v3351_v25  ;;  %v3719_v29 = vrot.slane %v10185_v28, 5  ;;  %v3721_v0 = vrot.slane %v10680_v46, 5  ;;  %v3785_v35 = vrot.slane %v10680_v46, 6 }
 0x71e   : > { %v10690_v31 = vpop.permute.xlu1 %4163  ;;  %v10692_v20 = vpop.permute.xlu0 %4321  ;;  %v10777_v13 = vsel %vm3344_vm14, %v3351_v25, %v3353_v17  ;;  %v3782_v52 = vrot.slane %v10622_v9, 6  ;;  %v10785_v46 = vsel %vm3409_vm15, %v3416_v51, %v3418_v53  ;;  %v10788_v21 = vsel %vm1029_vm6, %v3618_v57, %v3619_v61 }
 0x71f   : > { %13999 = vst [vmem:[#allocation92_spill] sm:$0xff] %v10690_v31  ;;  %14000 = vst [vmem:[#allocation93_spill] sm:$0xff] %v10692_v20  ;;  %v10711_v20 = vrot.slane %v10635_v23, %v13946_v26  ;;  %v10715_v31 = vrot.slane %v10148_v55, %v13986_v63  ;;  %v10801_v17 = vsel %vm1029_vm6, %v3619_v61, %v3621_v7 }
 0x720   : > { %3883 = vrot.lane.b32.xlu1 %v10185_v28, %s7895_s18  ;;  %5869 = vrot.lane.b32.xlu0 %v10622_v9, %s7898_s22  ;;  %14018 = vst [vmem:[#allocation109_spill] sm:$0xff] %v10801_v17  ;;  %v3284_v57 = vmul.f32 %v10513_v58, %v10655_v11  ;;  %v10820_v61 = vrot.slane %v10635_v23, %v13941_v33 }
 0x721   : > { %14004 = vst [vmem:[#allocation97_spill] sm:$0xff] %v10711_v20  ;;  %14005 = vst [vmem:[#allocation98_spill] sm:$0xff] %v10715_v31  ;;  %v10828_v58 = vrot.slane %v10171_v40, %v13986_v63  ;;  %v10846_v7 = vrot.slane %v10635_v23, %v13991_v27 }
 0x722   : > { %v10738_v37 = vpop.permute.xlu1 %4243  ;;  %v10740_v1 = vpop.permute.xlu0 %4445  ;;  %14021 = vst [vmem:[#allocation112_spill] sm:$0xff] %v10820_v61 }
 0x723   : > { %14011 = vst [vmem:[#allocation102_spill] sm:$0xff] %v10738_v37  ;;  %14012 = vst [vmem:[#allocation103_spill] sm:$0xff] %v10740_v1  ;;  %v3783_v1 = vrot.slane %v10185_v28, 6  ;;  %v10763_v37 = vsel %vm3409_vm15, %v3415_v8, %v3416_v51  ;;  %v3718_v8 = vrot.slane %v10622_v9, 5  ;;  %v10813_v51 = vsel %vm2900_vm13, %v3719_v29, %v3721_v0 }
 0x724   : > { %4371 = vrot.lane.b32.xlu1 %v10185_v28, %s7899_s23  ;;  %5383 = vrot.lane.b32.xlu0 %v10185_v28, %s7897_s16  ;;  %14023 = vst [vmem:[#allocation114_spill] sm:$0xff] %v10828_v58  ;;  %14028 = vst [vmem:[#allocation119_spill] sm:$0xff] %v10846_v7  ;;  %v10854_v9 = vmul.f32 %v10535_v48, %v10651_v18  ;;  %v3300_v48 = vrot.slane %v3284_v57, 5  ;;  %v10894_v57 = vrot.slane %v10171_v40, %v13991_v27 }
 0x725   : > { %v10798_v25 = vsel %vm2900_vm13, %v3718_v8, %v3719_v29  ;;  %v10804_v53 = vsel %vm3572_vm1, %v3782_v52, %v3783_v1  ;;  %v10816_v54 = vsel %vm3572_vm1, %v3783_v1, %v3785_v35  ;;  %v10824_v52 = vrot.slane %v10148_v55, %v13946_v26 }
 0x726   : > { %v10772_v31 = vpop.permute.xlu1 %4323  ;;  %v10774_v62 = vpop.permute.xlu0 %4525  ;;  %14017 = vst [vmem:[#allocation108_spill] sm:$0xff] %v10798_v25  ;;  %14019 = vst [vmem:[#allocation110_spill] sm:$0xff] %v10804_v53  ;;  %v3285_v35 = vmul.f32 %v10537_v2, %v10655_v11  ;;  %v10842_v29 = vrot.slane %v10190_v60, %v13948_v32  ;;  %v10850_v8 = vrot.slane %v10148_v55, %v13938_v12 }
 0x727   : > { %14015 = vst [vmem:[#allocation106_spill] sm:$0xff] %v10772_v31  ;;  %v10791_v31 = vsel %vm3511_vm0, %v3518_v22, %v3520_v10  ;;  %v10810_v22 = vrot.slane %v10635_v23, %v13938_v12  ;;  %14022 = vst [vmem:[#allocation113_spill] sm:$0xff] %v10824_v52  ;;  %v10832_v10 = vrot.slane %v10199_v45, %v13936_v59 }
 0x728   : > { %14016 = vst [vmem:[#allocation107_spill] sm:$0xff] %v10791_v31  ;;  %5871 = vrot.lane.b32.xlu1 %v10185_v28, %s7898_s22  ;;  %3369 = vrot.lane.b32.xlu0 %v10743_v56, %s7896_s15  ;;  %14027 = vst [vmem:[#allocation118_spill] sm:$0xff] %v10842_v29  ;;  %v10862_v2 = vrot.slane %v10199_v45, %v13986_v63  ;;  %v10866_v11 = vrot.slane %v10148_v55, %v13991_v27 }
 0x729   : > { %14020 = vst [vmem:[#allocation111_spill] sm:$0xff] %v10810_v22  ;;  %14024 = vst [vmem:[#allocation115_spill] sm:$0xff] %v10832_v10 }
 0x72a   : > { %v10834_v0 = vpop.permute.xlu1 %4447  ;;  %v10836_v1 = vpop.permute.xlu0 %4605  ;;  %14029 = vst [vmem:[#allocation120_spill] sm:$0xff] %v10850_v8  ;;  %14030 = vst [vmem:[#allocation121_spill] sm:$0xff] %v10854_v9  ;;  %v10874_v8 = vrot.slane %v10148_v55, %v13941_v33 }
 0x72b   : > { %14025 = vst [vmem:[#allocation116_spill] sm:$0xff] %v10834_v0  ;;  %14026 = vst [vmem:[#allocation117_spill] sm:$0xff] %v10836_v1  ;;  %v10870_v1 = vmul.f32 %v10511_v42, %v10651_v18  ;;  %v10890_v42 = vrot.slane %v10635_v23, %v13948_v32  ;;  %v10898_v18 = vrot.slane %v10171_v40, %v13941_v33 }
 0x72c   : > { %4895 = vrot.lane.b32.xlu1 %v10185_v28, %s7894_s17  ;;  %3434 = vrot.lane.b32.xlu0 %v10763_v37, %s7896_s15  ;;  %14031 = vst [vmem:[#allocation122_spill] sm:$0xff] %v10862_v2  ;;  %14032 = vst [vmem:[#allocation123_spill] sm:$0xff] %v10866_v11  ;;  %v10878_v28 = vrot.slane %v10171_v40, %v13946_v26  ;;  %v10886_v11 = vrot.slane %v10190_v60, %v13944_v5 }
 0x72d   : > { %14033 = vst [vmem:[#allocation124_spill] sm:$0xff] %v10870_v1  ;;  %14034 = vst [vmem:[#allocation125_spill] sm:$0xff] %v10874_v8  ;;  %v3301_v8 = vrot.slane %v3285_v35, 5  ;;  %v10935_v35 = vmul.f32 %v10543_v49, %v10671_v47  ;;  %v10957_v49 = vrot.slane %v10199_v45, %v13991_v27  ;;  %v14050_v27 = vrot.slane %v10870_v1, 5  ;;  %v14059_v1 = vld [vmem:[#allocation98_spill] sm:$0xff] }
 0x72e   : > { %14035 = vst [vmem:[#allocation126_spill] sm:$0xff] %v10878_v28  ;;  %v10880_v0 = vpop.permute.xlu1 %4527  ;;  %v10882_v2 = vpop.permute.xlu0 %4811  ;;  %14036 = vst [vmem:[#allocation127_spill] sm:$0xff] %v10886_v11  ;;  %v10902_v28 = vmul.f32 %v10521_v44, %v10667_v15  ;;  %v10906_v11 = vrot.slane %v10199_v45, %v13946_v26  ;;  %v10923_v26 = vrot.slane %v10635_v23, %v13944_v5 }
 0x72f   : > { %14037 = vst [vmem:[#allocation128_spill] sm:$0xff] %v10890_v42  ;;  %14038 = vst [vmem:[#allocation129_spill] sm:$0xff] %v10894_v57  ;;  %v10910_v42 = vrot.slane %v10190_v60, %v13986_v63  ;;  %v10914_v57 = vmul.f32 %v10527_v14, %v10671_v47  ;;  %v10927_v44 = vrot.slane %v10148_v55, %v13948_v32 }
 0x730   : > { %14039 = vst [vmem:[#allocation130_spill] sm:$0xff] %v10898_v18  ;;  %14040 = vst [vmem:[#allocation131_spill] sm:$0xff] %v10906_v11  ;;  %3371 = vrot.lane.b32.xlu1 %v10777_v13, %s7896_s15  ;;  %3536 = vrot.lane.b32.xlu0 %v10782_v36, %s7896_s15  ;;  %v10931_v14 = vadd.f32 %v3300_v48, %v10684_v38  ;;  %v10939_v18 = vmul.f32 %v10545_v24, %v10667_v15  ;;  %v3917_v24 = vrot.slane %v10902_v28, 6 }
 0x731   : > { %14041 = vst [vmem:[#allocation132_spill] sm:$0xff] %v10910_v42  ;;  %14042 = vst [vmem:[#allocation133_spill] sm:$0xff] %v10914_v57  ;;  %v3454_v38 = vmul.f32 %v10561_v16, %v10705_v30  ;;  %v3556_v47 = vmul.f32 %v10569_v4, %v10711_v20  ;;  %v10968_v15 = vmul.f32 %v10529_v39, %v10675_v19  ;;  %v14054_v16 = vld [vmem:[#allocation94_spill] sm:$0xff] }
 0x732   : > { %14043 = vst [vmem:[#allocation134_spill] sm:$0xff] %v10923_v26  ;;  %14044 = vst [vmem:[#allocation135_spill] sm:$0xff] %v10927_v44  ;;  %v10943_v26 = vmul.f32 %v10519_v3, %v10663_v43  ;;  %v10947_v44 = vmul.f32 %v10551_v50, %v10675_v19  ;;  %v10951_v63 = vpop.permute.xlu1 %4607  ;;  %v10953_v42 = vpop.permute.xlu0 %5095  ;;  %v3302_v3 = vsel %vm2900_vm13, %v3300_v48, %v3301_v8  ;;  %v14049_v43 = vrot.slane %v10854_v9, 5  ;;  %v14060_v9 = vld [vmem:[#allocation71_spill] sm:$0xff]  ;;  %v14068_v19 = vld [vmem:[#allocation73_spill] sm:$0xff] }
 0x733   : > { %14045 = vst [vmem:[#allocation136_spill] sm:$0xff] %v10935_v35  ;;  %14047 = vst [vmem:[#allocation138_spill] sm:$0xff] %v10951_v63  ;;  %v3557_v50 = vmul.f32 %v10583_v34, %v10711_v20  ;;  %v10983_v4 = vrot.slane %v10171_v40, %v13938_v12  ;;  %v10986_v39 = vadd.f32 %v3301_v8, %v10688_v41  ;;  %v14058_v8 = vld [vmem:[#allocation69_spill] sm:$0xff]  ;;  %v3573_v48 = vrot.slane %v3556_v47, 6  ;;  %v14078_v63 = vld [vmem:[#allocation72_spill] sm:$0xff] }
 0x734   : > { %14046 = vst [vmem:[#allocation137_spill] sm:$0xff] %v10943_v26  ;;  %14048 = vst [vmem:[#allocation139_spill] sm:$0xff] %v10957_v49  ;;  %v10975_v28 = vsel %vm2900_vm13, %v14050_v27, %v14049_v43  ;;  %3436 = vrot.lane.b32.xlu1 %v10785_v46, %s7896_s15  ;;  %3637 = vrot.lane.b32.xlu0 %v10788_v21, %s7896_s15  ;;  %v14053_v43 = vld [vmem:[#allocation70_spill] sm:$0xff]  ;;  %v10993_v20 = vadd.f32 %v3302_v3, %v14054_v16  ;;  %v14055_v26 = vld [vmem:[#allocation95_spill] sm:$0xff]  ;;  %v14064_v47 = vrot.slane %v10935_v35, 6 }
 0x735   : > { %14051 = vst [vmem:[#allocation140_spill] sm:$0xff] %v10975_v28  ;;  %14052 = vst [vmem:[#allocation141_spill] sm:$0xff] %v10983_v4  ;;  %v3455_v27 = vmul.f32 %v14053_v43, %v10705_v30  ;;  %v14056_v49 = vld [vmem:[#allocation67_spill] sm:$0xff]  ;;  %v3471_v28 = vrot.slane %v3454_v38, 7  ;;  %v3390_v34 = vmul.f32 %v14058_v8, %v14055_v26  ;;  %v3657_v43 = vmul.f32 %v14060_v9, %v14059_v1 }
 0x736   : > { %v3389_v11 = vmul.f32 %v14056_v49, %v14055_v26  ;;  %v10998_v4 = vpop.permute.xlu1 %4809  ;;  %v11000_v41 = vpop.permute.xlu0 %4651  ;;  %v3574_v30 = vrot.slane %v3557_v50, 6  ;;  %v11013_v38 = vrot.slane %v10199_v45, %v13941_v33  ;;  %v11017_v49 = vrot.slane %v10190_v60, %v13936_v59 }
 0x737   : > { %14057 = vst [vmem:[#allocation70_spill] sm:$0xff] %v11000_v41  ;;  %v11021_v9 = vrot.slane %v10148_v55, %v13944_v5  ;;  %v14065_v50 = vrot.slane %v10914_v57, 6  ;;  %v14067_v8 = vrot.slane %v10939_v18, 6  ;;  %v3472_v3 = vrot.slane %v3455_v27, 7  ;;  %v14072_v57 = vld [vmem:[#allocation53_spill] sm:$0xff] }
 0x738   : > { %3538 = vrot.lane.b32.xlu1 %v10791_v31, %s7896_s15  ;;  %3737 = vrot.lane.b32.xlu0 %v10798_v25, %s7896_s15  ;;  %14061 = vst [vmem:[#allocation94_spill] sm:$0xff] %v11013_v38  ;;  %14062 = vst [vmem:[#allocation67_spill] sm:$0xff] %v11017_v49  ;;  %v3658_v60 = vmul.f32 %v14068_v19, %v14059_v1  ;;  %v14069_v26 = vrot.slane %v10947_v44, 7  ;;  %v14070_v55 = vrot.slane %v10968_v15, 7  ;;  %v14071_v49 = vld [vmem:[#allocation48_spill] sm:$0xff]  ;;  %v14075_v19 = vld [vmem:[#allocation54_spill] sm:$0xff] }
 0x739   : > { %14063 = vst [vmem:[#allocation69_spill] sm:$0xff] %v11021_v9  ;;  %v11028_v16 = vsel %vm3572_vm1, %v14065_v50, %v14064_v47  ;;  %v3919_v33 = vsel %vm3572_vm1, %v3917_v24, %v14067_v8  ;;  %v3397_v35 = vadd.f32 %v3389_v11, %v14071_v49  ;;  %v3495_v47 = vadd.f32 %v3471_v28, %v14072_v57  ;;  %v14076_v1 = vld [vmem:[#allocation56_spill] sm:$0xff]  ;;  %v14080_v57 = vld [vmem:[#allocation74_spill] sm:$0xff] }
 0x73a   : > { %14066 = vst [vmem:[#allocation71_spill] sm:$0xff] %v11028_v16  ;;  %v11040_v5 = vsel %vm3470_vm2, %v14070_v55, %v14069_v26  ;;  %v11044_v50 = vpop.permute.xlu1 %5093  ;;  %v11046_v16 = vpop.permute.xlu0 %4731  ;;  %v11050_v27 = vrot.slane %v10171_v40, %v13948_v32  ;;  %v3398_v8 = vadd.f32 %v3390_v34, %v14075_v19  ;;  %v3597_v9 = vadd.f32 %v3573_v48, %v14076_v1  ;;  %v14077_v55 = vld [vmem:[#allocation100_spill] sm:$0xff]  ;;  %v14084_v19 = vld [vmem:[#allocation58_spill] sm:$0xff] }
 0x73b   : > { %14073 = vst [vmem:[#allocation73_spill] sm:$0xff] %v11046_v16  ;;  %v3673_v38 = vrot.slane %v3657_v43, 5  ;;  %v3575_v26 = vsel %vm3572_vm1, %v3573_v48, %v3574_v30  ;;  %v3757_v11 = vmul.f32 %v14078_v63, %v14077_v55  ;;  %v14079_v49 = vld [vmem:[#allocation104_spill] sm:$0xff]  ;;  %v11065_v40 = vrot.slane %v10199_v45, %v13938_v12  ;;  %v14083_v63 = vld [vmem:[#allocation77_spill] sm:$0xff]  ;;  %v14086_v16 = vld [vmem:[#allocation79_spill] sm:$0xff] }
 0x73c   : > { %14074 = vst [vmem:[#allocation48_spill] sm:$0xff] %v11050_v27  ;;  %v3821_v41 = vmul.f32 %v14080_v57, %v14079_v49  ;;  %3639 = vrot.lane.b32.xlu1 %v10801_v17, %s7896_s15  ;;  %3801 = vrot.lane.b32.xlu0 %v10804_v53, %s7896_s15  ;;  %v3473_v32 = vsel %vm3470_vm2, %v3471_v28, %v3472_v3  ;;  %v3674_v1 = vrot.slane %v3658_v60, 5  ;;  %v14082_v34 = vld [vmem:[#allocation76_spill] sm:$0xff]  ;;  %v14085_v27 = vld [vmem:[#allocation101_spill] sm:$0xff]  ;;  %v14088_v60 = vld [vmem:[#allocation99_spill] sm:$0xff] }
 0x73d   : > { %14081 = vst [vmem:[#allocation53_spill] sm:$0xff] %v11065_v40  ;;  %v3981_v48 = vmul.f32 %v14082_v34, %v10770_v6  ;;  %v3822_v43 = vmul.f32 %v14083_v63, %v14079_v49  ;;  %v3598_v57 = vadd.f32 %v3575_v26, %v14084_v19  ;;  %v3599_v17 = vadd.f32 %v3574_v30, %v14085_v27  ;;  %v14087_v25 = vld [vmem:[#allocation80_spill] sm:$0xff]  ;;  %v14090_v30 = vld [vmem:[#allocation57_spill] sm:$0xff] }
 0x73e   : > { %v3982_v53 = vmul.f32 %v14086_v16, %v10770_v6  ;;  %v4105_v12 = vmul.f32 %v14087_v25, %v10820_v61  ;;  %v11078_v45 = vpop.permute.xlu1 %4649  ;;  %v11080_v28 = vpop.permute.xlu0 %4935  ;;  %v3497_v40 = vadd.f32 %v3472_v3, %v14088_v60  ;;  %v3697_v34 = vadd.f32 %v3673_v38, %v10931_v14  ;;  %v14091_v19 = vld [vmem:[#allocation84_spill] sm:$0xff] }
 0x73f   : > { %v3941_v31 = vadd.f32 %v3917_v24, %v3597_v9  ;;  %v11086_v26 = vrot.slane %v10635_v23, %v13936_v59  ;;  %v3496_v27 = vadd.f32 %v3473_v32, %v14090_v30  ;;  %v3765_v63 = vadd.f32 %v3757_v11, %v3397_v35  ;;  %v14092_v24 = vld [vmem:[#allocation75_spill] sm:$0xff] }
 0x740   : > { %v3837_v16 = vrot.slane %v3821_v41, 7  ;;  %v4106_v25 = vmul.f32 %v14091_v19, %v10820_v61  ;;  %3739 = vrot.lane.b32.xlu1 %v10813_v51, %s7896_s15  ;;  %3961 = vrot.lane.b32.xlu0 %v10743_v56, %s7895_s18  ;;  %v3675_v14 = vsel %vm2900_vm13, %v3673_v38, %v3674_v1  ;;  %v3758_v3 = vmul.f32 %v14092_v24, %v14077_v55  ;;  %v14094_v38 = vld [vmem:[#allocation78_spill] sm:$0xff]  ;;  %v14095_v24 = vld [vmem:[#allocation83_spill] sm:$0xff] }
 0x741   : > { %14089 = vst [vmem:[#allocation54_spill] sm:$0xff] %v11086_v26  ;;  %v3997_v59 = vrot.slane %v3981_v48, 5  ;;  %v3838_v23 = vrot.slane %v3822_v43, 7  ;;  %v3998_v9 = vrot.slane %v3982_v53, 5  ;;  %v4121_v32 = vrot.slane %v4105_v12, 7  ;;  %v14096_v53 = vld [vmem:[#allocation92_spill] sm:$0xff] }
 0x742   : > { %v14093_v35 = vrot.slane %v10939_v18, 6  ;;  %v3942_v11 = vadd.f32 %v3919_v33, %v3598_v57  ;;  %v11102_v60 = vpop.permute.xlu1 %4729  ;;  %v11104_v30 = vpop.permute.xlu0 %5015  ;;  %v3699_v19 = vadd.f32 %v3674_v1, %v10986_v39  ;;  %v4061_v61 = vmul.f32 %v14094_v38, %v10810_v22  ;;  %v14097_v33 = vld [vmem:[#allocation102_spill] sm:$0xff]  ;;  %v14098_v38 = vld [vmem:[#allocation85_spill] sm:$0xff] }
 0x743   : > { %v4185_v48 = vmul.f32 %v14095_v24, %v10824_v52  ;;  %v4186_v43 = vmul.f32 %v14096_v53, %v10824_v52  ;;  %v3698_v18 = vadd.f32 %v3675_v14, %v10993_v20  ;;  %v4122_v12 = vrot.slane %v4106_v25, 7  ;;  %v14099_v25 = vld [vmem:[#allocation82_spill] sm:$0xff] }
 0x744   : > { %v11100_v41 = vadd.f32 %v14093_v35, %v3599_v17  ;;  %v3861_v17 = vadd.f32 %v3837_v16, %v3495_v47  ;;  %v4266_v57 = vmul.f32 %v14097_v33, %v10828_v58  ;;  %3803 = vrot.lane.b32.xlu1 %v10816_v54, %s7896_s15  ;;  %4041 = vrot.lane.b32.xlu0 %v10763_v37, %s7895_s18 }
 0x745   : > { %v3766_v39 = vadd.f32 %v3758_v3, %v3398_v8  ;;  %v4021_v1 = vadd.f32 %v3997_v59, %v3697_v34  ;;  %v3839_v35 = vsel %vm3470_vm2, %v3837_v16, %v3838_v23  ;;  %v4265_v24 = vmul.f32 %v14098_v38, %v10828_v58  ;;  %v14100_v58 = vld [vmem:[#allocation103_spill] sm:$0xff] }
 0x746   : > { %v3999_v20 = vsel %vm2900_vm13, %v3997_v59, %v3998_v9  ;;  %v4145_v47 = vadd.f32 %v4121_v32, %v3861_v17  ;;  %v4062_v14 = vmul.f32 %v14099_v25, %v10810_v22  ;;  %v4550_v53 = vmul.f32 %v10880_v0, %v10846_v7  ;;  %v11128_v33 = vpop.permute.xlu1 %4933  ;;  %v11130_v52 = vpop.permute.xlu0 %5663 }
 0x747   : > { %v3863_v8 = vadd.f32 %v3838_v23, %v3497_v40  ;;  %v4069_v34 = vadd.f32 %v4061_v61, %v3765_v63  ;;  %v4201_v3 = vrot.slane %v4185_v48, 6  ;;  %v4202_v16 = vrot.slane %v4186_v43, 6  ;;  %v14101_v63 = vld [vmem:[#allocation93_spill] sm:$0xff] }
 0x748   : > { %v3862_v6 = vadd.f32 %v3839_v35, %v3496_v27  ;;  %v4023_v55 = vadd.f32 %v3998_v9, %v3699_v19  ;;  %v4123_v38 = vsel %vm3470_vm2, %v4121_v32, %v4122_v12  ;;  %v4282_v59 = vrot.slane %v4266_v57, 5  ;;  %3963 = vrot.lane.b32.xlu1 %v10777_v13, %s7895_s18  ;;  %4085 = vrot.lane.b32.xlu0 %v10782_v36, %s7895_s18 }
 0x749   : > { %v4022_v0 = vadd.f32 %v3999_v20, %v3698_v18  ;;  %v4147_v17 = vadd.f32 %v4122_v12, %v3863_v8  ;;  %v4281_v25 = vrot.slane %v4265_v24, 5  ;;  %v4469_v40 = vmul.f32 %v14100_v58, %v10842_v29  ;;  %v14104_v24 = vld [vmem:[#allocation116_spill] sm:$0xff] }
 0x74a   : > { %v4070_v61 = vadd.f32 %v4062_v14, %v3766_v39  ;;  %v4345_v27 = vmul.f32 %v14101_v63, %v10832_v10  ;;  %v4566_v23 = vrot.slane %v4550_v53, 5  ;;  %v14102_v9 = vrot.slane %v10968_v15, 7  ;;  %v11145_v19 = vpop.permute.xlu1 %5013  ;;  %v11147_v48 = vpop.permute.xlu0 %5219  ;;  %v14103_v39 = vld [vmem:[#allocation122_spill] sm:$0xff] }
 0x74b   : > { %v4225_v43 = vadd.f32 %v4201_v3, %v3941_v31  ;;  %v4146_v18 = vadd.f32 %v4123_v38, %v3862_v6  ;;  %v4203_v12 = vsel %vm3572_vm1, %v4201_v3, %v4202_v16  ;;  %v4549_v58 = vmul.f32 %v10774_v62, %v10846_v7 }
 0x74c   : > { %v11143_v32 = vadd.f32 %v14102_v9, %v4145_v47  ;;  %v4307_v57 = vadd.f32 %v4282_v59, %v4023_v55  ;;  %v4834_v35 = vmul.f32 %v10882_v2, %v14103_v39  ;;  %v4833_v15 = vmul.f32 %v10998_v4, %v14103_v39  ;;  %4043 = vrot.lane.b32.xlu1 %v10785_v46, %s7895_s18  ;;  %v14106_v2 = vld [vmem:[#allocation123_spill] sm:$0xff]  ;;  %v14109_v9 = vld [vmem:[#allocation108_spill] sm:$0xff] }
 0x74d   : > { %4165 = vrot.lane.b32.xlu0 %v10788_v21, %s7895_s18  ;;  %v4305_v31 = vadd.f32 %v4281_v25, %v4021_v1  ;;  %v4485_v6 = vrot.slane %v4469_v40, 6  ;;  %v4470_v20 = vmul.f32 %v14104_v24, %v10842_v29  ;;  %v14105_v62 = vrot.slane %v10947_v44, 7  ;;  %v14114_v29 = vld [vmem:[#allocation126_spill] sm:$0xff] }
 0x74e   : > { %v4353_v47 = vadd.f32 %v4345_v27, %v4069_v34  ;;  %v4591_v14 = vadd.f32 %v4566_v23, %v4307_v57  ;;  %v5118_v53 = vmul.f32 %v10953_v42, %v14106_v2  ;;  %v5117_v4 = vmul.f32 %v11044_v50, %v14106_v2  ;;  %v11168_v8 = vpop.permute.xlu1 %5661  ;;  %v11170_v3 = vpop.permute.xlu0 %5299  ;;  %v14107_v34 = vld [vmem:[#allocation106_spill] sm:$0xff]  ;;  %v14108_v50 = vld [vmem:[#allocation107_spill] sm:$0xff] }
 0x74f   : > { %v4431_v55 = vadd.f32 %v14105_v62, %v4147_v17  ;;  %v4226_v1 = vadd.f32 %v4203_v12, %v3942_v11  ;;  %v4227_v38 = vadd.f32 %v4202_v16, %v11100_v41  ;;  %v4565_v40 = vrot.slane %v4549_v58, 5  ;;  %v14110_v16 = vld [vmem:[#allocation120_spill] sm:$0xff]  ;;  %v14111_v12 = vld [vmem:[#allocation117_spill] sm:$0xff]  ;;  %v14113_v57 = vld [vmem:[#allocation70_spill] sm:$0xff] }
 0x750   : > { %v11174_v63 = vadd.f32 %v11040_v5, %v4146_v18  ;;  %v4283_v44 = vsel %vm2900_vm13, %v4281_v25, %v4282_v59  ;;  %v4346_v17 = vmul.f32 %v14107_v34, %v10832_v10  ;;  %v4850_v42 = vrot.slane %v4834_v35, 5  ;;  %4087 = vrot.lane.b32.xlu1 %v14108_v50, %s7895_s18  ;;  %v14112_v58 = vld [vmem:[#allocation125_spill] sm:$0xff] }
 0x751   : > { %v4849_v27 = vrot.slane %v4833_v15, 5  ;;  %4245 = vrot.lane.b32.xlu0 %v14109_v9, %s7895_s18  ;;  %v11183_v11 = vadd.f32 %v4485_v6, %v4225_v43  ;;  %v4486_v41 = vrot.slane %v4470_v20, 6  ;;  %v4629_v5 = vmul.f32 %v14111_v12, %v14110_v16  ;;  %v14115_v43 = vld [vmem:[#allocation73_spill] sm:$0xff] }
 0x752   : > { %v4567_v18 = vsel %vm2900_vm13, %v4565_v40, %v4566_v23  ;;  %v4875_v59 = vadd.f32 %v4850_v42, %v4591_v14  ;;  %v5134_v25 = vrot.slane %v5118_v53, 5  ;;  %v4674_v35 = vmul.f32 %v14113_v57, %v14112_v58  ;;  %v5218_v24 = vpop.permute.xlu1 %5217  ;;  %v11190_v62 = vpop.permute.xlu0 %5947  ;;  %v14116_v53 = vld [vmem:[#allocation109_spill] sm:$0xff] }
 0x753   : > { %v5133_v15 = vrot.slane %v5117_v4, 5  ;;  %v4306_v34 = vadd.f32 %v4283_v44, %v4022_v0  ;;  %v4589_v2 = vadd.f32 %v4565_v40, %v4305_v31  ;;  %v4754_v39 = vmul.f32 %v14115_v43, %v14114_v29  ;;  %v14117_v4 = vld [vmem:[#allocation110_spill] sm:$0xff] }
 0x754   : > { %v4673_v20 = vmul.f32 %v11078_v45, %v14112_v58  ;;  %v11196_v12 = vadd.f32 %v4346_v17, %v4070_v61  ;;  %v4851_v23 = vsel %vm2900_vm13, %v4849_v27, %v4850_v42  ;;  %v4753_v14 = vmul.f32 %v11102_v60, %v14114_v29  ;;  %4167 = vrot.lane.b32.xlu1 %v14116_v53, %s7895_s18  ;;  %v14118_v42 = vld [vmem:[#allocation127_spill] sm:$0xff] }
 0x755   : > { %4325 = vrot.lane.b32.xlu0 %v14117_v4, %s7895_s18  ;;  %v4487_v0 = vsel %vm3572_vm1, %v4485_v6, %v4486_v41  ;;  %v11206_v31 = vadd.f32 %v4629_v5, %v4353_v47  ;;  %v4590_v40 = vadd.f32 %v4567_v18, %v4306_v34  ;;  %v4873_v44 = vadd.f32 %v4849_v27, %v4589_v2  ;;  %v14119_v47 = vld [vmem:[#allocation128_spill] sm:$0xff]  ;;  %v14120_v27 = vld [vmem:[#allocation138_spill] sm:$0xff] }
 0x756   : > { %v5159_v45 = vadd.f32 %v5134_v25, %v4875_v59  ;;  %v4690_v61 = vrot.slane %v4674_v35, 7  ;;  %v5135_v17 = vsel %vm2900_vm13, %v5133_v15, %v5134_v25  ;;  %v4958_v57 = vmul.f32 %v11080_v28, %v14118_v42  ;;  %v5298_v60 = vpop.permute.xlu1 %5297  ;;  %v11211_v43 = vpop.permute.xlu0 %5501  ;;  %v14121_v59 = vld [vmem:[#allocation121_spill] sm:$0xff] }
 0x757   : > { %v4874_v29 = vadd.f32 %v4851_v23, %v4590_v40  ;;  %v5157_v58 = vadd.f32 %v5133_v15, %v4873_v44  ;;  %v4770_v10 = vrot.slane %v4754_v39, 6  ;;  %v4689_v7 = vrot.slane %v4673_v20, 7  ;;  %v14123_v35 = vld [vmem:[#allocation129_spill] sm:$0xff] }
 0x758   : > { %v4511_v22 = vadd.f32 %v4486_v41, %v4227_v38  ;;  %v4769_v6 = vrot.slane %v4753_v14, 6  ;;  %v5038_v5 = vmul.f32 %v11104_v30, %v14119_v47  ;;  %v4957_v2 = vmul.f32 %v11128_v33, %v14118_v42  ;;  %4247 = vrot.lane.b32.xlu1 %v10813_v51, %s7895_s18  ;;  %v14124_v14 = vld [vmem:[#allocation124_spill] sm:$0xff] }
 0x759   : > { %4449 = vrot.lane.b32.xlu0 %v10743_v56, %s7899_s23  ;;  %v4510_v28 = vadd.f32 %v4487_v0, %v4226_v1  ;;  %v11223_v18 = vmul.f32 %v14120_v27, %v14110_v16  ;;  %v5158_v39 = vadd.f32 %v5135_v17, %v4874_v29  ;;  %v5037_v38 = vmul.f32 %v11145_v19, %v14119_v47  ;;  %v14126_v17 = vld [vmem:[#allocation130_spill] sm:$0xff] }
 0x75a   : > { %v4715_v41 = vadd.f32 %v4690_v61, %v4431_v55  ;;  %v4974_v30 = vrot.slane %v4958_v57, 7  ;;  %v14122_v25 = vrot.slane %v14121_v59, 5  ;;  %v5686_v15 = vmul.f32 %v11130_v52, %v14123_v35  ;;  %v5946_v34 = vpop.permute.xlu1 %5945  ;;  %v5582_v20 = vpop.permute.xlu0 %5581 }
 0x75b   : > { %v4795_v23 = vadd.f32 %v4770_v10, %v4511_v22  ;;  %v4691_v1 = vsel %vm3470_vm2, %v4689_v7, %v4690_v61  ;;  %v14125_v0 = vrot.slane %v14124_v14, 5  ;;  %v5685_v29 = vmul.f32 %v11168_v8, %v14123_v35  ;;  %v14129_v35 = vld [vmem:[#allocation132_spill] sm:$0xff] }
 0x75c   : > { %v5443_v33 = vadd.f32 %v14122_v25, %v5159_v45  ;;  %v4771_v19 = vsel %vm3572_vm1, %v4769_v6, %v4770_v10  ;;  %v5054_v55 = vrot.slane %v5038_v5, 6  ;;  %v4973_v44 = vrot.slane %v4957_v2, 7  ;;  %4327 = vrot.lane.b32.xlu1 %v10816_v54, %s7895_s18  ;;  %v14128_v2 = vld [vmem:[#allocation131_spill] sm:$0xff] }
 0x75d   : > { %v5441_v40 = vadd.f32 %v14125_v0, %v5157_v58  ;;  %v5242_v45 = vmul.f32 %v11147_v48, %v14126_v17  ;;  %4529 = vrot.lane.b32.xlu0 %v10763_v37, %s7899_s23  ;;  %v4713_v22 = vadd.f32 %v4689_v7, %v11143_v32  ;;  %v5053_v52 = vrot.slane %v5037_v38, 6  ;;  %v14127_v58 = vld [vmem:[#allocation140_spill] sm:$0xff] }
 0x75e   : > { %v5442_v61 = vadd.f32 %v14127_v58, %v5158_v39  ;;  %v5241_v8 = vmul.f32 %v5218_v24, %v14126_v17  ;;  %v4714_v10 = vadd.f32 %v4691_v1, %v11174_v63  ;;  %v4999_v57 = vadd.f32 %v4974_v30, %v4715_v41  ;;  %v5504_v27 = vpop.permute.xlu1 %5503  ;;  %v6230_v59 = vpop.permute.xlu0 %6229 }
 0x75f   : > { %v5702_v5 = vrot.slane %v5686_v15, 5  ;;  %v5322_v48 = vmul.f32 %v11170_v3, %v14128_v2  ;;  %v4793_v25 = vadd.f32 %v4769_v6, %v11183_v11  ;;  %v4794_v14 = vadd.f32 %v4771_v19, %v4510_v28  ;;  %v14130_v15 = vld [vmem:[#allocation134_spill] sm:$0xff] }
 0x760   : > { %v5701_v0 = vrot.slane %v5685_v29, 5  ;;  %v5969_v7 = vmul.f32 %v5946_v34, %v14129_v35  ;;  %v5079_v32 = vadd.f32 %v5054_v55, %v4795_v23  ;;  %v4975_v39 = vsel %vm3470_vm2, %v4973_v44, %v4974_v30  ;;  %4451 = vrot.lane.b32.xlu1 %v10777_v13, %s7899_s23  ;;  %v14131_v34 = vld [vmem:[#allocation139_spill] sm:$0xff] }
 0x761   : > { %v5258_v38 = vrot.slane %v5242_v45, 7  ;;  %v5970_v63 = vmul.f32 %v11190_v62, %v14129_v35  ;;  %4609 = vrot.lane.b32.xlu0 %v10782_v36, %s7899_s23  ;;  %v4997_v3 = vadd.f32 %v4973_v44, %v4713_v22  ;;  %v5055_v11 = vsel %vm3572_vm1, %v5053_v52, %v5054_v55 }
 0x762   : > { %v5257_v24 = vrot.slane %v5241_v8, 7  ;;  %v5321_v6 = vmul.f32 %v5298_v60, %v14128_v2  ;;  %v5727_v28 = vadd.f32 %v5702_v5, %v5443_v33  ;;  %v5338_v41 = vrot.slane %v5322_v48, 6  ;;  %v5584_v1 = vpop.permute.xlu1 %5583  ;;  %v11262_v62 = vpop.permute.xlu0 %5173 }
 0x763   : > { %v5526_v30 = vmul.f32 %v5504_v27, %v14130_v15  ;;  %v6253_v23 = vmul.f32 %v6230_v59, %v14131_v34  ;;  %v4998_v29 = vadd.f32 %v4975_v39, %v4714_v10  ;;  %v5077_v19 = vadd.f32 %v5053_v52, %v4793_v25  ;;  %v14132_v52 = vld [vmem:[#allocation135_spill] sm:$0xff] }
 0x764   : > { %v5703_v45 = vsel %vm2900_vm13, %v5701_v0, %v5702_v5  ;;  %v5985_v58 = vrot.slane %v5969_v7, 5  ;;  %v5078_v44 = vadd.f32 %v5055_v11, %v4794_v14  ;;  %v5283_v22 = vadd.f32 %v5258_v38, %v4999_v57  ;;  %4531 = vrot.lane.b32.xlu1 %v10785_v46, %s7899_s23 }
 0x765   : > { %v5986_v55 = vrot.slane %v5970_v63, 5  ;;  %v5525_v60 = vmul.f32 %v11211_v43, %v14130_v15  ;;  %4815 = vrot.lane.b32.xlu0 %v10816_v54, %s7899_s23  ;;  %v5725_v33 = vadd.f32 %v5701_v0, %v5441_v40  ;;  %v5259_v8 = vsel %vm3470_vm2, %v5257_v24, %v5258_v38 }
 0x766   : > { %v5337_v10 = vrot.slane %v5321_v6, 6  ;;  %v5605_v48 = vmul.f32 %v5582_v20, %v14132_v52  ;;  %v5726_v5 = vadd.f32 %v5703_v45, %v5442_v61  ;;  %v5363_v27 = vadd.f32 %v5338_v41, %v5079_v32  ;;  %v6232_v25 = vpop.permute.xlu1 %6231  ;;  %v5788_v14 = vpop.permute.xlu0 %5787 }
 0x767   : > { %v5542_v59 = vrot.slane %v5526_v30, 7  ;;  %v6269_v57 = vrot.slane %v6253_v23, 5  ;;  %v5281_v7 = vadd.f32 %v5257_v24, %v4997_v3  ;;  %v5987_v43 = vsel %vm2900_vm13, %v5985_v58, %v5986_v55  ;;  %v14133_v3 = vld [vmem:[#allocation94_spill] sm:$0xff] }
 0x768   : > { %v5606_v39 = vmul.f32 %v5584_v1, %v14132_v52  ;;  %v6254_v63 = vmul.f32 %v6232_v25, %v14131_v34  ;;  %v5282_v11 = vadd.f32 %v5259_v8, %v4998_v29  ;;  %v6011_v40 = vadd.f32 %v5986_v55, %v5727_v28  ;;  %4611 = vrot.lane.b32.xlu1 %v14108_v50, %s7899_s23 }
 0x769   : > { %v5541_v0 = vrot.slane %v5525_v60, 7  ;;  %v6009_v38 = vadd.f32 %v5985_v58, %v5725_v33  ;;  %5097 = vrot.lane.b32.xlu0 %v10782_v36, %s7894_s17  ;;  %v5339_v20 = vsel %vm3572_vm1, %v5337_v10, %v5338_v41  ;;  %v5621_v61 = vrot.slane %v5605_v48, 6 }
 0x76a   : > { %v6270_v32 = vrot.slane %v6254_v63, 5  ;;  %v5810_v24 = vmul.f32 %v5788_v14, %v14133_v3  ;;  %v5361_v6 = vadd.f32 %v5337_v10, %v5077_v19  ;;  %v6010_v30 = vadd.f32 %v5987_v43, %v5726_v5  ;;  %v5786_v28 = vpop.permute.xlu1 %5785  ;;  %v5458_v29 = vpop.permute.xlu0 %5457 }
 0x76b   : > { %v5543_v23 = vsel %vm3470_vm2, %v5541_v0, %v5542_v59  ;;  %v6293_v1 = vadd.f32 %v6269_v57, %v6009_v38  ;;  %v5622_v45 = vrot.slane %v5606_v39, 6  ;;  %v5809_v60 = vmul.f32 %v5786_v28, %v14133_v3 }
 0x76c   : > { %v6271_v58 = vsel %vm2900_vm13, %v6269_v57, %v6270_v32  ;;  %v11284_v55 = vadd.f32 %v6270_v32, %v6011_v40  ;;  %v5362_v33 = vadd.f32 %v5339_v20, %v5078_v44  ;;  %v5565_v41 = vadd.f32 %v5541_v0, %v5281_v7  ;;  %4813 = vrot.lane.b32.xlu1 %v14117_v4, %s7899_s23  ;;  %v14134_v40 = vld [vmem:[#allocation69_spill] sm:$0xff] }
 0x76d   : > { %v6294_v8 = vadd.f32 %v6271_v58, %v6010_v30  ;;  %4653 = vrot.lane.b32.xlu0 %v10788_v21, %s7899_s23  ;;  %v5645_v19 = vadd.f32 %v5621_v61, %v5361_v6  ;;  %v5826_v48 = vrot.slane %v5810_v24, 7  ;;  %v5825_v5 = vrot.slane %v5809_v60, 7  ;;  %v14135_v30 = vld [vmem:[#allocation137_spill] sm:$0xff] }
 0x76e   : > { %v6412_v10 = vrot.slane %v11284_v55, 1  ;;  %v5566_v25 = vadd.f32 %v5543_v23, %v5282_v11  ;;  %v5567_v57 = vadd.f32 %v5542_v59, %v5283_v22  ;;  %v6409_v14 = vrot.slane %v6293_v1, 1  ;;  %v6070_v39 = vpop.permute.xlu1 %6069  ;;  %v6072_v63 = vpop.permute.xlu0 %6071  ;;  %v14136_v1 = vld [vmem:[#allocation141_spill] sm:$0xff] }
 0x76f   : > { %v6410_v43 = vrot.slane %v6294_v8, 1  ;;  %v5623_v44 = vsel %vm3572_vm1, %v5621_v61, %v5622_v45  ;;  %v5827_v7 = vsel %vm3470_vm2, %v5825_v5, %v5826_v48  ;;  %v6093_v0 = vmul.f32 %v6070_v39, %v14134_v40  ;;  %v14137_v39 = vld [vmem:[#allocation48_spill] sm:$0xff] }
 0x770   : > { %v6094_v38 = vmul.f32 %v6072_v63, %v14134_v40  ;;  %v5647_v20 = vadd.f32 %v5622_v45, %v5363_v27  ;;  %5099 = vrot.lane.b32.xlu1 %v14108_v50, %s7894_s17  ;;  %v5851_v59 = vadd.f32 %v5826_v48, %v5567_v57  ;;  %v5849_v11 = vadd.f32 %v5825_v5, %v5565_v41 }
 0x771   : > { %v6413_v32 = vsel %vm3344_vm14, %v6410_v43, %v6412_v10  ;;  %4733 = vrot.lane.b32.xlu0 %v14109_v9, %s7899_s23  ;;  %v6411_v22 = vsel %vm3344_vm14, %v6409_v14, %v6410_v43  ;;  %v6109_v61 = vrot.slane %v6093_v0, 7  ;;  %v5646_v6 = vadd.f32 %v5623_v44, %v5362_v33  ;;  %v14140_v43 = vld [vmem:[#allocation136_spill] sm:$0xff] }
 0x772   : > { %v6110_v24 = vrot.slane %v6094_v38, 7  ;;  %v4921_v23 = vadd.f32 %v14135_v30, %v11206_v31  ;;  %v5197_v27 = vmul.f32 %v11262_v62, %v14136_v1  ;;  %v5850_v28 = vadd.f32 %v5827_v7, %v5566_v25  ;;  %v6150_v45 = vpop.permute.xlu1 %6149  ;;  %v6152_v58 = vpop.permute.xlu0 %6151  ;;  %v14138_v62 = vld [vmem:[#allocation133_spill] sm:$0xff]  ;;  %v14142_v7 = vld [vmem:[#allocation67_spill] sm:$0xff] }
 0x773   : > { %v6133_v55 = vadd.f32 %v6109_v61, %v5849_v11  ;;  %v6173_v14 = vmul.f32 %v6150_v45, %v14137_v39  ;;  %v4638_v41 = vadd.f32 %v11223_v18, %v11196_v12  ;;  %v6174_v33 = vmul.f32 %v6152_v58, %v14137_v39  ;;  %v14143_v30 = vld [vmem:[#allocation71_spill] sm:$0xff]  ;;  %v14144_v45 = vld [vmem:[#allocation53_spill] sm:$0xff] }
 0x774   : > { %v6111_v60 = vsel %vm3470_vm2, %v6109_v61, %v6110_v24  ;;  %v6135_v8 = vadd.f32 %v6110_v24, %v5851_v59  ;;  %4655 = vrot.lane.b32.xlu1 %v14116_v53, %s7899_s23  ;;  %v14139_v5 = vrot.slane %v14138_v62, 6  ;;  %v14141_v63 = vrot.slane %v14140_v43, 6 }
 0x775   : > { %v6134_v48 = vadd.f32 %v6111_v60, %v5850_v28  ;;  %4937 = vrot.lane.b32.xlu0 %v10743_v56, %s7894_s17  ;;  %v6361_v31 = vrot.slane %v6133_v55, 1  ;;  %v6189_v57 = vrot.slane %v6173_v14, 6  ;;  %v5481_v0 = vmul.f32 %v5458_v29, %v14142_v7  ;;  %v14146_v60 = vld [vmem:[#allocation68_spill] sm:$0xff] }
 0x776   : > { %v5929_v25 = vadd.f32 %v14139_v5, %v5645_v19  ;;  %v5931_v44 = vadd.f32 %v14141_v63, %v5647_v20  ;;  %v6364_v18 = vrot.slane %v6135_v8, 1  ;;  %v6190_v38 = vrot.slane %v6174_v33, 6  ;;  %v5176_v59 = vpop.permute.xlu1 %5175  ;;  %v5742_v11 = vpop.permute.xlu0 %5741  ;;  %v14145_v20 = vld [vmem:[#allocation87_spill] sm:$0xff] }
 0x777   : > { %v6362_v12 = vrot.slane %v6134_v48, 1  ;;  %v5205_v61 = vadd.f32 %v5197_v27, %v4921_v23  ;;  %v5930_v28 = vadd.f32 %v14143_v30, %v5646_v6  ;;  %v5765_v58 = vmul.f32 %v5742_v11, %v14144_v45 }
 0x778   : > { %v6213_v24 = vadd.f32 %v6189_v57, %v5929_v25  ;;  %v6191_v55 = vsel %vm3572_vm1, %v6189_v57, %v6190_v38  ;;  %v6215_v19 = vadd.f32 %v6190_v38, %v5931_v44  ;;  %4735 = vrot.lane.b32.xlu1 %v10813_v51, %s7899_s23  ;;  %v4914_v8 = vmul.f32 %v14146_v60, %v14145_v20 }
 0x779   : > { %5017 = vrot.lane.b32.xlu0 %v10763_v37, %s7894_s17  ;;  %v6363_v29 = vsel %vm3344_vm14, %v6361_v31, %v6362_v12  ;;  %v6214_v27 = vadd.f32 %v6191_v55, %v5930_v28  ;;  %v5489_v14 = vadd.f32 %v5481_v0, %v5205_v61  ;;  %v5198_v48 = vmul.f32 %v5176_v59, %v14136_v1 }
 0x77a   : > { %v6441_v23 = vadd.f32 %v6411_v22, %v6213_v24  ;;  %v6443_v6 = vadd.f32 %v6412_v10, %v6215_v19  ;;  %v6026_v33 = vpop.permute.xlu1 %6025  ;;  %v5460_v62 = vpop.permute.xlu0 %5459  ;;  %v6365_v5 = vsel %vm3344_vm14, %v6362_v12, %v6364_v18  ;;  %v4922_v44 = vadd.f32 %v4914_v8, %v4638_v41  ;;  %v7015_v10 = vld [vmem:[%s13579_s5 + $0x30] ss:$0 sm:$0xff] }
 0x77b   : > { %v6442_v57 = vadd.f32 %v6413_v32, %v6214_v27  ;;  %v6049_v43 = vmul.f32 %v6026_v33, %v11086_v26  ;;  %v5773_v31 = vadd.f32 %v5765_v58, %v5489_v14  ;;  %v5482_v0 = vmul.f32 %v5460_v62, %v14142_v7 }
 0x77c   : > { %v6465_v25 = vrot.slane %v6441_v23, 2  ;;  %v6468_v63 = vrot.slane %v6443_v6, 2  ;;  %4939 = vrot.lane.b32.xlu1 %v10777_v13, %s7894_s17  ;;  %v5206_v12 = vadd.f32 %v5198_v48, %v4922_v44 }
 0x77d   : > { %5667 = vrot.lane.b32.xlu0 %v14116_v53, %s7897_s16  ;;  %v6466_v22 = vrot.slane %v6442_v57, 2  ;;  %v6057_v32 = vadd.f32 %v6049_v43, %v5773_v31 }
 0x77e   : > { %v5744_v18 = vpop.permute.xlu1 %5743  ;;  %v6310_v38 = vpop.permute.xlu0 %6309  ;;  %v5490_v24 = vadd.f32 %v5482_v0, %v5206_v12 }
 0x77f   : > { %v5766_v41 = vmul.f32 %v5744_v18, %v14144_v45  ;;  %v6333_v59 = vmul.f32 %v7015_v10, %v6310_v38  ;;  %v6469_v11 = vsel %vm3409_vm15, %v6466_v22, %v6468_v63  ;;  %v6467_v61 = vsel %vm3409_vm15, %v6465_v25, %v6466_v22 }
 0x780   : > { %5019 = vrot.lane.b32.xlu1 %v10785_v46, %s7894_s17 }
 0x781   : > { %5221 = vrot.lane.b32.xlu0 %v14109_v9, %s7894_s17  ;;  %v6341_v30 = vadd.f32 %v6333_v59, %v6057_v32  ;;  %v5774_v55 = vadd.f32 %v5766_v41, %v5490_v24 }
 0x782   : > { %v6028_v28 = vpop.permute.xlu1 %6027  ;;  %v6312_v58 = vpop.permute.xlu0 %6311 }
 0x783   : > { %v6389_v19 = vadd.f32 %v6363_v29, %v6341_v30  ;;  %v6050_v60 = vmul.f32 %v6028_v28, %v11086_v26  ;;  %v6334_v23 = vmul.f32 %v7015_v10, %v6312_v58  ;;  %v14168_v28 = vld [vmem:[#allocation52_spill] sm:$0xff] }
 0x784   : > { %5665 = vrot.lane.b32.xlu1 %v10788_v21, %s7897_s16  ;;  %v3624_v52 = vrot.slane %v14168_v28, 4  ;;  %v3724_v47 = vrot.slane %v14168_v28, 5  ;;  %v3788_v16 = vrot.slane %v14168_v28, 6 }
 0x785   : > { %5301 = vrot.lane.b32.xlu0 %v14117_v4, %s7894_s17  ;;  %v6058_v8 = vadd.f32 %v6050_v60, %v5774_v55  ;;  %v11353_v27 = vadd.f32 %v6467_v61, %v6389_v19  ;;  %v14162_v61 = vld [vmem:[#allocation50_spill] sm:$0xff] }
 0x786   : > { %v11355_v14 = vpop.permute.xlu1 %5381  ;;  %v11357_v6 = vpop.permute.xlu0 %3264  ;;  %v14163_v24 = vrot.slane %v14162_v61, 5 }
 0x787   : > { %14147 = vst [vmem:[#allocation56_spill] sm:$0xff] %v11353_v27  ;;  %v6342_v48 = vadd.f32 %v6334_v23, %v6058_v8  ;;  %v3356_v8 = vrot.slane %v14168_v28, 1  ;;  %v14175_v27 = vld [vmem:[#allocation51_spill] sm:$0xff] }
 0x788   : > { %5223 = vrot.lane.b32.xlu1 %v10813_v51, %s7894_s17 }
 0x789   : > { %5951 = vrot.lane.b32.xlu0 %v10777_v13, %s7898_s22  ;;  %v6390_v29 = vadd.f32 %v6365_v5, %v6342_v48 }
 0x78a   : > { %v11363_v33 = vpop.permute.xlu1 %4893  ;;  %v11365_v62 = vpop.permute.xlu0 %3881 }
 0x78b   : > { %v11367_v25 = vadd.f32 %v6469_v11, %v6390_v29 }
 0x78c   : > { %5303 = vrot.lane.b32.xlu1 %v10816_v54, %s7894_s17 }
 0x78d   : > { %14148 = vst [vmem:[#allocation72_spill] sm:$0xff] %v11367_v25  ;;  %5507 = vrot.lane.b32.xlu0 %v10785_v46, %s7897_s16  ;;  %v14176_v25 = vrot.slane %v14175_v27, 5 }
 0x78e   : > { %v11373_v57 = vpop.permute.xlu1 %3266  ;;  %v11375_v43 = vpop.permute.xlu0 %4369 }
 0x78f   : > { %v11519_v26 = vsel %vm2900_vm13, %v14176_v25, 0.0  ;;  %v3523_v25 = vrot.slane %v14168_v28, 3 }
 0x790   : > { %5949 = vrot.lane.b32.xlu1 %v10743_v56, %s7898_s22  ;;  %v3358_v27 = vrot.slane %v11519_v26, 1  ;;  %v3423_v34 = vrot.slane %v11519_v26, 2 }
 0x791   : > { %5587 = vrot.lane.b32.xlu0 %v14108_v50, %s7897_s16 }
 0x792   : > { %v11381_v5 = vpop.permute.xlu1 %3883  ;;  %v11383_v63 = vpop.permute.xlu0 %5869  ;;  %v11545_v15 = vsel %vm3344_vm14, %v3356_v8, %v3358_v27  ;;  %v3525_v27 = vrot.slane %v11519_v26, 3 }
 0x794   : > { %5505 = vrot.lane.b32.xlu1 %v10763_v37, %s7897_s16 }
 0x795   : > { %6233 = vrot.lane.b32.xlu0 %v14109_v9, %s7898_s22 }
 0x796   : > { %v11389_v44 = vpop.permute.xlu1 %4371  ;;  %v11391_v31 = vpop.permute.xlu0 %5383 }
 0x798   : > { %5585 = vrot.lane.b32.xlu1 %v10782_v36, %s7897_s16 }
 0x799   : > { %5177 = vrot.lane.b32.xlu0 %v10788_v21, %s7894_s17 }
 0x79a   : > { %v11397_v10 = vpop.permute.xlu1 %5871  ;;  %v11399_v22 = vpop.permute.xlu0 %3369 }
 0x79b   : > { %14149 = vst [vmem:[#allocation74_spill] sm:$0xff] %v11399_v22 }
 0x79c   : > { %6235 = vrot.lane.b32.xlu1 %v10813_v51, %s7898_s22 }
 0x79d   : > { %5789 = vrot.lane.b32.xlu0 %v14117_v4, %s7897_s16 }
 0x79e   : > { %v11405_v0 = vpop.permute.xlu1 %4895  ;;  %v11407_v12 = vpop.permute.xlu0 %3434 }
 0x79f   : > { %14150 = vst [vmem:[#allocation76_spill] sm:$0xff] %v11405_v0 }
 0x7a0   : > { %5791 = vrot.lane.b32.xlu1 %v10816_v54, %s7897_s16 }
 0x7a1   : > { %5461 = vrot.lane.b32.xlu0 %v10743_v56, %s7897_s16 }
 0x7a2   : > { %v11413_v32 = vpop.permute.xlu1 %3371  ;;  %v11415_v18 = vpop.permute.xlu0 %3536 }
 0x7a3   : > { %14151 = vst [vmem:[#allocation77_spill] sm:$0xff] %v11413_v32 }
 0x7a4   : > { %6075 = vrot.lane.b32.xlu1 %v14108_v50, %s7898_s22 }
 0x7a5   : > { %6073 = vrot.lane.b32.xlu0 %v10782_v36, %s7898_s22 }
 0x7a6   : > { %v11421_v38 = vpop.permute.xlu1 %3436  ;;  %v11423_v41 = vpop.permute.xlu0 %3637 }
 0x7a7   : > { %14152 = vst [vmem:[#allocation58_spill] sm:$0xff] %v11423_v41 }
 0x7a8   : > { %6155 = vrot.lane.b32.xlu1 %v14116_v53, %s7898_s22 }
 0x7a9   : > { %6153 = vrot.lane.b32.xlu0 %v10788_v21, %s7898_s22 }
 0x7aa   : > { %v11429_v56 = vpop.permute.xlu1 %3538  ;;  %v11431_v59 = vpop.permute.xlu0 %3737 }
 0x7ab   : > { %14153 = vst [vmem:[#allocation101_spill] sm:$0xff] %v11431_v59 }
 0x7ac   : > { %5745 = vrot.lane.b32.xlu1 %v14109_v9, %s7897_s16 }
 0x7ad   : > { %5179 = vrot.lane.b32.xlu0 %v14116_v53, %s7894_s17 }
 0x7ae   : > { %v11437_v36 = vpop.permute.xlu1 %3639  ;;  %v11439_v50 = vpop.permute.xlu0 %3801 }
 0x7af   : > { %14154 = vst [vmem:[#allocation79_spill] sm:$0xff] %v11437_v36  ;;  %14155 = vst [vmem:[#allocation80_spill] sm:$0xff] %v11439_v50  ;;  %v14245_v36 = vld [vmem:[#allocation47_spill] sm:$0xff] }
 0x7b0   : > { %6029 = vrot.lane.b32.xlu1 %v10763_v37, %s7898_s22 }
 0x7b1   : > { %5463 = vrot.lane.b32.xlu0 %v10777_v13, %s7897_s16 }
 0x7b2   : > { %v11445_v21 = vpop.permute.xlu1 %3739  ;;  %v11447_v11 = vpop.permute.xlu0 %3961 }
 0x7b3   : > { %14156 = vst [vmem:[#allocation99_spill] sm:$0xff] %v11445_v21  ;;  %14157 = vst [vmem:[#allocation57_spill] sm:$0xff] %v11447_v11  ;;  %v14238_v21 = vld [vmem:[#allocation43_spill] sm:$0xff] }
 0x7b4   : > { %5747 = vrot.lane.b32.xlu1 %v10813_v51, %s7897_s16  ;;  %v11468_v51 = vsel %vm2900_vm13, 0.0, %v14163_v24  ;;  %v3421_v24 = vrot.slane %v14168_v28, 2 }
 0x7b5   : > { %6313 = vrot.lane.b32.xlu0 %v14117_v4, %s7898_s22  ;;  %v3355_v23 = vrot.slane %v11468_v51, 1  ;;  %v3420_v45 = vrot.slane %v11468_v51, 2  ;;  %v3522_v40 = vrot.slane %v11468_v51, 3  ;;  %v3623_v35 = vrot.slane %v11468_v51, 4 }
 0x7b6   : > { %v11453_v9 = vpop.permute.xlu1 %3803  ;;  %v11455_v53 = vpop.permute.xlu0 %4041  ;;  %v3723_v42 = vrot.slane %v11468_v51, 5 }
 0x7b7   : > { %14158 = vst [vmem:[#allocation84_spill] sm:$0xff] %v11453_v9  ;;  %14159 = vst [vmem:[#allocation75_spill] sm:$0xff] %v11455_v53  ;;  %v11513_v61 = vsel %vm3344_vm14, %v3355_v23, %v3356_v8  ;;  %v11531_v23 = vsel %vm3409_vm15, %v3420_v45, %v3421_v24  ;;  %v11548_v45 = vsel %vm3511_vm0, %v3522_v40, %v3523_v25 }
 0x7b8   : > { %6031 = vrot.lane.b32.xlu1 %v10785_v46, %s7898_s22  ;;  %v11562_v8 = vsel %vm3409_vm15, %v3421_v24, %v3423_v34  ;;  %v11565_v40 = vsel %vm1029_vm6, %v3623_v35, %v3624_v52  ;;  %v11579_v34 = vsel %vm3511_vm0, %v3523_v25, %v3525_v27  ;;  %v11582_v35 = vsel %vm2900_vm13, %v3723_v42, %v3724_v47 }
 0x7b9   : > { %6315 = vrot.lane.b32.xlu0 %v10816_v54, %s7898_s22  ;;  %14183 = vst [vmem:[#allocation121_spill] sm:$0xff] %v11562_v8  ;;  %v3626_v24 = vrot.slane %v11519_v26, 4  ;;  %v3726_v27 = vrot.slane %v11519_v26, 5 }
 0x7ba   : > { %v11461_v37 = vpop.permute.xlu1 %3963  ;;  %v11463_v13 = vpop.permute.xlu0 %4085 }
 0x7bb   : > { %14160 = vst [vmem:[#allocation78_spill] sm:$0xff] %v11461_v37  ;;  %14161 = vst [vmem:[#allocation83_spill] sm:$0xff] %v11463_v13  ;;  %v11596_v25 = vsel %vm1029_vm6, %v3624_v52, %v3626_v24  ;;  %v3790_v52 = vrot.slane %v11519_v26, 6 }
 0x7bc   : > { %5385 = vrot.lane.b32.xlu1 %v11468_v51, %s7897_s16 }
 0x7bd   : > { %3268 = vrot.lane.b32.xlu0 %v11468_v51, %s7896_s15 }
 0x7be   : > { %v11474_v4 = vpop.permute.xlu1 %4043 }
 0x7bf   : > { %14164 = vst [vmem:[#allocation92_spill] sm:$0xff] %v11474_v4  ;;  %v11476_v46 = vpop.permute.xlu0 %4165 }
 0x7c0   : > { %14165 = vst [vmem:[#allocation102_spill] sm:$0xff] %v11476_v46  ;;  %4897 = vrot.lane.b32.xlu1 %v11468_v51, %s7894_s17 }
 0x7c1   : > { %3885 = vrot.lane.b32.xlu0 %v11468_v51, %s7895_s18 }
 0x7c2   : > { %v11482_v54 = vpop.permute.xlu1 %4087 }
 0x7c3   : > { %14166 = vst [vmem:[#allocation85_spill] sm:$0xff] %v11482_v54  ;;  %v11484_v30 = vpop.permute.xlu0 %4245  ;;  %v14241_v54 = vld [vmem:[#allocation41_spill] sm:$0xff] }
 0x7c4   : > { %14167 = vst [vmem:[#allocation82_spill] sm:$0xff] %v11484_v30  ;;  %3270 = vrot.lane.b32.xlu1 %v14168_v28, %s7896_s15 }
 0x7c5   : > { %4373 = vrot.lane.b32.xlu0 %v11468_v51, %s7899_s23 }
 0x7c6   : > { %v11490_v58 = vpop.permute.xlu1 %4167 }
 0x7c7   : > { %14169 = vst [vmem:[#allocation103_spill] sm:$0xff] %v11490_v58  ;;  %v11492_v55 = vpop.permute.xlu0 %4325 }
 0x7c8   : > { %14170 = vst [vmem:[#allocation93_spill] sm:$0xff] %v11492_v55  ;;  %3887 = vrot.lane.b32.xlu1 %v14168_v28, %s7895_s18 }
 0x7c9   : > { %5873 = vrot.lane.b32.xlu0 %v11468_v51, %s7898_s22 }
 0x7ca   : > { %v11498_v19 = vpop.permute.xlu1 %4247 }
 0x7cb   : > { %14171 = vst [vmem:[#allocation116_spill] sm:$0xff] %v11498_v19  ;;  %v11500_v60 = vpop.permute.xlu0 %4449 }
 0x7cc   : > { %14172 = vst [vmem:[#allocation106_spill] sm:$0xff] %v11500_v60  ;;  %4375 = vrot.lane.b32.xlu1 %v14168_v28, %s7899_s23 }
 0x7cd   : > { %5387 = vrot.lane.b32.xlu0 %v14168_v28, %s7897_s16 }
 0x7ce   : > { %v11508_v48 = vpop.permute.xlu1 %4327 }
 0x7cf   : > { %14173 = vst [vmem:[#allocation107_spill] sm:$0xff] %v11508_v48  ;;  %v11510_v29 = vpop.permute.xlu0 %4529  ;;  %v3787_v48 = vrot.slane %v11468_v51, 6 }
 0x7d0   : > { %14174 = vst [vmem:[#allocation108_spill] sm:$0xff] %v11510_v29  ;;  %5875 = vrot.lane.b32.xlu1 %v14168_v28, %s7898_s22  ;;  %v14235_v29 = vld [vmem:[#allocation45_spill] sm:$0xff] }
 0x7d1   : > { %3373 = vrot.lane.b32.xlu0 %v11513_v61, %s7896_s15  ;;  %v11599_v42 = vsel %vm3572_vm1, %v3787_v48, %v3788_v16 }
 0x7d2   : > { %v11526_v7 = vpop.permute.xlu1 %4451 }
 0x7d3   : > { %14177 = vst [vmem:[#allocation117_spill] sm:$0xff] %v11526_v7  ;;  %v11528_v1 = vpop.permute.xlu0 %4609 }
 0x7d4   : > { %14178 = vst [vmem:[#allocation70_spill] sm:$0xff] %v11528_v1  ;;  %4899 = vrot.lane.b32.xlu1 %v14168_v28, %s7894_s17 }
 0x7d5   : > { %3438 = vrot.lane.b32.xlu0 %v11531_v23, %s7896_s15 }
 0x7d6   : > { %v11540_v3 = vpop.permute.xlu1 %4531 }
 0x7d7   : > { %14179 = vst [vmem:[#allocation73_spill] sm:$0xff] %v11540_v3  ;;  %v11542_v39 = vpop.permute.xlu0 %4815 }
 0x7d8   : > { %14180 = vst [vmem:[#allocation109_spill] sm:$0xff] %v11542_v39  ;;  %3375 = vrot.lane.b32.xlu1 %v11545_v15, %s7896_s15 }
 0x7d9   : > { %3540 = vrot.lane.b32.xlu0 %v11548_v45, %s7896_s15 }
 0x7da   : > { %v11557_v2 = vpop.permute.xlu1 %4611 }
 0x7db   : > { %14181 = vst [vmem:[#allocation110_spill] sm:$0xff] %v11557_v2  ;;  %v11559_v17 = vpop.permute.xlu0 %5097 }
 0x7dc   : > { %14182 = vst [vmem:[#allocation138_spill] sm:$0xff] %v11559_v17  ;;  %3440 = vrot.lane.b32.xlu1 %v11562_v8, %s7896_s15 }
 0x7dd   : > { %3641 = vrot.lane.b32.xlu0 %v11565_v40, %s7896_s15 }
 0x7de   : > { %v11574_v2 = vpop.permute.xlu1 %4813 }
 0x7df   : > { %14184 = vst [vmem:[#allocation124_spill] sm:$0xff] %v11574_v2  ;;  %v11576_v1 = vpop.permute.xlu0 %4653  ;;  %v14233_v2 = vld [vmem:[#allocation91_spill] sm:$0xff] }
 0x7e0   : > { %14185 = vst [vmem:[#allocation140_spill] sm:$0xff] %v11576_v1  ;;  %3542 = vrot.lane.b32.xlu1 %v11579_v34, %s7896_s15 }
 0x7e1   : > { %3741 = vrot.lane.b32.xlu0 %v11582_v35, %s7896_s15 }
 0x7e2   : > { %v11591_v17 = vpop.permute.xlu1 %5099 }
 0x7e3   : > { %14186 = vst [vmem:[#allocation137_spill] sm:$0xff] %v11591_v17  ;;  %v11593_v1 = vpop.permute.xlu0 %4733  ;;  %v11623_v17 = vsel %vm3572_vm1, %v3788_v16, %v3790_v52 }
 0x7e4   : > { %14187 = vst [vmem:[#allocation133_spill] sm:$0xff] %v11593_v1  ;;  %3643 = vrot.lane.b32.xlu1 %v11596_v25, %s7896_s15  ;;  %v11611_v1 = vsel %vm2900_vm13, %v3724_v47, %v3726_v27 }
 0x7e5   : > { %3805 = vrot.lane.b32.xlu0 %v11599_v42, %s7896_s15 }
 0x7e6   : > { %v11606_v7 = vpop.permute.xlu1 %4655 }
 0x7e7   : > { %14188 = vst [vmem:[#allocation136_spill] sm:$0xff] %v11606_v7  ;;  %v11608_v39 = vpop.permute.xlu0 %4937  ;;  %v14232_v7 = vld [vmem:[#allocation42_spill] sm:$0xff] }
 0x7e8   : > { %14189 = vst [vmem:[#allocation71_spill] sm:$0xff] %v11608_v39  ;;  %3743 = vrot.lane.b32.xlu1 %v11611_v1, %s7896_s15  ;;  %v14231_v39 = vld [vmem:[#allocation46_spill] sm:$0xff]  ;;  %v3117_v53 = vmul.f32 %v14232_v7, %v14233_v2  ;;  %v3120_v22 = vmul.f32 %v14232_v7, %v11519_v26 }
 0x7e9   : > { %3965 = vrot.lane.b32.xlu0 %v11513_v61, %s7895_s18 }
 0x7ea   : > { %v11618_v48 = vpop.permute.xlu1 %4735  ;;  %v3144_v32 = vrot.slane %v3117_v53, 4 }
 0x7eb   : > { %14190 = vst [vmem:[#allocation68_spill] sm:$0xff] %v11618_v48  ;;  %v11620_v24 = vpop.permute.xlu0 %5017 }
 0x7ec   : > { %14191 = vst [vmem:[#allocation50_spill] sm:$0xff] %v11620_v24  ;;  %3807 = vrot.lane.b32.xlu1 %v11623_v17, %s7896_s15 }
 0x7ed   : > { %4045 = vrot.lane.b32.xlu0 %v11531_v23, %s7895_s18 }
 0x7ee   : > { %v11629_v47 = vpop.permute.xlu1 %4939 }
 0x7ef   : > { %14192 = vst [vmem:[#allocation52_spill] sm:$0xff] %v11629_v47  ;;  %v11631_v27 = vpop.permute.xlu0 %5667 }
 0x7f0   : > { %14193 = vst [vmem:[#allocation51_spill] sm:$0xff] %v11631_v27  ;;  %3967 = vrot.lane.b32.xlu1 %v11545_v15, %s7895_s18 }
 0x7f1   : > { %4089 = vrot.lane.b32.xlu0 %v11548_v45, %s7895_s18 }
 0x7f2   : > { %v11637_v24 = vpop.permute.xlu1 %5019 }
 0x7f3   : > { %14194 = vst [vmem:[#allocation142_spill] sm:$0xff] %v11637_v24  ;;  %v11639_v16 = vpop.permute.xlu0 %5221 }
 0x7f4   : > { %14195 = vst [vmem:[#allocation143_spill] sm:$0xff] %v11639_v16  ;;  %4047 = vrot.lane.b32.xlu1 %v11562_v8, %s7895_s18 }
 0x7f5   : > { %4169 = vrot.lane.b32.xlu0 %v11565_v40, %s7895_s18 }
 0x7f6   : > { %v11645_v52 = vpop.permute.xlu1 %5665 }
 0x7f7   : > { %14196 = vst [vmem:[#allocation144_spill] sm:$0xff] %v11645_v52  ;;  %v11647_v47 = vpop.permute.xlu0 %5301 }
 0x7f8   : > { %14197 = vst [vmem:[#allocation145_spill] sm:$0xff] %v11647_v47  ;;  %4091 = vrot.lane.b32.xlu1 %v11579_v34, %s7895_s18 }
 0x7f9   : > { %4249 = vrot.lane.b32.xlu0 %v11582_v35, %s7895_s18 }
 0x7fa   : > { %v11653_v27 = vpop.permute.xlu1 %5223 }
 0x7fb   : > { %14198 = vst [vmem:[#allocation146_spill] sm:$0xff] %v11653_v27  ;;  %v11655_v24 = vpop.permute.xlu0 %5951 }
 0x7fc   : > { %14199 = vst [vmem:[#allocation147_spill] sm:$0xff] %v11655_v24  ;;  %4171 = vrot.lane.b32.xlu1 %v11596_v25, %s7895_s18 }
 0x7fd   : > { %4329 = vrot.lane.b32.xlu0 %v11599_v42, %s7895_s18 }
 0x7fe   : > { %v11661_v16 = vpop.permute.xlu1 %5303 }
 0x7ff   : > { %14200 = vst [vmem:[#allocation148_spill] sm:$0xff] %v11661_v16  ;;  %v11663_v52 = vpop.permute.xlu0 %5507 }
 0x800   : > { %14201 = vst [vmem:[#allocation149_spill] sm:$0xff] %v11663_v52  ;;  %4251 = vrot.lane.b32.xlu1 %v11611_v1, %s7895_s18 }
 0x801   : > { %4453 = vrot.lane.b32.xlu0 %v11513_v61, %s7899_s23 }
 0x802   : > { %v11669_v47 = vpop.permute.xlu1 %5949 }
 0x803   : > { %14202 = vst [vmem:[#allocation150_spill] sm:$0xff] %v11669_v47  ;;  %v11671_v27 = vpop.permute.xlu0 %5587 }
 0x804   : > { %14203 = vst [vmem:[#allocation151_spill] sm:$0xff] %v11671_v27  ;;  %4331 = vrot.lane.b32.xlu1 %v11623_v17, %s7895_s18 }
 0x805   : > { %4533 = vrot.lane.b32.xlu0 %v11531_v23, %s7899_s23 }
 0x806   : > { %v11677_v24 = vpop.permute.xlu1 %5505 }
 0x807   : > { %14204 = vst [vmem:[#allocation152_spill] sm:$0xff] %v11677_v24  ;;  %v11679_v16 = vpop.permute.xlu0 %6233 }
 0x808   : > { %14205 = vst [vmem:[#allocation153_spill] sm:$0xff] %v11679_v16  ;;  %4455 = vrot.lane.b32.xlu1 %v11545_v15, %s7899_s23 }
 0x809   : > { %4613 = vrot.lane.b32.xlu0 %v11548_v45, %s7899_s23 }
 0x80a   : > { %v11685_v52 = vpop.permute.xlu1 %5585 }
 0x80b   : > { %14206 = vst [vmem:[#allocation154_spill] sm:$0xff] %v11685_v52  ;;  %v11687_v47 = vpop.permute.xlu0 %5177 }
 0x80c   : > { %14207 = vst [vmem:[#allocation155_spill] sm:$0xff] %v11687_v47  ;;  %4535 = vrot.lane.b32.xlu1 %v11562_v8, %s7899_s23 }
 0x80d   : > { %4819 = vrot.lane.b32.xlu0 %v11623_v17, %s7899_s23 }
 0x80e   : > { %v11693_v27 = vpop.permute.xlu1 %6235 }
 0x80f   : > { %14208 = vst [vmem:[#allocation156_spill] sm:$0xff] %v11693_v27  ;;  %v11695_v24 = vpop.permute.xlu0 %5789 }
 0x810   : > { %14209 = vst [vmem:[#allocation157_spill] sm:$0xff] %v11695_v24  ;;  %4615 = vrot.lane.b32.xlu1 %v11579_v34, %s7899_s23 }
 0x811   : > { %5101 = vrot.lane.b32.xlu0 %v11548_v45, %s7894_s17 }
 0x812   : > { %v11701_v16 = vpop.permute.xlu1 %5791 }
 0x813   : > { %14210 = vst [vmem:[#allocation158_spill] sm:$0xff] %v11701_v16  ;;  %v11703_v52 = vpop.permute.xlu0 %5461 }
 0x814   : > { %14211 = vst [vmem:[#allocation159_spill] sm:$0xff] %v11703_v52  ;;  %4817 = vrot.lane.b32.xlu1 %v11599_v42, %s7899_s23 }
 0x815   : > { %4657 = vrot.lane.b32.xlu0 %v11565_v40, %s7899_s23 }
 0x816   : > { %v11709_v47 = vpop.permute.xlu1 %6075 }
 0x817   : > { %14212 = vst [vmem:[#allocation160_spill] sm:$0xff] %v11709_v47  ;;  %v11711_v27 = vpop.permute.xlu0 %6073 }
 0x818   : > { %14213 = vst [vmem:[#allocation161_spill] sm:$0xff] %v11711_v27  ;;  %5103 = vrot.lane.b32.xlu1 %v11579_v34, %s7894_s17 }
 0x819   : > { %4737 = vrot.lane.b32.xlu0 %v11582_v35, %s7899_s23 }
 0x81a   : > { %v11717_v24 = vpop.permute.xlu1 %6155 }
 0x81b   : > { %14214 = vst [vmem:[#allocation162_spill] sm:$0xff] %v11717_v24  ;;  %v11719_v16 = vpop.permute.xlu0 %6153 }
 0x81c   : > { %14215 = vst [vmem:[#allocation163_spill] sm:$0xff] %v11719_v16  ;;  %4659 = vrot.lane.b32.xlu1 %v11596_v25, %s7899_s23 }
 0x81d   : > { %4941 = vrot.lane.b32.xlu0 %v11513_v61, %s7894_s17 }
 0x81e   : > { %v11725_v52 = vpop.permute.xlu1 %5745 }
 0x81f   : > { %14216 = vst [vmem:[#allocation164_spill] sm:$0xff] %v11725_v52  ;;  %v11727_v47 = vpop.permute.xlu0 %5179 }
 0x820   : > { %14217 = vst [vmem:[#allocation165_spill] sm:$0xff] %v11727_v47  ;;  %4739 = vrot.lane.b32.xlu1 %v11611_v1, %s7899_s23 }
 0x821   : > { %5021 = vrot.lane.b32.xlu0 %v11531_v23, %s7894_s17 }
 0x822   : > { %v11733_v27 = vpop.permute.xlu1 %6029 }
 0x823   : > { %14218 = vst [vmem:[#allocation166_spill] sm:$0xff] %v11733_v27  ;;  %v11735_v24 = vpop.permute.xlu0 %5463 }
 0x824   : > { %14219 = vst [vmem:[#allocation167_spill] sm:$0xff] %v11735_v24  ;;  %4943 = vrot.lane.b32.xlu1 %v11545_v15, %s7894_s17 }
 0x825   : > { %5669 = vrot.lane.b32.xlu0 %v11565_v40, %s7897_s16 }
 0x826   : > { %v11741_v16 = vpop.permute.xlu1 %5747 }
 0x827   : > { %14220 = vst [vmem:[#allocation168_spill] sm:$0xff] %v11741_v16  ;;  %v11743_v52 = vpop.permute.xlu0 %6313 }
 0x828   : > { %14221 = vst [vmem:[#allocation169_spill] sm:$0xff] %v11743_v52  ;;  %5023 = vrot.lane.b32.xlu1 %v11562_v8, %s7894_s17 }
 0x829   : > { %5227 = vrot.lane.b32.xlu0 %v11611_v1, %s7894_s17 }
 0x82a   : > { %v11749_v47 = vpop.permute.xlu1 %6031 }
 0x82b   : > { %14222 = vst [vmem:[#allocation170_spill] sm:$0xff] %v11749_v47  ;;  %v11751_v27 = vpop.permute.xlu0 %6315 }
 0x82c   : > { %14223 = vst [vmem:[#allocation171_spill] sm:$0xff] %v11751_v27  ;;  %5671 = vrot.lane.b32.xlu1 %v11596_v25, %s7897_s16 }
 0x82d   : > { %5307 = vrot.lane.b32.xlu0 %v11623_v17, %s7894_s17 }
 0x82e   : > { %v11757_v24 = vpop.permute.xlu1 %5385 }
 0x82f   : > { %14224 = vst [vmem:[#allocation172_spill] sm:$0xff] %v11757_v24  ;;  %v11759_v16 = vpop.permute.xlu0 %3268 }
 0x830   : > { %14225 = vst [vmem:[#allocation173_spill] sm:$0xff] %v11759_v16  ;;  %5225 = vrot.lane.b32.xlu1 %v11582_v35, %s7894_s17  ;;  %v14230_v16 = vld [vmem:[#allocation49_spill] sm:$0xff] }
 0x831   : > { %5955 = vrot.lane.b32.xlu0 %v11545_v15, %s7898_s22  ;;  %v3052_v48 = vmul.f32 %v14231_v39, %v14230_v16  ;;  %v3116_v60 = vmul.f32 %v14232_v7, %v14230_v16  ;;  %v3188_v55 = vmul.f32 %v14235_v29, %v14230_v16  ;;  %v2947_v0 = vmul.f32 %v14241_v54, %v14230_v16 }
 0x832   : > { %v11765_v52 = vpop.permute.xlu1 %4897 }
 0x833   : > { %14226 = vst [vmem:[#allocation174_spill] sm:$0xff] %v11765_v52  ;;  %v11767_v47 = vpop.permute.xlu0 %3885  ;;  %v3053_v52 = vmul.f32 %v14231_v39, %v14233_v2  ;;  %v3078_v19 = vrot.slane %v3052_v48, 4  ;;  %v3142_v58 = vrot.slane %v3116_v60, 4  ;;  %v11811_v60 = vmul.f32 %v14238_v21, %v14230_v16 }
 0x834   : > { %14227 = vst [vmem:[#allocation175_spill] sm:$0xff] %v11767_v47  ;;  %5305 = vrot.lane.b32.xlu1 %v11599_v42, %s7894_s17  ;;  %v14234_v47 = vld [vmem:[#allocation81_spill] sm:$0xff]  ;;  %v3214_v11 = vrot.slane %v3188_v55, 4 }
 0x835   : > { %5511 = vrot.lane.b32.xlu0 %v11562_v8, %s7897_s16  ;;  %v3080_v30 = vrot.slane %v3053_v52, 4  ;;  %v3187_v46 = vmul.f32 %v14235_v29, %v14234_v47  ;;  %14239 = vst [vmem:[#allocation42_spill] sm:$0xff] %v11811_v60  ;;  %v3189_v52 = vmul.f32 %v14235_v29, %v14233_v2  ;;  %v2946_v13 = vmul.f32 %v14241_v54, %v14234_v47 }
 0x836   : > { %v11775_v24 = vpop.permute.xlu1 %3270  ;;  %v2995_v60 = vmul.f32 %v14245_v36, %v14234_v47  ;;  %v3056_v8 = vmul.f32 %v14231_v39, %v11519_v26 }
 0x837   : > { %v11773_v27 = vpop.permute.xlu0 %4373  ;;  %14229 = vst [vmem:[#allocation177_spill] sm:$0xff] %v11775_v24  ;;  %v3115_v24 = vmul.f32 %v14232_v7, %v14234_v47  ;;  %v3213_v55 = vrot.slane %v3187_v46, 4 }
 0x838   : > { %14228 = vst [vmem:[#allocation176_spill] sm:$0xff] %v11773_v27  ;;  %5953 = vrot.lane.b32.xlu1 %v11513_v61, %s7898_s22  ;;  %v3051_v27 = vmul.f32 %v14231_v39, %v14234_v47 }
 0x839   : > { %5591 = vrot.lane.b32.xlu0 %v11579_v34, %s7897_s16  ;;  %v3141_v37 = vrot.slane %v3115_v24, 4  ;;  %v3081_v24 = vsel %vm1029_vm6, %v3078_v19, %v3080_v30  ;;  %v3215_v53 = vsel %vm1029_vm6, %v3213_v55, %v3214_v11  ;;  %v3145_v55 = vsel %vm1029_vm6, %v3142_v58, %v3144_v32 }
 0x83a   : > { %v11795_v4 = vpop.permute.xlu1 %3887  ;;  %v3077_v48 = vrot.slane %v3051_v27, 4  ;;  %v14244_v27 = vld [vmem:[#allocation44_spill] sm:$0xff] }
 0x83b   : > { %v11793_v3 = vpop.permute.xlu0 %5873  ;;  %14237 = vst [vmem:[#allocation46_spill] sm:$0xff] %v11795_v4  ;;  %v11817_v4 = vmul.f32 %v14238_v21, %v14233_v2  ;;  %v2967_v49 = vmul.f32 %v14244_v27, %v14234_v47  ;;  %v3143_v41 = vsel %vm1029_vm6, %v3141_v37, %v3142_v58  ;;  %v3055_v37 = vmul.f32 %v14231_v39, %v14168_v28 }
 0x83c   : > { %14236 = vst [vmem:[#allocation49_spill] sm:$0xff] %v11793_v3  ;;  %5509 = vrot.lane.b32.xlu1 %v11531_v23, %s7897_s16  ;;  %v11807_v3 = vmul.f32 %v14238_v21, %v14234_v47  ;;  %v3079_v50 = vsel %vm1029_vm6, %v3077_v48, %v3078_v19  ;;  %v2968_v48 = vmul.f32 %v14244_v27, %v14230_v16 }
 0x83d   : > { %6237 = vrot.lane.b32.xlu0 %v11582_v35, %s7898_s22  ;;  %14240 = vst [vmem:[#allocation91_spill] sm:$0xff] %v11817_v4  ;;  %v11844_v47 = vadd.f32 %v3079_v50, %v2946_v13  ;;  %v3119_v19 = vmul.f32 %v14232_v7, %v14168_v28  ;;  %v11855_v4 = vadd.f32 %v3143_v41, %v2967_v49  ;;  %v3083_v58 = vrot.slane %v3055_v37, 4 }
 0x83e   : > { %v11823_v59 = vpop.permute.xlu1 %4375  ;;  %v2996_v50 = vmul.f32 %v14245_v36, %v14230_v16  ;;  %v3054_v13 = vmul.f32 %v14231_v39, %v11468_v51  ;;  %v3118_v49 = vmul.f32 %v14232_v7, %v11468_v51  ;;  %v11872_v41 = vadd.f32 %v3215_v53, %v2995_v60 }
 0x83f   : > { %v11821_v9 = vpop.permute.xlu0 %5387  ;;  %14243 = vst [vmem:[#allocation45_spill] sm:$0xff] %v11823_v59  ;;  %v2969_v59 = vmul.f32 %v14244_v27, %v14233_v2  ;;  %14246 = vst [vmem:[#allocation41_spill] sm:$0xff] %v11844_v47  ;;  %v2997_v16 = vmul.f32 %v14245_v36, %v14233_v2  ;;  %v3190_v47 = vmul.f32 %v14235_v29, %v11468_v51 }
 0x840   : > { %14242 = vst [vmem:[#allocation81_spill] sm:$0xff] %v11821_v9  ;;  %5589 = vrot.lane.b32.xlu1 %v11548_v45, %s7897_s16  ;;  %v3216_v9 = vrot.slane %v3189_v52, 4  ;;  %14249 = vst [vmem:[#allocation178_spill] sm:$0xff] %v11855_v4  ;;  %v11857_v52 = vadd.f32 %v3081_v24, %v2947_v0  ;;  %v3191_v0 = vmul.f32 %v14235_v29, %v14168_v28  ;;  %v3085_v4 = vrot.slane %v3056_v8, 4 }
 0x841   : > { %5181 = vrot.lane.b32.xlu0 %v11565_v40, %s7894_s17  ;;  %v11885_v60 = vadd.f32 %v3145_v55, %v2968_v48  ;;  %v11887_v53 = vadd.f32 %v3144_v32, %v2969_v59  ;;  %v3192_v7 = vmul.f32 %v14235_v29, %v11519_v26  ;;  %v11901_v32 = vmul.f32 %v14238_v21, %v11468_v51 }
 0x842   : > { %v11847_v46 = vpop.permute.xlu1 %5875  ;;  %14250 = vst [vmem:[#allocation179_spill] sm:$0xff] %v11857_v52  ;;  %v3217_v24 = vsel %vm1029_vm6, %v3214_v11, %v3216_v9  ;;  %v3147_v52 = vrot.slane %v3119_v19, 4  ;;  %v11889_v2 = vadd.f32 %v3216_v9, %v2997_v16  ;;  %v3082_v11 = vrot.slane %v3054_v13, 4  ;;  %v14257_v16 = vld [vmem:[#allocation55_spill] sm:$0xff] }
 0x843   : > { %14247 = vst [vmem:[#allocation44_spill] sm:$0xff] %v11847_v46  ;;  %v11849_v30 = vpop.permute.xlu0 %3373  ;;  %v11891_v37 = vadd.f32 %v3217_v24, %v2996_v50  ;;  %v3219_v8 = vrot.slane %v3191_v0, 4  ;;  %14253 = vst [vmem:[#allocation182_spill] sm:$0xff] %v11901_v32  ;;  %v11905_v59 = vmul.f32 %v14238_v21, %v11519_v26  ;;  %v2948_v9 = vmul.f32 %v14241_v54, %v11468_v51 }
 0x844   : > { %14248 = vst [vmem:[#allocation47_spill] sm:$0xff] %v11849_v30  ;;  %6239 = vrot.lane.b32.xlu1 %v11611_v1, %s7898_s22  ;;  %v3084_v48 = vsel %vm1029_vm6, %v3082_v11, %v3083_v58  ;;  %v3086_v50 = vsel %vm1029_vm6, %v3083_v58, %v3085_v4  ;;  %v3218_v29 = vrot.slane %v3190_v47, 4  ;;  %v3149_v55 = vrot.slane %v3120_v22, 4 }
 0x845   : > { %5793 = vrot.lane.b32.xlu0 %v11599_v42, %s7897_s16  ;;  %14254 = vst [vmem:[#allocation183_spill] sm:$0xff] %v11905_v59  ;;  %v2949_v0 = vmul.f32 %v14241_v54, %v14168_v28  ;;  %v3361_v24 = vrot.slane %v14257_v16, 1  ;;  %v14258_v59 = vld [vmem:[#allocation59_spill] sm:$0xff]  ;;  %v2998_v4 = vmul.f32 %v14245_v36, %v11468_v51  ;;  %v3221_v22 = vrot.slane %v3192_v7, 4 }
 0x846   : > { %v11877_v30 = vpop.permute.xlu1 %4899  ;;  %v3363_v11 = vrot.slane %v14258_v59, 1  ;;  %v3220_v47 = vsel %vm1029_vm6, %v3218_v29, %v3219_v8  ;;  %v11933_v58 = vadd.f32 %v3084_v48, %v2948_v9  ;;  %v2999_v7 = vmul.f32 %v14245_v36, %v14168_v28 }
 0x847   : > { %14251 = vst [vmem:[#allocation180_spill] sm:$0xff] %v11877_v30  ;;  %v11879_v46 = vpop.permute.xlu0 %3438  ;;  %v3146_v30 = vrot.slane %v3118_v49, 4  ;;  %v2970_v49 = vmul.f32 %v14244_v27, %v11468_v51  ;;  %v2971_v51 = vmul.f32 %v14244_v27, %v14168_v28  ;;  %v11952_v9 = vadd.f32 %v3220_v47, %v2998_v4 }
 0x848   : > { %14252 = vst [vmem:[#allocation181_spill] sm:$0xff] %v11879_v46  ;;  %5795 = vrot.lane.b32.xlu1 %v11623_v17, %s7897_s16  ;;  %14260 = vst [vmem:[#allocation186_spill] sm:$0xff] %v11933_v58  ;;  %v11955_v48 = vsel %vm3344_vm14, %v3361_v24, %v3363_v11  ;;  %v3528_v11 = vrot.slane %v14257_v16, 3  ;;  %v3631_v47 = vrot.slane %v14258_v59, 4 }
 0x849   : > { %5465 = vrot.lane.b32.xlu0 %v11513_v61, %s7897_s16  ;;  %v3148_v19 = vsel %vm1029_vm6, %v3146_v30, %v3147_v52  ;;  %v11924_v30 = vmul.f32 %v14238_v21, %v14168_v28  ;;  %14265 = vst [vmem:[#allocation191_spill] sm:$0xff] %v11952_v9  ;;  %v14268_v28 = vld [vmem:[#allocation60_spill] sm:$0xff] }
 0x84a   : > { %v11911_v61 = vpop.permute.xlu1 %3375 }
 0x84b   : > { %14255 = vst [vmem:[#allocation184_spill] sm:$0xff] %v11911_v61  ;;  %v11914_v13 = vpop.permute.xlu0 %3540  ;;  %14259 = vst [vmem:[#allocation55_spill] sm:$0xff] %v11924_v30  ;;  %v11935_v61 = vadd.f32 %v3148_v19, %v2970_v49  ;;  %v2972_v30 = vmul.f32 %v14244_v27, %v11519_v26  ;;  %v3426_v19 = vrot.slane %v14257_v16, 2 }
 0x84c   : > { %14256 = vst [vmem:[#allocation185_spill] sm:$0xff] %v11914_v13  ;;  %6079 = vrot.lane.b32.xlu1 %v11579_v34, %s7898_s22  ;;  %v11937_v13 = vadd.f32 %v3086_v50, %v2949_v0  ;;  %v3150_v34 = vsel %vm1029_vm6, %v3147_v52, %v3149_v55  ;;  %v3428_v50 = vrot.slane %v14258_v59, 2  ;;  %v3360_v52 = vrot.slane %v14268_v28, 1 }
 0x84d   : > { %6077 = vrot.lane.b32.xlu0 %v11548_v45, %s7898_s22  ;;  %14261 = vst [vmem:[#allocation187_spill] sm:$0xff] %v11935_v61  ;;  %v3000_v45 = vmul.f32 %v14245_v36, %v11519_v26  ;;  %v11959_v27 = vadd.f32 %v3149_v55, %v2972_v30  ;;  %v3222_v36 = vsel %vm1029_vm6, %v3219_v8, %v3221_v22  ;;  %v3425_v0 = vrot.slane %v14268_v28, 2  ;;  %v14288_v61 = vld [vmem:[#allocation89_spill] sm:$0xff] }
 0x84e   : > { %14262 = vst [vmem:[#allocation188_spill] sm:$0xff] %v11937_v13  ;;  %v11941_v46 = vpop.permute.xlu1 %3440  ;;  %v11969_v49 = vadd.f32 %v3150_v34, %v2971_v51  ;;  %v3530_v55 = vrot.slane %v14258_v59, 3  ;;  %v3729_v8 = vrot.slane %v14257_v16, 5  ;;  %v11982_v51 = vadd.f32 %v3222_v36, %v2999_v7 }
 0x84f   : > { %14263 = vst [vmem:[#allocation189_spill] sm:$0xff] %v11941_v46  ;;  %v11946_v29 = vpop.permute.xlu0 %3641  ;;  %14266 = vst [vmem:[#allocation192_spill] sm:$0xff] %v11959_v27  ;;  %v11965_v26 = vadd.f32 %v3221_v22, %v3000_v45  ;;  %v3731_v22 = vrot.slane %v14258_v59, 5  ;;  %v11985_v34 = vsel %vm3344_vm14, %v3360_v52, %v3361_v24  ;;  %v11988_v45 = vsel %vm3409_vm15, %v3426_v19, %v3428_v50  ;;  %v14273_v52 = vld [vmem:[#allocation40_spill] sm:$0xff]  ;;  %v14296_v46 = vld [vmem:[#allocation74_spill] sm:$0xff] }
 0x850   : > { %14264 = vst [vmem:[#allocation190_spill] sm:$0xff] %v11946_v29  ;;  %6159 = vrot.lane.b32.xlu1 %v11596_v25, %s7898_s22  ;;  %14269 = vst [vmem:[#allocation60_spill] sm:$0xff] %v11969_v49  ;;  %v3527_v49 = vrot.slane %v14268_v28, 3  ;;  %v11996_v27 = vsel %vm3409_vm15, %v3425_v0, %v3426_v19  ;;  %v3628_v7 = vrot.slane %v14268_v28, 4  ;;  %v3793_v36 = vrot.slane %v14257_v16, 6  ;;  %v14299_v29 = vld [vmem:[#allocation77_spill] sm:$0xff] }
 0x851   : > { %6157 = vrot.lane.b32.xlu0 %v11565_v40, %s7898_s22  ;;  %14267 = vst [vmem:[#allocation193_spill] sm:$0xff] %v11965_v26  ;;  %v3629_v40 = vrot.slane %v14257_v16, 4  ;;  %14272 = vst [vmem:[#allocation196_spill] sm:$0xff] %v11982_v51  ;;  %v3795_v24 = vrot.slane %v14258_v59, 6  ;;  %v3286_v50 = vmul.f32 %v11357_v6, %v14273_v52  ;;  %v12004_v26 = vsel %vm3511_vm0, %v3528_v11, %v3530_v55 }
 0x852   : > { %v11974_v30 = vpop.permute.xlu1 %3542  ;;  %14274 = vst [vmem:[#allocation197_spill] sm:$0xff] %v12004_v26  ;;  %v12021_v6 = vsel %vm2900_vm13, %v3729_v8, %v3731_v22  ;;  %v3792_v55 = vrot.slane %v14268_v28, 6  ;;  %v12031_v13 = vmul.f32 %v14238_v21, %v14268_v28 }
 0x853   : > { %14270 = vst [vmem:[#allocation194_spill] sm:$0xff] %v11974_v30  ;;  %v11976_v4 = vpop.permute.xlu0 %3741  ;;  %v12015_v0 = vsel %vm1029_vm6, %v3629_v40, %v3631_v47  ;;  %v12035_v47 = vmul.f32 %v14238_v21, %v14257_v16  ;;  %v14297_v30 = vld [vmem:[#allocation91_spill] sm:$0xff] }
 0x854   : > { %14271 = vst [vmem:[#allocation195_spill] sm:$0xff] %v11976_v4  ;;  %5749 = vrot.lane.b32.xlu1 %v11582_v35, %s7897_s16  ;;  %v12007_v35 = vsel %vm3511_vm0, %v3527_v49, %v3528_v11  ;;  %v12018_v4 = vsel %vm1029_vm6, %v3628_v7, %v3629_v40  ;;  %v3287_v49 = vmul.f32 %v11373_v57, %v14273_v52  ;;  %14277 = vst [vmem:[#allocation200_spill] sm:$0xff] %v12031_v13  ;;  %v14279_v40 = vld [vmem:[#allocation86_spill] sm:$0xff] }
 0x855   : > { %5183 = vrot.lane.b32.xlu0 %v11596_v25, %s7894_s17  ;;  %v3728_v25 = vrot.slane %v14268_v28, 5  ;;  %14278 = vst [vmem:[#allocation201_spill] sm:$0xff] %v12035_v47  ;;  %v12039_v22 = vmul.f32 %v11355_v14, %v14279_v40  ;;  %v12046_v57 = vsel %vm3572_vm1, %v3793_v36, %v3795_v24  ;;  %v3303_v7 = vrot.slane %v3286_v50, 5  ;;  %v14284_v50 = vld [vmem:[#allocation90_spill] sm:$0xff] }
 0x856   : > { %v12010_v51 = vpop.permute.xlu1 %3643  ;;  %14280 = vst [vmem:[#allocation202_spill] sm:$0xff] %v12046_v57  ;;  %v12057_v14 = vmul.f32 %v14231_v39, %v14257_v16  ;;  %v3304_v9 = vrot.slane %v3287_v49, 5 }
 0x857   : > { %14275 = vst [vmem:[#allocation198_spill] sm:$0xff] %v12010_v51  ;;  %v12012_v19 = vpop.permute.xlu0 %3805  ;;  %v12027_v11 = vsel %vm2900_vm13, %v3728_v25, %v3729_v8  ;;  %v12049_v8 = vsel %vm3572_vm1, %v3792_v55, %v3793_v36  ;;  %v12053_v25 = vmul.f32 %v14241_v54, %v14257_v16  ;;  %v12073_v55 = vmul.f32 %v11389_v44, %v14284_v50 }
 0x858   : > { %14276 = vst [vmem:[#allocation199_spill] sm:$0xff] %v12012_v19  ;;  %6033 = vrot.lane.b32.xlu1 %v11531_v23, %s7898_s22  ;;  %v12061_v23 = vmul.f32 %v14231_v39, %v14258_v59  ;;  %v12081_v19 = vmul.f32 %v14241_v54, %v14268_v28  ;;  %v12093_v44 = vmul.f32 %v14231_v39, %v14268_v28  ;;  %v14290_v54 = vld [vmem:[#allocation97_spill] sm:$0xff] }
 0x859   : > { %5467 = vrot.lane.b32.xlu0 %v11545_v15, %s7897_s16  ;;  %14281 = vst [vmem:[#allocation203_spill] sm:$0xff] %v12053_v25  ;;  %v14283_v15 = vld [vmem:[#allocation88_spill] sm:$0xff]  ;;  %v3558_v49 = vmul.f32 %v11415_v18, %v14290_v54  ;;  %v3327_v39 = vadd.f32 %v3303_v7, %v11807_v3  ;;  %v3305_v51 = vsel %vm2900_vm13, %v3303_v7, %v3304_v9 }
 0x85a   : > { %14282 = vst [vmem:[#allocation204_spill] sm:$0xff] %v12061_v23  ;;  %v12065_v24 = vmul.f32 %v11365_v62, %v14283_v15  ;;  %v12069_v36 = vmul.f32 %v11381_v5, %v14283_v15  ;;  %v12075_v47 = vpop.permute.xlu1 %3743  ;;  %14287 = vst [vmem:[#allocation207_spill] sm:$0xff] %v12081_v19  ;;  %v12085_v62 = vmul.f32 %v11391_v31, %v14279_v40  ;;  %v14292_v18 = vld [vmem:[#allocation96_spill] sm:$0xff] }
 0x85b   : > { %14285 = vst [vmem:[#allocation205_spill] sm:$0xff] %v12075_v47  ;;  %v12077_v13 = vpop.permute.xlu0 %3965  ;;  %v12089_v5 = vmul.f32 %v11397_v10, %v14288_v61  ;;  %14289 = vst [vmem:[#allocation208_spill] sm:$0xff] %v12093_v44  ;;  %v3559_v31 = vmul.f32 %v11429_v56, %v14290_v54  ;;  %v12111_v10 = vmul.f32 %v11363_v33, %v14145_v20  ;;  %v3576_v54 = vrot.slane %v3558_v49, 6  ;;  %v14319_v25 = vld [vmem:[#allocation84_spill] sm:$0xff] }
 0x85c   : > { %14286 = vst [vmem:[#allocation206_spill] sm:$0xff] %v12077_v13  ;;  %v12098_v13 = vmul.f32 %v11375_v43, %v14284_v50  ;;  %6317 = vrot.lane.b32.xlu1 %v11599_v42, %s7898_s22  ;;  %v12115_v43 = vmul.f32 %v11383_v63, %v14288_v61  ;;  %v3456_v47 = vmul.f32 %v11407_v12, %v14292_v18  ;;  %v3920_v56 = vrot.slane %v12065_v24, 6  ;;  %v14295_v12 = vld [vmem:[#allocation95_spill] sm:$0xff] }
 0x85d   : > { %5751 = vrot.lane.b32.xlu0 %v11611_v1, %s7897_s16  ;;  %v3921_v42 = vrot.slane %v12069_v36, 6  ;;  %v3457_v3 = vmul.f32 %v11421_v38, %v14292_v18  ;;  %v3391_v24 = vmul.f32 %v14296_v46, %v14295_v12  ;;  %v12134_v36 = vadd.f32 %v3304_v9, %v14297_v30  ;;  %v14300_v46 = vld [vmem:[#allocation98_spill] sm:$0xff] }
 0x85e   : > { %14291 = vst [vmem:[#allocation209_spill] sm:$0xff] %v12115_v43  ;;  %v12124_v1 = vpop.permute.xlu1 %3807  ;;  %v13780_v58 = vrot.slane %v12098_v13, 7  ;;  %v3577_v38 = vrot.slane %v3559_v31, 6  ;;  %v3474_v63 = vrot.slane %v3456_v47, 7  ;;  %v14301_v18 = vld [vmem:[#allocation58_spill] sm:$0xff]  ;;  %v14303_v31 = vrot.slane %v12073_v55, 7 }
 0x85f   : > { %14293 = vst [vmem:[#allocation210_spill] sm:$0xff] %v12124_v1  ;;  %v12126_v33 = vpop.permute.xlu0 %4045  ;;  %v3392_v1 = vmul.f32 %v14299_v29, %v14295_v12  ;;  %v3659_v9 = vmul.f32 %v14301_v18, %v14300_v46  ;;  %v14302_v30 = vld [vmem:[#allocation42_spill] sm:$0xff]  ;;  %v3922_v49 = vsel %vm3572_vm1, %v3920_v56, %v3921_v42  ;;  %v14306_v29 = vrot.slane %v12085_v62, 5 }
 0x860   : > { %14294 = vst [vmem:[#allocation211_spill] sm:$0xff] %v12126_v33  ;;  %6319 = vrot.lane.b32.xlu1 %v11623_v17, %s7898_s22  ;;  %v14298_v33 = vld [vmem:[#allocation121_spill] sm:$0xff]  ;;  %v3328_v32 = vadd.f32 %v3305_v51, %v14302_v30  ;;  %v12153_v17 = vsel %vm3470_vm2, %v13780_v58, %v14303_v31  ;;  %v14307_v18 = vrot.slane %v12039_v22, 5  ;;  %v14308_v30 = vrot.slane %v12089_v5, 6  ;;  %v14311_v58 = vld [vmem:[#allocation79_spill] sm:$0xff] }
 0x861   : > { %6035 = vrot.lane.b32.xlu0 %v14298_v33, %s7898_s22  ;;  %v3475_v33 = vrot.slane %v3457_v3, 7  ;;  %v14309_v12 = vrot.slane %v12115_v43, 6  ;;  %v14310_v31 = vld [vmem:[#allocation41_spill] sm:$0xff]  ;;  %v3600_v15 = vadd.f32 %v3576_v54, %v11872_v41  ;;  %v3602_v41 = vadd.f32 %v3577_v38, %v11889_v2  ;;  %v14325_v2 = vld [vmem:[#allocation112_spill] sm:$0xff] }
 0x862   : > { %v12155_v7 = vpop.permute.xlu1 %3967  ;;  %v12164_v51 = vsel %vm2900_vm13, %v14307_v18, %v14306_v29  ;;  %v3399_v3 = vadd.f32 %v3391_v24, %v14310_v31  ;;  %v3578_v29 = vsel %vm3572_vm1, %v3576_v54, %v3577_v38  ;;  %v14314_v24 = vld [vmem:[#allocation179_spill] sm:$0xff]  ;;  %v3676_v31 = vrot.slane %v3659_v9, 5  ;;  %v14318_v54 = vld [vmem:[#allocation101_spill] sm:$0xff] }
 0x863   : > { %14304 = vst [vmem:[#allocation74_spill] sm:$0xff] %v12155_v7  ;;  %v12157_v47 = vpop.permute.xlu0 %4089  ;;  %v12171_v61 = vsel %vm3572_vm1, %v14309_v12, %v14308_v30  ;;  %v3660_v7 = vmul.f32 %v14311_v58, %v14300_v46  ;;  %v14313_v12 = vld [vmem:[#allocation178_spill] sm:$0xff]  ;;  %v3400_v30 = vadd.f32 %v3392_v1, %v14314_v24  ;;  %v14315_v58 = vld [vmem:[#allocation104_spill] sm:$0xff]  ;;  %v3601_v1 = vadd.f32 %v3578_v29, %v11891_v37  ;;  %v14323_v24 = vld [vmem:[#allocation57_spill] sm:$0xff] }
 0x864   : > { %14305 = vst [vmem:[#allocation91_spill] sm:$0xff] %v12157_v47  ;;  %v14312_v47 = vld [vmem:[#allocation76_spill] sm:$0xff]  ;;  %5389 = vrot.lane.b32.xlu1 %v14268_v28, %s7897_s16  ;;  %v3498_v18 = vadd.f32 %v3474_v63, %v14313_v12  ;;  %v3824_v21 = vmul.f32 %v14319_v25, %v14315_v58  ;;  %v14322_v12 = vld [vmem:[#allocation105_spill] sm:$0xff]  ;;  %v14326_v38 = vld [vmem:[#allocation83_spill] sm:$0xff]  ;;  %v3700_v29 = vadd.f32 %v3676_v31, %v3327_v39 }
 0x865   : > { %v12178_v50 = vmul.f32 %v14312_v47, %v14145_v20  ;;  %3272 = vrot.lane.b32.xlu0 %v14268_v28, %s7896_s15  ;;  %v14316_v46 = vld [vmem:[#allocation80_spill] sm:$0xff]  ;;  %v3476_v47 = vsel %vm3470_vm2, %v3474_v63, %v3475_v33  ;;  %v3677_v9 = vrot.slane %v3660_v7, 5  ;;  %v14324_v63 = vld [vmem:[#allocation78_spill] sm:$0xff]  ;;  %v4107_v23 = vmul.f32 %v14326_v38, %v14325_v2  ;;  %v14327_v43 = vld [vmem:[#allocation85_spill] sm:$0xff] }
 0x866   : > { %v3823_v40 = vmul.f32 %v14316_v46, %v14315_v58  ;;  %v14317_v20 = vld [vmem:[#allocation100_spill] sm:$0xff]  ;;  %v12196_v59 = vpop.permute.xlu1 %4047  ;;  %v3983_v46 = vmul.f32 %v14323_v24, %v14322_v12  ;;  %v3984_v44 = vmul.f32 %v14324_v63, %v14322_v12  ;;  %v4108_v25 = vmul.f32 %v14327_v43, %v14325_v2 }
 0x867   : > { %v3759_v19 = vmul.f32 %v14318_v54, %v14317_v20  ;;  %14320 = vst [vmem:[#allocation121_spill] sm:$0xff] %v12196_v59  ;;  %v12198_v52 = vpop.permute.xlu0 %4169  ;;  %v3944_v54 = vadd.f32 %v3920_v56, %v3600_v15  ;;  %v3499_v37 = vadd.f32 %v3476_v47, %v11885_v60  ;;  %v3500_v7 = vadd.f32 %v3475_v33, %v11887_v53  ;;  %v14328_v59 = vld [vmem:[#allocation99_spill] sm:$0xff]  ;;  %v14334_v33 = vld [vmem:[#allocation102_spill] sm:$0xff] }
 0x868   : > { %14321 = vst [vmem:[#allocation77_spill] sm:$0xff] %v12198_v52  ;;  %4901 = vrot.lane.b32.xlu1 %v14268_v28, %s7894_s17  ;;  %v3840_v24 = vrot.slane %v3823_v40, 7  ;;  %v3760_v38 = vmul.f32 %v14328_v59, %v14317_v20  ;;  %v3841_v15 = vrot.slane %v3824_v21, 7  ;;  %v12217_v56 = vadd.f32 %v3921_v42, %v3602_v41  ;;  %v14331_v47 = vld [vmem:[#allocation111_spill] sm:$0xff] }
 0x869   : > { %3889 = vrot.lane.b32.xlu0 %v14268_v28, %s7895_s18  ;;  %v3767_v63 = vadd.f32 %v3759_v19, %v3399_v3  ;;  %v3678_v2 = vsel %vm2900_vm13, %v3676_v31, %v3677_v9  ;;  %v4000_v12 = vrot.slane %v3983_v46, 5  ;;  %v4001_v58 = vrot.slane %v3984_v44, 5  ;;  %v14332_v53 = vld [vmem:[#allocation75_spill] sm:$0xff]  ;;  %v14333_v19 = vld [vmem:[#allocation113_spill] sm:$0xff]  ;;  %v14335_v31 = vld [vmem:[#allocation114_spill] sm:$0xff] }
 0x86a   : > { %v12219_v43 = vpop.permute.xlu1 %4091  ;;  %v3945_v60 = vadd.f32 %v3922_v49, %v3601_v1  ;;  %v4063_v39 = vmul.f32 %v14332_v53, %v14331_v47  ;;  %v4124_v40 = vrot.slane %v4107_v23, 7  ;;  %v4187_v3 = vmul.f32 %v14334_v33, %v14333_v19  ;;  %v14336_v44 = vld [vmem:[#allocation82_spill] sm:$0xff]  ;;  %v14337_v41 = vld [vmem:[#allocation103_spill] sm:$0xff] }
 0x86b   : > { %14329 = vst [vmem:[#allocation58_spill] sm:$0xff] %v12219_v43  ;;  %v12221_v52 = vpop.permute.xlu0 %4249  ;;  %v4125_v59 = vrot.slane %v4108_v25, 7  ;;  %v3702_v21 = vadd.f32 %v3677_v9, %v12134_v36  ;;  %v3864_v42 = vadd.f32 %v3840_v24, %v3498_v18  ;;  %v4267_v49 = vmul.f32 %v14336_v44, %v14335_v31  ;;  %v14338_v25 = vld [vmem:[#allocation116_spill] sm:$0xff] }
 0x86c   : > { %14330 = vst [vmem:[#allocation42_spill] sm:$0xff] %v12221_v52  ;;  %5877 = vrot.lane.b32.xlu1 %v14268_v28, %s7898_s22  ;;  %v4188_v1 = vmul.f32 %v14337_v41, %v14333_v19  ;;  %v3701_v23 = vadd.f32 %v3678_v2, %v3328_v32  ;;  %v3768_v46 = vadd.f32 %v3760_v38, %v3400_v30  ;;  %v14341_v9 = vld [vmem:[#allocation92_spill] sm:$0xff]  ;;  %v4204_v32 = vrot.slane %v4187_v3, 6 }
 0x86d   : > { %4377 = vrot.lane.b32.xlu0 %v14268_v28, %s7899_s23  ;;  %v3842_v53 = vsel %vm3470_vm2, %v3840_v24, %v3841_v15  ;;  %v4268_v33 = vmul.f32 %v14338_v25, %v14335_v31  ;;  %v4024_v28 = vadd.f32 %v4000_v12, %v3700_v29  ;;  %v3866_v36 = vadd.f32 %v3841_v15, %v3500_v7  ;;  %v14342_v25 = vld [vmem:[#allocation119_spill] sm:$0xff] }
 0x86e   : > { %v12240_v52 = vpop.permute.xlu1 %4171  ;;  %v4002_v18 = vsel %vm2900_vm13, %v4000_v12, %v4001_v58  ;;  %v4064_v44 = vmul.f32 %v14341_v9, %v14331_v47  ;;  %v4071_v20 = vadd.f32 %v4063_v39, %v3767_v63  ;;  %v4148_v41 = vadd.f32 %v4124_v40, %v3864_v42  ;;  %v14343_v9 = vld [vmem:[#allocation73_spill] sm:$0xff] }
 0x86f   : > { %14339 = vst [vmem:[#allocation41_spill] sm:$0xff] %v12240_v52  ;;  %v12242_v43 = vpop.permute.xlu0 %4329  ;;  %v4126_v30 = vsel %vm3470_vm2, %v4124_v40, %v4125_v59  ;;  %v3865_v2 = vadd.f32 %v3842_v53, %v3499_v37  ;;  %v4150_v24 = vadd.f32 %v4125_v59, %v3866_v36  ;;  %v4284_v29 = vrot.slane %v4267_v49, 5  ;;  %v14346_v47 = vld [vmem:[#allocation93_spill] sm:$0xff]  ;;  %v14347_v37 = vld [vmem:[#allocation108_spill] sm:$0xff]  ;;  %v14352_v36 = vld [vmem:[#allocation106_spill] sm:$0xff] }
 0x870   : > { %14340 = vst [vmem:[#allocation79_spill] sm:$0xff] %v12242_v43  ;;  %3274 = vrot.lane.b32.xlu1 %v14257_v16, %s7896_s15  ;;  %v4205_v7 = vrot.slane %v4188_v1, 6  ;;  %v4025_v38 = vadd.f32 %v4002_v18, %v3701_v23  ;;  %v4026_v12 = vadd.f32 %v4001_v58, %v3702_v21  ;;  %v4285_v15 = vrot.slane %v4268_v33, 5  ;;  %v14345_v43 = vld [vmem:[#allocation115_spill] sm:$0xff]  ;;  %v14348_v1 = vld [vmem:[#allocation122_spill] sm:$0xff]  ;;  %v14349_v23 = vld [vmem:[#allocation124_spill] sm:$0xff] }
 0x871   : > { %5391 = vrot.lane.b32.xlu0 %v14257_v16, %s7897_s16  ;;  %v4552_v63 = vmul.f32 %v14343_v9, %v14342_v25  ;;  %v4072_v40 = vadd.f32 %v4064_v44, %v3768_v46  ;;  %v4149_v42 = vadd.f32 %v4126_v30, %v3865_v2  ;;  %v4347_v52 = vmul.f32 %v14346_v47, %v14345_v43  ;;  %v14351_v33 = vld [vmem:[#allocation118_spill] sm:$0xff]  ;;  %v14354_v30 = vld [vmem:[#allocation109_spill] sm:$0xff]  ;;  %v14355_v9 = vld [vmem:[#allocation123_spill] sm:$0xff] }
 0x872   : > { %v12254_v39 = vpop.permute.xlu1 %4251  ;;  %v4551_v59 = vmul.f32 %v14347_v37, %v14342_v25  ;;  %v4228_v49 = vadd.f32 %v4204_v32, %v3944_v54  ;;  %v4835_v58 = vmul.f32 %v14349_v23, %v14348_v1  ;;  %v14350_v21 = vrot.slane %v12098_v13, 7  ;;  %v14356_v37 = vld [vmem:[#allocation137_spill] sm:$0xff] }
 0x873   : > { %v12256_v3 = vpop.permute.xlu0 %4453  ;;  %v4308_v46 = vadd.f32 %v4284_v29, %v4024_v28  ;;  %v4206_v47 = vsel %vm3572_vm1, %v4204_v32, %v4205_v7  ;;  %v4471_v18 = vmul.f32 %v14352_v36, %v14351_v33  ;;  %v14353_v54 = vrot.slane %v12073_v55, 7  ;;  %v14359_v36 = vld [vmem:[#allocation117_spill] sm:$0xff] }
 0x874   : > { %14344 = vst [vmem:[#allocation76_spill] sm:$0xff] %v12256_v3  ;;  %v12266_v53 = vadd.f32 %v14350_v21, %v4148_v41  ;;  %3891 = vrot.lane.b32.xlu1 %v14257_v16, %s7895_s18  ;;  %v4286_v13 = vsel %vm2900_vm13, %v4284_v29, %v4285_v15  ;;  %v4569_v41 = vrot.slane %v4552_v63, 5  ;;  %v4836_v2 = vmul.f32 %v14354_v30, %v14348_v1 }
 0x875   : > { %5879 = vrot.lane.b32.xlu0 %v14257_v16, %s7898_s22  ;;  %v12277_v44 = vadd.f32 %v14353_v54, %v4150_v24  ;;  %v5120_v23 = vmul.f32 %v14356_v37, %v14355_v9  ;;  %v4355_v32 = vadd.f32 %v4347_v52, %v4071_v20  ;;  %v4568_v3 = vrot.slane %v4551_v59, 5  ;;  %v14360_v54 = vld [vmem:[#allocation138_spill] sm:$0xff]  ;;  %v14361_v37 = vld [vmem:[#allocation107_spill] sm:$0xff] }
 0x876   : > { %v12284_v21 = vpop.permute.xlu1 %4331  ;;  %v4472_v55 = vmul.f32 %v14359_v36, %v14351_v33  ;;  %v12291_v24 = vadd.f32 %v12153_v17, %v4149_v42  ;;  %v4229_v29 = vadd.f32 %v4206_v47, %v3945_v60  ;;  %v4230_v63 = vadd.f32 %v4205_v7, %v12217_v56  ;;  %v14362_v42 = vld [vmem:[#allocation120_spill] sm:$0xff]  ;;  %v14363_v60 = vld [vmem:[#allocation70_spill] sm:$0xff] }
 0x877   : > { %14357 = vst [vmem:[#allocation178_spill] sm:$0xff] %v12284_v21  ;;  %v12286_v28 = vpop.permute.xlu0 %4533  ;;  %v5119_v30 = vmul.f32 %v14360_v54, %v14355_v9  ;;  %v4852_v1 = vrot.slane %v4835_v58, 5  ;;  %v4309_v20 = vadd.f32 %v4286_v13, %v4025_v38  ;;  %v4310_v52 = vadd.f32 %v4285_v15, %v4026_v12  ;;  %v14366_v38 = vld [vmem:[#allocation110_spill] sm:$0xff]  ;;  %v14367_v13 = vld [vmem:[#allocation125_spill] sm:$0xff] }
 0x878   : > { %14358 = vst [vmem:[#allocation179_spill] sm:$0xff] %v12286_v28  ;;  %4379 = vrot.lane.b32.xlu1 %v14257_v16, %s7899_s23  ;;  %v4488_v59 = vrot.slane %v4471_v18, 6  ;;  %v4348_v17 = vmul.f32 %v14361_v37, %v14345_v43  ;;  %v4631_v47 = vmul.f32 %v14363_v60, %v14362_v42  ;;  %v4570_v56 = vsel %vm2900_vm13, %v4568_v3, %v4569_v41  ;;  %v14368_v37 = vld [vmem:[#allocation140_spill] sm:$0xff]  ;;  %v14369_v33 = vld [vmem:[#allocation126_spill] sm:$0xff]  ;;  %v14370_v28 = vld [vmem:[#allocation133_spill] sm:$0xff] }
 0x879   : > { %4903 = vrot.lane.b32.xlu0 %v14257_v16, %s7894_s17  ;;  %v4853_v7 = vrot.slane %v4836_v2, 5  ;;  %v5137_v36 = vrot.slane %v5120_v23, 5  ;;  %v4592_v21 = vadd.f32 %v4568_v3, %v4308_v46  ;;  %v4489_v9 = vrot.slane %v4472_v55, 6  ;;  %v14371_v23 = vld [vmem:[#allocation136_spill] sm:$0xff] }
 0x87a   : > { %v12305_v58 = vpop.permute.xlu1 %4455  ;;  %v4594_v16 = vadd.f32 %v4569_v41, %v4310_v52  ;;  %v4632_v12 = vmul.f32 %v14366_v38, %v14362_v42  ;;  %v5136_v15 = vrot.slane %v5119_v30, 5  ;;  %v4675_v60 = vmul.f32 %v14368_v37, %v14367_v13  ;;  %v14372_v37 = vld [vmem:[#allocation68_spill] sm:$0xff] }
 0x87b   : > { %14364 = vst [vmem:[#allocation80_spill] sm:$0xff] %v12305_v58  ;;  %v12307_v54 = vpop.permute.xlu0 %4613  ;;  %v4854_v18 = vsel %vm2900_vm13, %v4852_v1, %v4853_v7  ;;  %v4755_v2 = vmul.f32 %v14370_v28, %v14369_v33  ;;  %v4356_v3 = vadd.f32 %v4348_v17, %v4072_v40  ;;  %v4593_v46 = vadd.f32 %v4570_v56, %v4309_v20  ;;  %v14374_v56 = vld [vmem:[#allocation127_spill] sm:$0xff] }
 0x87c   : > { %14365 = vst [vmem:[#allocation101_spill] sm:$0xff] %v12307_v54  ;;  %3379 = vrot.lane.b32.xlu1 %v11955_v48, %s7896_s15  ;;  %v4876_v41 = vadd.f32 %v4852_v1, %v4592_v21  ;;  %v4676_v55 = vmul.f32 %v14371_v23, %v14367_v13  ;;  %v4512_v30 = vadd.f32 %v4488_v59, %v4228_v49  ;;  %v4692_v21 = vrot.slane %v4675_v60, 7  ;;  %v14375_v49 = vld [vmem:[#allocation71_spill] sm:$0xff] }
 0x87d   : > { %3377 = vrot.lane.b32.xlu0 %v11985_v34, %s7896_s15  ;;  %v4639_v52 = vadd.f32 %v4631_v47, %v4355_v32  ;;  %v5138_v38 = vsel %vm2900_vm13, %v5136_v15, %v5137_v36  ;;  %v4756_v54 = vmul.f32 %v14372_v37, %v14369_v33  ;;  %v4490_v58 = vsel %vm3572_vm1, %v4488_v59, %v4489_v9 }
 0x87e   : > { %v12325_v28 = vpop.permute.xlu1 %4535  ;;  %v4878_v25 = vadd.f32 %v4853_v7, %v4594_v16  ;;  %v4640_v40 = vadd.f32 %v4632_v12, %v4356_v3  ;;  %v4877_v20 = vadd.f32 %v4854_v18, %v4593_v46  ;;  %v4514_v1 = vadd.f32 %v4489_v9, %v4230_v63  ;;  %v14376_v16 = vld [vmem:[#allocation128_spill] sm:$0xff]  ;;  %v14377_v12 = vld [vmem:[#allocation50_spill] sm:$0xff]  ;;  %v14381_v3 = vld [vmem:[#allocation129_spill] sm:$0xff] }
 0x87f   : > { %v12327_v42 = vpop.permute.xlu0 %4819  ;;  %v4772_v17 = vrot.slane %v4755_v2, 6  ;;  %v4959_v32 = vmul.f32 %v14375_v49, %v14374_v56  ;;  %v5160_v47 = vadd.f32 %v5136_v15, %v4876_v41  ;;  %v4693_v33 = vrot.slane %v4676_v55, 7  ;;  %v14378_v63 = vld [vmem:[#allocation52_spill] sm:$0xff]  ;;  %v14382_v46 = vld [vmem:[#allocation51_spill] sm:$0xff]  ;;  %v14383_v15 = vld [vmem:[#allocation142_spill] sm:$0xff] }
 0x880   : > { %14373 = vst [vmem:[#allocation84_spill] sm:$0xff] %v12327_v42  ;;  %3444 = vrot.lane.b32.xlu1 %v11988_v45, %s7896_s15  ;;  %v5161_v23 = vadd.f32 %v5138_v38, %v4877_v20  ;;  %v5162_v37 = vadd.f32 %v5137_v36, %v4878_v25  ;;  %v4513_v59 = vadd.f32 %v4490_v58, %v4229_v29  ;;  %v4773_v7 = vrot.slane %v4756_v54, 6  ;;  %v14384_v55 = vld [vmem:[#allocation144_spill] sm:$0xff] }
 0x881   : > { %3442 = vrot.lane.b32.xlu0 %v11996_v27, %s7896_s15  ;;  %v5039_v9 = vmul.f32 %v14377_v12, %v14376_v16  ;;  %v4960_v18 = vmul.f32 %v14378_v63, %v14374_v56  ;;  %v5688_v49 = vmul.f32 %v14382_v46, %v14381_v3  ;;  %v5040_v41 = vmul.f32 %v14383_v15, %v14376_v16  ;;  %v14387_v63 = vld [vmem:[#allocation130_spill] sm:$0xff]  ;;  %v14388_v46 = vld [vmem:[#allocation143_spill] sm:$0xff] }
 0x882   : > { %v12340_v60 = vpop.permute.xlu1 %4615  ;;  %v12349_v25 = vadd.f32 %v12111_v10, %v4639_v52  ;;  %v12352_v29 = vadd.f32 %v12178_v50, %v4640_v40  ;;  %v4716_v36 = vadd.f32 %v4692_v21, %v12266_v53  ;;  %v4796_v58 = vadd.f32 %v4772_v17, %v4512_v30 }
 0x883   : > { %14379 = vst [vmem:[#allocation57_spill] sm:$0xff] %v12340_v60  ;;  %v12342_v2 = vpop.permute.xlu0 %5101  ;;  %v4976_v54 = vrot.slane %v4959_v32, 7  ;;  %v5687_v38 = vmul.f32 %v14384_v55, %v14381_v3  ;;  %v4694_v20 = vsel %vm3470_vm2, %v4692_v21, %v4693_v33  ;;  %v14385_v10 = vrot.slane %v12085_v62, 5 }
 0x884   : > { %14380 = vst [vmem:[#allocation78_spill] sm:$0xff] %v12342_v2  ;;  %3546 = vrot.lane.b32.xlu1 %v12004_v26, %s7896_s15  ;;  %v14386_v50 = vrot.slane %v12039_v22, 5  ;;  %v5445_v53 = vadd.f32 %v12164_v51, %v5161_v23  ;;  %v4774_v30 = vsel %vm3572_vm1, %v4772_v17, %v4773_v7  ;;  %v5056_v32 = vrot.slane %v5039_v9, 6  ;;  %v14391_v22 = vld [vmem:[#allocation145_spill] sm:$0xff]  ;;  %v14392_v9 = vld [vmem:[#allocation148_spill] sm:$0xff] }
 0x885   : > { %3544 = vrot.lane.b32.xlu0 %v12007_v35, %s7896_s15  ;;  %v5446_v52 = vadd.f32 %v14385_v10, %v5162_v37  ;;  %v4977_v12 = vrot.slane %v4960_v18, 7  ;;  %v5243_v15 = vmul.f32 %v14388_v46, %v14387_v63  ;;  %v4718_v21 = vadd.f32 %v4693_v33, %v12277_v44  ;;  %v14390_v10 = vld [vmem:[#allocation131_spill] sm:$0xff]  ;;  %v14393_v44 = vld [vmem:[#allocation146_spill] sm:$0xff] }
 0x886   : > { %v5444_v40 = vadd.f32 %v14386_v50, %v5160_v47  ;;  %v12370_v55 = vpop.permute.xlu1 %4817  ;;  %v5705_v62 = vrot.slane %v5688_v49, 5  ;;  %v5057_v37 = vrot.slane %v5040_v41, 6  ;;  %v5323_v47 = vmul.f32 %v14391_v22, %v14390_v10  ;;  %v14394_v41 = vld [vmem:[#allocation132_spill] sm:$0xff]  ;;  %v14395_v46 = vld [vmem:[#allocation150_spill] sm:$0xff] }
 0x887   : > { %v12372_v3 = vpop.permute.xlu0 %4657  ;;  %v4717_v51 = vadd.f32 %v4694_v20, %v12291_v24  ;;  %v5000_v23 = vadd.f32 %v4976_v54, %v4716_v36  ;;  %v5704_v17 = vrot.slane %v5687_v38, 5  ;;  %v5324_v18 = vmul.f32 %v14392_v9, %v14390_v10 }
 0x888   : > { %14389 = vst [vmem:[#allocation83_spill] sm:$0xff] %v12372_v3  ;;  %3647 = vrot.lane.b32.xlu1 %v12015_v0, %s7896_s15  ;;  %v4797_v50 = vadd.f32 %v4774_v30, %v4513_v59  ;;  %v4798_v33 = vadd.f32 %v4773_v7, %v4514_v1  ;;  %v5244_v49 = vmul.f32 %v14393_v44, %v14387_v63  ;;  %v5260_v20 = vrot.slane %v5243_v15, 7  ;;  %v14398_v7 = vld [vmem:[#allocation147_spill] sm:$0xff] }
 0x889   : > { %3645 = vrot.lane.b32.xlu0 %v12018_v4, %s7896_s15  ;;  %v12388_v22 = vmul.f32 %v14395_v46, %v14394_v41  ;;  %v5080_v24 = vadd.f32 %v5056_v32, %v4796_v58  ;;  %v4978_v36 = vsel %vm3470_vm2, %v4976_v54, %v4977_v12  ;;  %v5002_v38 = vadd.f32 %v4977_v12, %v4718_v21  ;;  %v14399_v63 = vld [vmem:[#allocation135_spill] sm:$0xff]  ;;  %v14400_v58 = vld [vmem:[#allocation154_spill] sm:$0xff]  ;;  %v14402_v12 = vld [vmem:[#allocation156_spill] sm:$0xff] }
 0x88a   : > { %v12391_v9 = vpop.permute.xlu1 %5103  ;;  %v5730_v16 = vadd.f32 %v5705_v62, %v5446_v52  ;;  %v5058_v59 = vsel %vm3572_vm1, %v5056_v32, %v5057_v37  ;;  %v5340_v1 = vrot.slane %v5323_v47, 6  ;;  %v5972_v30 = vmul.f32 %v14398_v7, %v14394_v41  ;;  %v14401_v54 = vld [vmem:[#allocation139_spill] sm:$0xff] }
 0x88b   : > { %14396 = vst [vmem:[#allocation85_spill] sm:$0xff] %v12391_v9  ;;  %v12393_v10 = vpop.permute.xlu0 %4737  ;;  %v5706_v44 = vsel %vm2900_vm13, %v5704_v17, %v5705_v62  ;;  %v5341_v46 = vrot.slane %v5324_v18, 6  ;;  %v5607_v56 = vmul.f32 %v14400_v58, %v14399_v63  ;;  %v6256_v15 = vmul.f32 %v14402_v12, %v14401_v54  ;;  %v14403_v18 = vld [vmem:[#allocation151_spill] sm:$0xff]  ;;  %v14404_v58 = vld [vmem:[#allocation153_spill] sm:$0xff] }
 0x88c   : > { %14397 = vst [vmem:[#allocation99_spill] sm:$0xff] %v12393_v10  ;;  %3747 = vrot.lane.b32.xlu1 %v12021_v6, %s7896_s15  ;;  %v5001_v52 = vadd.f32 %v4978_v36, %v4717_v51  ;;  %v5082_v32 = vadd.f32 %v5057_v37, %v4798_v33  ;;  %v5261_v21 = vrot.slane %v5244_v49, 7  ;;  %v5988_v47 = vrot.slane %v12388_v22, 5  ;;  %v14407_v33 = vld [vmem:[#allocation134_spill] sm:$0xff]  ;;  %v14408_v49 = vld [vmem:[#allocation149_spill] sm:$0xff] }
 0x88d   : > { %3745 = vrot.lane.b32.xlu0 %v12027_v11, %s7896_s15  ;;  %v5081_v7 = vadd.f32 %v5058_v59, %v4797_v50  ;;  %v5284_v62 = vadd.f32 %v5260_v20, %v5000_v23  ;;  %v5608_v41 = vmul.f32 %v14403_v18, %v14399_v63  ;;  %v6255_v10 = vmul.f32 %v14404_v58, %v14401_v54  ;;  %v14416_v63 = vld [vmem:[#allocation158_spill] sm:$0xff] }
 0x88e   : > { %v12412_v12 = vpop.permute.xlu1 %4659  ;;  %v5728_v13 = vadd.f32 %v5704_v17, %v5444_v40  ;;  %v5729_v60 = vadd.f32 %v5706_v44, %v5445_v53  ;;  %v5364_v2 = vadd.f32 %v5340_v1, %v5080_v24  ;;  %v5989_v51 = vrot.slane %v5972_v30, 5  ;;  %v14409_v53 = vld [vmem:[#allocation152_spill] sm:$0xff]  ;;  %v14411_v44 = vld [vmem:[#allocation162_spill] sm:$0xff] }
 0x88f   : > { %14405 = vst [vmem:[#allocation75_spill] sm:$0xff] %v12412_v12  ;;  %v12414_v3 = vpop.permute.xlu0 %4941  ;;  %v5342_v37 = vsel %vm3572_vm1, %v5340_v1, %v5341_v46  ;;  %v5528_v50 = vmul.f32 %v14408_v49, %v14407_v33  ;;  %v5624_v23 = vrot.slane %v5607_v56, 6  ;;  %v6273_v22 = vrot.slane %v6256_v15, 5  ;;  %v14410_v30 = vld [vmem:[#allocation48_spill] sm:$0xff]  ;;  %v14412_v15 = vld [vmem:[#allocation163_spill] sm:$0xff] }
 0x890   : > { %14406 = vst [vmem:[#allocation102_spill] sm:$0xff] %v12414_v3  ;;  %3811 = vrot.lane.b32.xlu1 %v12046_v57, %s7896_s15  ;;  %v5262_v36 = vsel %vm3470_vm2, %v5260_v20, %v5261_v21  ;;  %v5286_v59 = vadd.f32 %v5261_v21, %v5002_v38  ;;  %v5990_v40 = vsel %vm2900_vm13, %v5988_v47, %v5989_v51  ;;  %v5625_v24 = vrot.slane %v5608_v41, 6  ;;  %v14415_v21 = vld [vmem:[#allocation94_spill] sm:$0xff] }
 0x891   : > { %3809 = vrot.lane.b32.xlu0 %v12049_v8, %s7896_s15  ;;  %v5527_v17 = vmul.f32 %v14409_v53, %v14407_v33  ;;  %v6272_v1 = vrot.slane %v6255_v10, 5  ;;  %v6176_v56 = vmul.f32 %v14411_v44, %v14410_v30  ;;  %v6175_v18 = vmul.f32 %v14412_v15, %v14410_v30  ;;  %s7902_s15 = smov [#allocation5]  }
 0x892   : > { %v12431_v58 = vpop.permute.xlu1 %4739  ;;  %v6014_v54 = vadd.f32 %v5989_v51, %v5730_v16  ;;  %v5365_v20 = vadd.f32 %v5342_v37, %v5081_v7  ;;  %v5366_v38 = vadd.f32 %v5341_v46, %v5082_v32  ;;  %v5812_v3 = vmul.f32 %v14416_v63, %v14415_v21  ;;  %v14417_v16 = vld [vmem:[#allocation157_spill] sm:$0xff]  ;;  %v14419_v32 = vld [vmem:[#allocation160_spill] sm:$0xff]  ;;  %s7824_s8 = sshll.u32 %s7902_s15, 4  ;;  %s7825_s8 = int_to_ptr.vmem [resolvable:$false] %s7824_s8 }
 0x893   : > { %14413 = vst [vmem:[#allocation82_spill] sm:$0xff] %v12431_v58  ;;  %v12433_v49 = vpop.permute.xlu0 %5021  ;;  %v5545_v12 = vrot.slane %v5528_v50, 7  ;;  %v6013_v53 = vadd.f32 %v5990_v40, %v5729_v60  ;;  %v5626_v10 = vsel %vm3572_vm1, %v5624_v23, %v5625_v24  ;;  %v6274_v41 = vsel %vm2900_vm13, %v6272_v1, %v6273_v22  ;;  %v14418_v46 = vld [vmem:[#allocation69_spill] sm:$0xff] }
 0x894   : > { %14414 = vst [vmem:[#allocation103_spill] sm:$0xff] %v12433_v49  ;;  %3971 = vrot.lane.b32.xlu1 %v11955_v48, %s7895_s18  ;;  %v5544_v44 = vrot.slane %v5527_v17, 7  ;;  %v5811_v7 = vmul.f32 %v14417_v16, %v14415_v21  ;;  %v6096_v51 = vmul.f32 %v14419_v32, %v14418_v46  ;;  %v14420_v63 = vld [vmem:[#allocation161_spill] sm:$0xff]  ;;  %v5285_v37 = vadd.f32 %v5262_v36, %v5001_v52 }
 0x895   : > { %3969 = vrot.lane.b32.xlu0 %v11985_v34, %s7895_s18  ;;  %v6095_v60 = vmul.f32 %v14420_v63, %v14418_v46  ;;  %v5650_v50 = vadd.f32 %v5625_v24, %v5366_v38  ;;  %v6193_v40 = vrot.slane %v6176_v56, 6  ;;  %v6192_v15 = vrot.slane %v6175_v18, 6 }
 0x896   : > { %v12449_v30 = vpop.permute.xlu1 %4943  ;;  %v5649_v49 = vadd.f32 %v5626_v10, %v5365_v20  ;;  %v6297_v58 = vadd.f32 %v6274_v41, %v6013_v53  ;;  %v6298_v17 = vadd.f32 %v6273_v22, %v6014_v54  ;;  %v5829_v9 = vrot.slane %v5812_v3, 7  ;;  %v14423_v53 = vld [vmem:[#allocation141_spill] sm:$0xff]  ;;  %v14424_v10 = vld [vmem:[#allocation155_spill] sm:$0xff] }
 0x897   : > { %v12451_v33 = vpop.permute.xlu0 %5669  ;;  %v5570_v42 = vadd.f32 %v5545_v12, %v5286_v59  ;;  %v6012_v16 = vadd.f32 %v5988_v47, %v5728_v13  ;;  %v5648_v21 = vadd.f32 %v5624_v23, %v5364_v2  ;;  %v3088_v52 = vrot.slane %v12057_v14, 4 }
 0x898   : > { %4051 = vrot.lane.b32.xlu1 %v11988_v45, %s7895_s18  ;;  %v5546_v36 = vsel %vm3470_vm2, %v5544_v44, %v5545_v12  ;;  %v5828_v24 = vrot.slane %v5811_v7, 7  ;;  %v6113_v56 = vrot.slane %v6096_v51, 7  ;;  %v6112_v18 = vrot.slane %v6095_v60, 7 }
 0x899   : > { %4049 = vrot.lane.b32.xlu0 %v11996_v27, %s7895_s18  ;;  %v5568_v20 = vadd.f32 %v5544_v44, %v5284_v62  ;;  %v6296_v38 = vadd.f32 %v6272_v1, %v6012_v16  ;;  %v14421_v3 = vrot.slane %v12089_v5, 6  ;;  %v6194_v13 = vsel %vm3572_vm1, %v6192_v15, %v6193_v40  ;;  %v14425_v1 = vld [vmem:[#allocation209_spill] sm:$0xff]  ;;  %v14427_v44 = vld [vmem:[#allocation204_spill] sm:$0xff] }
 0x89a   : > { %v12462_v2 = vpop.permute.xlu1 %5023  ;;  %v6415_v23 = vrot.slane %v6297_v58, 1  ;;  %v6417_v22 = vrot.slane %v6298_v17, 1  ;;  %v5830_v14 = vsel %vm3470_vm2, %v5828_v24, %v5829_v9  ;;  %v5933_v12 = vadd.f32 %v12171_v61, %v5649_v49 }
 0x89b   : > { %v5934_v54 = vadd.f32 %v14421_v3, %v5650_v50  ;;  %v12464_v47 = vpop.permute.xlu0 %5227  ;;  %v5569_v59 = vadd.f32 %v5546_v36, %v5285_v37  ;;  %v5199_v62 = vmul.f32 %v14424_v10, %v14423_v53  ;;  %v14426_v41 = vrot.slane %v14425_v1, 6  ;;  %v14428_v37 = vld [vmem:[#allocation165_spill] sm:$0xff]  ;;  %v14431_v3 = vld [vmem:[#allocation67_spill] sm:$0xff] }
 0x89c   : > { %14422 = vst [vmem:[#allocation116_spill] sm:$0xff] %v12464_v47  ;;  %4095 = vrot.lane.b32.xlu1 %v12004_v26, %s7895_s18  ;;  %v3090_v58 = vrot.slane %v14427_v44, 4  ;;  %v5854_v7 = vadd.f32 %v5829_v9, %v5570_v42  ;;  %v6114_v32 = vsel %vm3470_vm2, %v6112_v18, %v6113_v56  ;;  %v6217_v61 = vadd.f32 %v6194_v13, %v5933_v12  ;;  %v14432_v10 = vld [vmem:[#allocation159_spill] sm:$0xff]  ;;  %v14524_v47 = vld [vmem:[#allocation74_spill] sm:$0xff] }
 0x89d   : > { %v5932_v5 = vadd.f32 %v14426_v41, %v5648_v21  ;;  %4093 = vrot.lane.b32.xlu0 %v12007_v35, %s7895_s18  ;;  %v6218_v51 = vadd.f32 %v6193_v40, %v5934_v54  ;;  %v5852_v49 = vadd.f32 %v5828_v24, %v5568_v20  ;;  %v5853_v63 = vadd.f32 %v5830_v14, %v5569_v59  ;;  %v14433_v24 = vld [vmem:[#allocation167_spill] sm:$0xff]  ;;  %v14435_v59 = vld [vmem:[#allocation53_spill] sm:$0xff]  ;;  %v14436_v41 = vld [vmem:[#allocation168_spill] sm:$0xff] }
 0x89e   : > { %v5200_v50 = vmul.f32 %v14428_v37, %v14423_v53  ;;  %v12480_v21 = vpop.permute.xlu1 %5671  ;;  %v6414_v16 = vrot.slane %v6296_v38, 1  ;;  %v6418_v36 = vsel %vm3344_vm14, %v6415_v23, %v6417_v22  ;;  %v5483_v42 = vmul.f32 %v14432_v10, %v14431_v3  ;;  %v14443_v10 = vld [vmem:[#allocation40_spill] sm:$0xff]  ;;  %v14492_v53 = vld [vmem:[#allocation183_spill] sm:$0xff] }
 0x89f   : > { %v6216_v60 = vadd.f32 %v6192_v15, %v5932_v5  ;;  %14429 = vst [vmem:[#allocation92_spill] sm:$0xff] %v12480_v21  ;;  %v12482_v17 = vpop.permute.xlu0 %5307  ;;  %v6138_v9 = vadd.f32 %v6113_v56, %v5854_v7  ;;  %v6136_v1 = vadd.f32 %v6112_v18, %v5852_v49  ;;  %v6137_v40 = vadd.f32 %v6114_v32, %v5853_v63  ;;  %v14434_v15 = vld [vmem:[#allocation208_spill] sm:$0xff]  ;;  %v14528_v21 = vld [vmem:[#allocation193_spill] sm:$0xff] }
 0x8a0   : > { %14430 = vst [vmem:[#allocation73_spill] sm:$0xff] %v12482_v17  ;;  %v5484_v20 = vmul.f32 %v14433_v24, %v14431_v3  ;;  %4175 = vrot.lane.b32.xlu1 %v12015_v0, %s7895_s18  ;;  %v3087_v54 = vrot.slane %v14434_v15, 4  ;;  %v5207_v38 = vadd.f32 %v5199_v62, %v12349_v25  ;;  %v6446_v13 = vadd.f32 %v6417_v22, %v6218_v51  ;;  %v14439_v25 = vld [vmem:[#allocation164_spill] sm:$0xff] }
 0x8a1   : > { %4173 = vrot.lane.b32.xlu0 %v12018_v4, %s7895_s18  ;;  %v6416_v14 = vsel %vm3344_vm14, %v6414_v16, %v6415_v23  ;;  %v6445_v12 = vadd.f32 %v6418_v36, %v6217_v61  ;;  %v5208_v18 = vadd.f32 %v5200_v50, %v12352_v29  ;;  %v5768_v5 = vmul.f32 %v14436_v41, %v14435_v59  ;;  %v14440_v29 = vld [vmem:[#allocation54_spill] sm:$0xff]  ;;  %v14453_v41 = vld [vmem:[#allocation203_spill] sm:$0xff] }
 0x8a2   : > { %v6444_v56 = vadd.f32 %v6416_v14, %v6216_v60  ;;  %v12499_v44 = vpop.permute.xlu1 %5225  ;;  %v3091_v32 = vsel %vm1029_vm6, %v3088_v52, %v3090_v58  ;;  %v5491_v49 = vadd.f32 %v5483_v42, %v5207_v38  ;;  %v6369_v63 = vrot.slane %v6138_v9, 1  ;;  %v14441_v60 = vld [vmem:[#allocation170_spill] sm:$0xff]  ;;  %v14444_v42 = vld [vmem:[#allocation173_spill] sm:$0xff]  ;;  %v14449_v38 = vld [vmem:[#allocation43_spill] sm:$0xff] }
 0x8a3   : > { %14437 = vst [vmem:[#allocation93_spill] sm:$0xff] %v12499_v44  ;;  %v12501_v7 = vpop.permute.xlu0 %5955  ;;  %v5767_v22 = vmul.f32 %v14439_v25, %v14435_v59  ;;  %v3089_v23 = vsel %vm1029_vm6, %v3087_v54, %v3088_v52  ;;  %v6366_v62 = vrot.slane %v6136_v1, 1  ;;  %v6367_v51 = vrot.slane %v6137_v40, 1  ;;  %v14442_v16 = vld [vmem:[#allocation166_spill] sm:$0xff]  ;;  %v14445_v40 = vld [vmem:[#allocation177_spill] sm:$0xff]  ;;  %v14448_v54 = vld [vmem:[#allocation59_spill] sm:$0xff] }
 0x8a4   : > { %14438 = vst [vmem:[#allocation108_spill] sm:$0xff] %v12501_v7  ;;  %v5492_v61 = vadd.f32 %v5484_v20, %v5208_v18  ;;  %v6052_v37 = vmul.f32 %v14441_v60, %v14440_v29  ;;  %4255 = vrot.lane.b32.xlu1 %v12021_v6, %s7895_s18  ;;  %v6473_v58 = vrot.slane %v6446_v13, 2  ;;  %v6471_v50 = vrot.slane %v6445_v12, 2  ;;  %v12530_v12 = vld [vmem:[%s13579_s5 + $0x30] ss:$0 sm:$0xff]  ;;  %v14452_v18 = vld [vmem:[#allocation169_spill] sm:$0xff] }
 0x8a5   : > { %4253 = vrot.lane.b32.xlu0 %v12027_v11, %s7895_s18  ;;  %v6051_v36 = vmul.f32 %v14442_v16, %v14440_v29  ;;  %v3288_v52 = vmul.f32 %v14444_v42, %v14443_v10  ;;  %v6470_v9 = vrot.slane %v6444_v56, 2  ;;  %v3289_v24 = vmul.f32 %v14445_v40, %v14443_v10  ;;  %14451 = vst [vmem:[#allocation137_spill] sm:$0xff] %v12530_v12  ;;  %v14455_v25 = vld [vmem:[#allocation207_spill] sm:$0xff]  ;;  %v14458_v42 = vld [vmem:[#allocation86_spill] sm:$0xff]  ;;  %v14487_v59 = vld [vmem:[#allocation49_spill] sm:$0xff] }
 0x8a6   : > { %v5776_v1 = vadd.f32 %v5768_v5, %v5492_v61  ;;  %v12519_v20 = vpop.permute.xlu1 %5305  ;;  %v12525_v14 = vmul.f32 %v14449_v38, %v14448_v54  ;;  %v5775_v13 = vadd.f32 %v5767_v22, %v5491_v49  ;;  %v6335_v56 = vmul.f32 %v12530_v12, %v14452_v18  ;;  %v14459_v49 = vld [vmem:[#allocation172_spill] sm:$0xff]  ;;  %v14464_v18 = vld [vmem:[#allocation46_spill] sm:$0xff] }
 0x8a7   : > { %14446 = vst [vmem:[#allocation124_spill] sm:$0xff] %v12519_v20  ;;  %v12521_v15 = vpop.permute.xlu0 %5511  ;;  %v12535_v5 = vadd.f32 %v3091_v32, %v14453_v41  ;;  %v12538_v61 = vadd.f32 %v3089_v23, %v14455_v25  ;;  %v12541_v60 = vsel %vm3344_vm14, %v6366_v62, %v6367_v51  ;;  %v12545_v22 = vmul.f32 %v14459_v49, %v14458_v42  ;;  %v14462_v62 = vld [vmem:[#allocation171_spill] sm:$0xff]  ;;  %v14463_v38 = vld [vmem:[#allocation88_spill] sm:$0xff] }
 0x8a8   : > { %14447 = vst [vmem:[#allocation106_spill] sm:$0xff] %v12521_v15  ;;  %14450 = vst [vmem:[#allocation109_spill] sm:$0xff] %v12525_v14  ;;  %v6060_v16 = vadd.f32 %v6052_v37, %v5776_v1  ;;  %4335 = vrot.lane.b32.xlu1 %v12046_v57, %s7895_s18  ;;  %v6059_v40 = vadd.f32 %v6051_v36, %v5775_v13  ;;  %v12552_v32 = vsel %vm3344_vm14, %v6367_v51, %v6369_v63  ;;  %v14469_v51 = vld [vmem:[#allocation175_spill] sm:$0xff]  ;;  %v14472_v13 = vld [vmem:[#allocation90_spill] sm:$0xff] }
 0x8a9   : > { %14454 = vst [vmem:[#allocation117_spill] sm:$0xff] %v12535_v5  ;;  %14456 = vst [vmem:[#allocation138_spill] sm:$0xff] %v12538_v61  ;;  %4333 = vrot.lane.b32.xlu0 %v12049_v8, %s7895_s18  ;;  %v3306_v23 = vrot.slane %v3288_v52, 5  ;;  %v12555_v54 = vsel %vm3409_vm15, %v6471_v50, %v6473_v58  ;;  %v6336_v37 = vmul.f32 %v12530_v12, %v14462_v62  ;;  %v3307_v1 = vrot.slane %v3289_v24, 5  ;;  %v14470_v52 = vld [vmem:[#allocation81_spill] sm:$0xff]  ;;  %v14486_v12 = vld [vmem:[#allocation174_spill] sm:$0xff] }
 0x8aa   : > { %14457 = vst [vmem:[#allocation107_spill] sm:$0xff] %v12541_v60  ;;  %14460 = vst [vmem:[#allocation70_spill] sm:$0xff] %v12552_v32  ;;  %v12561_v41 = vmul.f32 %v14464_v18, %v14463_v38  ;;  %v12563_v25 = vpop.permute.xlu1 %5953  ;;  %v12568_v36 = vsel %vm3409_vm15, %v6470_v9, %v6471_v50  ;;  %v12570_v63 = vadd.f32 %v6335_v56, %v6059_v40  ;;  %v14473_v62 = vld [vmem:[#allocation45_spill] sm:$0xff]  ;;  %v14475_v50 = vld [vmem:[#allocation176_spill] sm:$0xff] }
 0x8ab   : > { %14461 = vst [vmem:[#allocation110_spill] sm:$0xff] %v12555_v54  ;;  %14465 = vst [vmem:[#allocation140_spill] sm:$0xff] %v12563_v25  ;;  %v12565_v49 = vpop.permute.xlu0 %5591  ;;  %v12574_v58 = vmul.f32 %v14469_v51, %v14463_v38  ;;  %v12578_v24 = vmul.f32 %v14470_v52, %v14458_v42  ;;  %v12582_v18 = vmul.f32 %v14473_v62, %v14472_v13  ;;  %v14476_v56 = vld [vmem:[#allocation89_spill] sm:$0xff]  ;;  %v14477_v40 = vld [vmem:[#allocation44_spill] sm:$0xff] }
 0x8ac   : > { %14466 = vst [vmem:[#allocation133_spill] sm:$0xff] %v12565_v49  ;;  %14467 = vst [vmem:[#allocation136_spill] sm:$0xff] %v12568_v36  ;;  %v12584_v54 = vadd.f32 %v6336_v37, %v6060_v16  ;;  %v12589_v9 = vmul.f32 %v14475_v50, %v14472_v13  ;;  %v12593_v51 = vmul.f32 %v14477_v40, %v14476_v56  ;;  %4459 = vrot.lane.b32.xlu1 %v11955_v48, %s7899_s23  ;;  %v14479_v52 = vld [vmem:[#allocation182_spill] sm:$0xff]  ;;  %v14480_v16 = vld [vmem:[#allocation96_spill] sm:$0xff] }
 0x8ad   : > { %14468 = vst [vmem:[#allocation68_spill] sm:$0xff] %v12570_v63  ;;  %14471 = vst [vmem:[#allocation71_spill] sm:$0xff] %v12578_v24  ;;  %4457 = vrot.lane.b32.xlu0 %v11985_v34, %s7899_s23  ;;  %v12600_v62 = vadd.f32 %v3306_v23, %v14479_v52  ;;  %v14481_v37 = vld [vmem:[#allocation181_spill] sm:$0xff]  ;;  %v14484_v60 = vld [vmem:[#allocation194_spill] sm:$0xff]  ;;  %v3308_v61 = vsel %vm2900_vm13, %v3306_v23, %v3307_v1  ;;  %v12615_v5 = vmul.f32 %v14487_v59, %v14476_v56 }
 0x8ae   : > { %14474 = vst [vmem:[#allocation50_spill] sm:$0xff] %v12584_v54  ;;  %14478 = vst [vmem:[#allocation52_spill] sm:$0xff] %v12593_v51  ;;  %v3458_v32 = vmul.f32 %v14481_v37, %v14480_v16  ;;  %v14482_v36 = vld [vmem:[#allocation97_spill] sm:$0xff]  ;;  %v14485_v40 = vld [vmem:[#allocation87_spill] sm:$0xff]  ;;  %v12618_v3 = vpop.permute.xlu1 %5509  ;;  %v12629_v59 = vadd.f32 %v3307_v1, %v14492_v53  ;;  %v14496_v53 = vrot.slane %v12561_v41, 6 }
 0x8af   : > { %v14483_v54 = vld [vmem:[#allocation185_spill] sm:$0xff]  ;;  %v3561_v63 = vmul.f32 %v14484_v60, %v14482_v36  ;;  %v12610_v29 = vmul.f32 %v14486_v12, %v14485_v40  ;;  %14488 = vst [vmem:[#allocation51_spill] sm:$0xff] %v12615_v5  ;;  %14489 = vst [vmem:[#allocation142_spill] sm:$0xff] %v12618_v3  ;;  %v12620_v37 = vpop.permute.xlu0 %6237  ;;  %v14493_v13 = vld [vmem:[#allocation95_spill] sm:$0xff] }
 0x8b0   : > { %v3560_v50 = vmul.f32 %v14483_v54, %v14482_v36  ;;  %14490 = vst [vmem:[#allocation144_spill] sm:$0xff] %v12620_v37  ;;  %v3923_v54 = vrot.slane %v12574_v58, 6  ;;  %v14491_v12 = vld [vmem:[#allocation189_spill] sm:$0xff]  ;;  %v14494_v14 = vld [vmem:[#allocation47_spill] sm:$0xff]  ;;  %4539 = vrot.lane.b32.xlu1 %v11988_v45, %s7899_s23  ;;  %v3477_v60 = vrot.slane %v3458_v32, 7  ;;  %v14497_v52 = vld [vmem:[#allocation184_spill] sm:$0xff] }
 0x8b1   : > { %v3459_v46 = vmul.f32 %v14491_v12, %v14480_v16  ;;  %v3393_v56 = vmul.f32 %v14494_v14, %v14493_v13  ;;  %4537 = vrot.lane.b32.xlu0 %v11996_v27, %s7899_s23  ;;  %v14495_v58 = vld [vmem:[#allocation55_spill] sm:$0xff]  ;;  %v3580_v16 = vrot.slane %v3561_v63, 6  ;;  %v3394_v14 = vmul.f32 %v14497_v52, %v14493_v13  ;;  %v14498_v38 = vld [vmem:[#allocation98_spill] sm:$0xff]  ;;  %v14512_v49 = vld [vmem:[#allocation180_spill] sm:$0xff] }
 0x8b2   : > { %v3331_v36 = vadd.f32 %v3308_v61, %v14495_v58  ;;  %v3579_v12 = vrot.slane %v3560_v50, 6  ;;  %v3925_v1 = vsel %vm3572_vm1, %v3923_v54, %v14496_v53  ;;  %v14499_v37 = vld [vmem:[#allocation190_spill] sm:$0xff]  ;;  %v12647_v10 = vpop.permute.xlu1 %5589  ;;  %v14502_v61 = vrot.slane %v12578_v24, 5 }
 0x8b3   : > { %v3661_v3 = vmul.f32 %v14499_v37, %v14498_v38  ;;  %14500 = vst [vmem:[#allocation143_spill] sm:$0xff] %v12647_v10  ;;  %v12649_v42 = vpop.permute.xlu0 %5181  ;;  %v14503_v32 = vrot.slane %v12545_v22, 5  ;;  %v14505_v50 = vrot.slane %v12582_v18, 7  ;;  %v14506_v58 = vrot.slane %v12589_v9, 7  ;;  %v14507_v37 = vld [vmem:[#allocation198_spill] sm:$0xff] }
 0x8b4   : > { %14501 = vst [vmem:[#allocation145_spill] sm:$0xff] %v12649_v42  ;;  %v3478_v53 = vrot.slane %v3459_v46, 7  ;;  %v3662_v23 = vmul.f32 %v14507_v37, %v14498_v38  ;;  %v14508_v13 = vrot.slane %v12593_v51, 6  ;;  %v14509_v42 = vrot.slane %v12615_v5, 6  ;;  %4821 = vrot.lane.b32.xlu1 %v12049_v8, %s7899_s23  ;;  %v14513_v46 = vld [vmem:[#allocation187_spill] sm:$0xff]  ;;  %v14520_v15 = vld [vmem:[#allocation210_spill] sm:$0xff] }
 0x8b5   : > { %v12656_v63 = vsel %vm2900_vm13, %v14503_v32, %v14502_v61  ;;  %v12663_v52 = vsel %vm3470_vm2, %v14506_v58, %v14505_v50  ;;  %v14511_v61 = vld [vmem:[#allocation186_spill] sm:$0xff]  ;;  %v12677_v25 = vmul.f32 %v14512_v49, %v14485_v40  ;;  %4617 = vrot.lane.b32.xlu0 %v12007_v35, %s7899_s23  ;;  %v3501_v50 = vadd.f32 %v3477_v60, %v14513_v46  ;;  %v14514_v58 = vld [vmem:[#allocation191_spill] sm:$0xff]  ;;  %v14518_v49 = vld [vmem:[#allocation100_spill] sm:$0xff] }
 0x8b6   : > { %14504 = vst [vmem:[#allocation148_spill] sm:$0xff] %v12656_v63  ;;  %v12672_v10 = vsel %vm3572_vm1, %v14509_v42, %v14508_v13  ;;  %v3401_v32 = vadd.f32 %v3393_v56, %v14511_v61  ;;  %v3603_v37 = vadd.f32 %v3579_v12, %v14514_v58  ;;  %v3581_v38 = vsel %vm3572_vm1, %v3579_v12, %v3580_v16  ;;  %v14515_v42 = vld [vmem:[#allocation104_spill] sm:$0xff]  ;;  %v14516_v13 = vld [vmem:[#allocation199_spill] sm:$0xff]  ;;  %v12693_v20 = vpop.permute.xlu1 %6239  ;;  %v14523_v12 = vld [vmem:[#allocation105_spill] sm:$0xff] }
 0x8b7   : > { %14510 = vst [vmem:[#allocation146_spill] sm:$0xff] %v12672_v10  ;;  %v3825_v10 = vmul.f32 %v14516_v13, %v14515_v42  ;;  %v14517_v56 = vld [vmem:[#allocation188_spill] sm:$0xff]  ;;  %v3679_v5 = vrot.slane %v3661_v3, 5  ;;  %v14519_v40 = vld [vmem:[#allocation195_spill] sm:$0xff]  ;;  %v3826_v7 = vmul.f32 %v14520_v15, %v14515_v42  ;;  %14521 = vst [vmem:[#allocation150_spill] sm:$0xff] %v12693_v20  ;;  %v12695_v17 = vpop.permute.xlu0 %5793  ;;  %v3479_v46 = vsel %vm3470_vm2, %v3477_v60, %v3478_v53 }
 0x8b8   : > { %v3402_v61 = vadd.f32 %v3394_v14, %v14517_v56  ;;  %v3761_v51 = vmul.f32 %v14519_v40, %v14518_v49  ;;  %14522 = vst [vmem:[#allocation147_spill] sm:$0xff] %v12695_v17  ;;  %v3680_v58 = vrot.slane %v3662_v23, 5  ;;  %v3986_v44 = vmul.f32 %v14524_v47, %v14523_v12  ;;  %v14525_v13 = vld [vmem:[#allocation112_spill] sm:$0xff]  ;;  %v14526_v63 = vld [vmem:[#allocation91_spill] sm:$0xff]  ;;  %v14529_v24 = vld [vmem:[#allocation58_spill] sm:$0xff]  ;;  %5107 = vrot.lane.b32.xlu1 %v12004_v26, %s7894_s17 }
 0x8b9   : > { %v4109_v14 = vmul.f32 %v14526_v63, %v14525_v13  ;;  %v14527_v3 = vld [vmem:[#allocation196_spill] sm:$0xff]  ;;  %v3605_v40 = vadd.f32 %v3580_v16, %v14528_v21  ;;  %v4110_v15 = vmul.f32 %v14529_v24, %v14525_v13  ;;  %4823 = vrot.lane.b32.xlu0 %v12046_v57, %s7899_s23  ;;  %v3843_v42 = vrot.slane %v3825_v10, 7  ;;  %v14531_v47 = vld [vmem:[#allocation206_spill] sm:$0xff]  ;;  %v14534_v57 = vld [vmem:[#allocation205_spill] sm:$0xff] }
 0x8ba   : > { %v3604_v56 = vadd.f32 %v3581_v38, %v14527_v3  ;;  %v14530_v60 = vld [vmem:[#allocation192_spill] sm:$0xff]  ;;  %v3985_v17 = vmul.f32 %v14531_v47, %v14523_v12  ;;  %v3947_v63 = vadd.f32 %v3923_v54, %v3603_v37  ;;  %v3703_v21 = vadd.f32 %v3679_v5, %v12600_v62  ;;  %v12715_v24 = vpop.permute.xlu1 %5795  ;;  %v14535_v47 = vld [vmem:[#allocation77_spill] sm:$0xff] }
 0x8bb   : > { %v3503_v23 = vadd.f32 %v3478_v53, %v14530_v60  ;;  %v14532_v20 = vld [vmem:[#allocation60_spill] sm:$0xff]  ;;  %v3769_v16 = vadd.f32 %v3761_v51, %v3401_v32  ;;  %v3844_v3 = vrot.slane %v3826_v7, 7  ;;  %v12717_v13 = vpop.permute.xlu0 %5465  ;;  %v3681_v26 = vsel %vm2900_vm13, %v3679_v5, %v3680_v58  ;;  %v14538_v32 = vld [vmem:[#allocation41_spill] sm:$0xff] }
 0x8bc   : > { %v3502_v38 = vadd.f32 %v3479_v46, %v14532_v20  ;;  %14533 = vst [vmem:[#allocation154_spill] sm:$0xff] %v12717_v13  ;;  %v3762_v53 = vmul.f32 %v14534_v57, %v14518_v49  ;;  %v4004_v10 = vrot.slane %v3986_v44, 5  ;;  %v4127_v60 = vrot.slane %v4109_v14, 7  ;;  %4663 = vrot.lane.b32.xlu1 %v12015_v0, %s7899_s23  ;;  %v14537_v57 = vld [vmem:[#allocation42_spill] sm:$0xff]  ;;  %v14541_v49 = vld [vmem:[#allocation121_spill] sm:$0xff] }
 0x8bd   : > { %v4189_v54 = vmul.f32 %v14535_v47, %v14333_v19  ;;  %v4128_v37 = vrot.slane %v4110_v15, 7  ;;  %v14536_v20 = vrot.slane %v12561_v41, 6  ;;  %v3948_v51 = vadd.f32 %v3925_v1, %v3604_v56  ;;  %5105 = vrot.lane.b32.xlu0 %v12007_v35, %s7894_s17  ;;  %v14539_v1 = vld [vmem:[#allocation111_spill] sm:$0xff] }
 0x8be   : > { %v3867_v7 = vadd.f32 %v3843_v42, %v3501_v50  ;;  %v4003_v5 = vrot.slane %v3985_v17, 5  ;;  %v4269_v44 = vmul.f32 %v14537_v57, %v14335_v31  ;;  %v4190_v46 = vmul.f32 %v14538_v32, %v14333_v19  ;;  %v14540_v56 = vld [vmem:[#allocation211_spill] sm:$0xff]  ;;  %v12738_v47 = vpop.permute.xlu1 %6079 }
 0x8bf   : > { %v3949_v62 = vadd.f32 %v14536_v20, %v3605_v40  ;;  %v3704_v14 = vadd.f32 %v3681_v26, %v3331_v36  ;;  %v3705_v15 = vadd.f32 %v3680_v58, %v12629_v59  ;;  %v3845_v41 = vsel %vm3470_vm2, %v3843_v42, %v3844_v3  ;;  %v12740_v20 = vpop.permute.xlu0 %6077 }
 0x8c0   : > { %v4065_v40 = vmul.f32 %v14540_v56, %v14539_v1  ;;  %v3770_v50 = vadd.f32 %v3762_v53, %v3402_v61  ;;  %v3869_v17 = vadd.f32 %v3844_v3, %v3503_v23  ;;  %v4005_v12 = vsel %vm2900_vm13, %v4003_v5, %v4004_v10  ;;  %4743 = vrot.lane.b32.xlu1 %v12021_v6, %s7899_s23 }
 0x8c1   : > { %v4151_v57 = vadd.f32 %v4127_v60, %v3867_v7  ;;  %v4066_v32 = vmul.f32 %v14541_v49, %v14539_v1  ;;  %v4207_v26 = vrot.slane %v4189_v54, 6  ;;  %v4129_v36 = vsel %vm3470_vm2, %v4127_v60, %v4128_v37  ;;  %4661 = vrot.lane.b32.xlu0 %v12018_v4, %s7899_s23  ;;  %v14542_v49 = vld [vmem:[#allocation79_spill] sm:$0xff] }
 0x8c2   : > { %v4270_v59 = vmul.f32 %v12254_v39, %v14335_v31  ;;  %v3868_v42 = vadd.f32 %v3845_v41, %v3502_v38  ;;  %v4153_v61 = vadd.f32 %v4128_v37, %v3869_v17  ;;  %v4287_v58 = vrot.slane %v4269_v44, 5  ;;  %v14543_v7 = vld [vmem:[#allocation119_spill] sm:$0xff]  ;;  %v12756_v19 = vpop.permute.xlu1 %6159  ;;  %v14548_v41 = vld [vmem:[#allocation118_spill] sm:$0xff]  ;;  %v14550_v17 = vld [vmem:[#allocation84_spill] sm:$0xff] }
 0x8c3   : > { %v4208_v23 = vrot.slane %v4190_v46, 6  ;;  %v4027_v3 = vadd.f32 %v4003_v5, %v3703_v21  ;;  %v4073_v53 = vadd.f32 %v4065_v40, %v3769_v16  ;;  %v4349_v54 = vmul.f32 %v14542_v49, %v14345_v43  ;;  %v14544_v60 = vld [vmem:[#allocation179_spill] sm:$0xff]  ;;  %v12758_v39 = vpop.permute.xlu0 %6157  ;;  %v14546_v46 = vld [vmem:[#allocation122_spill] sm:$0xff]  ;;  %v14549_v40 = vld [vmem:[#allocation80_spill] sm:$0xff] }
 0x8c4   : > { %v4553_v56 = vmul.f32 %v14544_v60, %v14543_v7  ;;  %v4028_v31 = vadd.f32 %v4005_v12, %v3704_v14  ;;  %v4029_v1 = vadd.f32 %v4004_v10, %v3705_v15  ;;  %v4152_v13 = vadd.f32 %v4129_v36, %v3868_v42  ;;  %4947 = vrot.lane.b32.xlu1 %v11955_v48, %s7894_s17  ;;  %v14551_v42 = vld [vmem:[#allocation123_spill] sm:$0xff]  ;;  %v14553_v49 = vld [vmem:[#allocation76_spill] sm:$0xff] }
 0x8c5   : > { %v4554_v38 = vmul.f32 %v12325_v28, %v14543_v7  ;;  %v4074_v37 = vadd.f32 %v4066_v32, %v3770_v50  ;;  %v12762_v44 = vadd.f32 %v4207_v26, %v3947_v63  ;;  %v4288_v21 = vrot.slane %v4270_v59, 5  ;;  %4741 = vrot.lane.b32.xlu0 %v12027_v11, %s7899_s23  ;;  %v14563_v7 = vld [vmem:[#allocation99_spill] sm:$0xff] }
 0x8c6   : > { %v14545_v16 = vrot.slane %v12589_v9, 7  ;;  %v4311_v12 = vadd.f32 %v4287_v58, %v4027_v3  ;;  %v4209_v10 = vsel %vm3572_vm1, %v4207_v26, %v4208_v23  ;;  %v4837_v28 = vmul.f32 %v12370_v55, %v14546_v46  ;;  %v12783_v32 = vpop.permute.xlu1 %5749  ;;  %v14552_v55 = vld [vmem:[#allocation85_spill] sm:$0xff] }
 0x8c7   : > { %v14547_v63 = vrot.slane %v12582_v18, 7  ;;  %v4357_v15 = vadd.f32 %v4349_v54, %v4073_v53  ;;  %v4571_v9 = vrot.slane %v4553_v56, 5  ;;  %v4474_v50 = vmul.f32 %v14549_v40, %v14548_v41  ;;  %v12785_v36 = vpop.permute.xlu0 %5183  ;;  %v14555_v56 = vld [vmem:[#allocation78_spill] sm:$0xff] }
 0x8c8   : > { %v12766_v5 = vadd.f32 %v14545_v16, %v4151_v57  ;;  %v4838_v57 = vmul.f32 %v14550_v17, %v14546_v46  ;;  %v4233_v26 = vadd.f32 %v4208_v23, %v3949_v62  ;;  %v4572_v59 = vrot.slane %v4554_v38, 5  ;;  %5027 = vrot.lane.b32.xlu1 %v11988_v45, %s7894_s17  ;;  %v14554_v23 = vld [vmem:[#allocation178_spill] sm:$0xff]  ;;  %v14557_v16 = vld [vmem:[#allocation101_spill] sm:$0xff] }
 0x8c9   : > { %v12777_v14 = vadd.f32 %v14547_v63, %v4153_v61  ;;  %v5122_v3 = vmul.f32 %v14552_v55, %v14551_v42  ;;  %v12790_v18 = vadd.f32 %v12663_v52, %v4152_v13  ;;  %v4232_v61 = vadd.f32 %v4209_v10, %v3948_v51  ;;  %4945 = vrot.lane.b32.xlu0 %v11985_v34, %s7894_s17 }
 0x8ca   : > { %v4289_v53 = vsel %vm2900_vm13, %v4287_v58, %v4288_v21  ;;  %v4473_v54 = vmul.f32 %v14553_v49, %v14548_v41  ;;  %v4313_v62 = vadd.f32 %v4288_v21, %v4029_v1  ;;  %v4350_v60 = vmul.f32 %v14554_v23, %v14345_v43  ;;  %v14556_v58 = vld [vmem:[#allocation120_spill] sm:$0xff]  ;;  %v12805_v40 = vpop.permute.xlu1 %6033  ;;  %v14559_v21 = vld [vmem:[#allocation57_spill] sm:$0xff] }
 0x8cb   : > { %v5121_v52 = vmul.f32 %v14555_v56, %v14551_v42  ;;  %v4855_v13 = vrot.slane %v4837_v28, 5  ;;  %v4595_v51 = vadd.f32 %v4571_v9, %v4311_v12  ;;  %v4492_v38 = vrot.slane %v4474_v50, 6  ;;  %14558 = vst [vmem:[#allocation156_spill] sm:$0xff] %v12805_v40  ;;  %v12807_v17 = vpop.permute.xlu0 %5467  ;;  %v14560_v28 = vld [vmem:[#allocation125_spill] sm:$0xff]  ;;  %v14561_v12 = vld [vmem:[#allocation83_spill] sm:$0xff]  ;;  %v14562_v42 = vld [vmem:[#allocation126_spill] sm:$0xff] }
 0x8cc   : > { %v4633_v10 = vmul.f32 %v14557_v16, %v14556_v58  ;;  %v4856_v63 = vrot.slane %v4838_v57, 5  ;;  %v4573_v55 = vsel %vm2900_vm13, %v4571_v9, %v4572_v59  ;;  %v4597_v1 = vadd.f32 %v4572_v59, %v4313_v62  ;;  %5675 = vrot.lane.b32.xlu1 %v12015_v0, %s7897_s16  ;;  %v14567_v40 = vld [vmem:[#allocation127_spill] sm:$0xff] }
 0x8cd   : > { %v4634_v49 = vmul.f32 %v14559_v21, %v14556_v58  ;;  %v5140_v23 = vrot.slane %v5122_v3, 5  ;;  %v4312_v46 = vadd.f32 %v4289_v53, %v4028_v31  ;;  %v4491_v56 = vrot.slane %v4473_v54, 6  ;;  %5025 = vrot.lane.b32.xlu0 %v11996_v27, %s7894_s17  ;;  %v14564_v54 = vld [vmem:[#allocation75_spill] sm:$0xff] }
 0x8ce   : > { %v4677_v50 = vmul.f32 %v14561_v12, %v14560_v28  ;;  %v4757_v16 = vmul.f32 %v14563_v7, %v14562_v42  ;;  %v4358_v9 = vadd.f32 %v4350_v60, %v4074_v37  ;;  %v5139_v57 = vrot.slane %v5121_v52, 5  ;;  %v12824_v12 = vpop.permute.xlu1 %6317  ;;  %v14566_v37 = vld [vmem:[#allocation82_spill] sm:$0xff] }
 0x8cf   : > { %v4857_v59 = vsel %vm2900_vm13, %v4855_v13, %v4856_v63  ;;  %v4879_v62 = vadd.f32 %v4855_v13, %v4595_v51  ;;  %v4493_v31 = vsel %vm3572_vm1, %v4491_v56, %v4492_v38  ;;  %v4641_v3 = vadd.f32 %v4633_v10, %v4357_v15  ;;  %14565 = vst [vmem:[#allocation151_spill] sm:$0xff] %v12824_v12  ;;  %v12826_v7 = vpop.permute.xlu0 %5751  ;;  %v14568_v15 = vld [vmem:[#allocation102_spill] sm:$0xff] }
 0x8d0   : > { %v4596_v53 = vadd.f32 %v4573_v55, %v4312_v46  ;;  %v4678_v21 = vmul.f32 %v14564_v54, %v14560_v28  ;;  %v4881_v58 = vadd.f32 %v4856_v63, %v4597_v1  ;;  %v4642_v41 = vadd.f32 %v4634_v49, %v4358_v9  ;;  %5229 = vrot.lane.b32.xlu1 %v12027_v11, %s7894_s17  ;;  %v14589_v12 = vld [vmem:[#allocation106_spill] sm:$0xff] }
 0x8d1   : > { %v5141_v43 = vsel %vm2900_vm13, %v5139_v57, %v5140_v23  ;;  %v4758_v60 = vmul.f32 %v14566_v37, %v14562_v42  ;;  %v4695_v13 = vrot.slane %v4677_v50, 7  ;;  %v4775_v51 = vrot.slane %v4757_v16, 6  ;;  %5673 = vrot.lane.b32.xlu0 %v12018_v4, %s7897_s16  ;;  %v14570_v37 = vld [vmem:[#allocation128_spill] sm:$0xff] }
 0x8d2   : > { %v4880_v52 = vadd.f32 %v4857_v59, %v4596_v53  ;;  %v4961_v46 = vmul.f32 %v14568_v15, %v14567_v40  ;;  %v4515_v10 = vadd.f32 %v4491_v56, %v12762_v44  ;;  %v4517_v63 = vadd.f32 %v4492_v38, %v4233_v26  ;;  %v12840_v16 = vpop.permute.xlu1 %6319  ;;  %v14576_v56 = vld [vmem:[#allocation92_spill] sm:$0xff] }
 0x8d3   : > { %v5163_v55 = vadd.f32 %v5139_v57, %v4879_v62  ;;  %v5165_v1 = vadd.f32 %v5140_v23, %v4881_v58  ;;  %v4516_v49 = vadd.f32 %v4493_v31, %v4232_v61  ;;  %v4696_v54 = vrot.slane %v4678_v21, 7  ;;  %14569 = vst [vmem:[#allocation153_spill] sm:$0xff] %v12840_v16  ;;  %v12842_v59 = vpop.permute.xlu0 %6035  ;;  %v14573_v58 = vld [vmem:[#allocation129_spill] sm:$0xff]  ;;  %v14588_v16 = vld [vmem:[#allocation134_spill] sm:$0xff] }
 0x8d4   : > { %v5164_v9 = vadd.f32 %v5141_v43, %v4880_v52  ;;  %v4962_v50 = vmul.f32 %v12449_v30, %v14567_v40  ;;  %v4776_v53 = vrot.slane %v4758_v60, 6  ;;  %v5042_v15 = vmul.f32 %v12462_v2, %v14570_v37  ;;  %v14571_v30 = vld [vmem:[#allocation103_spill] sm:$0xff]  ;;  %5309 = vrot.lane.b32.xlu1 %v12049_v8, %s7894_s17  ;;  %v14578_v60 = vld [vmem:[#allocation130_spill] sm:$0xff]  ;;  %v14579_v52 = vld [vmem:[#allocation93_spill] sm:$0xff] }
 0x8d5   : > { %v12847_v42 = vadd.f32 %v12610_v29, %v4641_v3  ;;  %v12850_v44 = vadd.f32 %v12677_v25, %v4642_v41  ;;  %v4719_v43 = vadd.f32 %v4695_v13, %v12766_v5  ;;  %v4799_v26 = vadd.f32 %v4775_v51, %v4515_v10  ;;  %5231 = vrot.lane.b32.xlu0 %v12021_v6, %s7894_s17  ;;  %v14574_v41 = vld [vmem:[#allocation71_spill] sm:$0xff]  ;;  %v14577_v3 = vld [vmem:[#allocation148_spill] sm:$0xff] }
 0x8d6   : > { %v4979_v61 = vrot.slane %v4961_v46, 7  ;;  %v5041_v38 = vmul.f32 %v14571_v30, %v14570_v37  ;;  %v14572_v2 = vrot.slane %v12545_v22, 5  ;;  %v5689_v25 = vmul.f32 %v12451_v33, %v14573_v58  ;;  %v5390_v10 = vpop.permute.xlu1 %5389  ;;  %v14580_v33 = vld [vmem:[#allocation116_spill] sm:$0xff] }
 0x8d7   : > { %v14575_v23 = vrot.slane %v14574_v41, 5  ;;  %v5690_v57 = vmul.f32 %v14576_v56, %v14573_v58  ;;  %v4697_v62 = vsel %vm3470_vm2, %v4695_v13, %v4696_v54  ;;  %v4980_v31 = vrot.slane %v4962_v50, 7  ;;  %v3273_v22 = vpop.permute.xlu0 %3272  ;;  %v14582_v41 = vld [vmem:[#allocation73_spill] sm:$0xff]  ;;  %v14586_v40 = vld [vmem:[#allocation108_spill] sm:$0xff] }
 0x8d8   : > { %v5447_v29 = vadd.f32 %v14572_v2, %v5163_v55  ;;  %v5448_v21 = vadd.f32 %v14577_v3, %v5164_v9  ;;  %v5245_v46 = vmul.f32 %v14579_v52, %v14578_v60  ;;  %v4777_v55 = vsel %vm3572_vm1, %v4775_v51, %v4776_v53  ;;  %v14583_v9 = vld [vmem:[#allocation124_spill] sm:$0xff]  ;;  %5957 = vrot.lane.b32.xlu1 %v11985_v34, %s7898_s22  ;;  %v14584_v52 = vld [vmem:[#allocation202_spill] sm:$0xff] }
 0x8d9   : > { %v5449_v5 = vadd.f32 %v14575_v23, %v5165_v1  ;;  %v5060_v30 = vrot.slane %v5042_v15, 6  ;;  %v5246_v2 = vmul.f32 %v14580_v33, %v14578_v60  ;;  %v14581_v1 = vld [vmem:[#allocation131_spill] sm:$0xff]  ;;  %v4721_v56 = vadd.f32 %v4696_v54, %v12777_v14  ;;  %5311 = vrot.lane.b32.xlu0 %v14584_v52, %s7894_s17  ;;  %v14585_v60 = vld [vmem:[#allocation132_spill] sm:$0xff] }
 0x8da   : > { %v5326_v23 = vmul.f32 %v14582_v41, %v14581_v1  ;;  %v5003_v13 = vadd.f32 %v4979_v61, %v4719_v43  ;;  %v5059_v50 = vrot.slane %v5041_v38, 6  ;;  %v5325_v3 = vmul.f32 %v14583_v9, %v14581_v1  ;;  %v12887_v38 = vpop.permute.xlu1 %4901 }
 0x8db   : > { %v4720_v51 = vadd.f32 %v4697_v62, %v12790_v18  ;;  %v5707_v15 = vrot.slane %v5689_v25, 5  ;;  %v5708_v33 = vrot.slane %v5690_v57, 5  ;;  %v5974_v41 = vmul.f32 %v14586_v40, %v14585_v60  ;;  %14587 = vst [vmem:[#allocation149_spill] sm:$0xff] %v12887_v38  ;;  %v3890_v9 = vpop.permute.xlu0 %3889  ;;  %v14590_v40 = vld [vmem:[#allocation140_spill] sm:$0xff] }
 0x8dc   : > { %v4800_v58 = vadd.f32 %v4777_v55, %v4516_v49  ;;  %v4801_v14 = vadd.f32 %v4776_v53, %v4517_v63  ;;  %v4981_v54 = vsel %vm3470_vm2, %v4979_v61, %v4980_v31  ;;  %v5263_v43 = vrot.slane %v5245_v46, 7  ;;  %5513 = vrot.lane.b32.xlu1 %v11996_v27, %s7897_s16 }
 0x8dd   : > { %v5061_v1 = vsel %vm3572_vm1, %v5059_v50, %v5060_v30  ;;  %v5264_v37 = vrot.slane %v5246_v2, 7  ;;  %v5344_v28 = vrot.slane %v5326_v23, 6  ;;  %v12892_v18 = vmul.f32 %v14589_v12, %v14588_v16  ;;  %5959 = vrot.lane.b32.xlu0 %v11955_v48, %s7898_s22  ;;  %v14592_v2 = vld [vmem:[#allocation133_spill] sm:$0xff] }
 0x8de   : > { %v5083_v25 = vadd.f32 %v5059_v50, %v4799_v26  ;;  %v5005_v57 = vadd.f32 %v4980_v31, %v4721_v56  ;;  %v5343_v62 = vrot.slane %v5325_v3, 6  ;;  %v5973_v63 = vmul.f32 %v14590_v40, %v14585_v60  ;;  %v14591_v31 = vld [vmem:[#allocation135_spill] sm:$0xff]  ;;  %v5878_v56 = vpop.permute.xlu1 %5877 }
 0x8df   : > { %v5731_v49 = vadd.f32 %v5707_v15, %v5447_v29  ;;  %v5085_v53 = vadd.f32 %v5060_v30, %v4801_v14  ;;  %v5709_v61 = vsel %vm2900_vm13, %v5707_v15, %v5708_v33  ;;  %v5992_v46 = vrot.slane %v5974_v41, 5  ;;  %v4378_v50 = vpop.permute.xlu0 %4377  ;;  %v14593_v41 = vld [vmem:[#allocation86_spill] sm:$0xff] }
 0x8e0   : > { %v5004_v55 = vadd.f32 %v4981_v54, %v4720_v51  ;;  %v5084_v12 = vadd.f32 %v5061_v1, %v4800_v58  ;;  %v5265_v26 = vsel %vm3470_vm2, %v5263_v43, %v5264_v37  ;;  %v12904_v23 = vmul.f32 %v14592_v2, %v14591_v31  ;;  %5593 = vrot.lane.b32.xlu1 %v12007_v35, %s7897_s16  ;;  %v14595_v1 = vld [vmem:[#allocation40_spill] sm:$0xff]  ;;  %v14597_v54 = vld [vmem:[#allocation139_spill] sm:$0xff] }
 0x8e1   : > { %v5289_v3 = vadd.f32 %v5264_v37, %v5005_v57  ;;  %v5733_v40 = vadd.f32 %v5708_v33, %v5449_v5  ;;  %v5369_v60 = vadd.f32 %v5344_v28, %v5085_v53  ;;  %v5548_v38 = vrot.slane %v12892_v18, 7  ;;  %5515 = vrot.lane.b32.xlu0 %v11988_v45, %s7897_s16  ;;  %v14598_v18 = vld [vmem:[#allocation150_spill] sm:$0xff] }
 0x8e2   : > { %v5732_v29 = vadd.f32 %v5709_v61, %v5448_v21  ;;  %v5345_v30 = vsel %vm3572_vm1, %v5343_v62, %v5344_v28  ;;  %v5991_v15 = vrot.slane %v5973_v63, 5  ;;  %v12909_v51 = vmul.f32 %v5390_v10, %v14593_v41  ;;  %v14596_v10 = vld [vmem:[#allocation142_spill] sm:$0xff]  ;;  %v3275_v63 = vpop.permute.xlu1 %3274 }
 0x8e3   : > { %v12915_v58 = vadd.f32 %v5263_v43, %v5003_v13  ;;  %v12917_v37 = vadd.f32 %v5265_v26, %v5004_v55  ;;  %v6017_v5 = vadd.f32 %v5992_v46, %v5733_v40  ;;  %v12920_v33 = vmul.f32 %v3273_v22, %v14595_v1  ;;  %v5392_v53 = vpop.permute.xlu0 %5391  ;;  %v14601_v26 = vld [vmem:[#allocation143_spill] sm:$0xff]  ;;  %v14603_v40 = vld [vmem:[#allocation88_spill] sm:$0xff] }
 0x8e4   : > { %14594 = vst [vmem:[#allocation152_spill] sm:$0xff] %v12909_v51  ;;  %v5367_v21 = vadd.f32 %v5343_v62, %v5083_v25  ;;  %v5628_v28 = vrot.slane %v12904_v23, 6  ;;  %v12925_v14 = vmul.f32 %v14596_v10, %v14588_v16  ;;  %v6258_v57 = vmul.f32 %v14598_v18, %v14597_v54  ;;  %v14600_v62 = vld [vmem:[#allocation144_spill] sm:$0xff]  ;;  %6243 = vrot.lane.b32.xlu1 %v12021_v6, %s7898_s22  ;;  %v14606_v16 = vld [vmem:[#allocation109_spill] sm:$0xff] }
 0x8e5   : > { %v5368_v13 = vadd.f32 %v5345_v30, %v5084_v12  ;;  %v12929_v43 = vadd.f32 %v5548_v38, %v5289_v3  ;;  %v3291_v61 = vmul.f32 %v3275_v63, %v14595_v1  ;;  %v12933_v22 = vmul.f32 %v5392_v53, %v14593_v41  ;;  %v14602_v12 = vld [vmem:[#allocation197_spill] sm:$0xff] }
 0x8e6   : > { %v5993_v25 = vsel %vm2900_vm13, %v5991_v15, %v5992_v46  ;;  %v6257_v55 = vmul.f32 %v14600_v62, %v14597_v54  ;;  %v5609_v2 = vmul.f32 %v14601_v26, %v14591_v31  ;;  %5595 = vrot.lane.b32.xlu0 %v14602_v12, %s7897_s16  ;;  %v13862_v3 = vrot.slane %v12920_v33, 5  ;;  %v14604_v63 = vld [vmem:[#allocation89_spill] sm:$0xff]  ;;  %v3892_v62 = vpop.permute.xlu1 %3891 }
 0x8e7   : > { %14599 = vst [vmem:[#allocation162_spill] sm:$0xff] %v12933_v22  ;;  %v12947_v30 = vmul.f32 %v3890_v9, %v14603_v40  ;;  %v3310_v46 = vrot.slane %v3291_v61, 5  ;;  %v13861_v41 = vrot.slane %v12933_v22, 5  ;;  %v5653_v1 = vadd.f32 %v5628_v28, %v5369_v60  ;;  %v5880_v26 = vpop.permute.xlu0 %5879 }
 0x8e8   : > { %v5547_v10 = vrot.slane %v12925_v14, 7  ;;  %v6276_v18 = vrot.slane %v6258_v57, 5  ;;  %v12952_v53 = vmul.f32 %v5878_v56, %v14604_v63  ;;  %v14607_v60 = vrot.slane %v12909_v51, 5  ;;  %5185 = vrot.lane.b32.xlu1 %v12018_v4, %s7894_s17  ;;  %v14623_v51 = vld [vmem:[#allocation67_spill] sm:$0xff] }
 0x8e9   : > { %v12957_v23 = vsel %vm2900_vm13, %v13862_v3, %v3310_v46  ;;  %v12960_v9 = vadd.f32 %v3310_v46, %v14606_v16  ;;  %v12970_v56 = vmul.f32 %v3892_v62, %v14603_v40  ;;  %v6015_v57 = vadd.f32 %v5991_v15, %v5731_v49  ;;  %v14611_v15 = vld [vmem:[#allocation52_spill] sm:$0xff] }
 0x8ea   : > { %14605 = vst [vmem:[#allocation163_spill] sm:$0xff] %v12952_v53  ;;  %v12967_v14 = vsel %vm2900_vm13, %v14607_v60, %v13861_v41  ;;  %v6275_v61 = vrot.slane %v6257_v55, 5  ;;  %v5627_v54 = vrot.slane %v5609_v2, 6  ;;  %v12973_v31 = vmul.f32 %v5880_v26, %v14604_v63  ;;  %6241 = vrot.lane.b32.xlu0 %v12027_v11, %s7898_s22  ;;  %v14610_v60 = vld [vmem:[#allocation90_spill] sm:$0xff]  ;;  %v4380_v26 = vpop.permute.xlu1 %4379  ;;  %v14615_v63 = vld [vmem:[#allocation147_spill] sm:$0xff] }
 0x8eb   : > { %14608 = vst [vmem:[#allocation158_spill] sm:$0xff] %v12967_v14  ;;  %v6016_v16 = vadd.f32 %v5993_v25, %v5732_v29  ;;  %v13863_v46 = vrot.slane %v12947_v30, 6  ;;  %v12981_v41 = vmul.f32 %v4378_v50, %v14610_v60  ;;  %v13864_v40 = vrot.slane %v12970_v56, 6  ;;  %v12991_v3 = vpop.permute.xlu0 %4903  ;;  %v14614_v25 = vld [vmem:[#allocation94_spill] sm:$0xff] }
 0x8ec   : > { %14609 = vst [vmem:[#allocation157_spill] sm:$0xff] %v12973_v31  ;;  %v6277_v49 = vsel %vm2900_vm13, %v6275_v61, %v6276_v18  ;;  %v14612_v55 = vrot.slane %v14611_v15, 6  ;;  %14613 = vst [vmem:[#allocation160_spill] sm:$0xff] %v12991_v3  ;;  %v5549_v29 = vsel %vm3470_vm2, %v5547_v10, %v5548_v38  ;;  %v5814_v50 = vmul.f32 %v12715_v24, %v14614_v25 }
 0x8ed   : > { %v13001_v15 = vsel %vm3572_vm1, %v13863_v46, %v13864_v40  ;;  %v5813_v62 = vmul.f32 %v14615_v63, %v14614_v25  ;;  %v14616_v38 = vrot.slane %v12973_v31, 6  ;;  %v14617_v3 = vrot.slane %v12952_v53, 6  ;;  %5797 = vrot.lane.b32.xlu1 %v12049_v8, %s7897_s16  ;;  %v14619_v40 = vld [vmem:[#allocation141_spill] sm:$0xff] }
 0x8ee   : > { %v12987_v2 = vadd.f32 %v14612_v55, %v5653_v1  ;;  %v13004_v1 = vmul.f32 %v4380_v26, %v14610_v60  ;;  %v5629_v55 = vsel %vm3572_vm1, %v5627_v54, %v5628_v28  ;;  %4619 = vrot.lane.b32.xlu0 %v14602_v12, %s7899_s23  ;;  %v13020_v60 = vadd.f32 %v6277_v49, %v6016_v16  ;;  %v14620_v25 = vld [vmem:[#allocation145_spill] sm:$0xff]  ;;  %v3380_v53 = vpop.permute.xlu1 %3379 }
 0x8ef   : > { %v13014_v24 = vsel %vm3572_vm1, %v14617_v3, %v14616_v38  ;;  %v13022_v26 = vadd.f32 %v6276_v18, %v6017_v5  ;;  %v13870_v28 = vrot.slane %v12981_v41, 7  ;;  %v5651_v46 = vadd.f32 %v5627_v54, %v5367_v21  ;;  %v14621_v3 = vld [vmem:[#allocation69_spill] sm:$0xff]  ;;  %v3378_v14 = vpop.permute.xlu0 %3377  ;;  %v14622_v21 = vld [vmem:[#allocation95_spill] sm:$0xff] }
 0x8f0   : > { %14618 = vst [vmem:[#allocation161_spill] sm:$0xff] %v13014_v24  ;;  %v13871_v63 = vrot.slane %v13004_v1, 7  ;;  %v5201_v31 = vmul.f32 %v14620_v25, %v14619_v40  ;;  %v6098_v38 = vmul.f32 %v12738_v47, %v14621_v3  ;;  %v6097_v24 = vmul.f32 %v12740_v20, %v14621_v3  ;;  %v14624_v20 = vld [vmem:[#allocation154_spill] sm:$0xff] }
 0x8f1   : > { %v5652_v16 = vadd.f32 %v5629_v55, %v5368_v13  ;;  %v5832_v49 = vrot.slane %v5814_v50, 7  ;;  %v3396_v54 = vmul.f32 %v3380_v53, %v14622_v21  ;;  %v5571_v18 = vadd.f32 %v5547_v10, %v12915_v58  ;;  %5469 = vrot.lane.b32.xlu1 %v11985_v34, %s7897_s16  ;;  %v14625_v55 = vld [vmem:[#allocation117_spill] sm:$0xff]  ;;  %v14629_v50 = vld [vmem:[#allocation96_spill] sm:$0xff] }
 0x8f2   : > { %v13037_v5 = vsel %vm3470_vm2, %v13870_v28, %v13871_v63  ;;  %v13041_v25 = vadd.f32 %v6275_v61, %v6015_v57  ;;  %v5831_v47 = vrot.slane %v5813_v62, 7  ;;  %v5485_v3 = vmul.f32 %v14624_v20, %v14623_v51  ;;  %5799 = vrot.lane.b32.xlu0 %v14584_v52, %s7897_s16  ;;  %v14626_v62 = vld [vmem:[#allocation51_spill] sm:$0xff]  ;;  %v3445_v34 = vpop.permute.xlu1 %3444 }
 0x8f3   : > { %v5572_v13 = vadd.f32 %v5549_v29, %v12917_v37  ;;  %v13053_v58 = vadd.f32 %v3396_v54, %v14625_v55  ;;  %v5209_v10 = vadd.f32 %v5201_v31, %v12847_v42  ;;  %v6116_v57 = vrot.slane %v6098_v38, 7  ;;  %v3443_v63 = vpop.permute.xlu0 %3442  ;;  %v14628_v37 = vld [vmem:[#allocation146_spill] sm:$0xff] }
 0x8f4   : > { %v6115_v61 = vrot.slane %v6097_v24, 7  ;;  %v14627_v20 = vrot.slane %v14626_v62, 6  ;;  %v5833_v22 = vsel %vm3470_vm2, %v5831_v47, %v5832_v49  ;;  %v13062_v29 = vadd.f32 %v14628_v37, %v5652_v16  ;;  %v14632_v16 = vld [vmem:[#allocation48_spill] sm:$0xff] }
 0x8f5   : > { %v3461_v53 = vmul.f32 %v3445_v34, %v14629_v50  ;;  %v3460_v54 = vmul.f32 %v3443_v63, %v14629_v50  ;;  %v5855_v55 = vadd.f32 %v5831_v47, %v5571_v18  ;;  %v5857_v42 = vadd.f32 %v5832_v49, %v12929_v43  ;;  %6081 = vrot.lane.b32.xlu1 %v12007_v35, %s7898_s22  ;;  %v14634_v34 = vld [vmem:[#allocation63_spill] sm:$0xff] }
 0x8f6   : > { %v13058_v28 = vadd.f32 %v14627_v20, %v5651_v46  ;;  %v13067_v31 = vadd.f32 %v5485_v3, %v5209_v10  ;;  %6083 = vrot.lane.b32.xlu0 %v14602_v12, %s7898_s22  ;;  %v14630_v46 = vrot.slane %v13022_v26, 1  ;;  %v14631_v24 = vrot.slane %v13020_v60, 1  ;;  %v3547_v47 = vpop.permute.xlu1 %3546  ;;  %v14633_v10 = vld [vmem:[#allocation61_spill] sm:$0xff] }
 0x8f7   : > { %v6178_v63 = vmul.f32 %v12756_v19, %v14632_v16  ;;  %v3481_v18 = vrot.slane %v3461_v53, 7  ;;  %v3480_v43 = vrot.slane %v3460_v54, 7  ;;  %v5856_v3 = vadd.f32 %v5833_v22, %v5572_v13  ;;  %v3545_v50 = vpop.permute.xlu0 %3544  ;;  %v14635_v19 = vld [vmem:[#allocation97_spill] sm:$0xff]  ;;  %v14636_v13 = vld [vmem:[#allocation64_spill] sm:$0xff] }
 0x8f8   : > { %v13078_v38 = vsel %vm3344_vm14, %v14631_v24, %v14630_v46  ;;  %v13082_v49 = vadd.f32 %v6116_v57, %v5857_v42  ;;  %v6117_v35 = vsel %vm3470_vm2, %v6115_v61, %v6116_v57  ;;  %v5202_v12 = vmul.f32 %v12785_v36, %v14619_v40 }
 0x8f9   : > { %v13088_v62 = vadd.f32 %v3481_v18, %v14633_v10  ;;  %v3482_v20 = vsel %vm3470_vm2, %v3480_v43, %v3481_v18  ;;  %v13092_v37 = vadd.f32 %v3480_v43, %v14634_v34  ;;  %v3563_v53 = vmul.f32 %v3547_v47, %v14635_v19  ;;  %6161 = vrot.lane.b32.xlu1 %v12018_v4, %s7898_s22  ;;  %v14637_v18 = vld [vmem:[#allocation53_spill] sm:$0xff]  ;;  %v14638_v34 = vld [vmem:[#allocation62_spill] sm:$0xff] }
 0x8fa   : > { %v6177_v22 = vmul.f32 %v12758_v39, %v14632_v16  ;;  %v13098_v57 = vadd.f32 %v3482_v20, %v14636_v13  ;;  %v3562_v36 = vmul.f32 %v3545_v50, %v14635_v19  ;;  %6163 = vrot.lane.b32.xlu0 %v12015_v0, %s7898_s22  ;;  %v13105_v54 = vadd.f32 %v6115_v61, %v5855_v55  ;;  %v3648_v10 = vpop.permute.xlu1 %3647  ;;  %v14639_v55 = vld [vmem:[#allocation98_spill] sm:$0xff]  ;;  %v14640_v19 = vld [vmem:[#allocation200_spill] sm:$0xff] }
 0x8fb   : > { %v13107_v42 = vadd.f32 %v6117_v35, %v5856_v3  ;;  %v6196_v46 = vrot.slane %v6178_v63, 6  ;;  %v3583_v24 = vrot.slane %v3563_v53, 6  ;;  %v5769_v39 = vmul.f32 %v12783_v32, %v14637_v18  ;;  %v3646_v20 = vpop.permute.xlu0 %3645 }
 0x8fc   : > { %v5210_v43 = vadd.f32 %v5202_v12, %v12850_v44  ;;  %v3395_v47 = vmul.f32 %v3378_v14, %v14622_v21  ;;  %v3582_v50 = vrot.slane %v3562_v36, 6  ;;  %v5486_v4 = vmul.f32 %v12807_v17, %v14623_v51  ;;  %v14642_v14 = vld [vmem:[#allocation65_spill] sm:$0xff]  ;;  %v14643_v17 = vld [vmem:[#allocation66_spill] sm:$0xff] }
 0x8fd   : > { %v3608_v61 = vadd.f32 %v3583_v24, %v14638_v34  ;;  %v3664_v3 = vmul.f32 %v3648_v10, %v14639_v55  ;;  %v3663_v63 = vmul.f32 %v3646_v20, %v14639_v55  ;;  %v6195_v35 = vrot.slane %v6177_v22, 6  ;;  %5187 = vrot.lane.b32.xlu1 %v12015_v0, %s7894_s17  ;;  %v14646_v20 = vld [vmem:[#allocation138_spill] sm:$0xff]  ;;  %s7900_s17 = smov 106  }
 0x8fe   : > { %v14641_v32 = vrot.slane %v12920_v33, 5  ;;  %v3584_v44 = vsel %vm3572_vm1, %v3582_v50, %v3583_v24  ;;  %v3606_v21 = vadd.f32 %v3582_v50, %v14642_v14  ;;  %5753 = vrot.lane.b32.xlu0 %v12027_v11, %s7897_s16  ;;  %v14644_v22 = vrot.slane %v12970_v56, 6  ;;  %v14645_v24 = vld [vmem:[#allocation201_spill] sm:$0xff]  ;;  %v3748_v0 = vpop.permute.xlu1 %3747  ;;  %v14649_v14 = vld [vmem:[#allocation54_spill] sm:$0xff] }
 0x8ff   : > { %v3607_v12 = vadd.f32 %v3584_v44, %v14643_v17  ;;  %v3683_v13 = vrot.slane %v3664_v3, 5  ;;  %v3682_v36 = vrot.slane %v3663_v63, 5  ;;  %v5770_v33 = vmul.f32 %v12826_v7, %v14637_v18  ;;  %v3746_v55 = vpop.permute.xlu0 %3745  ;;  %v14648_v63 = vld [vmem:[#allocation100_spill] sm:$0xff] }
 0x900   : > { %v3333_v53 = vadd.f32 %v14641_v32, %v14640_v19  ;;  %v13130_v10 = vadd.f32 %v14644_v22, %v3608_v61  ;;  %v3334_v50 = vadd.f32 %v12957_v23, %v14645_v24  ;;  %v3403_v34 = vadd.f32 %v3395_v47, %v14646_v20 }
 0x901   : > { %v14647_v11 = vrot.slane %v12947_v30, 6  ;;  %v3708_v3 = vadd.f32 %v3683_v13, %v12960_v9  ;;  %v3684_v56 = vsel %vm2900_vm13, %v3682_v36, %v3683_v13  ;;  %v3764_v32 = vmul.f32 %v3748_v0, %v14648_v63  ;;  %6037 = vrot.lane.b32.xlu1 %v11996_v27, %s7898_s22  ;;  %v14654_v0 = vld [vmem:[#allocation151_spill] sm:$0xff] }
 0x902   : > { %v13143_v61 = vadd.f32 %v3682_v36, %v3333_v53  ;;  %v6419_v7 = vrot.slane %v13041_v25, 1  ;;  %v13147_v44 = vadd.f32 %v3684_v56, %v3334_v50  ;;  %v3763_v23 = vmul.f32 %v3746_v55, %v14648_v63  ;;  %5471 = vrot.lane.b32.xlu0 %v11955_v48, %s7897_s16  ;;  %v3812_v48 = vpop.permute.xlu1 %3811  ;;  %v14657_v63 = vld [vmem:[#allocation153_spill] sm:$0xff] }
 0x903   : > { %v13139_v19 = vadd.f32 %v14647_v11, %v3606_v21  ;;  %v13155_v30 = vadd.f32 %v13001_v15, %v3607_v12  ;;  %v6221_v9 = vadd.f32 %v6196_v46, %v12987_v2  ;;  %v6197_v47 = vsel %vm3572_vm1, %v6195_v35, %v6196_v46  ;;  %v14650_v21 = vld [vmem:[#allocation156_spill] sm:$0xff]  ;;  %v3810_v22 = vpop.permute.xlu0 %3809 }
 0x904   : > { %v6219_v53 = vadd.f32 %v6195_v35, %v13058_v28  ;;  %v3772_v25 = vadd.f32 %v3764_v32, %v13053_v58  ;;  %v6053_v17 = vmul.f32 %v14650_v21, %v14649_v14  ;;  %v5494_v13 = vadd.f32 %v5486_v4, %v5210_v43  ;;  %v14652_v12 = vld [vmem:[#allocation104_spill] sm:$0xff] }
 0x905   : > { %v6054_v27 = vmul.f32 %v12842_v59, %v14649_v14  ;;  %v3771_v36 = vadd.f32 %v3763_v23, %v3403_v34  ;;  %v6374_v15 = vrot.slane %v13082_v49, 1  ;;  %v14651_v2 = vrot.slane %v13020_v60, 1  ;;  %6321 = vrot.lane.b32.xlu1 %v12049_v8, %s7898_s22  ;;  %v14659_v23 = vld [vmem:[#allocation107_spill] sm:$0xff] }
 0x906   : > { %v3828_v28 = vmul.f32 %v3812_v48, %v14652_v12  ;;  %v3827_v58 = vmul.f32 %v3810_v22, %v14652_v12  ;;  %v6371_v35 = vrot.slane %v13105_v54, 1  ;;  %v6372_v43 = vrot.slane %v13107_v42, 1  ;;  %5755 = vrot.lane.b32.xlu0 %v12021_v6, %s7897_s16  ;;  %v14655_v42 = vld [vmem:[#allocation137_spill] sm:$0xff] }
 0x907   : > { %v6421_v46 = vsel %vm3344_vm14, %v6419_v7, %v14651_v2  ;;  %v5777_v4 = vadd.f32 %v5769_v39, %v13067_v31  ;;  %v5778_v59 = vadd.f32 %v5770_v33, %v5494_v13  ;;  %v14653_v60 = vrot.slane %v13022_v26, 1  ;;  %v3972_v39 = vpop.permute.xlu1 %3971  ;;  %v3970_v33 = vpop.permute.xlu0 %3969  ;;  %v14656_v26 = vld [vmem:[#allocation105_spill] sm:$0xff] }
 0x908   : > { %v6220_v24 = vadd.f32 %v6197_v47, %v13062_v29  ;;  %v3847_v50 = vrot.slane %v3828_v28, 7  ;;  %v3846_v20 = vrot.slane %v3827_v58, 7  ;;  %v6447_v34 = vadd.f32 %v6421_v46, %v6219_v53  ;;  %v14660_v47 = vld [vmem:[#allocation50_spill] sm:$0xff] }
 0x909   : > { %v6449_v49 = vadd.f32 %v14653_v60, %v6221_v9  ;;  %v6061_v54 = vadd.f32 %v6053_v17, %v5777_v4  ;;  %v6337_v55 = vmul.f32 %v14655_v42, %v14654_v0  ;;  %v6062_v31 = vadd.f32 %v6054_v27, %v5778_v59  ;;  %6323 = vrot.lane.b32.xlu1 %v14584_v52, %s7898_s22  ;;  %v14664_v60 = vld [vmem:[#allocation56_spill] sm:$0xff] }
 0x90a   : > { %v3872_v8 = vadd.f32 %v3847_v50, %v13088_v62  ;;  %v3848_v11 = vsel %vm3470_vm2, %v3846_v20, %v3847_v50  ;;  %v3870_v6 = vadd.f32 %v3846_v20, %v13092_v37  ;;  %v3988_v56 = vmul.f32 %v3972_v39, %v14656_v26  ;;  %6039 = vrot.lane.b32.xlu0 %v11988_v45, %s7898_s22  ;;  %v14658_v62 = vld [vmem:[#allocation68_spill] sm:$0xff]  ;;  %v14661_v37 = vld [vmem:[#allocation70_spill] sm:$0xff]  ;;  %v14662_v45 = vld [vmem:[#allocation111_spill] sm:$0xff]  ;;  %s287_s22 = sand.u32 1, %s7876_s25  }
 0x90b   : > { %v6338_v29 = vmul.f32 %v14655_v42, %v14657_v63  ;;  %v3871_v32 = vadd.f32 %v3848_v11, %v13098_v57  ;;  %v3987_v7 = vmul.f32 %v3970_v33, %v14656_v26  ;;  %v6391_v9 = vadd.f32 %v14659_v23, %v14658_v62  ;;  %v4052_v22 = vpop.permute.xlu1 %4051  ;;  %v4050_v2 = vpop.permute.xlu0 %4049  ;;  %v14668_v23 = vld [vmem:[#allocation113_spill] sm:$0xff]  ;;  %s7007_s23 = sshll.u32 %s287_s22, 8  ;;  %s13534_s28 = scalar_lea.sflag [#allocation4], %s287_s22 }
 0x90c   : > { %v6392_v53 = vadd.f32 %v14661_v37, %v14660_v47  ;;  %v6448_v21 = vadd.f32 %v13078_v38, %v6220_v24  ;;  %v4007_v17 = vrot.slane %v3988_v56, 5  ;;  %v6345_v13 = vadd.f32 %v6337_v55, %v6061_v54  ;;  %v14665_v54 = vld [vmem:[#allocation110_spill] sm:$0xff]  ;;  %v14667_v55 = vld [vmem:[#allocation112_spill] sm:$0xff]  ;;  %s13459_s14 = scalar_lea.vmem [#allocation5], %s7007_s23 }
 0x90d   : > { %v6373_v57 = vsel %vm3344_vm14, %v6371_v35, %v6372_v43  ;;  %v6346_v27 = vadd.f32 %v6338_v29, %v6062_v31  ;;  %v4006_v48 = vrot.slane %v3987_v7, 5  ;;  %v6375_v52 = vsel %vm3344_vm14, %v6372_v43, %v6374_v15  ;;  %v14663_v35 = vld [vmem:[#allocation72_spill] sm:$0xff]  ;;  %s6927_s13 = sshll.u32 %s13459_s14, 4  ;;  %s13524_s13 = int_to_ptr.vmem [resolvable:$true] %s6927_s13 }
 0x90e   : > { %v4032_v46 = vadd.f32 %v4007_v17, %v3708_v3  ;;  %v4068_v12 = vmul.f32 %v4052_v22, %v14662_v45  ;;  %v4067_v28 = vmul.f32 %v4050_v2, %v14662_v45  ;;  %v6478_v58 = vrot.slane %v6449_v49, 2  ;;  %6511 = vrot.lane.b32.xlu1 %v14663_v35, %s7900_s17  ;;  %6509 = vrot.lane.b32.xlu0 %v14664_v60, %s7900_s17  ;;  %v14671_v22 = vld [vmem:[#allocation114_spill] sm:$0xff]  ;;  %s7820_s29 = scalar_lea.vmem %s13524_s13, 4096  ;;  %p7827_p11 = scmp.lt.s32.totalorder %s13524_s13, %s7825_s8 }
 0x90f   : > { %v6475_v4 = vrot.slane %v6447_v34, 2  ;;  %v4008_v59 = vsel %vm2900_vm13, %v4006_v48, %v4007_v17  ;;  %v4030_v38 = vadd.f32 %v4006_v48, %v13143_v61  ;;  %v6476_v24 = vrot.slane %v6448_v21, 2  ;;  %v4096_v49 = vpop.permute.xlu1 %4095  ;;  %v4094_v34 = vpop.permute.xlu0 %4093  ;;  %v14666_v61 = vld [vmem:[#allocation136_spill] sm:$0xff]  ;;  %p7821_p8 = scmp.ne.s32.totalorder %s13524_s13, %s7820_s29 }
 0x910   : > { %v4031_v3 = vadd.f32 %v4008_v59, %v13147_v44  ;;  %v4076_v15 = vadd.f32 %v4068_v12, %v3772_v25  ;;  %v4075_v43 = vadd.f32 %v4067_v28, %v3771_v36  ;;  %v6393_v50 = vadd.f32 %v6373_v57, %v6345_v13 }
 0x911   : > { %v6394_v20 = vadd.f32 %v6375_v52, %v6346_v27  ;;  %v13212_v0 = vadd.f32 %v14665_v54, %v6392_v53  ;;  %v13215_v42 = vadd.f32 %v14666_v61, %v6391_v9  ;;  %v4112_v31 = vmul.f32 %v4096_v49, %v14667_v55  ;;  %v6596_v54 = vld [vmem:[#allocation2 + $0x38] sm:$0xff]  ;;  %v6593_v61 = vld [vmem:[#allocation2 + $0x20] sm:$0xff]  ;;  %p7822_p9 = pnand %p7821_p8, %p7983_p5 }
 0x912   : > { %v4111_v39 = vmul.f32 %v4094_v34, %v14667_v55  ;;  %v6477_v44 = vsel %vm3409_vm15, %v6475_v4, %v6476_v24  ;;  %v6479_v33 = vsel %vm3409_vm15, %v6476_v24, %v6478_v58  ;;  %v14669_v21 = vrot.slane %v13004_v1, 7  ;;  %v6594_v34 = vld [vmem:[#allocation2 + $0x28] sm:$0xff]  ;;  %6763 = vmatprep.subr.mxu1 %v6596_v54 }
 0x913   : > { %6515 = vrot.lane.b32.xlu1 %v13212_v0, %s7900_s17  ;;  %6513 = vrot.lane.b32.xlu0 %v13215_v42, %s7900_s17  ;;  %v4131_v25 = vrot.slane %v4112_v31, 7  ;;  %v13225_v11 = vadd.f32 %v6477_v44, %v6393_v50  ;;  %v4176_v26 = vpop.permute.xlu1 %4175  ;;  %v4174_v56 = vpop.permute.xlu0 %4173  ;;  %v13227_v63 = vadd.f32 %v6479_v33, %v6394_v20  ;;  %v14672_v50 = vld [vmem:[#allocation115_spill] sm:$0xff]  ;;  %p7823_p10 = pneg %p7822_p9 }
 0x914   : > { %v4130_v36 = vrot.slane %v4111_v39, 7  ;;  %v4192_v9 = vmul.f32 %v4176_v26, %v14668_v23  ;;  %v4191_v37 = vmul.f32 %v4174_v56, %v14668_v23  ;;  %6650 = vmatprep.subr.mxu0 %v6594_v34  ;;  %v6592_v31 = vld [vmem:[#allocation2 + $0x18] sm:$0xff] }
 0x915   : > { %v4156_v29 = vadd.f32 %v4131_v25, %v3872_v8  ;;  %v14670_v8 = vrot.slane %v12981_v41, 7  ;;  %6651 = vmatpush1.msra.mxu0 %v6593_v61 }
 0x916   : > { %v4132_v7 = vsel %vm3470_vm2, %v4130_v36, %v4131_v25  ;;  %v4154_v62 = vadd.f32 %v4130_v36, %v3870_v6  ;;  %v4211_v53 = vrot.slane %v4192_v9, 6  ;;  %v4210_v6 = vrot.slane %v4191_v37, 6  ;;  %v6591_v25 = vld [vmem:[#allocation2 + $0x10] sm:$0xff] }
 0x917   : > { %v4155_v47 = vadd.f32 %v4132_v7, %v3871_v32  ;;  %6517 = vrot.lane.b32.xlu0 %v13225_v11, %s7900_s17  ;;  %6519 = vrot.lane.b32.xlu1 %v13227_v63, %s7900_s17  ;;  %v13238_v17 = vadd.f32 %v14669_v21, %v4156_v29  ;;  %v4256_v57 = vpop.permute.xlu1 %4255  ;;  %v4254_v32 = vpop.permute.xlu0 %4253 }
 0x918   : > { %v13242_v13 = vadd.f32 %v14670_v8, %v4154_v62  ;;  %v4236_v48 = vadd.f32 %v4211_v53, %v13130_v10  ;;  %v4272_v2 = vmul.f32 %v4256_v57, %v14671_v22  ;;  %v4271_v52 = vmul.f32 %v4254_v32, %v14671_v22  ;;  %v14676_v32 = vld [vmem:[#allocation87_spill] sm:$0xff]  ;;  %v14677_v22 = vld [vmem:[#allocation149_spill] sm:$0xff] }
 0x919   : > { %v13245_v27 = vadd.f32 %v13037_v5, %v4155_v47  ;;  %v4212_v1 = vsel %vm3572_vm1, %v4210_v6, %v4211_v53  ;;  %v4234_v45 = vadd.f32 %v4210_v6, %v13139_v19  ;;  %v6595_v19 = vld [vmem:[#allocation2 + $0x30] sm:$0xff]  ;;  %v14674_v47 = vld [vmem:[#allocation119_spill] sm:$0xff]  ;;  %v14675_v6 = vld [vmem:[#allocation120_spill] sm:$0xff] }
 0x91a   : > { %v4235_v41 = vadd.f32 %v4212_v1, %v13155_v30  ;;  %v4291_v12 = vrot.slane %v4272_v2, 5  ;;  %v4290_v28 = vrot.slane %v4271_v52, 5  ;;  %v6590_v30 = vld [vmem:[#allocation2 + $0x8] sm:$0xff]  ;;  %6764 = vmatpush1.msra.mxu1 %v6595_v19  ;;  %v4919_v2 = vmul.f32 %v14677_v22, %v14676_v32  ;;  %v14678_v1 = vld [vmem:[#allocation122_spill] sm:$0xff] }
 0x91b   : > { %v4336_v58 = vpop.permute.xlu1 %4335  ;;  %v4334_v4 = vpop.permute.xlu0 %4333  ;;  %6652 = vmatprep.subr.mxu0 %v6590_v30  ;;  %6765 = vmatprep.subr.mxu1 %v6592_v31 }
 0x91c   : > { %v4316_v59 = vadd.f32 %v4291_v12, %v4032_v46  ;;  %v4292_v5 = vsel %vm2900_vm13, %v4290_v28, %v4291_v12  ;;  %v4314_v24 = vadd.f32 %v4290_v28, %v4030_v38  ;;  %v4352_v10 = vmul.f32 %v4336_v58, %v14672_v50  ;;  %v6589_v38 = vld [vmem:[#allocation2] sm:$0xff]  ;;  %6766 = vmatpush1.msra.mxu1 %v6591_v25 }
 0x91d   : > { %v4315_v20 = vadd.f32 %v4292_v5, %v4031_v3  ;;  %v4351_v49 = vmul.f32 %v4334_v4, %v14672_v50  ;;  %v14673_v3 = vld [vmem:[#allocation118_spill] sm:$0xff]  ;;  %6653 = vmatpush1.msra.mxu0 %v6589_v38 }
 0x91e   : > { %v13256_v55 = vadd.f32 %v4352_v10, %v4076_v15  ;;  %v7901_v15 = vmov 0.0  }
 0x91f   : > { %v4359_v39 = vadd.f32 %v4351_v49, %v4075_v43  ;;  %v4460_v46 = vpop.permute.xlu1 %4459  ;;  %v4458_v44 = vpop.permute.xlu0 %4457  ;;  %6686 = vmatprep.mubr.f32.mxu0 %v7901_v15  ;;  %6799 = vmatprep.mubr.f32.mxu1 %v7901_v15 }
 0x920   : > { %v4476_v36 = vmul.f32 %v4460_v46, %v14673_v3  ;;  %v4475_v33 = vmul.f32 %v4458_v44, %v14673_v3 }
 0x922   : > { %v4495_v26 = vrot.slane %v4476_v36, 6  ;;  %v4494_v56 = vrot.slane %v4475_v33, 6 }
 0x923   : > { %v4540_v43 = vpop.permute.xlu1 %4539  ;;  %v4538_v29 = vpop.permute.xlu0 %4537 }
 0x924   : > { %v13262_v7 = vadd.f32 %v4495_v26, %v4236_v48  ;;  %v4496_v62 = vsel %vm3572_vm1, %v4494_v56, %v4495_v26  ;;  %v13265_v23 = vadd.f32 %v4494_v56, %v4234_v45  ;;  %v4556_v37 = vmul.f32 %v4540_v43, %v14674_v47 }
 0x925   : > { %v13267_v9 = vadd.f32 %v4496_v62, %v4235_v41  ;;  %v4555_v53 = vmul.f32 %v4538_v29, %v14674_v47  ;;  %v14679_v41 = vld [vmem:[#allocation123_spill] sm:$0xff] }
 0x926   : > { %v4575_v52 = vrot.slane %v4556_v37, 5  ;;  %v14682_v37 = vld [vmem:[#allocation152_spill] sm:$0xff] }
 0x927   : > { %v4822_v21 = vpop.permute.xlu1 %4821  ;;  %v4618_v8 = vpop.permute.xlu0 %4617  ;;  %v4574_v48 = vrot.slane %v4555_v53, 5  ;;  %v14683_v53 = vrot.slane %v14682_v37, 5 }
 0x928   : > { %v4635_v57 = vmul.f32 %v4618_v8, %v14675_v6  ;;  %v4839_v12 = vmul.f32 %v4822_v21, %v14678_v1  ;;  %v4600_v10 = vadd.f32 %v4575_v52, %v4316_v59 }
 0x929   : > { %v4576_v49 = vsel %vm2900_vm13, %v4574_v48, %v4575_v52  ;;  %v4598_v61 = vadd.f32 %v4574_v48, %v4314_v24  ;;  %v14680_v24 = vld [vmem:[#allocation162_spill] sm:$0xff] }
 0x92a   : > { %v4643_v28 = vadd.f32 %v4635_v57, %v4359_v39  ;;  %v4858_v34 = vrot.slane %v4839_v12, 5  ;;  %v4599_v38 = vadd.f32 %v4576_v49, %v4315_v20  ;;  %v14681_v62 = vrot.slane %v14680_v24, 5  ;;  %v14684_v57 = vld [vmem:[#allocation158_spill] sm:$0xff]  ;;  %v14690_v24 = vld [vmem:[#allocation129_spill] sm:$0xff] }
 0x92b   : > { %v5108_v45 = vpop.permute.xlu1 %5107  ;;  %v4824_v58 = vpop.permute.xlu0 %4823 }
 0x92c   : > { %v5124_v4 = vmul.f32 %v5108_v45, %v14679_v41  ;;  %v4840_v5 = vmul.f32 %v4824_v58, %v14678_v1  ;;  %v13277_v50 = vadd.f32 %v4919_v2, %v4643_v28  ;;  %v4882_v25 = vadd.f32 %v4858_v34, %v4598_v61 }
 0x92e   : > { %v4859_v54 = vrot.slane %v4840_v5, 5  ;;  %v5143_v31 = vrot.slane %v5124_v4, 5 }
 0x92f   : > { %v4664_v19 = vpop.permute.xlu1 %4663  ;;  %v5106_v30 = vpop.permute.xlu0 %5105 }
 0x930   : > { %v4860_v46 = vsel %vm2900_vm13, %v4858_v34, %v4859_v54  ;;  %v4884_v39 = vadd.f32 %v4859_v54, %v4600_v10  ;;  %v5123_v44 = vmul.f32 %v5106_v30, %v14679_v41  ;;  %v14685_v41 = vld [vmem:[#allocation125_spill] sm:$0xff]  ;;  %v14686_v10 = vld [vmem:[#allocation126_spill] sm:$0xff]  ;;  %v14687_v30 = vld [vmem:[#allocation128_spill] sm:$0xff] }
 0x931   : > { %v4883_v33 = vadd.f32 %v4860_v46, %v4599_v38  ;;  %v4680_v4 = vmul.f32 %v4664_v19, %v14685_v41  ;;  %v14688_v38 = vld [vmem:[#allocation131_spill] sm:$0xff] }
 0x932   : > { %v5168_v3 = vadd.f32 %v5143_v31, %v4884_v39  ;;  %v5142_v36 = vrot.slane %v5123_v44, 5 }
 0x933   : > { %v4744_v26 = vpop.permute.xlu1 %4743  ;;  %v4662_v59 = vpop.permute.xlu0 %4661  ;;  %v4699_v46 = vrot.slane %v4680_v4, 7 }
 0x934   : > { %v5144_v56 = vsel %vm2900_vm13, %v5142_v36, %v5143_v31  ;;  %v5166_v43 = vadd.f32 %v5142_v36, %v4882_v25  ;;  %v13285_v47 = vadd.f32 %v14681_v62, %v5168_v3  ;;  %v4679_v5 = vmul.f32 %v4662_v59, %v14685_v41 }
 0x935   : > { %v5167_v29 = vadd.f32 %v5144_v56, %v4883_v33  ;;  %v4760_v34 = vmul.f32 %v4744_v26, %v14686_v10  ;;  %v14689_v26 = vld [vmem:[#allocation160_spill] sm:$0xff] }
 0x936   : > { %v13289_v21 = vadd.f32 %v14683_v53, %v5166_v43  ;;  %v4698_v39 = vrot.slane %v4679_v5, 7  ;;  %v13308_v43 = vmul.f32 %v14689_v26, %v14676_v32  ;;  %v14691_v53 = vld [vmem:[#allocation127_spill] sm:$0xff] }
 0x937   : > { %v4948_v8 = vpop.permute.xlu1 %4947  ;;  %v4742_v20 = vpop.permute.xlu0 %4741  ;;  %v13292_v22 = vadd.f32 %v14684_v57, %v5167_v29  ;;  %v4779_v3 = vrot.slane %v4760_v34, 6  ;;  %v13311_v29 = vadd.f32 %v4699_v46, %v13238_v17 }
 0x938   : > { %v4759_v49 = vmul.f32 %v4742_v20, %v14686_v10  ;;  %v4700_v37 = vsel %vm3470_vm2, %v4698_v39, %v4699_v46  ;;  %v13316_v20 = vmul.f32 %v4948_v8, %v14691_v53 }
 0x939   : > { %v13327_v34 = vadd.f32 %v4700_v37, %v13245_v27 }
 0x93a   : > { %v4778_v44 = vrot.slane %v4759_v49, 6  ;;  %v14692_v49 = vld [vmem:[#allocation135_spill] sm:$0xff] }
 0x93b   : > { %v5028_v2 = vpop.permute.xlu1 %5027  ;;  %v4946_v52 = vpop.permute.xlu0 %4945 }
 0x93c   : > { %v5044_v36 = vmul.f32 %v5028_v2, %v14687_v30  ;;  %v4802_v57 = vadd.f32 %v4778_v44, %v13265_v23  ;;  %v4963_v23 = vmul.f32 %v4946_v52, %v14691_v53  ;;  %v14695_v53 = vld [vmem:[#allocation130_spill] sm:$0xff] }
 0x93e   : > { %v5063_v32 = vrot.slane %v5044_v36, 6 }
 0x93f   : > { %v5676_v48 = vpop.permute.xlu1 %5675  ;;  %v5026_v1 = vpop.permute.xlu0 %5025 }
 0x940   : > { %v5043_v31 = vmul.f32 %v5026_v1, %v14687_v30  ;;  %v5692_v62 = vmul.f32 %v5676_v48, %v14690_v24  ;;  %v4804_v1 = vadd.f32 %v4779_v3, %v13262_v7  ;;  %v4780_v48 = vsel %vm3572_vm1, %v4778_v44, %v4779_v3 }
 0x941   : > { %v4983_v30 = vrot.slane %v13316_v20, 7 }
 0x942   : > { %v5062_v59 = vrot.slane %v5043_v31, 6  ;;  %v5711_v7 = vrot.slane %v5692_v62, 5  ;;  %v5088_v44 = vadd.f32 %v5063_v32, %v4804_v1  ;;  %v14696_v1 = vld [vmem:[#allocation163_spill] sm:$0xff] }
 0x943   : > { %v5230_v12 = vpop.permute.xlu1 %5229  ;;  %v5674_v28 = vpop.permute.xlu0 %5673 }
 0x944   : > { %v5691_v41 = vmul.f32 %v5674_v28, %v14690_v24  ;;  %v5086_v5 = vadd.f32 %v5062_v59, %v4802_v57  ;;  %v5064_v28 = vsel %vm3572_vm1, %v5062_v59, %v5063_v32  ;;  %v4982_v24 = vrot.slane %v4963_v23, 7 }
 0x945   : > { %v5736_v59 = vadd.f32 %v5711_v7, %v13285_v47 }
 0x947   : > { %v5310_v45 = vpop.permute.xlu1 %5309  ;;  %v13294_v58 = vpop.permute.xlu0 %5231 }
 0x948   : > { %v5327_v25 = vmul.f32 %v5310_v45, %v14688_v38  ;;  %v13321_v45 = vadd.f32 %v4698_v39, %v13242_v13  ;;  %v4803_v39 = vadd.f32 %v4780_v48, %v13267_v9  ;;  %v5247_v9 = vmul.f32 %v5230_v12, %v14695_v53 }
 0x94a   : > { %v5346_v2 = vrot.slane %v5327_v25, 6  ;;  %v5087_v62 = vadd.f32 %v5064_v28, %v4803_v39 }
 0x94b   : > { %v5958_v54 = vpop.permute.xlu1 %5957  ;;  %v5312_v61 = vpop.permute.xlu0 %5311 }
 0x94c   : > { %v5328_v56 = vmul.f32 %v5312_v61, %v14688_v38  ;;  %v14693_v61 = vld [vmem:[#allocation132_spill] sm:$0xff]  ;;  %v5370_v31 = vadd.f32 %v5346_v2, %v5086_v5  ;;  %v5710_v38 = vrot.slane %v5691_v41, 5  ;;  %v5248_v41 = vmul.f32 %v13294_v58, %v14695_v53 }
 0x94d   : > { %v5975_v25 = vmul.f32 %v5958_v54, %v14693_v61  ;;  %v14697_v54 = vrot.slane %v14696_v1, 6  ;;  %v4984_v58 = vsel %vm3470_vm2, %v4982_v24, %v4983_v30 }
 0x94e   : > { %v5347_v10 = vrot.slane %v5328_v56, 6  ;;  %v14694_v56 = vld [vmem:[#allocation139_spill] sm:$0xff] }
 0x94f   : > { %v13303_v33 = vpop.permute.xlu1 %5513  ;;  %v5960_v19 = vpop.permute.xlu0 %5959 }
 0x950   : > { %v5976_v13 = vmul.f32 %v5960_v19, %v14693_v61  ;;  %v5348_v36 = vsel %vm3572_vm1, %v5346_v2, %v5347_v10  ;;  %v5372_v20 = vadd.f32 %v5347_v10, %v5088_v44  ;;  %v5712_v2 = vsel %vm2900_vm13, %v5710_v38, %v5711_v7  ;;  %v14698_v61 = vld [vmem:[#allocation134_spill] sm:$0xff]  ;;  %v14699_v44 = vld [vmem:[#allocation157_spill] sm:$0xff] }
 0x951   : > { %v5371_v48 = vadd.f32 %v5348_v36, %v5087_v62 }
 0x952   : > { %v5995_v37 = vrot.slane %v5976_v13, 5 }
 0x953   : > { %v5594_v17 = vpop.permute.xlu1 %5593  ;;  %v5516_v4 = vpop.permute.xlu0 %5515 }
 0x954   : > { %v5611_v8 = vmul.f32 %v5594_v17, %v14692_v49  ;;  %v5994_v17 = vrot.slane %v5975_v25, 5  ;;  %v5532_v13 = vmul.f32 %v5516_v4, %v14698_v61  ;;  %v6020_v39 = vadd.f32 %v5995_v37, %v5736_v59  ;;  %v14701_v4 = vld [vmem:[#allocation161_spill] sm:$0xff] }
 0x955   : > { %v14700_v25 = vrot.slane %v14699_v44, 6  ;;  %v5266_v59 = vrot.slane %v5247_v9, 7 }
 0x956   : > { %v5630_v46 = vrot.slane %v5611_v8, 6  ;;  %v5996_v23 = vsel %vm2900_vm13, %v5994_v17, %v5995_v37  ;;  %v5551_v62 = vrot.slane %v5532_v13, 7 }
 0x957   : > { %v6244_v3 = vpop.permute.xlu1 %6243 }
 0x958   : > { %v5596_v27 = vpop.permute.xlu0 %5595  ;;  %v5654_v52 = vadd.f32 %v5630_v46, %v5370_v31  ;;  %v6260_v26 = vmul.f32 %v6244_v3, %v14694_v56  ;;  %v5735_v31 = vadd.f32 %v5712_v2, %v13292_v22  ;;  %v5006_v2 = vadd.f32 %v4982_v24, %v13321_v45 }
 0x959   : > { %v5612_v19 = vmul.f32 %v5596_v27, %v14692_v49  ;;  %v5734_v49 = vadd.f32 %v5710_v38, %v13289_v21 }
 0x95a   : > { %v13342_v32 = vadd.f32 %v14697_v54, %v5654_v52  ;;  %v6279_v8 = vrot.slane %v6260_v26, 5  ;;  %v6019_v26 = vadd.f32 %v5996_v23, %v5735_v31 }
 0x95b   : > { %v5631_v57 = vrot.slane %v5612_v19, 6  ;;  %v13347_v5 = vpop.permute.xlu1 %5185  ;;  %v6018_v21 = vadd.f32 %v5994_v17, %v5734_v49 }
 0x95c   : > { %v6242_v47 = vpop.permute.xlu0 %6241  ;;  %v13365_v19 = vadd.f32 %v6279_v8, %v6020_v39  ;;  %v14703_v39 = vld [vmem:[#allocation69_spill] sm:$0xff] }
 0x95d   : > { %v5632_v12 = vsel %vm3572_vm1, %v5630_v46, %v5631_v57  ;;  %v5656_v10 = vadd.f32 %v5631_v57, %v5372_v20  ;;  %v6259_v7 = vmul.f32 %v6242_v47, %v14694_v56  ;;  %v5531_v46 = vmul.f32 %v13303_v33, %v14698_v61  ;;  %v14702_v57 = vld [vmem:[#allocation94_spill] sm:$0xff] }
 0x95e   : > { %v5655_v28 = vadd.f32 %v5632_v12, %v5371_v48  ;;  %v5267_v56 = vrot.slane %v5248_v41, 7  ;;  %v5008_v20 = vadd.f32 %v4983_v30, %v13311_v29  ;;  %v5007_v41 = vadd.f32 %v4984_v58, %v13327_v34 }
 0x95f   : > { %v13358_v3 = vadd.f32 %v14700_v25, %v5656_v10  ;;  %v6278_v38 = vrot.slane %v6259_v7, 5  ;;  %v5798_v27 = vpop.permute.xlu1 %5797  ;;  %v5550_v17 = vrot.slane %v5531_v46, 7  ;;  %v6427_v49 = vrot.slane %v13365_v19, 1 }
 0x960   : > { %v4620_v36 = vpop.permute.xlu0 %4619  ;;  %v13363_v52 = vadd.f32 %v14701_v4, %v5655_v28  ;;  %v5815_v1 = vmul.f32 %v5798_v27, %v14702_v57  ;;  %v5268_v9 = vsel %vm3470_vm2, %v5266_v59, %v5267_v56  ;;  %v5290_v30 = vadd.f32 %v5266_v59, %v5006_v2 }
 0x961   : > { %v4636_v22 = vmul.f32 %v4620_v36, %v14675_v6  ;;  %v6280_v37 = vsel %vm2900_vm13, %v6278_v38, %v6279_v8  ;;  %v6302_v53 = vadd.f32 %v6278_v38, %v6018_v21  ;;  %v5292_v12 = vadd.f32 %v5267_v56, %v5008_v20 }
 0x962   : > { %v6303_v33 = vadd.f32 %v6280_v37, %v6019_v26  ;;  %v5552_v10 = vsel %vm3470_vm2, %v5550_v17, %v5551_v62  ;;  %v5834_v45 = vrot.slane %v5815_v1, 7  ;;  %v5291_v61 = vadd.f32 %v5268_v9, %v5007_v41 }
 0x963   : > { %v4644_v54 = vadd.f32 %v4636_v22, %v13256_v55  ;;  %v6424_v48 = vrot.slane %v6302_v53, 1  ;;  %v5470_v47 = vpop.permute.xlu1 %5469  ;;  %v5574_v13 = vadd.f32 %v5550_v17, %v5290_v30  ;;  %v5576_v58 = vadd.f32 %v5551_v62, %v5292_v12 }
 0x964   : > { %v5800_v6 = vpop.permute.xlu0 %5799  ;;  %v6425_v8 = vrot.slane %v6303_v33, 1  ;;  %v5575_v21 = vadd.f32 %v5552_v10, %v5291_v61  ;;  %v5203_v36 = vmul.f32 %v13347_v5, %v14619_v40  ;;  %v5487_v1 = vmul.f32 %v5470_v47, %v14623_v51 }
 0x965   : > { %v5816_v29 = vmul.f32 %v5800_v6, %v14702_v57  ;;  %v4928_v55 = vadd.f32 %v13308_v43, %v4644_v54  ;;  %v5858_v46 = vadd.f32 %v5834_v45, %v5574_v13 }
 0x966   : > { %v6426_v34 = vsel %vm3344_vm14, %v6424_v48, %v6425_v8  ;;  %v6428_v23 = vsel %vm3344_vm14, %v6425_v8, %v6427_v49  ;;  %v5211_v17 = vadd.f32 %v5203_v36, %v13277_v50 }
 0x967   : > { %v5835_v24 = vrot.slane %v5816_v29, 7  ;;  %v6082_v28 = vpop.permute.xlu1 %6081 }
 0x968   : > { %v6084_v7 = vpop.permute.xlu0 %6083  ;;  %v6099_v44 = vmul.f32 %v6082_v28, %v14703_v39  ;;  %v5495_v12 = vadd.f32 %v5487_v1, %v5211_v17 }
 0x969   : > { %v5836_v31 = vsel %vm3470_vm2, %v5834_v45, %v5835_v24  ;;  %v6100_v25 = vmul.f32 %v6084_v7, %v14703_v39  ;;  %v5860_v43 = vadd.f32 %v5835_v24, %v5576_v58 }
 0x96a   : > { %v6118_v38 = vrot.slane %v6099_v44, 7  ;;  %v5859_v4 = vadd.f32 %v5836_v31, %v5575_v21 }
 0x96b   : > { %v6119_v27 = vrot.slane %v6100_v25, 7  ;;  %v6162_v56 = vpop.permute.xlu1 %6161 }
 0x96c   : > { %v6164_v26 = vpop.permute.xlu0 %6163  ;;  %v6142_v19 = vadd.f32 %v6118_v38, %v5858_v46  ;;  %v6179_v62 = vmul.f32 %v6162_v56, %v14632_v16 }
 0x96d   : > { %v6120_v22 = vsel %vm3470_vm2, %v6118_v38, %v6119_v27  ;;  %v6144_v59 = vadd.f32 %v6119_v27, %v5860_v43  ;;  %v6180_v53 = vmul.f32 %v6164_v26, %v14632_v16 }
 0x96e   : > { %v6143_v37 = vadd.f32 %v6120_v22, %v5859_v4  ;;  %v6376_v20 = vrot.slane %v6142_v19, 1  ;;  %v6198_v57 = vrot.slane %v6179_v62, 6 }
 0x96f   : > { %v6379_v33 = vrot.slane %v6144_v59, 1  ;;  %v6199_v2 = vrot.slane %v6180_v53, 6  ;;  %v5188_v5 = vpop.permute.xlu1 %5187 }
 0x970   : > { %v6377_v54 = vrot.slane %v6143_v37, 1  ;;  %v5754_v41 = vpop.permute.xlu0 %5753  ;;  %v6222_v48 = vadd.f32 %v6198_v57, %v13342_v32  ;;  %v5204_v45 = vmul.f32 %v5188_v5, %v14619_v40 }
 0x971   : > { %v5771_v6 = vmul.f32 %v5754_v41, %v14637_v18  ;;  %v6200_v9 = vsel %vm3572_vm1, %v6198_v57, %v6199_v2  ;;  %v6224_v8 = vadd.f32 %v6199_v2, %v13358_v3 }
 0x972   : > { %v6378_v16 = vsel %vm3344_vm14, %v6376_v20, %v6377_v54  ;;  %v6380_v29 = vsel %vm3344_vm14, %v6377_v54, %v6379_v33  ;;  %v6450_v30 = vadd.f32 %v6426_v34, %v6222_v48  ;;  %v6223_v47 = vadd.f32 %v6200_v9, %v13363_v52  ;;  %v7793_v52 = vld [vmem:[%s13579_s5 + $0x30] ss:$0 sm:$0xff] }
 0x973   : > { %v6452_v10 = vadd.f32 %v6427_v49, %v6224_v8  ;;  %v6038_v50 = vpop.permute.xlu1 %6037  ;;  %v5779_v7 = vadd.f32 %v5771_v6, %v5495_v12  ;;  %v5212_v31 = vadd.f32 %v5204_v45, %v4928_v55 }
 0x974   : > { %v5472_v24 = vpop.permute.xlu0 %5471  ;;  %v6480_v32 = vrot.slane %v6450_v30, 2  ;;  %v6451_v61 = vadd.f32 %v6428_v23, %v6223_v47  ;;  %v6055_v13 = vmul.f32 %v6038_v50, %v14649_v14 }
 0x975   : > { %v6483_v28 = vrot.slane %v6452_v10, 2  ;;  %v5488_v58 = vmul.f32 %v5472_v24, %v14623_v51 }
 0x976   : > { %v6481_v3 = vrot.slane %v6451_v61, 2  ;;  %v6063_v39 = vadd.f32 %v6055_v13, %v5779_v7 }
 0x977   : > { %v6322_v34 = vpop.permute.xlu1 %6321  ;;  %v5496_v21 = vadd.f32 %v5488_v58, %v5212_v31 }
 0x978   : > { %v5756_v44 = vpop.permute.xlu0 %5755  ;;  %v6339_v40 = vmul.f32 %v7793_v52, %v6322_v34  ;;  %v6482_v49 = vsel %vm3409_vm15, %v6480_v32, %v6481_v3  ;;  %v6484_v25 = vsel %vm3409_vm15, %v6481_v3, %v6483_v28 }
 0x979   : > { %v5772_v23 = vmul.f32 %v5756_v44, %v14637_v18 }
 0x97a   : > { %v6347_v46 = vadd.f32 %v6339_v40, %v6063_v39 }
 0x97b   : > { %v6324_v43 = vpop.permute.xlu1 %6323  ;;  %v5780_v55 = vadd.f32 %v5772_v23, %v5496_v21  ;;  %v14704_v21 = vld [vmem:[#allocation8_spill] sm:$0xff] }
 0x97c   : > { %v6040_v38 = vpop.permute.xlu0 %6039  ;;  %v6395_v51 = vadd.f32 %v6378_v16, %v6347_v46  ;;  %v6340_v4 = vmul.f32 %v7793_v52, %v6324_v43  ;;  %v14705_v43 = vld [vmem:[#allocation9_spill] sm:$0xff] }
 0x97d   : > { %v6056_v27 = vmul.f32 %v6040_v38, %v14649_v14 }
 0x97e   : > { %v13408_v36 = vadd.f32 %v6482_v49, %v6395_v51 }
 0x97f   : > { %v6064_v56 = vadd.f32 %v6056_v27, %v5780_v55 }
 0x980   : > { %v6512_v26 = vpop.permute.xlu1 %6511  ;;  %v6510_v19 = vpop.permute.xlu0 %6509  ;;  %6521 = vrot.lane.b32.xlu0 %v13408_v36, %s7900_s17 }
 0x981   : > { %v6348_v22 = vadd.f32 %v6340_v4, %v6064_v56  ;;  %v6534_v59 = vadd.f32 %v6512_v26, %v14663_v35  ;;  %v6533_v18 = vadd.f32 %v6510_v19, %v14664_v60  ;;  %v14708_v19 = vld [vmem:[#allocation12_spill] sm:$0xff] }
 0x983   : > { %v6396_v62 = vadd.f32 %v6380_v29, %v6348_v22  ;;  %v7017_v37 = vmul.f32 -1.442695, %v6534_v59  ;;  %v7016_v53 = vmul.f32 -1.442695, %v6533_v18  ;;  %v14709_v59 = vld [vmem:[#allocation13_spill] sm:$0xff] }
 0x985   : > { %v6516_v20 = vpop.permute.xlu1 %6515  ;;  %v6514_v33 = vpop.permute.xlu0 %6513  ;;  %7760 = vpow2.f32 %v7017_v37  ;;  %v13415_v57 = vadd.f32 %v6484_v25, %v6396_v62 }
 0x986   : > { %v6535_v14 = vadd.f32 %v6514_v33, %v13215_v42  ;;  %7762 = vpow2.f32 %v7016_v53  ;;  %v6536_v1 = vadd.f32 %v6516_v20, %v13212_v0  ;;  %v14710_v53 = vld [vmem:[#allocation14_spill] sm:$0xff]  ;;  %v14711_v33 = vld [vmem:[#allocation15_spill] sm:$0xff] }
 0x987   : > { %6523 = vrot.lane.b32.xlu1 %v13415_v57, %s7900_s17  ;;  %s7826_s17 = scalar_lea.vmem %s7825_s8, 8192 }
 0x988   : > { %v7018_v54 = vmul.f32 -1.442695, %v6535_v14  ;;  %v7019_v60 = vmul.f32 -1.442695, %v6536_v1  ;;  %p7828_p12 = scmp.lt.s32.totalorder %s7826_s17, %s7820_s29 }
 0x989   : > { %v6518_v35 = vpop.permute.xlu0 %6517  ;;  %v6520_v5 = vpop.permute.xlu1 %6519 }
 0x98a   : > { %7764 = vpow2.f32 %v7018_v54  ;;  %v6537_v2 = vadd.f32 %v6518_v35, %v13225_v11  ;;  %v6538_v41 = vadd.f32 %v6520_v5, %v13227_v63  ;;  %v14712_v54 = vld [vmem:[#allocation16_spill] sm:$0xff]  ;;  %p7829_p13 = por %p7828_p12, %p7827_p11 }
 0x98b   : > { %7766 = vpow2.f32 %v7019_v60  ;;  %v14713_v60 = vld [vmem:[#allocation17_spill] sm:$0xff] }
 0x98c   : > { %v7020_v17 = vmul.f32 -1.442695, %v6537_v2  ;;  %v7021_v42 = vmul.f32 -1.442695, %v6538_v41  ;;  %p7830_p0 = pnand %p7829_p13, %p7823_p10 }
 0x98e   : > { %7768 = vpow2.f32 %v7020_v17  ;;  %v14714_v17 = vld [vmem:[#allocation18_spill] sm:$0xff] }
 0x98f   : > { %7770 = vpow2.f32 %v7021_v42 }
 0x992   : > { %v7761_v48 = vpop.eup %7760 }
 0x993   : > { %v7763_v6 = vpop.eup %7762  ;;  %v6566_v0 = vadd.f32 1.0, %v7761_v48  ;;  %v14715_v48 = vld [vmem:[#allocation19_spill] sm:$0xff] }
 0x994   : > { %v6565_v9 = vadd.f32 1.0, %v7763_v6 }
 0x996   : > { %7772 = vrcp.f32 %v6565_v9 }
 0x997   : > { %v7765_v8 = vpop.eup %7764  ;;  %7774 = vrcp.f32 %v6566_v0 }
 0x998   : > { %v6567_v16 = vadd.f32 1.0, %v7765_v8  ;;  %v7767_v29 = vpop.eup %7766  ;;  %v14716_v8 = vld [vmem:[#allocation20_spill] sm:$0xff] }
 0x999   : > { %v6568_v30 = vadd.f32 1.0, %v7767_v29  ;;  %v14717_v29 = vld [vmem:[#allocation21_spill] sm:$0xff] }
 0x99a   : > { %7776 = vrcp.f32 %v6567_v16 }
 0x99b   : > { %v7769_v11 = vpop.eup %7768  ;;  %7778 = vrcp.f32 %v6568_v30 }
 0x99c   : > { %v7771_v47 = vpop.eup %7770  ;;  %v6569_v63 = vadd.f32 1.0, %v7769_v11 }
 0x99d   : > { %v6570_v10 = vadd.f32 1.0, %v7771_v47 }
 0x99e   : > { %7780 = vrcp.f32 %v6569_v63  ;;  %v14718_v63 = vld [vmem:[#allocation22_spill] sm:$0xff] }
 0x99f   : > { %7782 = vrcp.f32 %v6570_v10  ;;  %v14719_v10 = vld [vmem:[#allocation23_spill] sm:$0xff] }
 0x9a3   : > { %v7773_v12 = vpop.eup %7772 }
 0x9a4   : > { %7024 = vmatmul.mubr.msk.f32.vlgmr.msra.gmra.mxu0 %vm6597_vm3, %v7773_v12  ;;  %7032 = vmatmul.mubr.msk.f32.vlgmr.msra.gmra.mxu1 %vm6597_vm3, %v7773_v12  ;;  %v7775_v45 = vpop.eup %7774 }
 0x9a5   : > { %6692 = vmatprep.mubr.f32.mxu0 %v7901_v15  ;;  %6805 = vmatprep.mubr.f32.mxu1 %v7901_v15 }
 0x9a7   : > { %v7777_v50 = vpop.eup %7776 }
 0x9a8   : > { %7025 = vmatmul.mubr.msk.f32.gmra.mxu0 %vm6597_vm3, %v7775_v45  ;;  %7033 = vmatmul.mubr.msk.f32.gmra.mxu1 %vm6597_vm3, %v7775_v45  ;;  %v7779_v24 = vpop.eup %7778 }
 0x9a9   : > { %6698 = vmatprep.mubr.f32.mxu0 %v7901_v15  ;;  %6811 = vmatprep.mubr.f32.mxu1 %v7901_v15 }
 0x9ab   : > { %v7781_v32 = vpop.eup %7780 }
 0x9ac   : > { %7026 = vmatmul.mubr.msk.f32.gmra.mxu0 %vm6597_vm3, %v7777_v50  ;;  %7034 = vmatmul.mubr.msk.f32.gmra.mxu1 %vm6597_vm3, %v7777_v50  ;;  %v7783_v61 = vpop.eup %7782 }
 0x9ad   : > { %6704 = vmatprep.mubr.f32.mxu0 %v7901_v15  ;;  %6817 = vmatprep.mubr.f32.mxu1 %v7901_v15 }
 0x9b0   : > { %7027 = vmatmul.mubr.msk.f32.gmra.mxu0 %vm6597_vm3, %v7779_v24  ;;  %7035 = vmatmul.mubr.msk.f32.gmra.mxu1 %vm6597_vm3, %v7779_v24 }
 0x9b1   : > { %6710 = vmatprep.mubr.f32.mxu0 %v7901_v15  ;;  %6823 = vmatprep.mubr.f32.mxu1 %v7901_v15 }
 0x9b4   : > { %7028 = vmatmul.mubr.msk.f32.gmra.mxu0 %vm6597_vm3, %v7781_v32  ;;  %7036 = vmatmul.mubr.msk.f32.gmra.mxu1 %vm6597_vm3, %v7781_v32  ;;  %v14720_v32 = vld [vmem:[#allocation24_spill] sm:$0xff] }
 0x9b5   : > { %6716 = vmatprep.mubr.f32.mxu0 %v7901_v15  ;;  %6829 = vmatprep.mubr.f32.mxu1 %v7901_v15 }
 0x9b8   : > { %7029 = vmatmul.mubr.msk.f32.gmra.mxu0 %vm6597_vm3, %v7783_v61  ;;  %7037 = vmatmul.mubr.msk.f32.gmra.mxu1 %vm6597_vm3, %v7783_v61 }
 0x9b9   : > { %6722 = vmatprep.mubr.f32.mxu0 %v7901_v15  ;;  %6835 = vmatprep.mubr.f32.mxu1 %v7901_v15 }
 0x9f2   : > { %v6522_v13 = vpop.permute.xlu0 %6521 }
 0x9f3   : > { %v6539_v28 = vadd.f32 %v6522_v13, %v13408_v36  ;;  %v14707_v36 = vld [vmem:[#allocation11_spill] sm:$0xff]  ;;  %v14721_v13 = vld [vmem:[#allocation25_spill] sm:$0xff] }
 0x9f5   : > { %v7022_v7 = vmul.f32 -1.442695, %v6539_v28 }
 0x9f7   : > { %7784 = vpow2.f32 %v7022_v7 }
 0x9f9   : > { %v6524_v3 = vpop.permute.xlu1 %6523 }
 0x9fa   : > { %v6540_v58 = vadd.f32 %v6524_v3, %v13415_v57 }
 0x9fc   : > { %v7023_v31 = vmul.f32 -1.442695, %v6540_v58  ;;  %v14722_v58 = vld [vmem:[#allocation26_spill] sm:$0xff] }
 0x9fe   : > { %7786 = vpow2.f32 %v7023_v31 }
 0xa04   : > { %v7785_v39 = vpop.eup %7784 }
 0xa05   : > { %v6571_v34 = vadd.f32 1.0, %v7785_v39  ;;  %v14723_v39 = vld [vmem:[#allocation27_spill] sm:$0xff] }
 0xa07   : > { %7788 = vrcp.f32 %v6571_v34 }
 0xa0b   : > { %v7787_v44 = vpop.eup %7786 }
 0xa0c   : > { %v6572_v52 = vadd.f32 1.0, %v7787_v44 }
 0xa0e   : > { %7790 = vrcp.f32 %v6572_v52 }
 0xa14   : > { %v7789_v40 = vpop.eup %7788 }
 0xa15   : > { %7030 = vmatmul.mubr.msk.f32.gmra.mxu0 %vm6597_vm3, %v7789_v40  ;;  %7038 = vmatmul.mubr.msk.f32.gmra.mxu1 %vm6597_vm3, %v7789_v40  ;;  %v14724_v40 = vld [vmem:[#allocation28_spill] sm:$0xff] }
 0xa16   : > { %6728 = vmatprep.mubr.f32.mxu0 %v7901_v15  ;;  %6841 = vmatprep.mubr.f32.mxu1 %v7901_v15  ;;  %v14706_v15 = vld [vmem:[#allocation10_spill] sm:$0xff] }
 0xa1b   : > { %v7791_v49 = vpop.eup %7790 }
 0xa1c   : > { %7031 = vmatmul.mubr.msk.f32.gmra.mxu0 %vm6597_vm3, %v7791_v49  ;;  %7039 = vmatmul.mubr.msk.f32.gmra.mxu1 %vm6597_vm3, %v7791_v49 }
 0xa64   : > { %v6688_v23 = vpop.f32.mrf.mxu0  ;;  %v6801_v25 = vpop.f32.mrf.mxu1 }
 0xa65   : > { %v6848_v46 = vmul.f32 %v6688_v23, %v14704_v21  ;;  %v6850_v38 = vmul.f32 %v6801_v25, %v14705_v43  ;;  %v14725_v23 = vld [vmem:[#allocation29_spill] sm:$0xff]  ;;  %v14726_v43 = vld [vmem:[#allocation30_spill] sm:$0xff] }
 0xa66   : > { %v6690_v51 = vpop.f32.mrf.mxu0  ;;  %v6803_v55 = vpop.f32.mrf.mxu1 }
 0xa67   : > { %6880 = vst [vmem:[%s13459_s14] sm:$0xff] %v6848_v46  ;;  %6882 = vst [vmem:[%s13459_s14 + $0x10] sm:$0xff] %v6850_v38  ;;  %v6849_v27 = vmul.f32 %v6690_v51, %v14706_v15  ;;  %v6851_v4 = vmul.f32 %v6803_v55, %v14707_v36  ;;  %v14727_v51 = vld [vmem:[#allocation31_spill] sm:$0xff]  ;;  %v14728_v36 = vld [vmem:[#allocation32_spill] sm:$0xff] }
 0xa68   : > { %v6694_v56 = vpop.f32.mrf.mxu0  ;;  %v6807_v26 = vpop.f32.mrf.mxu1 }
 0xa69   : > { %6881 = vst [vmem:[%s13459_s14 + $0x8] sm:$0xff] %v6849_v27  ;;  %6883 = vst [vmem:[%s13459_s14 + $0x18] sm:$0xff] %v6851_v4  ;;  %v6852_v22 = vmul.f32 %v6694_v56, %v14708_v19  ;;  %v6854_v18 = vmul.f32 %v6807_v26, %v14709_v59  ;;  %v14729_v56 = vld [vmem:[#allocation33_spill] sm:$0xff]  ;;  %v14730_v59 = vld [vmem:[#allocation34_spill] sm:$0xff] }
 0xa6a   : > { %v6696_v62 = vpop.f32.mrf.mxu0  ;;  %v6809_v37 = vpop.f32.mrf.mxu1 }
 0xa6b   : > { %6884 = vst [vmem:[%s13459_s14 + $0x20] sm:$0xff] %v6852_v22  ;;  %6886 = vst [vmem:[%s13459_s14 + $0x30] sm:$0xff] %v6854_v18  ;;  %v6853_v20 = vmul.f32 %v6696_v62, %v14710_v53  ;;  %v6855_v14 = vmul.f32 %v6809_v37, %v14711_v33  ;;  %v14731_v62 = vld [vmem:[#allocation35_spill] sm:$0xff]  ;;  %v14732_v33 = vld [vmem:[#allocation36_spill] sm:$0xff] }
 0xa6c   : > { %v6700_v57 = vpop.f32.mrf.mxu0  ;;  %v6813_v1 = vpop.f32.mrf.mxu1 }
 0xa6d   : > { %6885 = vst [vmem:[%s13459_s14 + $0x28] sm:$0xff] %v6853_v20  ;;  %6887 = vst [vmem:[%s13459_s14 + $0x38] sm:$0xff] %v6855_v14  ;;  %v6856_v35 = vmul.f32 %v6700_v57, %v14712_v54  ;;  %v6858_v2 = vmul.f32 %v6813_v1, %v14713_v60  ;;  %v14733_v57 = vld [vmem:[#allocation37_spill] sm:$0xff]  ;;  %v14734_v60 = vld [vmem:[#allocation38_spill] sm:$0xff] }
 0xa6e   : > { %v6702_v5 = vpop.f32.mrf.mxu0  ;;  %v6815_v41 = vpop.f32.mrf.mxu1 }
 0xa6f   : > { %6888 = vst [vmem:[%s13459_s14 + $0x40] sm:$0xff] %v6856_v35  ;;  %6890 = vst [vmem:[%s13459_s14 + $0x50] sm:$0xff] %v6858_v2  ;;  %v6857_v42 = vmul.f32 %v6702_v5, %v14714_v17  ;;  %v6859_v6 = vmul.f32 %v6815_v41, %v14715_v48  ;;  %v14735_v5 = vld [vmem:[#allocation39_spill] sm:$0xff] }
 0xa70   : > { %v6706_v9 = vpop.f32.mrf.mxu0  ;;  %v6819_v0 = vpop.f32.mrf.mxu1 }
 0xa71   : > { %6889 = vst [vmem:[%s13459_s14 + $0x48] sm:$0xff] %v6857_v42  ;;  %6891 = vst [vmem:[%s13459_s14 + $0x58] sm:$0xff] %v6859_v6  ;;  %v6860_v16 = vmul.f32 %v6706_v9, %v14716_v8  ;;  %v6862_v30 = vmul.f32 %v6819_v0, %v14717_v29 }
 0xa72   : > { %v6708_v11 = vpop.f32.mrf.mxu0  ;;  %v6821_v47 = vpop.f32.mrf.mxu1 }
 0xa73   : > { %6892 = vst [vmem:[%s13459_s14 + $0x60] sm:$0xff] %v6860_v16  ;;  %6894 = vst [vmem:[%s13459_s14 + $0x70] sm:$0xff] %v6862_v30  ;;  %v6861_v12 = vmul.f32 %v6708_v11, %v14718_v63  ;;  %v6863_v45 = vmul.f32 %v6821_v47, %v14719_v10 }
 0xa74   : > { %v6712_v50 = vpop.f32.mrf.mxu0  ;;  %v6825_v24 = vpop.f32.mrf.mxu1 }
 0xa75   : > { %6893 = vst [vmem:[%s13459_s14 + $0x68] sm:$0xff] %v6861_v12  ;;  %6895 = vst [vmem:[%s13459_s14 + $0x78] sm:$0xff] %v6863_v45  ;;  %v6864_v61 = vmul.f32 %v6712_v50, %v14720_v32  ;;  %v6866_v28 = vmul.f32 %v6825_v24, %v14721_v13 }
 0xa76   : > { %v6714_v7 = vpop.f32.mrf.mxu0  ;;  %v6827_v3 = vpop.f32.mrf.mxu1 }
 0xa77   : > { %6896 = vst [vmem:[%s13459_s14 + $0x80] sm:$0xff] %v6864_v61  ;;  %6898 = vst [vmem:[%s13459_s14 + $0x90] sm:$0xff] %v6866_v28  ;;  %v6865_v31 = vmul.f32 %v6714_v7, %v14722_v58  ;;  %v6867_v34 = vmul.f32 %v6827_v3, %v14723_v39 }
 0xa78   : > { %v6718_v44 = vpop.f32.mrf.mxu0  ;;  %v6831_v52 = vpop.f32.mrf.mxu1 }
 0xa79   : > { %6897 = vst [vmem:[%s13459_s14 + $0x88] sm:$0xff] %v6865_v31  ;;  %6899 = vst [vmem:[%s13459_s14 + $0x98] sm:$0xff] %v6867_v34  ;;  %v6868_v49 = vmul.f32 %v6718_v44, %v14724_v40  ;;  %v6870_v25 = vmul.f32 %v6831_v52, %v14725_v23 }
 0xa7a   : > { %v6720_v21 = vpop.f32.mrf.mxu0  ;;  %v6833_v46 = vpop.f32.mrf.mxu1 }
 0xa7b   : > { %6900 = vst [vmem:[%s13459_s14 + $0xa0] sm:$0xff] %v6868_v49  ;;  %6902 = vst [vmem:[%s13459_s14 + $0xb0] sm:$0xff] %v6870_v25  ;;  %v6869_v38 = vmul.f32 %v6720_v21, %v14726_v43  ;;  %v6871_v55 = vmul.f32 %v6833_v46, %v14727_v51 }
 0xa7d   : > { %6901 = vst [vmem:[%s13459_s14 + $0xa8] sm:$0xff] %v6869_v38  ;;  %6903 = vst [vmem:[%s13459_s14 + $0xb8] sm:$0xff] %v6871_v55 }
 0xad5   : > { %v6724_v15 = vpop.f32.mrf.mxu0  ;;  %v6837_v27 = vpop.f32.mrf.mxu1 }
 0xad6   : > { %v6872_v4 = vmul.f32 %v6724_v15, %v14728_v36  ;;  %v6874_v26 = vmul.f32 %v6837_v27, %v14729_v56 }
 0xad7   : > { %v6726_v19 = vpop.f32.mrf.mxu0  ;;  %v6839_v22 = vpop.f32.mrf.mxu1 }
 0xad8   : > { %6904 = vst [vmem:[%s13459_s14 + $0xc0] sm:$0xff] %v6872_v4  ;;  %6906 = vst [vmem:[%s13459_s14 + $0xd0] sm:$0xff] %v6874_v26  ;;  %v6873_v18 = vmul.f32 %v6726_v19, %v14730_v59  ;;  %v6875_v37 = vmul.f32 %v6839_v22, %v14731_v62 }
 0xada   : > { %6905 = vst [vmem:[%s13459_s14 + $0xc8] sm:$0xff] %v6873_v18  ;;  %6907 = vst [vmem:[%s13459_s14 + $0xd8] sm:$0xff] %v6875_v37 }
 0xadc   : > { %v6730_v53 = vpop.f32.mrf.mxu0  ;;  %v6843_v20 = vpop.f32.mrf.mxu1 }
 0xadd   : > { %v6876_v14 = vmul.f32 %v6730_v53, %v14732_v33  ;;  %v6878_v1 = vmul.f32 %v6843_v20, %v14733_v57 }
 0xade   : > { %v6732_v54 = vpop.f32.mrf.mxu0  ;;  %v6845_v35 = vpop.f32.mrf.mxu1 }
 0xadf   : > { %6908 = vst [vmem:[%s13459_s14 + $0xe0] sm:$0xff] %v6876_v14  ;;  %6910 = vst [vmem:[%s13459_s14 + $0xf0] sm:$0xff] %v6878_v1  ;;  %v6877_v2 = vmul.f32 %v6732_v54, %v14734_v60  ;;  %v6879_v41 = vmul.f32 %v6845_v35, %v14735_v5 }
 0xae1   : > { %6909 = vst [vmem:[%s13459_s14 + $0xe8] sm:$0xff] %v6877_v2  ;;  %6911 = vst [vmem:[%s13459_s14 + $0xf8] sm:$0xff] %v6879_v41 }
 0xae2   : > { %7833 = shalt.err (!%p7830_p0)
}
 0xae3   : > { %s7834_s18 = scalar_lea.hbm %s13522_s9, 4096  ;;  %s7838_s23 = scalar_lea.hbm %s13581_s7, 16384 }
 0xae4   : > { %p7835_p1 = scmp.ne.s32.totalorder %s13522_s9, %s7834_s18  ;;  %p7839_p4 = scmp.lt.s32.totalorder %s13522_s9, %s13581_s7 }
 0xae5   : > { %p7840_p7 = scmp.lt.s32.totalorder %s7838_s23, %s7834_s18 }
 0xae6   : > { %p7836_p2 = pnand %p7835_p1, %p7983_p5 }
 0xae7   : > { %p7841_p6 = por %p7840_p7, %p7839_p4 }
 0xae8   : > { %p7837_p3 = pneg %p7836_p2 }
 0xaea   : > { %p7842_p8 = pnand %p7841_p6, %p7837_p3 }
 0xaec   : > { %7845 = shalt.err (!%p7842_p8)
}
 0xaed   : > { %s7903_s19 = smov 512   ;;  %s7904_s20 = smov 32  }
 0xaee   : > { %7277 = dma.vmem_to_hbm [thread:$0]  (%p7983_p5), %s13524_s13, 4096, %s13522_s9, %s13534_s28, %s7903_s19, %s7903_s19, %s7904_s20  }
 0xaef PF: > { %p7289_p9 = scmp.ge.s32.totalorder %s7884_s27, 2  ;;  %s6942_s29 = sand.u32 1, %s7872_s24  }
 0xaf0   : > { %p14736_p10 = scmp.ne.s32.totalorder %s13874_s12, 0  ;;  %s6943_s15 = scalar_lea.sflag [#allocation4], %s6942_s29 }
 0xaf2   : > { %p7284_p11 = pnand %p7289_p9, %p14736_p10 }
 0xaf4   : > { %p7285_p12 = pneg %p7284_p11 }
 0xaf6   : > { %7867 = dma.done.wait (%p7285_p12), %s6943_s15, 4096  }
 0xaf7   : > { %7869 = vsyncadd (%p7285_p12), %s6943_s15, 4294963200  ;;  %p18_p13 = scmp.ge.s32.totalorder %s7970_s30, 6   ;;  %s14737_s24 = smov %s7876_s25 }
 0xaf8   : > { %s14738_s25 = smov %s7880_s26  ;;  %s14739_s26 = smov %s7981_s10 }
 0xaf9   : > { %s14740_s27 = smov %s7970_s30  ;;  %20 = sbr.rel (!%p18_p13) target bundleno = 4 (0x4), region = 88 }
 0xafe   :  { %6948 = vsyncpa [#allocation3], 1 }
 0xaff   :  { %6950 = vsyncpa [#allocation3 + $0x1], 1 }
 0xb00   :  { %6951 = vsyncpa [#allocation4], 1 }
 0xb01   :  { %6953 = vsyncpa [#allocation4 + $0x1], 1 }

</bundles_post_ra>
